<compile_context>
chip_gen: v5e
topology: v5e:2x2
jax: 0.10.0
libtpu: 0.0.40
codegen_flags: <defaults>
</compile_context>

<pallas_src>
import functools

import jax
import jax.numpy as jnp
import numpy as np
from jax.experimental import pallas as pl
from jax.experimental.pallas import tpu as pltpu

_HALO_PAD = 8   # guard rows around the halo'd scratch so +-1 tap slices stay in-bounds


def _round_up(v, k):
    return ((v + k - 1) // k) * k


# ---------------------------------------------------------------------------
# Fused Bottleneck kernel: one (image, row-tile) grid step
# ---------------------------------------------------------------------------
def _bottleneck_kernel(x_ref, xp_ref, xn_ref, w0_ref, b0_ref, w1_ref, b1_ref,
                       o_ref, yh_ref, *, width, add):
    tm = x_ref.shape[0]                     # flattened rows in this tile (TR*W)
    cp_mid = yh_ref.shape[1]
    cdt = yh_ref.dtype                      # compute/storage dtype (f32 or bf16)
    pad = _HALO_PAD
    t = pl.program_id(1)
    n_t = pl.num_programs(1)

    w0 = w0_ref[...]                        # BN scale already folded in
    b0 = b0_ref[...]

    def conv0(xv):                          # 1x1 conv + bias + SiLU (f32 math)
        y = jnp.dot(xv, w0, preferred_element_type=jnp.float32) + b0
        return y * jax.nn.sigmoid(y)        # sigmoid -> EUP slot

    # ---- ConvBlock 0 on the tile rows; cast once to compute dtype, place in
    # ---- the halo'd scratch --------------------------------------------------
    x = x_ref[...]
    yh_ref[pl.ds(pad + width, tm), :] = conv0(x).astype(cdt)

    # Guard rows are only ever read at column-masked positions; zero them anyway.
    yh_ref[pl.ds(0, pad), :] = jnp.zeros((pad, cp_mid), cdt)
    yh_ref[pl.ds(pad + width + tm + width, pad), :] = jnp.zeros((pad, cp_mid), cdt)

    # Halo rows: 1x1 conv recomputed for the single image row above/below the
    # tile; zeroed at image top/bottom (this is the 3x3 conv's zero padding).
    @pl.when(t > 0)
    def _():
        yh_ref[pl.ds(pad, width), :] = conv0(xp_ref[...]).astype(cdt)

    @pl.when(t == 0)
    def _():
        yh_ref[pl.ds(pad, width), :] = jnp.zeros((width, cp_mid), cdt)

    @pl.when(t < n_t - 1)
    def _():
        yh_ref[pl.ds(pad + width + tm, width), :] = conv0(xn_ref[...]).astype(cdt)

    @pl.when(t == n_t - 1)
    def _():
        yh_ref[pl.ds(pad + width + tm, width), :] = jnp.zeros((width, cp_mid), cdt)

    # ---- ConvBlock 1: 3x3 conv (pad=1) as paired-tap accumulated matmuls ----
    # Only the ox = +-1 taps need a (reused) column mask; the oy = +-1 rows are
    # handled entirely by the halo rows above.
    col = jax.lax.broadcasted_iota(jnp.int32, (tm, 1), 0) % width
    not_left = col != 0                     # for ox = -1
    not_right = col != width - 1            # for ox = +1

    def tap(i):
        oy, ox = i // 3 - 1, i % 3 - 1
        s = yh_ref[pl.ds(pad + width + oy * width + ox, tm), :]
        if ox == -1:
            s = jnp.where(not_left, s, 0.0)
        elif ox == 1:
            s = jnp.where(not_right, s, 0.0)
        return s

    acc = None
    for g in ((0, 1), (2, 3), (4, 5), (6, 7), (8,)):
        if len(g) == 2:                     # K = 2*Cp_mid (256-deep on padded 128)
            lhs = jnp.concatenate([tap(g[0]), tap(g[1])], axis=-1)
        else:
            lhs = tap(g[0])
        rhs = w1_ref[pl.ds(g[0] * cp_mid, len(g) * cp_mid), :]
        d = jnp.dot(lhs, rhs, preferred_element_type=jnp.float32)
        acc = d if acc is None else acc + d

    z = acc + b1_ref[...]
    z = z * jax.nn.sigmoid(z)               # SiLU
    if add:                                 # static Python flag -> no dead residual DMA
        # NOTE: on the bf16 path the residual uses the bf16-stored x (documented
        # precision trade-off, consistent with the loose bf16 tolerance).
        z = z + x.astype(jnp.float32)
    o_ref[...] = z.astype(o_ref.dtype)


# ---------------------------------------------------------------------------
# Wrapper: layout plumbing (NCHW <-> NHWC, lane padding, BN folding) + pallas_call
# ---------------------------------------------------------------------------
def bottleneck_forward(x_nchw, params, shortcut=True, *,
                       compute_dtype=jnp.float32, row_budget=1024):
    n, cin, h, w = x_nchw.shape
    cmid = params["w0"].shape[1]
    cout = params["w1"].shape[2]
    add = bool(shortcut and cin == cout)

    if w % 8 != 0:
        raise NotImplementedError(
            "TODO(synk): widths not a multiple of 8 need a padded-row layout")

    cp_in = _round_up(cin, 128)
    cp_mid = _round_up(cmid, 128)
    cp_out = _round_up(cout, 128)
    m = h * w

    # Row tiling: TR whole image rows per grid step (halo = 1 image row).
    divisors = [d for d in range(1, h + 1) if h % d == 0]
    within = [d for d in divisors if d * w <= row_budget]
    tr = max(within) if within else min(divisors)
    n_tiles = h // tr
    tm = tr * w

    # ---- NHWC rows x channels, lanes padded to 128 --------------------------
    x_nhwc = jnp.transpose(x_nchw, (0, 2, 3, 1))
    x2d = x_nhwc.reshape(n * m, cin)
    x2d = jnp.pad(x2d, ((0, 0), (0, cp_in - cin))).astype(compute_dtype)

    # Fold BN scale into conv weights (per output channel); keep biases f32.
    w0 = params["w0"] * params["scale0"]                          # (Cin, Cmid)
    w0 = jnp.pad(w0, ((0, cp_in - cin), (0, cp_mid - cmid))).astype(compute_dtype)
    w1 = params["w1"] * params["scale1"][0][None, None, :]        # (9, Cmid, Cout)
    w1 = jnp.pad(w1, ((0, 0), (0, cp_mid - cmid), (0, cp_out - cout)))
    w1 = w1.reshape(9 * cp_mid, cp_out).astype(compute_dtype)
    b0 = jnp.pad(params["bias0"], ((0, 0), (0, cp_mid - cmid)))   # f32 (1, Cp_mid)
    b1 = jnp.pad(params["bias1"], ((0, 0), (0, cp_out - cout)))   # f32 (1, Cp_out)

    kern = functools.partial(_bottleneck_kernel, width=w, add=add)

    itemsize = jnp.dtype(compute_dtype).itemsize
    cost = pl.CostEstimate(
        flops=2 * n * m * (cp_in * cp_mid + 9 * cp_mid * cp_out),
        transcendentals=n * m * (cp_mid + cp_out),
        bytes_accessed=int((x2d.size + n * m * cp_out + w0.size + w1.size) * itemsize
                           + (b0.size + b1.size) * 4),
    )

    def build_call(single_buffer_consts):
        const_kw = dict(pipeline_mode=pl.Buffered(1)) if single_buffer_consts else {}
        in_specs = [
            # main activation tile
            pl.BlockSpec((tm, cp_in), lambda b, t: (b * n_tiles + t, 0)),
            # one-image-row halo above / below the tile (clamped block index;
            # zeroed in-kernel at image top/bottom)
            pl.BlockSpec((w, cp_in),
                         lambda b, t: (jnp.maximum(b * h + t * tr - 1, 0), 0)),
            pl.BlockSpec((w, cp_in),
                         lambda b, t: (jnp.minimum(b * h + (t + 1) * tr, n * h - 1), 0)),
            # VMEM-resident weights / biases (constant index_map)
            pl.BlockSpec((cp_in, cp_mid), lambda b, t: (0, 0), **const_kw),
            pl.BlockSpec((1, cp_mid), lambda b, t: (0, 0), **const_kw),
            pl.BlockSpec((9 * cp_mid, cp_out), lambda b, t: (0, 0), **const_kw),
            pl.BlockSpec((1, cp_out), lambda b, t: (0, 0), **const_kw),
        ]
        return pl.pallas_call(
            kern,
            out_shape=jax.ShapeDtypeStruct((n * m, cp_out), compute_dtype),
            grid=(n, n_tiles),
            in_specs=in_specs,
            out_specs=pl.BlockSpec((tm, cp_out), lambda b, t: (b * n_tiles + t, 0)),
            scratch_shapes=[
                pltpu.VMEM((2 * _HALO_PAD + tm + 2 * w, cp_mid), compute_dtype)],
            compiler_params=pltpu.CompilerParams(
                dimension_semantics=("parallel", "parallel"),
                vmem_limit_bytes=64 * 1024 * 1024,  # re-derive per-gen in production
            ),
            cost_estimate=cost,
        )

    args = (x2d, x2d, x2d, w0, b0, w1, b1)
    try:
        out2d = build_call(True)(*args)
        jax.block_until_ready(out2d)
    except Exception:
        # pipeline_mode=pl.Buffered(1) not supported on this jax version:
        # fall back to default double-buffering of the resident operands.
        out2d = build_call(False)(*args)

    out = out2d[:, :cout].astype(x_nchw.dtype).reshape(n, h, w, cout)
    return jnp.transpose(out, (0, 3, 1, 2))                      # back to NCHW


# ---------------------------------------------------------------------------
# Deterministic parameter construction (Bottleneck(4, 4), expansion=1.0)
# ---------------------------------------------------------------------------
def fold_bn(gamma, beta, mean, var, eps=1e-5):
    scale = gamma / jnp.sqrt(var + eps)
    bias = beta - mean * scale
    return scale[None, :], bias[None, :]


def make_params(key, cin, cout, expansion=1.0):
    cmid = int(cout * expansion)
    ks = jax.random.split(key, 10)
    w0 = jax.random.normal(ks[0], (cin, cmid), jnp.float32) * 0.2       # (Cin, Cmid)
    w1 = jax.random.normal(ks[1], (9, cmid, cout), jnp.float32) * 0.1   # (kh*kw, Cmid, Cout)
    g0 = 1.0 + 0.2 * jax.random.normal(ks[2], (cmid,), jnp.float32)
    b0 = 0.1 * jax.random.normal(ks[3], (cmid,), jnp.float32)
    m0 = 0.1 * jax.random.normal(ks[4], (cmid,), jnp.float32)
    v0 = 1.0 + 0.2 * jax.random.uniform(ks[5], (cmid,), jnp.float32)
    g1 = 1.0 + 0.2 * jax.random.normal(ks[6], (cout,), jnp.float32)
    b1 = 0.1 * jax.random.normal(ks[7], (cout,), jnp.float32)
    m1 = 0.1 * jax.random.normal(ks[8], (cout,), jnp.float32)
    v1 = 1.0 + 0.2 * jax.random.uniform(ks[9], (cout,), jnp.float32)
    scale0, bias0 = fold_bn(g0, b0, m0, v0)
    scale1, bias1 = fold_bn(g1, b1, m1, v1)
    return dict(w0=w0, w1=w1, scale0=scale0, bias0=bias0,
                scale1=scale1, bias1=bias1)


# ---------------------------------------------------------------------------
# Pure-JAX reference (for correctness check)
# ---------------------------------------------------------------------------
def reference_forward(x_nchw, params, shortcut=True):
    cin = x_nchw.shape[1]
    cmid = params["w0"].shape[1]
    cout = params["w1"].shape[2]
    silu = lambda v: v * jax.nn.sigmoid(v)

    w0_oihw = jnp.transpose(params["w0"], (1, 0)).reshape(cmid, cin, 1, 1)
    y = jax.lax.conv_general_dilated(
        x_nchw, w0_oihw, (1, 1), "VALID",
        dimension_numbers=("NCHW", "OIHW", "NCHW"))
    y = y * params["scale0"][0][None, :, None, None] + \
        params["bias0"][0][None, :, None, None]
    y = silu(y)

    w1_oihw = jnp.transpose(params["w1"].reshape(3, 3, cmid, cout), (3, 2, 0, 1))
    z = jax.lax.conv_general_dilated(
        y, w1_oihw, (1, 1), ((1, 1), (1, 1)),
        dimension_numbers=("NCHW", "OIHW", "NCHW"))
    z = z * params["scale1"][0][None, :, None, None] + \
        params["bias1"][0][None, :, None, None]
    z = silu(z)
    if shortcut and cin == cout:
        z = z + x_nchw
    return z


# ---------------------------------------------------------------------------
if __name__ == "__main__":
    key = jax.random.PRNGKey(0)
    k_x, k_p = jax.random.split(key)

    N, C, H, W = 2, 4, 16, 16          # Bottleneck(4, 4), shortcut=True
    x = jax.random.normal(k_x, (N, C, H, W), jnp.float32)
    params = make_params(k_p, C, C, expansion=1.0)

    ref = jax.block_until_ready(reference_forward(x, params, shortcut=True))

    # f32, default row budget (single tile per image at this size): strict check.
    out = jax.block_until_ready(bottleneck_forward(x, params, shortcut=True))
    np.testing.assert_allclose(np.asarray(out), np.asarray(ref),
                               rtol=1e-4, atol=1e-4)

    # f32, small row budget -> 4 row tiles per image: exercises the halo path.
    out_tiled = jax.block_until_ready(
        bottleneck_forward(x, params, shortcut=True, row_budget=64))
    np.testing.assert_allclose(np.asarray(out_tiled), np.asarray(ref),
                               rtol=1e-4, atol=1e-4)

    # bf16 activations/weights, f32 accumulation + bias/SiLU/residual math.
    out_bf16 = jax.block_until_ready(
        bottleneck_forward(x, params, shortcut=True, row_budget=64,
                           compute_dtype=jnp.bfloat16))
    np.testing.assert_allclose(np.asarray(out_bf16), np.asarray(ref),
                               rtol=5e-2, atol=5e-2)

    print("KERNEL_OK")
</pallas_src>

<mosaic_0001>
module attributes {stable_mosaic.version = 11 : i64} {
  func.func @_bottleneck_kernel(%arg0: i32, %arg1: i32, %arg2: memref<256x128xf32, #tpu.memory_space<vmem>>, %arg3: memref<16x128xf32, #tpu.memory_space<vmem>>, %arg4: memref<16x128xf32, #tpu.memory_space<vmem>>, %arg5: memref<128x128xf32, #tpu.memory_space<vmem>>, %arg6: memref<1x128xf32, #tpu.memory_space<vmem>>, %arg7: memref<1152x128xf32, #tpu.memory_space<vmem>>, %arg8: memref<1x128xf32, #tpu.memory_space<vmem>>, %arg9: memref<256x128xf32, #tpu.memory_space<vmem>>, %arg10: memref<304x128xf32, #tpu.memory_space<vmem>>) attributes {dimension_semantics = [#tpu.dimension_semantics<parallel>, #tpu.dimension_semantics<parallel>], iteration_bounds = array<i64: 2, 1>, scalar_prefetch = 0 : i64, scratch_operands = 1 : i64, tpu.core_type = #tpu.core_type<tc>, window_params = [{transform_indices = @transform_0, window_bounds = array<i64: 256, 128>}, {transform_indices = @transform_1, window_bounds = array<i64: 16, 128>}, {transform_indices = @transform_2, window_bounds = array<i64: 16, 128>}, {pipeline_mode = #tpu.pipeline_mode<synchronous>, transform_indices = @transform_3, window_bounds = array<i64: 128, 128>}, {pipeline_mode = #tpu.pipeline_mode<synchronous>, transform_indices = @transform_4, window_bounds = array<i64: 1, 128>}, {pipeline_mode = #tpu.pipeline_mode<synchronous>, transform_indices = @transform_5, window_bounds = array<i64: 1152, 128>}, {pipeline_mode = #tpu.pipeline_mode<synchronous>, transform_indices = @transform_6, window_bounds = array<i64: 1, 128>}, {transform_indices = @transform_7, window_bounds = array<i64: 256, 128>}]} {
    %c0 = arith.constant 0 : index
    %c0_0 = arith.constant 0 : index
    %0 = vector.load %arg5[%c0, %c0_0] : memref<128x128xf32, #tpu.memory_space<vmem>>, vector<128x128xf32>
    %c0_1 = arith.constant 0 : index
    %c0_2 = arith.constant 0 : index
    %1 = vector.load %arg6[%c0_1, %c0_2] : memref<1x128xf32, #tpu.memory_space<vmem>>, vector<1x128xf32>
    %c0_3 = arith.constant 0 : index
    %c0_4 = arith.constant 0 : index
    %2 = vector.load %arg2[%c0_3, %c0_4] : memref<256x128xf32, #tpu.memory_space<vmem>>, vector<256x128xf32>
    %cst = arith.constant dense<0.000000e+00> : vector<256x128xf32>
    %3 = tpu.matmul %2, %0, %cst {dimension_numbers = #tpu.dot_dimension_numbers<[1], [0], [0], [1], [0, 0, 1, 1], [], []>} : vector<256x128xf32>, vector<128x128xf32>, vector<256x128xf32> -> vector<256x128xf32>
    %4 = vector.broadcast %1 : vector<1x128xf32> to vector<256x128xf32>
    %5 = arith.addf %3, %4 : vector<256x128xf32>
    %6 = arith.negf %5 : vector<256x128xf32>
    %7 = math.exp %6 : vector<256x128xf32>
    %cst_5 = arith.constant 1.000000e+00 : f32
    %8 = vector.broadcast %cst_5 : f32 to vector<256x128xf32>
    %9 = arith.addf %8, %7 : vector<256x128xf32>
    %10 = arith.divf %8, %9 : vector<256x128xf32>
    %11 = arith.mulf %5, %10 : vector<256x128xf32>
    %c24 = arith.constant 24 : index
    %c0_6 = arith.constant 0 : index
    %12 = vector.load %arg10[%c24, %c0_6] : memref<304x128xf32, #tpu.memory_space<vmem>>, vector<256x128xf32>
    tpu.vector_store %arg10[%c24, %c0_6], %11 {strides = array<i32>} : memref<304x128xf32, #tpu.memory_space<vmem>>, vector<256x128xf32>,
    %cst_7 = arith.constant 0.000000e+00 : f32
    %13 = vector.broadcast %cst_7 : f32 to vector<8x128xf32>
    %c0_8 = arith.constant 0 : index
    %c0_9 = arith.constant 0 : index
    %14 = vector.load %arg10[%c0_8, %c0_9] : memref<304x128xf32, #tpu.memory_space<vmem>>, vector<8x128xf32>
    tpu.vector_store %arg10[%c0_8, %c0_9], %13 {strides = array<i32>} : memref<304x128xf32, #tpu.memory_space<vmem>>, vector<8x128xf32>,
    %cst_10 = arith.constant 0.000000e+00 : f32
    %15 = vector.broadcast %cst_10 : f32 to vector<8x128xf32>
    %c296 = arith.constant 296 : index
    %c0_11 = arith.constant 0 : index
    %16 = vector.load %arg10[%c296, %c0_11] : memref<304x128xf32, #tpu.memory_space<vmem>>, vector<8x128xf32>
    tpu.vector_store %arg10[%c296, %c0_11], %15 {strides = array<i32>} : memref<304x128xf32, #tpu.memory_space<vmem>>, vector<8x128xf32>,
    %c0_i32 = arith.constant 0 : i32
    %17 = arith.cmpi sgt, %arg1, %c0_i32 : i32
    %18 = arith.extui %17 : i1 to i32
    %c0_i32_12 = arith.constant 0 : i32
    %19 = arith.cmpi ne, %18, %c0_i32_12 : i32
    scf.if %19 {
      %c0_56 = arith.constant 0 : index
      %c0_57 = arith.constant 0 : index
      %112 = vector.load %arg3[%c0_56, %c0_57] : memref<16x128xf32, #tpu.memory_space<vmem>>, vector<16x128xf32>
      %cst_58 = arith.constant dense<0.000000e+00> : vector<16x128xf32>
      %113 = tpu.matmul %112, %0, %cst_58 {dimension_numbers = #tpu.dot_dimension_numbers<[1], [0], [0], [1], [0, 0, 1, 1], [], []>} : vector<16x128xf32>, vector<128x128xf32>, vector<16x128xf32> -> vector<16x128xf32>
      %114 = vector.broadcast %1 : vector<1x128xf32> to vector<16x128xf32>
      %115 = arith.addf %113, %114 : vector<16x128xf32>
      %116 = arith.negf %115 : vector<16x128xf32>
      %117 = math.exp %116 : vector<16x128xf32>
      %cst_59 = arith.constant 1.000000e+00 : f32
      %118 = vector.broadcast %cst_59 : f32 to vector<16x128xf32>
      %119 = arith.addf %118, %117 : vector<16x128xf32>
      %120 = arith.divf %118, %119 : vector<16x128xf32>
      %121 = arith.mulf %115, %120 : vector<16x128xf32>
      %c8_60 = arith.constant 8 : index
      %c0_61 = arith.constant 0 : index
      %122 = vector.load %arg10[%c8_60, %c0_61] : memref<304x128xf32, #tpu.memory_space<vmem>>, vector<16x128xf32>
      tpu.vector_store %arg10[%c8_60, %c0_61], %121 {strides = array<i32>} : memref<304x128xf32, #tpu.memory_space<vmem>>, vector<16x128xf32>,
    } else {
    }
    %c0_i32_13 = arith.constant 0 : i32
    %20 = arith.cmpi eq, %arg1, %c0_i32_13 : i32
    %21 = arith.extui %20 : i1 to i32
    %c0_i32_14 = arith.constant 0 : i32
    %22 = arith.cmpi ne, %21, %c0_i32_14 : i32
    scf.if %22 {
      %cst_56 = arith.constant 0.000000e+00 : f32
      %112 = vector.broadcast %cst_56 : f32 to vector<16x128xf32>
      %c8_57 = arith.constant 8 : index
      %c0_58 = arith.constant 0 : index
      %113 = vector.load %arg10[%c8_57, %c0_58] : memref<304x128xf32, #tpu.memory_space<vmem>>, vector<16x128xf32>
      tpu.vector_store %arg10[%c8_57, %c0_58], %112 {strides = array<i32>} : memref<304x128xf32, #tpu.memory_space<vmem>>, vector<16x128xf32>,
    } else {
    }
    %c0_i32_15 = arith.constant 0 : i32
    %23 = arith.cmpi slt, %arg1, %c0_i32_15 : i32
    %24 = arith.extui %23 : i1 to i32
    %c0_i32_16 = arith.constant 0 : i32
    %25 = arith.cmpi ne, %24, %c0_i32_16 : i32
    scf.if %25 {
      %c0_56 = arith.constant 0 : index
      %c0_57 = arith.constant 0 : index
      %112 = vector.load %arg4[%c0_56, %c0_57] : memref<16x128xf32, #tpu.memory_space<vmem>>, vector<16x128xf32>
      %cst_58 = arith.constant dense<0.000000e+00> : vector<16x128xf32>
      %113 = tpu.matmul %112, %0, %cst_58 {dimension_numbers = #tpu.dot_dimension_numbers<[1], [0], [0], [1], [0, 0, 1, 1], [], []>} : vector<16x128xf32>, vector<128x128xf32>, vector<16x128xf32> -> vector<16x128xf32>
      %114 = vector.broadcast %1 : vector<1x128xf32> to vector<16x128xf32>
      %115 = arith.addf %113, %114 : vector<16x128xf32>
      %116 = arith.negf %115 : vector<16x128xf32>
      %117 = math.exp %116 : vector<16x128xf32>
      %cst_59 = arith.constant 1.000000e+00 : f32
      %118 = vector.broadcast %cst_59 : f32 to vector<16x128xf32>
      %119 = arith.addf %118, %117 : vector<16x128xf32>
      %120 = arith.divf %118, %119 : vector<16x128xf32>
      %121 = arith.mulf %115, %120 : vector<16x128xf32>
      %c280 = arith.constant 280 : index
      %c0_60 = arith.constant 0 : index
      %122 = vector.load %arg10[%c280, %c0_60] : memref<304x128xf32, #tpu.memory_space<vmem>>, vector<16x128xf32>
      tpu.vector_store %arg10[%c280, %c0_60], %121 {strides = array<i32>} : memref<304x128xf32, #tpu.memory_space<vmem>>, vector<16x128xf32>,
    } else {
    }
    %c0_i32_17 = arith.constant 0 : i32
    %26 = arith.cmpi eq, %arg1, %c0_i32_17 : i32
    %27 = arith.extui %26 : i1 to i32
    %c0_i32_18 = arith.constant 0 : i32
    %28 = arith.cmpi ne, %27, %c0_i32_18 : i32
    scf.if %28 {
      %cst_56 = arith.constant 0.000000e+00 : f32
      %112 = vector.broadcast %cst_56 : f32 to vector<16x128xf32>
      %c280 = arith.constant 280 : index
      %c0_57 = arith.constant 0 : index
      %113 = vector.load %arg10[%c280, %c0_57] : memref<304x128xf32, #tpu.memory_space<vmem>>, vector<16x128xf32>
      tpu.vector_store %arg10[%c280, %c0_57], %112 {strides = array<i32>} : memref<304x128xf32, #tpu.memory_space<vmem>>, vector<16x128xf32>,
    } else {
    }
    %29 = tpu.iota {dimensions = array<i32: 0>} : vector<256x1xi32>
    %c16_i32 = arith.constant 16 : i32
    %c0_i32_19 = arith.constant 0 : i32
    %30 = arith.cmpi eq, %c16_i32, %c0_i32_19 : i32
    %c1_i32 = arith.constant 1 : i32
    %31 = arith.select %30, %c1_i32, %c16_i32 : i32
    %32 = vector.broadcast %31 : i32 to vector<256x1xi32>
    %33 = arith.remsi %29, %32 : vector<256x1xi32>
    %c0_i32_20 = arith.constant 0 : i32
    %34 = vector.broadcast %c0_i32_20 : i32 to vector<256x1xi32>
    %35 = arith.cmpi ne, %33, %34 : vector<256x1xi32>
    %c0_i32_21 = arith.constant 0 : i32
    %36 = vector.broadcast %c0_i32_21 : i32 to vector<256x1xi32>
    %37 = arith.cmpi slt, %33, %36 : vector<256x1xi32>
    %c0_i32_22 = arith.constant 0 : i32
    %38 = arith.cmpi slt, %31, %c0_i32_22 : i32
    %39 = vector.broadcast %38 : i1 to vector<256x1xi1>
    %40 = vector.broadcast %39 : vector<256x1xi1> to vector<256x1xi1>
    %41 = arith.xori %37, %40 : vector<256x1xi1>
    %42 = arith.andi %41, %35 : vector<256x1xi1>
    %43 = vector.broadcast %31 : i32 to vector<256x1xi32>
    %44 = arith.addi %33, %43 : vector<256x1xi32>
    %45 = arith.select %42, %44, %33 : vector<256x1xi1>, vector<256x1xi32>
    %c0_i32_23 = arith.constant 0 : i32
    %46 = vector.broadcast %c0_i32_23 : i32 to vector<256x1xi32>
    %47 = arith.cmpi ne, %45, %46 : vector<256x1xi32>
    %c15_i32 = arith.constant 15 : i32
    %48 = vector.broadcast %c15_i32 : i32 to vector<256x1xi32>
    %49 = arith.cmpi ne, %45, %48 : vector<256x1xi32>
    %c7 = arith.constant 7 : index
    %c0_24 = arith.constant 0 : index
    %50 = vector.load %arg10[%c7, %c0_24] : memref<304x128xf32, #tpu.memory_space<vmem>>, vector<256x128xf32>
    %cst_25 = arith.constant 0.000000e+00 : f32
    %51 = vector.shape_cast %47 : vector<256x1xi1> to vector<256x1xi1>
    %52 = vector.broadcast %51 : vector<256x1xi1> to vector<256x128xi1>
    %53 = vector.broadcast %cst_25 : f32 to vector<256x128xf32>
    %54 = arith.select %52, %50, %53 : vector<256x128xi1>, vector<256x128xf32>
    %c8 = arith.constant 8 : index
    %c0_26 = arith.constant 0 : index
    %55 = vector.load %arg10[%c8, %c0_26] : memref<304x128xf32, #tpu.memory_space<vmem>>, vector<256x128xf32>
    %56 = tpu.concatenate %54, %55 in 1 : vector<256x128xf32>, vector<256x128xf32> -> vector<256x256xf32>
    %c0_27 = arith.constant 0 : index
    %c0_28 = arith.constant 0 : index
    %57 = vector.load %arg7[%c0_27, %c0_28] : memref<1152x128xf32, #tpu.memory_space<vmem>>, vector<256x128xf32>
    %cst_29 = arith.constant dense<0.000000e+00> : vector<256x128xf32>
    %58 = tpu.matmul %56, %57, %cst_29 {dimension_numbers = #tpu.dot_dimension_numbers<[1], [0], [0], [1], [0, 0, 1, 1], [], []>} : vector<256x256xf32>, vector<256x128xf32>, vector<256x128xf32> -> vector<256x128xf32>
    %c9 = arith.constant 9 : index
    %c0_30 = arith.constant 0 : index
    %59 = vector.load %arg10[%c9, %c0_30] : memref<304x128xf32, #tpu.memory_space<vmem>>, vector<256x128xf32>
    %cst_31 = arith.constant 0.000000e+00 : f32
    %60 = vector.shape_cast %49 : vector<256x1xi1> to vector<256x1xi1>
    %61 = vector.broadcast %60 : vector<256x1xi1> to vector<256x128xi1>
    %62 = vector.broadcast %cst_31 : f32 to vector<256x128xf32>
    %63 = arith.select %61, %59, %62 : vector<256x128xi1>, vector<256x128xf32>
    %c23 = arith.constant 23 : index
    %c0_32 = arith.constant 0 : index
    %64 = vector.load %arg10[%c23, %c0_32] : memref<304x128xf32, #tpu.memory_space<vmem>>, vector<256x128xf32>
    %cst_33 = arith.constant 0.000000e+00 : f32
    %65 = vector.shape_cast %47 : vector<256x1xi1> to vector<256x1xi1>
    %66 = vector.broadcast %65 : vector<256x1xi1> to vector<256x128xi1>
    %67 = vector.broadcast %cst_33 : f32 to vector<256x128xf32>
    %68 = arith.select %66, %64, %67 : vector<256x128xi1>, vector<256x128xf32>
    %69 = tpu.concatenate %63, %68 in 1 : vector<256x128xf32>, vector<256x128xf32> -> vector<256x256xf32>
    %c256 = arith.constant 256 : index
    %c0_34 = arith.constant 0 : index
    %70 = vector.load %arg7[%c256, %c0_34] : memref<1152x128xf32, #tpu.memory_space<vmem>>, vector<256x128xf32>
    %cst_35 = arith.constant dense<0.000000e+00> : vector<256x128xf32>
    %71 = tpu.matmul %69, %70, %cst_35 {dimension_numbers = #tpu.dot_dimension_numbers<[1], [0], [0], [1], [0, 0, 1, 1], [], []>} : vector<256x256xf32>, vector<256x128xf32>, vector<256x128xf32> -> vector<256x128xf32>
    %72 = arith.addf %58, %71 : vector<256x128xf32>
    %c24_36 = arith.constant 24 : index
    %c0_37 = arith.constant 0 : index
    %73 = vector.load %arg10[%c24_36, %c0_37] : memref<304x128xf32, #tpu.memory_space<vmem>>, vector<256x128xf32>
    %c25 = arith.constant 25 : index
    %c0_38 = arith.constant 0 : index
    %74 = vector.load %arg10[%c25, %c0_38] : memref<304x128xf32, #tpu.memory_space<vmem>>, vector<256x128xf32>
    %cst_39 = arith.constant 0.000000e+00 : f32
    %75 = vector.shape_cast %49 : vector<256x1xi1> to vector<256x1xi1>
    %76 = vector.broadcast %75 : vector<256x1xi1> to vector<256x128xi1>
    %77 = vector.broadcast %cst_39 : f32 to vector<256x128xf32>
    %78 = arith.select %76, %74, %77 : vector<256x128xi1>, vector<256x128xf32>
    %79 = tpu.concatenate %73, %78 in 1 : vector<256x128xf32>, vector<256x128xf32> -> vector<256x256xf32>
    %c512 = arith.constant 512 : index
    %c0_40 = arith.constant 0 : index
    %80 = vector.load %arg7[%c512, %c0_40] : memref<1152x128xf32, #tpu.memory_space<vmem>>, vector<256x128xf32>
    %cst_41 = arith.constant dense<0.000000e+00> : vector<256x128xf32>
    %81 = tpu.matmul %79, %80, %cst_41 {dimension_numbers = #tpu.dot_dimension_numbers<[1], [0], [0], [1], [0, 0, 1, 1], [], []>} : vector<256x256xf32>, vector<256x128xf32>, vector<256x128xf32> -> vector<256x128xf32>
    %82 = arith.addf %72, %81 : vector<256x128xf32>
    %c39 = arith.constant 39 : index
    %c0_42 = arith.constant 0 : index
    %83 = vector.load %arg10[%c39, %c0_42] : memref<304x128xf32, #tpu.memory_space<vmem>>, vector<256x128xf32>
    %cst_43 = arith.constant 0.000000e+00 : f32
    %84 = vector.shape_cast %47 : vector<256x1xi1> to vector<256x1xi1>
    %85 = vector.broadcast %84 : vector<256x1xi1> to vector<256x128xi1>
    %86 = vector.broadcast %cst_43 : f32 to vector<256x128xf32>
    %87 = arith.select %85, %83, %86 : vector<256x128xi1>, vector<256x128xf32>
    %c40 = arith.constant 40 : index
    %c0_44 = arith.constant 0 : index
    %88 = vector.load %arg10[%c40, %c0_44] : memref<304x128xf32, #tpu.memory_space<vmem>>, vector<256x128xf32>
    %89 = tpu.concatenate %87, %88 in 1 : vector<256x128xf32>, vector<256x128xf32> -> vector<256x256xf32>
    %c768 = arith.constant 768 : index
    %c0_45 = arith.constant 0 : index
    %90 = vector.load %arg7[%c768, %c0_45] : memref<1152x128xf32, #tpu.memory_space<vmem>>, vector<256x128xf32>
    %cst_46 = arith.constant dense<0.000000e+00> : vector<256x128xf32>
    %91 = tpu.matmul %89, %90, %cst_46 {dimension_numbers = #tpu.dot_dimension_numbers<[1], [0], [0], [1], [0, 0, 1, 1], [], []>} : vector<256x256xf32>, vector<256x128xf32>, vector<256x128xf32> -> vector<256x128xf32>
    %92 = arith.addf %82, %91 : vector<256x128xf32>
    %c41 = arith.constant 41 : index
    %c0_47 = arith.constant 0 : index
    %93 = vector.load %arg10[%c41, %c0_47] : memref<304x128xf32, #tpu.memory_space<vmem>>, vector<256x128xf32>
    %cst_48 = arith.constant 0.000000e+00 : f32
    %94 = vector.shape_cast %49 : vector<256x1xi1> to vector<256x1xi1>
    %95 = vector.broadcast %94 : vector<256x1xi1> to vector<256x128xi1>
    %96 = vector.broadcast %cst_48 : f32 to vector<256x128xf32>
    %97 = arith.select %95, %93, %96 : vector<256x128xi1>, vector<256x128xf32>
    %c1024 = arith.constant 1024 : index
    %c0_49 = arith.constant 0 : index
    %98 = vector.load %arg7[%c1024, %c0_49] : memref<1152x128xf32, #tpu.memory_space<vmem>>, vector<128x128xf32>
    %cst_50 = arith.constant dense<0.000000e+00> : vector<256x128xf32>
    %99 = tpu.matmul %97, %98, %cst_50 {dimension_numbers = #tpu.dot_dimension_numbers<[1], [0], [0], [1], [0, 0, 1, 1], [], []>} : vector<256x128xf32>, vector<128x128xf32>, vector<256x128xf32> -> vector<256x128xf32>
    %100 = arith.addf %92, %99 : vector<256x128xf32>
    %c0_51 = arith.constant 0 : index
    %c0_52 = arith.constant 0 : index
    %101 = vector.load %arg8[%c0_51, %c0_52] : memref<1x128xf32, #tpu.memory_space<vmem>>, vector<1x128xf32>
    %102 = vector.broadcast %101 : vector<1x128xf32> to vector<256x128xf32>
    %103 = arith.addf %100, %102 : vector<256x128xf32>
    %104 = arith.negf %103 : vector<256x128xf32>
    %105 = math.exp %104 : vector<256x128xf32>
    %cst_53 = arith.constant 1.000000e+00 : f32
    %106 = vector.broadcast %cst_53 : f32 to vector<256x128xf32>
    %107 = arith.addf %106, %105 : vector<256x128xf32>
    %108 = arith.divf %106, %107 : vector<256x128xf32>
    %109 = arith.mulf %103, %108 : vector<256x128xf32>
    %110 = arith.addf %109, %2 : vector<256x128xf32>
    %c0_54 = arith.constant 0 : index
    %c0_55 = arith.constant 0 : index
    %111 = vector.load %arg9[%c0_54, %c0_55] : memref<256x128xf32, #tpu.memory_space<vmem>>, vector<256x128xf32>
    tpu.vector_store %arg9[%c0_54, %c0_55], %110 {strides = array<i32>} : memref<256x128xf32, #tpu.memory_space<vmem>>, vector<256x128xf32>,
    return
  }
  func.func @transform_0(%arg0: i32, %arg1: i32) -> (i32, i32) {
    %c1_i32 = arith.constant 1 : i32
    %0 = arith.muli %arg0, %c1_i32 : i32
    %1 = arith.addi %0, %arg1 : i32
    %c0_i32 = arith.constant 0 : i32
    %c0_i32_0 = arith.constant 0 : i32
    return %1, %c0_i32 : i32, i32
  }
  func.func @transform_1(%arg0: i32, %arg1: i32) -> (i32, i32) {
    %c16_i32 = arith.constant 16 : i32
    %0 = arith.muli %arg0, %c16_i32 : i32
    %c16_i32_0 = arith.constant 16 : i32
    %1 = arith.muli %arg1, %c16_i32_0 : i32
    %2 = arith.addi %0, %1 : i32
    %c1_i32 = arith.constant 1 : i32
    %3 = arith.subi %2, %c1_i32 : i32
    %c0_i32 = arith.constant 0 : i32
    %4 = arith.maxsi %3, %c0_i32 : i32
    %c0_i32_1 = arith.constant 0 : i32
    %c0_i32_2 = arith.constant 0 : i32
    return %4, %c0_i32_1 : i32, i32
  }
  func.func @transform_2(%arg0: i32, %arg1: i32) -> (i32, i32) {
    %c16_i32 = arith.constant 16 : i32
    %0 = arith.muli %arg0, %c16_i32 : i32
    %c1_i32 = arith.constant 1 : i32
    %1 = arith.addi %arg1, %c1_i32 : i32
    %c16_i32_0 = arith.constant 16 : i32
    %2 = arith.muli %1, %c16_i32_0 : i32
    %3 = arith.addi %0, %2 : i32
    %c31_i32 = arith.constant 31 : i32
    %4 = arith.minsi %3, %c31_i32 : i32
    %c0_i32 = arith.constant 0 : i32
    %c0_i32_1 = arith.constant 0 : i32
    return %4, %c0_i32 : i32, i32
  }
  func.func @transform_3(%arg0: i32, %arg1: i32) -> (i32, i32) {
    %c0_i32 = arith.constant 0 : i32
    %c0_i32_0 = arith.constant 0 : i32
    %c0_i32_1 = arith.constant 0 : i32
    return %c0_i32, %c0_i32_0 : i32, i32
  }
  func.func @transform_4(%arg0: i32, %arg1: i32) -> (i32, i32) {
    %c0_i32 = arith.constant 0 : i32
    %c0_i32_0 = arith.constant 0 : i32
    %c0_i32_1 = arith.constant 0 : i32
    return %c0_i32, %c0_i32_0 : i32, i32
  }
  func.func @transform_5(%arg0: i32, %arg1: i32) -> (i32, i32) {
    %c0_i32 = arith.constant 0 : i32
    %c0_i32_0 = arith.constant 0 : i32
    %c0_i32_1 = arith.constant 0 : i32
    return %c0_i32, %c0_i32_0 : i32, i32
  }
  func.func @transform_6(%arg0: i32, %arg1: i32) -> (i32, i32) {
    %c0_i32 = arith.constant 0 : i32
    %c0_i32_0 = arith.constant 0 : i32
    %c0_i32_1 = arith.constant 0 : i32
    return %c0_i32, %c0_i32_0 : i32, i32
  }
  func.func @transform_7(%arg0: i32, %arg1: i32) -> (i32, i32) {
    %c1_i32 = arith.constant 1 : i32
    %0 = arith.muli %arg0, %c1_i32 : i32
    %1 = arith.addi %0, %arg1 : i32
    %c0_i32 = arith.constant 0 : i32
    %c0_i32_0 = arith.constant 0 : i32
    return %1, %c0_i32 : i32, i32
  }
}

module attributes {stable_mosaic.version = 11 : i64} {
  func.func @_bottleneck_kernel(%arg0: i32, %arg1: i32, %arg2: memref<256x128xf32, #tpu.memory_space<vmem>>, %arg3: memref<16x128xf32, #tpu.memory_space<vmem>>, %arg4: memref<16x128xf32, #tpu.memory_space<vmem>>, %arg5: memref<128x128xf32, #tpu.memory_space<vmem>>, %arg6: memref<1x128xf32, #tpu.memory_space<vmem>>, %arg7: memref<1152x128xf32, #tpu.memory_space<vmem>>, %arg8: memref<1x128xf32, #tpu.memory_space<vmem>>, %arg9: memref<256x128xf32, #tpu.memory_space<vmem>>, %arg10: memref<304x128xf32, #tpu.memory_space<vmem>>) attributes {dimension_semantics = [#tpu.dimension_semantics<parallel>, #tpu.dimension_semantics<parallel>], iteration_bounds = array<i64: 2, 1>, scalar_prefetch = 0 : i64, scratch_operands = 1 : i64, tpu.core_type = #tpu.core_type<tc>, window_params = [{transform_indices = @transform_0, window_bounds = array<i64: 256, 128>}, {transform_indices = @transform_1, window_bounds = array<i64: 16, 128>}, {transform_indices = @transform_2, window_bounds = array<i64: 16, 128>}, {pipeline_mode = #tpu.pipeline_mode<synchronous>, transform_indices = @transform_3, window_bounds = array<i64: 128, 128>}, {pipeline_mode = #tpu.pipeline_mode<synchronous>, transform_indices = @transform_4, window_bounds = array<i64: 1, 128>}, {pipeline_mode = #tpu.pipeline_mode<synchronous>, transform_indices = @transform_5, window_bounds = array<i64: 1152, 128>}, {pipeline_mode = #tpu.pipeline_mode<synchronous>, transform_indices = @transform_6, window_bounds = array<i64: 1, 128>}, {transform_indices = @transform_7, window_bounds = array<i64: 256, 128>}]} {
    %c0 = arith.constant 0 : index
    %c0_0 = arith.constant 0 : index
    %0 = vector.load %arg5[%c0, %c0_0] : memref<128x128xf32, #tpu.memory_space<vmem>>, vector<128x128xf32>
    %c0_1 = arith.constant 0 : index
    %c0_2 = arith.constant 0 : index
    %1 = vector.load %arg6[%c0_1, %c0_2] : memref<1x128xf32, #tpu.memory_space<vmem>>, vector<1x128xf32>
    %c0_3 = arith.constant 0 : index
    %c0_4 = arith.constant 0 : index
    %2 = vector.load %arg2[%c0_3, %c0_4] : memref<256x128xf32, #tpu.memory_space<vmem>>, vector<256x128xf32>
    %cst = arith.constant dense<0.000000e+00> : vector<256x128xf32>
    %3 = tpu.matmul %2, %0, %cst {dimension_numbers = #tpu.dot_dimension_numbers<[1], [0], [0], [1], [0, 0, 1, 1], [], []>} : vector<256x128xf32>, vector<128x128xf32>, vector<256x128xf32> -> vector<256x128xf32>
    %4 = vector.broadcast %1 : vector<1x128xf32> to vector<256x128xf32>
    %5 = arith.addf %3, %4 : vector<256x128xf32>
    %6 = arith.negf %5 : vector<256x128xf32>
    %7 = math.exp %6 : vector<256x128xf32>
    %cst_5 = arith.constant 1.000000e+00 : f32
    %8 = vector.broadcast %cst_5 : f32 to vector<256x128xf32>
    %9 = arith.addf %8, %7 : vector<256x128xf32>
    %10 = arith.divf %8, %9 : vector<256x128xf32>
    %11 = arith.mulf %5, %10 : vector<256x128xf32>
    %c24 = arith.constant 24 : index
    %c0_6 = arith.constant 0 : index
    %12 = vector.load %arg10[%c24, %c0_6] : memref<304x128xf32, #tpu.memory_space<vmem>>, vector<256x128xf32>
    tpu.vector_store %arg10[%c24, %c0_6], %11 {strides = array<i32>} : memref<304x128xf32, #tpu.memory_space<vmem>>, vector<256x128xf32>,
    %cst_7 = arith.constant 0.000000e+00 : f32
    %13 = vector.broadcast %cst_7 : f32 to vector<8x128xf32>
    %c0_8 = arith.constant 0 : index
    %c0_9 = arith.constant 0 : index
    %14 = vector.load %arg10[%c0_8, %c0_9] : memref<304x128xf32, #tpu.memory_space<vmem>>, vector<8x128xf32>
    tpu.vector_store %arg10[%c0_8, %c0_9], %13 {strides = array<i32>} : memref<304x128xf32, #tpu.memory_space<vmem>>, vector<8x128xf32>,
    %cst_10 = arith.constant 0.000000e+00 : f32
    %15 = vector.broadcast %cst_10 : f32 to vector<8x128xf32>
    %c296 = arith.constant 296 : index
    %c0_11 = arith.constant 0 : index
    %16 = vector.load %arg10[%c296, %c0_11] : memref<304x128xf32, #tpu.memory_space<vmem>>, vector<8x128xf32>
    tpu.vector_store %arg10[%c296, %c0_11], %15 {strides = array<i32>} : memref<304x128xf32, #tpu.memory_space<vmem>>, vector<8x128xf32>,
    %c0_i32 = arith.constant 0 : i32
    %17 = arith.cmpi sgt, %arg1, %c0_i32 : i32
    %18 = arith.extui %17 : i1 to i32
    %c0_i32_12 = arith.constant 0 : i32
    %19 = arith.cmpi ne, %18, %c0_i32_12 : i32
    scf.if %19 {
      %c0_56 = arith.constant 0 : index
      %c0_57 = arith.constant 0 : index
      %112 = vector.load %arg3[%c0_56, %c0_57] : memref<16x128xf32, #tpu.memory_space<vmem>>, vector<16x128xf32>
      %cst_58 = arith.constant dense<0.000000e+00> : vector<16x128xf32>
      %113 = tpu.matmul %112, %0, %cst_58 {dimension_numbers = #tpu.dot_dimension_numbers<[1], [0], [0], [1], [0, 0, 1, 1], [], []>} : vector<16x128xf32>, vector<128x128xf32>, vector<16x128xf32> -> vector<16x128xf32>
      %114 = vector.broadcast %1 : vector<1x128xf32> to vector<16x128xf32>
      %115 = arith.addf %113, %114 : vector<16x128xf32>
      %116 = arith.negf %115 : vector<16x128xf32>
      %117 = math.exp %116 : vector<16x128xf32>
      %cst_59 = arith.constant 1.000000e+00 : f32
      %118 = vector.broadcast %cst_59 : f32 to vector<16x128xf32>
      %119 = arith.addf %118, %117 : vector<16x128xf32>
      %120 = arith.divf %118, %119 : vector<16x128xf32>
      %121 = arith.mulf %115, %120 : vector<16x128xf32>
      %c8_60 = arith.constant 8 : index
      %c0_61 = arith.constant 0 : index
      %122 = vector.load %arg10[%c8_60, %c0_61] : memref<304x128xf32, #tpu.memory_space<vmem>>, vector<16x128xf32>
      tpu.vector_store %arg10[%c8_60, %c0_61], %121 {strides = array<i32>} : memref<304x128xf32, #tpu.memory_space<vmem>>, vector<16x128xf32>,
    } else {
    }
    %c0_i32_13 = arith.constant 0 : i32
    %20 = arith.cmpi eq, %arg1, %c0_i32_13 : i32
    %21 = arith.extui %20 : i1 to i32
    %c0_i32_14 = arith.constant 0 : i32
    %22 = arith.cmpi ne, %21, %c0_i32_14 : i32
    scf.if %22 {
      %cst_56 = arith.constant 0.000000e+00 : f32
      %112 = vector.broadcast %cst_56 : f32 to vector<16x128xf32>
      %c8_57 = arith.constant 8 : index
      %c0_58 = arith.constant 0 : index
      %113 = vector.load %arg10[%c8_57, %c0_58] : memref<304x128xf32, #tpu.memory_space<vmem>>, vector<16x128xf32>
      tpu.vector_store %arg10[%c8_57, %c0_58], %112 {strides = array<i32>} : memref<304x128xf32, #tpu.memory_space<vmem>>, vector<16x128xf32>,
    } else {
    }
    %c0_i32_15 = arith.constant 0 : i32
    %23 = arith.cmpi slt, %arg1, %c0_i32_15 : i32
    %24 = arith.extui %23 : i1 to i32
    %c0_i32_16 = arith.constant 0 : i32
    %25 = arith.cmpi ne, %24, %c0_i32_16 : i32
    scf.if %25 {
      %c0_56 = arith.constant 0 : index
      %c0_57 = arith.constant 0 : index
      %112 = vector.load %arg4[%c0_56, %c0_57] : memref<16x128xf32, #tpu.memory_space<vmem>>, vector<16x128xf32>
      %cst_58 = arith.constant dense<0.000000e+00> : vector<16x128xf32>
      %113 = tpu.matmul %112, %0, %cst_58 {dimension_numbers = #tpu.dot_dimension_numbers<[1], [0], [0], [1], [0, 0, 1, 1], [], []>} : vector<16x128xf32>, vector<128x128xf32>, vector<16x128xf32> -> vector<16x128xf32>
      %114 = vector.broadcast %1 : vector<1x128xf32> to vector<16x128xf32>
      %115 = arith.addf %113, %114 : vector<16x128xf32>
      %116 = arith.negf %115 : vector<16x128xf32>
      %117 = math.exp %116 : vector<16x128xf32>
      %cst_59 = arith.constant 1.000000e+00 : f32
      %118 = vector.broadcast %cst_59 : f32 to vector<16x128xf32>
      %119 = arith.addf %118, %117 : vector<16x128xf32>
      %120 = arith.divf %118, %119 : vector<16x128xf32>
      %121 = arith.mulf %115, %120 : vector<16x128xf32>
      %c280 = arith.constant 280 : index
      %c0_60 = arith.constant 0 : index
      %122 = vector.load %arg10[%c280, %c0_60] : memref<304x128xf32, #tpu.memory_space<vmem>>, vector<16x128xf32>
      tpu.vector_store %arg10[%c280, %c0_60], %121 {strides = array<i32>} : memref<304x128xf32, #tpu.memory_space<vmem>>, vector<16x128xf32>,
    } else {
    }
    %c0_i32_17 = arith.constant 0 : i32
    %26 = arith.cmpi eq, %arg1, %c0_i32_17 : i32
    %27 = arith.extui %26 : i1 to i32
    %c0_i32_18 = arith.constant 0 : i32
    %28 = arith.cmpi ne, %27, %c0_i32_18 : i32
    scf.if %28 {
      %cst_56 = arith.constant 0.000000e+00 : f32
      %112 = vector.broadcast %cst_56 : f32 to vector<16x128xf32>
      %c280 = arith.constant 280 : index
      %c0_57 = arith.constant 0 : index
      %113 = vector.load %arg10[%c280, %c0_57] : memref<304x128xf32, #tpu.memory_space<vmem>>, vector<16x128xf32>
      tpu.vector_store %arg10[%c280, %c0_57], %112 {strides = array<i32>} : memref<304x128xf32, #tpu.memory_space<vmem>>, vector<16x128xf32>,
    } else {
    }
    %29 = tpu.iota {dimensions = array<i32: 0>} : vector<256x1xi32>
    %c16_i32 = arith.constant 16 : i32
    %c0_i32_19 = arith.constant 0 : i32
    %30 = arith.cmpi eq, %c16_i32, %c0_i32_19 : i32
    %c1_i32 = arith.constant 1 : i32
    %31 = arith.select %30, %c1_i32, %c16_i32 : i32
    %32 = vector.broadcast %31 : i32 to vector<256x1xi32>
    %33 = arith.remsi %29, %32 : vector<256x1xi32>
    %c0_i32_20 = arith.constant 0 : i32
    %34 = vector.broadcast %c0_i32_20 : i32 to vector<256x1xi32>
    %35 = arith.cmpi ne, %33, %34 : vector<256x1xi32>
    %c0_i32_21 = arith.constant 0 : i32
    %36 = vector.broadcast %c0_i32_21 : i32 to vector<256x1xi32>
    %37 = arith.cmpi slt, %33, %36 : vector<256x1xi32>
    %c0_i32_22 = arith.constant 0 : i32
    %38 = arith.cmpi slt, %31, %c0_i32_22 : i32
    %39 = vector.broadcast %38 : i1 to vector<256x1xi1>
    %40 = vector.broadcast %39 : vector<256x1xi1> to vector<256x1xi1>
    %41 = arith.xori %37, %40 : vector<256x1xi1>
    %42 = arith.andi %41, %35 : vector<256x1xi1>
    %43 = vector.broadcast %31 : i32 to vector<256x1xi32>
    %44 = arith.addi %33, %43 : vector<256x1xi32>
    %45 = arith.select %42, %44, %33 : vector<256x1xi1>, vector<256x1xi32>
    %c0_i32_23 = arith.constant 0 : i32
    %46 = vector.broadcast %c0_i32_23 : i32 to vector<256x1xi32>
    %47 = arith.cmpi ne, %45, %46 : vector<256x1xi32>
    %c15_i32 = arith.constant 15 : i32
    %48 = vector.broadcast %c15_i32 : i32 to vector<256x1xi32>
    %49 = arith.cmpi ne, %45, %48 : vector<256x1xi32>
    %c7 = arith.constant 7 : index
    %c0_24 = arith.constant 0 : index
    %50 = vector.load %arg10[%c7, %c0_24] : memref<304x128xf32, #tpu.memory_space<vmem>>, vector<256x128xf32>
    %cst_25 = arith.constant 0.000000e+00 : f32
    %51 = vector.shape_cast %47 : vector<256x1xi1> to vector<256x1xi1>
    %52 = vector.broadcast %51 : vector<256x1xi1> to vector<256x128xi1>
    %53 = vector.broadcast %cst_25 : f32 to vector<256x128xf32>
    %54 = arith.select %52, %50, %53 : vector<256x128xi1>, vector<256x128xf32>
    %c8 = arith.constant 8 : index
    %c0_26 = arith.constant 0 : index
    %55 = vector.load %arg10[%c8, %c0_26] : memref<304x128xf32, #tpu.memory_space<vmem>>, vector<256x128xf32>
    %56 = tpu.concatenate %54, %55 in 1 : vector<256x128xf32>, vector<256x128xf32> -> vector<256x256xf32>
    %c0_27 = arith.constant 0 : index
    %c0_28 = arith.constant 0 : index
    %57 = vector.load %arg7[%c0_27, %c0_28] : memref<1152x128xf32, #tpu.memory_space<vmem>>, vector<256x128xf32>
    %cst_29 = arith.constant dense<0.000000e+00> : vector<256x128xf32>
    %58 = tpu.matmul %56, %57, %cst_29 {dimension_numbers = #tpu.dot_dimension_numbers<[1], [0], [0], [1], [0, 0, 1, 1], [], []>} : vector<256x256xf32>, vector<256x128xf32>, vector<256x128xf32> -> vector<256x128xf32>
    %c9 = arith.constant 9 : index
    %c0_30 = arith.constant 0 : index
    %59 = vector.load %arg10[%c9, %c0_30] : memref<304x128xf32, #tpu.memory_space<vmem>>, vector<256x128xf32>
    %cst_31 = arith.constant 0.000000e+00 : f32
    %60 = vector.shape_cast %49 : vector<256x1xi1> to vector<256x1xi1>
    %61 = vector.broadcast %60 : vector<256x1xi1> to vector<256x128xi1>
    %62 = vector.broadcast %cst_31 : f32 to vector<256x128xf32>
    %63 = arith.select %61, %59, %62 : vector<256x128xi1>, vector<256x128xf32>
    %c23 = arith.constant 23 : index
    %c0_32 = arith.constant 0 : index
    %64 = vector.load %arg10[%c23, %c0_32] : memref<304x128xf32, #tpu.memory_space<vmem>>, vector<256x128xf32>
    %cst_33 = arith.constant 0.000000e+00 : f32
    %65 = vector.shape_cast %47 : vector<256x1xi1> to vector<256x1xi1>
    %66 = vector.broadcast %65 : vector<256x1xi1> to vector<256x128xi1>
    %67 = vector.broadcast %cst_33 : f32 to vector<256x128xf32>
    %68 = arith.select %66, %64, %67 : vector<256x128xi1>, vector<256x128xf32>
    %69 = tpu.concatenate %63, %68 in 1 : vector<256x128xf32>, vector<256x128xf32> -> vector<256x256xf32>
    %c256 = arith.constant 256 : index
    %c0_34 = arith.constant 0 : index
    %70 = vector.load %arg7[%c256, %c0_34] : memref<1152x128xf32, #tpu.memory_space<vmem>>, vector<256x128xf32>
    %cst_35 = arith.constant dense<0.000000e+00> : vector<256x128xf32>
    %71 = tpu.matmul %69, %70, %cst_35 {dimension_numbers = #tpu.dot_dimension_numbers<[1], [0], [0], [1], [0, 0, 1, 1], [], []>} : vector<256x256xf32>, vector<256x128xf32>, vector<256x128xf32> -> vector<256x128xf32>
    %72 = arith.addf %58, %71 : vector<256x128xf32>
    %c24_36 = arith.constant 24 : index
    %c0_37 = arith.constant 0 : index
    %73 = vector.load %arg10[%c24_36, %c0_37] : memref<304x128xf32, #tpu.memory_space<vmem>>, vector<256x128xf32>
    %c25 = arith.constant 25 : index
    %c0_38 = arith.constant 0 : index
    %74 = vector.load %arg10[%c25, %c0_38] : memref<304x128xf32, #tpu.memory_space<vmem>>, vector<256x128xf32>
    %cst_39 = arith.constant 0.000000e+00 : f32
    %75 = vector.shape_cast %49 : vector<256x1xi1> to vector<256x1xi1>
    %76 = vector.broadcast %75 : vector<256x1xi1> to vector<256x128xi1>
    %77 = vector.broadcast %cst_39 : f32 to vector<256x128xf32>
    %78 = arith.select %76, %74, %77 : vector<256x128xi1>, vector<256x128xf32>
    %79 = tpu.concatenate %73, %78 in 1 : vector<256x128xf32>, vector<256x128xf32> -> vector<256x256xf32>
    %c512 = arith.constant 512 : index
    %c0_40 = arith.constant 0 : index
    %80 = vector.load %arg7[%c512, %c0_40] : memref<1152x128xf32, #tpu.memory_space<vmem>>, vector<256x128xf32>
    %cst_41 = arith.constant dense<0.000000e+00> : vector<256x128xf32>
    %81 = tpu.matmul %79, %80, %cst_41 {dimension_numbers = #tpu.dot_dimension_numbers<[1], [0], [0], [1], [0, 0, 1, 1], [], []>} : vector<256x256xf32>, vector<256x128xf32>, vector<256x128xf32> -> vector<256x128xf32>
    %82 = arith.addf %72, %81 : vector<256x128xf32>
    %c39 = arith.constant 39 : index
    %c0_42 = arith.constant 0 : index
    %83 = vector.load %arg10[%c39, %c0_42] : memref<304x128xf32, #tpu.memory_space<vmem>>, vector<256x128xf32>
    %cst_43 = arith.constant 0.000000e+00 : f32
    %84 = vector.shape_cast %47 : vector<256x1xi1> to vector<256x1xi1>
    %85 = vector.broadcast %84 : vector<256x1xi1> to vector<256x128xi1>
    %86 = vector.broadcast %cst_43 : f32 to vector<256x128xf32>
    %87 = arith.select %85, %83, %86 : vector<256x128xi1>, vector<256x128xf32>
    %c40 = arith.constant 40 : index
    %c0_44 = arith.constant 0 : index
    %88 = vector.load %arg10[%c40, %c0_44] : memref<304x128xf32, #tpu.memory_space<vmem>>, vector<256x128xf32>
    %89 = tpu.concatenate %87, %88 in 1 : vector<256x128xf32>, vector<256x128xf32> -> vector<256x256xf32>
    %c768 = arith.constant 768 : index
    %c0_45 = arith.constant 0 : index
    %90 = vector.load %arg7[%c768, %c0_45] : memref<1152x128xf32, #tpu.memory_space<vmem>>, vector<256x128xf32>
    %cst_46 = arith.constant dense<0.000000e+00> : vector<256x128xf32>
    %91 = tpu.matmul %89, %90, %cst_46 {dimension_numbers = #tpu.dot_dimension_numbers<[1], [0], [0], [1], [0, 0, 1, 1], [], []>} : vector<256x256xf32>, vector<256x128xf32>, vector<256x128xf32> -> vector<256x128xf32>
    %92 = arith.addf %82, %91 : vector<256x128xf32>
    %c41 = arith.constant 41 : index
    %c0_47 = arith.constant 0 : index
    %93 = vector.load %arg10[%c41, %c0_47] : memref<304x128xf32, #tpu.memory_space<vmem>>, vector<256x128xf32>
    %cst_48 = arith.constant 0.000000e+00 : f32
    %94 = vector.shape_cast %49 : vector<256x1xi1> to vector<256x1xi1>
    %95 = vector.broadcast %94 : vector<256x1xi1> to vector<256x128xi1>
    %96 = vector.broadcast %cst_48 : f32 to vector<256x128xf32>
    %97 = arith.select %95, %93, %96 : vector<256x128xi1>, vector<256x128xf32>
    %c1024 = arith.constant 1024 : index
    %c0_49 = arith.constant 0 : index
    %98 = vector.load %arg7[%c1024, %c0_49] : memref<1152x128xf32, #tpu.memory_space<vmem>>, vector<128x128xf32>
    %cst_50 = arith.constant dense<0.000000e+00> : vector<256x128xf32>
    %99 = tpu.matmul %97, %98, %cst_50 {dimension_numbers = #tpu.dot_dimension_numbers<[1], [0], [0], [1], [0, 0, 1, 1], [], []>} : vector<256x128xf32>, vector<128x128xf32>, vector<256x128xf32> -> vector<256x128xf32>
    %100 = arith.addf %92, %99 : vector<256x128xf32>
    %c0_51 = arith.constant 0 : index
    %c0_52 = arith.constant 0 : index
    %101 = vector.load %arg8[%c0_51, %c0_52] : memref<1x128xf32, #tpu.memory_space<vmem>>, vector<1x128xf32>
    %102 = vector.broadcast %101 : vector<1x128xf32> to vector<256x128xf32>
    %103 = arith.addf %100, %102 : vector<256x128xf32>
    %104 = arith.negf %103 : vector<256x128xf32>
    %105 = math.exp %104 : vector<256x128xf32>
    %cst_53 = arith.constant 1.000000e+00 : f32
    %106 = vector.broadcast %cst_53 : f32 to vector<256x128xf32>
    %107 = arith.addf %106, %105 : vector<256x128xf32>
    %108 = arith.divf %106, %107 : vector<256x128xf32>
    %109 = arith.mulf %103, %108 : vector<256x128xf32>
    %110 = arith.addf %109, %2 : vector<256x128xf32>
    %c0_54 = arith.constant 0 : index
    %c0_55 = arith.constant 0 : index
    %111 = vector.load %arg9[%c0_54, %c0_55] : memref<256x128xf32, #tpu.memory_space<vmem>>, vector<256x128xf32>
    tpu.vector_store %arg9[%c0_54, %c0_55], %110 {strides = array<i32>} : memref<256x128xf32, #tpu.memory_space<vmem>>, vector<256x128xf32>,
    return
  }
  func.func @transform_0(%arg0: i32, %arg1: i32) -> (i32, i32) {
    %c1_i32 = arith.constant 1 : i32
    %0 = arith.muli %arg0, %c1_i32 : i32
    %1 = arith.addi %0, %arg1 : i32
    %c0_i32 = arith.constant 0 : i32
    %c0_i32_0 = arith.constant 0 : i32
    return %1, %c0_i32 : i32, i32
  }
  func.func @transform_1(%arg0: i32, %arg1: i32) -> (i32, i32) {
    %c16_i32 = arith.constant 16 : i32
    %0 = arith.muli %arg0, %c16_i32 : i32
    %c16_i32_0 = arith.constant 16 : i32
    %1 = arith.muli %arg1, %c16_i32_0 : i32
    %2 = arith.addi %0, %1 : i32
    %c1_i32 = arith.constant 1 : i32
    %3 = arith.subi %2, %c1_i32 : i32
    %c0_i32 = arith.constant 0 : i32
    %4 = arith.maxsi %3, %c0_i32 : i32
    %c0_i32_1 = arith.constant 0 : i32
    %c0_i32_2 = arith.constant 0 : i32
    return %4, %c0_i32_1 : i32, i32
  }
  func.func @transform_2(%arg0: i32, %arg1: i32) -> (i32, i32) {
    %c16_i32 = arith.constant 16 : i32
    %0 = arith.muli %arg0, %c16_i32 : i32
    %c1_i32 = arith.constant 1 : i32
    %1 = arith.addi %arg1, %c1_i32 : i32
    %c16_i32_0 = arith.constant 16 : i32
    %2 = arith.muli %1, %c16_i32_0 : i32
    %3 = arith.addi %0, %2 : i32
    %c31_i32 = arith.constant 31 : i32
    %4 = arith.minsi %3, %c31_i32 : i32
    %c0_i32 = arith.constant 0 : i32
    %c0_i32_1 = arith.constant 0 : i32
    return %4, %c0_i32 : i32, i32
  }
  func.func @transform_3(%arg0: i32, %arg1: i32) -> (i32, i32) {
    %c0_i32 = arith.constant 0 : i32
    %c0_i32_0 = arith.constant 0 : i32
    %c0_i32_1 = arith.constant 0 : i32
    return %c0_i32, %c0_i32_0 : i32, i32
  }
  func.func @transform_4(%arg0: i32, %arg1: i32) -> (i32, i32) {
    %c0_i32 = arith.constant 0 : i32
    %c0_i32_0 = arith.constant 0 : i32
    %c0_i32_1 = arith.constant 0 : i32
    return %c0_i32, %c0_i32_0 : i32, i32
  }
  func.func @transform_5(%arg0: i32, %arg1: i32) -> (i32, i32) {
    %c0_i32 = arith.constant 0 : i32
    %c0_i32_0 = arith.constant 0 : i32
    %c0_i32_1 = arith.constant 0 : i32
    return %c0_i32, %c0_i32_0 : i32, i32
  }
  func.func @transform_6(%arg0: i32, %arg1: i32) -> (i32, i32) {
    %c0_i32 = arith.constant 0 : i32
    %c0_i32_0 = arith.constant 0 : i32
    %c0_i32_1 = arith.constant 0 : i32
    return %c0_i32, %c0_i32_0 : i32, i32
  }
  func.func @transform_7(%arg0: i32, %arg1: i32) -> (i32, i32) {
    %c1_i32 = arith.constant 1 : i32
    %0 = arith.muli %arg0, %c1_i32 : i32
    %1 = arith.addi %0, %arg1 : i32
    %c0_i32 = arith.constant 0 : i32
    %c0_i32_0 = arith.constant 0 : i32
    return %1, %c0_i32 : i32, i32
  }
}

</mosaic_0001>

<bundles_post_ra>
// kernel: tpu_custom_call.1
= control target key start
LH: loop header
LB: loop body
LE: loop exit
PB: predicated region body
PF: predicated region fallthrough
CT: control target
= control target key end

     0   :  { %s8654_s0 = inlined_call_operand.hbm [shape: f32[512,128], index: 0, kind: input, shape index: {}]   ;;  %s8655_s1 = inlined_call_operand.hbm [shape: f32[512,128], index: 1, kind: input, shape index: {}]   ;;  %s8656_s2 = inlined_call_operand.hbm [shape: f32[512,128], index: 2, kind: input, shape index: {}]   ;;  %s8657_s3 = inlined_call_operand.hbm [shape: f32[128,128], index: 3, kind: input, shape index: {}]   ;;  %s8658_s4 = inlined_call_operand.vmem [shape: f32[1,128], index: 4, kind: input, shape index: {}]   ;;  %s8659_s5 = inlined_call_operand.hbm [shape: f32[1152,128], index: 5, kind: input, shape index: {}]   ;;  %s8660_s6 = inlined_call_operand.vmem [shape: f32[1,128], index: 6, kind: input, shape index: {}]   ;;  %s8661_s7 = inlined_call_operand.hbm [shape: f32[512,128], index: 7, kind: output, shape index: {}]  }
   0x1   :  { %8760 = sst [smem:[#allocation132_spill]] %s8654_s0 }
   0x2   :  { %8761 = sst [smem:[#allocation133_spill]] %s8655_s1 }
   0x3   :  { %8762 = sst [smem:[#allocation134_spill]] %s8656_s2 }
   0x4   :  { %8763 = sst [smem:[#allocation135_spill]] %s8657_s3 }
   0x5   :  { %8764 = sst [smem:[#allocation136_spill]] %s8658_s4 }
   0x6   :  { %8765 = sst [smem:[#allocation137_spill]] %s8659_s5 }
   0x7   :  { %8766 = sst [smem:[#allocation138_spill]] %s8660_s6 }
   0x8   :  { %8767 = sst [smem:[#allocation139_spill]] %s8661_s7 }
   0x9   :  { %12 = vsyncpa [#allocation4], 0 }
   0xa   :  { %14 = vsyncpa [#allocation4 + $0x1], 0 }
   0xb   :  { %15 = vsyncpa [#allocation7], 0 }
   0xc   :  { %17 = vsyncpa [#allocation7 + $0x1], 0 }
   0xd   :  { %18 = vsyncpa [#allocation10], 0 }
   0xe   :  { %19 = vsyncpa [#allocation5], 0 }
   0xf   :  { %21 = vsyncpa [#allocation5 + $0x1], 0  ;;  %s5727_s24 = smov 0   ;;  %s5729_s25 = smov 0  }
  0x10   :  { %s5731_s26 = smov 0   ;;  %s5733_s27 = smov 0  }
  0x11   :  { %s5735_s28 = smov 0   ;;  %s5737_s29 = smov 0  }
  0x12   :  { %s5739_s30 = smov 0   ;;  %s5741_s8 = smov 0  }
  0x13   :  { %s5743_s9 = smov 0   ;;  %s5745_s10 = smov 0  }
  0x14   :  { %s5747_s11 = smov 0   ;;  %s5749_s12 = smov 0  }
  0x15 LB: > { %8768 = sst [smem:[#allocation18_spill]] %s5650_s28  ;;  %s5788_s13 = sadd.s32 4294967295, %s5678_s12   ;;  %s5678_s12 = sphi %s5749_s12, %s27_s12   ;;  %s5674_s11 = sphi %s5747_s11, %s9259_s11   ;;  %s5670_s10 = sphi %s5745_s10, %s9258_s10   ;;  %s5666_s9 = sphi %s5743_s9, %s9268_s9   ;;  %s5662_s8 = sphi %s5741_s8, %s9267_s8   ;;  %s5658_s30 = sphi %s5739_s30, %s9266_s30   ;;  %s5654_s29 = sphi %s5737_s29, %s9265_s29   ;;  %s5650_s28 = sphi %s5735_s28, %s9264_s28   ;;  %s5646_s27 = sphi %s5733_s27, %s9263_s27   ;;  %s5642_s26 = sphi %s5731_s26, %s9262_s26   ;;  %s5638_s25 = sphi %s5729_s25, %s9261_s25   ;;  %s5634_s24 = sphi %s5727_s24, %s9260_s24  }
  0x16   : > { %8769 = sst [smem:[#allocation19_spill]] %s5670_s10  ;;  %p4702_p0 = scmp.ge.s32.totalorder %s5678_s12, 1 }
  0x17   : > { %8770 = sst [smem:[#allocation20_spill]] %s5674_s11  ;;  %p8675_p1 = scmp.eq.s32.totalorder %s5788_s13, 0 }
  0x18   : > { %p260_p2 = scmp.lt.s32.totalorder %s5678_s12, 3  ;;  %s8771_s3 = sld [smem:[#allocation135_spill]] }
  0x19   : > { %s5680_s18 = smov [#allocation9]   ;;  %s8663_s21 = smov 128  }
  0x1a   : > { %p5796_p3 = pnand %p4702_p0, %p260_p2  ;;  %s273_s19 = sshll.u32 %s5680_s18, 4  ;;  %s274_s19 = int_to_ptr.vmem [resolvable:$true] %s273_s19 }
  0x1b   : > { %s8665_s22 = smov 8   ;;  %s39_s23 = sadd.s32 1, %s5674_s11 }
  0x1c   : > { %s8772_s17 = scalar_select %p5796_p3, 1, 0 }
  0x1d   : > { %p4946_p4 = pneg %p5796_p3  ;;  %p41_p7 = scmp.ge.s32.totalorder %s39_s23, 2 }
  0x1e   : > { %s271_s16 = sshll.u32 %s8771_s3, 4  ;;  %8773 = sst [smem:[#allocation21_spill]] %s8772_s17  ;;  %s272_s16 = int_to_ptr.hbm [resolvable:$true] %s271_s16 }
  0x1f   : > { %p5804_p5 = pnand %p4946_p4, %p8675_p1  ;;  %p56_p8 = scmp.eq.s32.totalorder %s5678_s12, 0 }
  0x20   : > { %s4696_s14 = sshll.u32 %s5674_s11, 4  ;;  %s86_s15 = sadd.s32 1, %s5654_s29 }
  0x21   : > { %4949 = dma.hbm_to_vmem [thread:$0]  (!%p5804_p5), %s272_s16, 2048, %s274_s19, [#allocation10], %s8663_s21, %s8663_s21, %s8665_s22  }
  0x22   : > { %s9270_s23 = smov (%p41_p7, %s39_s23), 0  ;;  %s4697_s18 = sadd.s32 4294967295, %s4696_s14 }
  0x23   : > { %8775 = sst [smem:[#allocation22_spill]] %s9270_s23  ;;  %p93_p9 = scmp.ne.s32.totalorder %s5654_s29, %s5650_s28 }
  0x24   : > { %s45_s3 = ssub.s32 %s5674_s11, %s9270_s23  ;;  %p75_p10 = scmp.gt.s32.totalorder %s4697_s18, 0 }
  0x25   : > { %p5824_p11 = scmp.eq.s32.totalorder %s45_s3, 0  ;;  %s4698_s16 = sshll.u32 %s9270_s23, 4 }
  0x26   : > { %s9272_s18 = smov (!%p75_p10, %s4697_s18), 0  ;;  %s4699_s19 = sadd.s32 4294967295, %s4698_s16 }
  0x27   : > { %p5831_p12 = por %p93_p9, %p56_p8  ;;  %p81_p13 = scmp.gt.s32.totalorder %s4699_s19, 0 }
  0x28   : > { %p99_p0 = scmp.ne.s32.totalorder %s5650_s28, %s5646_s27  ;;  %s5837_s22 = sadd.s32 16, %s4696_s14 }
  0x29   : > { %s5839_s3 = sadd.s32 16, %s4698_s16  ;;  %s9274_s19 = smov (!%p81_p13, %s4699_s19), 0 }
  0x2a   : > { %p5843_p2 = por %p99_p0, %p8675_p1  ;;  %p113_p4 = scmp.lt.s32.totalorder %s5837_s22, 31 }
  0x2b   : > { %s83_s10 = ssub.s32 %s9272_s18, %s9274_s19  ;;  %p4969_p10 = scmp.lt.s32.totalorder %s5678_s12, 2 }
  0x2c   : > { %s8778_s23 = scalar_select %p5843_p2, 1, 0 }
  0x2d   : > { %p84_p9 = scmp.eq.s32.totalorder %s83_s10, 0  ;;  %s330_s27 = sand.u32 1, %s5678_s12  }
  0x2e   : > { %8779 = sst [smem:[#allocation23_spill]] %s8778_s23  ;;  %s332_s14 = sand.u32 1, %s5654_s29  }
  0x2f   : > { %s5853_s28 = scalar_select %p84_p9, %s5654_s29, %s86_s15  }
  0x30   : > { %s4709_s16 = sshll.u32 %s332_s14, 4  ;;  %s4895_s6 = sshll.u32 %s9272_s18, 4 }
  0x31   : > { %s8780_s1 = sld [smem:[#allocation133_spill]]  ;;  %s334_s23 = scalar_lea.vmem [#allocation6], %s4709_s16 }
  0x32   : > { %s348_s19 = sshll.u32 %s334_s23, 4  ;;  %p4957_p13 = pnand %p4969_p10, %p5831_p12  ;;  %s349_s19 = int_to_ptr.vmem [resolvable:$true] %s348_s19 }
  0x33   : > { %s8781_s5 = sld [smem:[#allocation137_spill]]  ;;  %s5865_s17 = scalar_lea.sflag [#allocation7], %s330_s27 }
  0x34   : > { %s8782_s23 = smov 8   ;;  %s8783_s18 = smov 128  }
  0x35   : > { %s4695_s14 = sadd.s32 4294967294, %s5678_s12   ;;  %s48_s16 = sadd.s32 1, %s5666_s9 }
  0x36   : > { %s5881_s27 = scalar_select %p5824_p11, %s5666_s9, %s48_s16  }
  0x37   : > { %s345_s2 = scalar_lea.hbm %s8780_s1, %s4895_s6  ;;  %p55_p12 = scmp.ne.s32.totalorder %s5666_s9, %s5662_s8 }
  0x38   : > { %s346_s10 = sshll.u32 %s345_s2, 4  ;;  %s5683_s2 = smov [#allocation11]   ;;  %s347_s10 = int_to_ptr.hbm [resolvable:$true] %s346_s10 }
  0x39   : > { %s288_s6 = sshll.u32 %s8781_s5, 4  ;;  %s290_s21 = sshll.u32 %s5683_s2, 4  ;;  %s289_s6 = int_to_ptr.hbm [resolvable:$true] %s288_s6  ;;  %s291_s21 = int_to_ptr.vmem [resolvable:$true] %s290_s21 }
  0x3a   : > { %4959 = dma.hbm_to_vmem [thread:$0]  (!%p4957_p13), %s347_s10, 256, %s349_s19, %s5865_s17, %s8783_s18, %s8783_s18, %s8782_s23  }
  0x3b   : > { %4952 = dma.hbm_to_vmem [thread:$0]  (!%p5804_p5), %s289_s6, 18432, %s291_s21, [#allocation10], %s8783_s18, %s8783_s18, %s8782_s23  }
  0x3c   : > { %p61_p0 = scmp.ne.s32.totalorder %s5662_s8, %s5658_s30  ;;  %p247_p9 = scmp.eq.s32.totalorder %s5788_s13, 1 }
  0x3d   : > { %p253_p13 = scmp.eq.s32.totalorder %s4695_s14, 1  ;;  %p5890_p6 = por %p56_p8, %p55_p12 }
  0x3e   : > { %p5896_p5 = por %p8675_p1, %p61_p0  ;;  %p5900_p11 = por %p247_p9, %p55_p12 }
  0x3f   : > { %p5904_p7 = por %p253_p13, %p61_p0  ;;  %s307_s15 = sand.u32 1, %s5666_s9  }
  0x40   : > { %s8786_s7 = scalar_select %p5900_p11, 1, 0 }
  0x41   : > { %s8787_s10 = scalar_select %p5904_p7, 1, 0 }
  0x42   : > { %s4894_s4 = sshll.u32 %s5674_s11, 8  ;;  %s4706_s6 = sshll.u32 %s307_s15, 8 }
  0x43   : > { %s8788_s0 = sld [smem:[#allocation132_spill]]  ;;  %s311_s1 = scalar_lea.vmem [#allocation3], %s4706_s6 }
  0x44   : > { %s320_s5 = sshll.u32 %s311_s1, 4  ;;  %p4954_p12 = pnand %p4969_p10, %p5890_p6  ;;  %s321_s5 = int_to_ptr.vmem [resolvable:$true] %s320_s5 }
  0x45   : > { %s308_s11 = scalar_lea.sflag [#allocation4], %s307_s15  ;;  %s9276_s22 = smov (!%p113_p4, %s5837_s22), 31 }
  0x46   : > { %p8789_p0 = scmp.lt.s32.totalorder %s5839_s3, 31  ;;  %p131_p9 = scmp.ne.s32.totalorder %s5642_s26, %s5638_s25 }
  0x47   : > { %p137_p13 = scmp.ne.s32.totalorder %s5638_s25, %s5634_s24  ;;  %p8790_p11 = scmp.eq.s32.totalorder %s5788_s13, 0 }
  0x48   : > { %s9278_s3 = smov (!%p8789_p0, %s5839_s3), 31  ;;  %p133_p7 = por %p131_p9, %p56_p8 }
  0x49   : > { %s317_s14 = scalar_lea.hbm %s8788_s0, %s4894_s4  ;;  %s124_s4 = sadd.s32 1, %s5642_s26 }
  0x4a   : > { %s318_s16 = sshll.u32 %s317_s14, 4  ;;  %s121_s6 = ssub.s32 %s9276_s22, %s9278_s3  ;;  %s319_s16 = int_to_ptr.hbm [resolvable:$true] %s318_s16 }
  0x4b   : > { %4956 = dma.hbm_to_vmem [thread:$0]  (!%p4954_p12), %s319_s16, 4096, %s321_s5, %s308_s11, %s8783_s18, %s8783_s18, %s8782_s23  }
  0x4c   : > { %p122_p1 = scmp.eq.s32.totalorder %s121_s6, 0  ;;  %p5935_p6 = por %p137_p13, %p8790_p11 }
  0x4d   : > { %s360_s19 = sand.u32 1, %s5642_s26   ;;  %s4896_s15 = sshll.u32 %s9276_s22, 4 }
  0x4e   : > { %s5941_s5 = scalar_select %p122_p1, %s5642_s26, %s124_s4  }
  0x4f   : > { %s4714_s11 = sshll.u32 %s360_s19, 4  ;;  %s8792_s14 = sld [smem:[#allocation134_spill]] }
  0x50   : > { %s362_s0 = scalar_lea.vmem [#allocation8], %s4714_s11  ;;  %p4960_p8 = pnand %p4969_p10, %p133_p7 }
  0x51   : > { %s376_s24 = sshll.u32 %s362_s0, 4  ;;  %s377_s24 = int_to_ptr.vmem [resolvable:$true] %s376_s24 }
  0x53   : > { %388 = sbr.rel (%p5796_p3) target bundleno = 1238 (0x4d6), region = 48 }
  0x55   : > { %s373_s16 = scalar_lea.hbm %s8792_s14, %s4896_s15 }
  0x56   : > { %s374_s3 = sshll.u32 %s373_s16, 4  ;;  %s375_s3 = int_to_ptr.hbm [resolvable:$true] %s374_s3 }
  0x57   : > { %4962 = dma.hbm_to_vmem [thread:$0]  (!%p4960_p8), %s375_s3, 256, %s377_s24, %s5865_s17, %s8783_s18, %s8783_s18, %s8782_s23  }
  0x58   : > { %s5955_s22 = sand.u32 1, %s5662_s8  }
  0x59   : > { %s4719_s4 = sshll.u32 %s5955_s22, 8  ;;  %s391_s0 = scalar_lea.sflag [#allocation4], %s5955_s22 }
  0x5a   : > { %s5961_s19 = scalar_lea.vmem [#allocation3], %s4719_s4 }
  0x5b   : > { %5613 = dma.done.wait (%p5896_p5), %s391_s0, 4096  }
  0x5c   : > { %5615 = vsyncadd (%p5896_p5), %s391_s0, 4294963200  ;;  %s400_s23 = sand.u32 1, %s5788_s13  }
  0x5d   : > { %s401_s18 = scalar_lea.sflag [#allocation7], %s400_s23 }
  0x5e   : > { %5617 = dma.done.wait (%p5843_p2), %s401_s18, 256  }
  0x5f   : > { %5619 = vsyncadd (%p5843_p2), %s401_s18, 4294967040 }
  0x60   : > { %5621 = dma.done.wait (%p5935_p6), %s401_s18, 256  }
  0x61   : > { %5623 = vsyncadd (%p5935_p6), %s401_s18, 4294967040  ;;  %p8795_p1 = scmp.eq.s32.totalorder %s5788_s13, 0 }
  0x63   : > { %5625 = dma.done.wait (%p8795_p1), [#allocation10], 20480   ;;  %p8796_p3 = pmov %p8795_p1 }
  0x64   : > { %v499_v0 = vld [vmem:[#allocation9 + $0x78] sm:$0xff]  ;;  %v498_v1 = vld [vmem:[#allocation9 + $0x70] sm:$0xff]  ;;  %v497_v2 = vld [vmem:[#allocation9 + $0x68] sm:$0xff]  ;;  %s8797_s1 = sld [smem:[#allocation136_spill]]  ;;  %s7967_s16 = scalar_lea.vmem [#allocation12], %s4719_s4 }
  0x65   : > { %5627 = vsyncadd (%p8796_p3), [#allocation10], 4294946816  ;;  %536 = vmatpush.msra.mxu0 %v499_v0  ;;  %4898 = vmatpush.msra.mxu2 %v499_v0  ;;  %v496_v3 = vld [vmem:[#allocation9 + $0x60] sm:$0xff]  ;;  %v495_v4 = vld [vmem:[#allocation9 + $0x58] sm:$0xff]  ;;  %s9187_s14 = sld [smem:[#allocation138_spill]]  ;;  %s4546_s13 = sshll.u32 %s7967_s16, 4  ;;  %s4547_s13 = int_to_ptr.vmem [resolvable:$true] %s4546_s13 }
  0x66   : > { %v494_v5 = vld [vmem:[#allocation9 + $0x50] sm:$0xff]  ;;  %v493_v6 = vld [vmem:[#allocation9 + $0x48] sm:$0xff]  ;;  %v492_v7 = vld [vmem:[#allocation9 + $0x40] sm:$0xff]  ;;  %s9250_s6 = sld [smem:[#allocation19_spill]]  ;;  %s4533_s11 = scalar_lea.sflag [#allocation5], %s5955_s22 }
  0x67   : > { %537 = vmatpush.msra.mxu0 %v498_v1  ;;  %4899 = vmatpush.msra.mxu2 %v498_v1  ;;  %v491_v8 = vld [vmem:[#allocation9 + $0x38] sm:$0xff]  ;;  %v490_v9 = vld [vmem:[#allocation9 + $0x30] sm:$0xff]  ;;  %v489_v10 = vld [vmem:[#allocation9 + $0x28] sm:$0xff]  ;;  %s9251_s23 = sld [smem:[#allocation139_spill]]  ;;  %p9252_p4 = scmp.ne.s32.totalorder %s8786_s7, 0 }
  0x68   : > { %v488_v11 = vld [vmem:[#allocation9 + $0x20] sm:$0xff]  ;;  %v487_v12 = vld [vmem:[#allocation9 + $0x18] sm:$0xff]  ;;  %v486_v13 = vld [vmem:[#allocation9 + $0x10] sm:$0xff] }
  0x69   : > { %538 = vmatpush.msra.mxu0 %v497_v2  ;;  %4900 = vmatpush.msra.mxu2 %v497_v2  ;;  %v485_v14 = vld [vmem:[#allocation9 + $0x8] sm:$0xff]  ;;  %v484_v15 = vld [vmem:[#allocation9] sm:$0xff]  ;;  %v503_v20 = vld [vmem:[%s5961_s19 + $0x10] sm:$0xff] }
  0x6a   : > { %v501_v16 = vld [vmem:[%s5961_s19] sm:$0xff]  ;;  %v502_v18 = vld [vmem:[%s5961_s19 + $0x8] sm:$0xff]  ;;  %v519_v21 = vld [vmem:[%s5961_s19 + $0x90] sm:$0xff] }
  0x6b   : > { %539 = vmatpush.msra.mxu0 %v496_v3  ;;  %4901 = vmatpush.msra.mxu2 %v496_v3  ;;  %v517_v17 = vld [vmem:[%s5961_s19 + $0x80] sm:$0xff]  ;;  %v518_v19 = vld [vmem:[%s5961_s19 + $0x88] sm:$0xff]  ;;  %v504_v22 = vld [vmem:[%s5961_s19 + $0x18] sm:$0xff] }
  0x6c   : > { %v520_v23 = vld [vmem:[%s5961_s19 + $0x98] sm:$0xff]  ;;  %v505_v24 = vld [vmem:[%s5961_s19 + $0x20] sm:$0xff]  ;;  %v506_v26 = vld [vmem:[%s5961_s19 + $0x28] sm:$0xff]  ;;  %s4897_s4 = sshll.u32 %s9250_s6, 8 }
  0x6d   : > { %540 = vmatpush.msra.mxu0 %v495_v4  ;;  %4902 = vmatpush.msra.mxu2 %v495_v4  ;;  %v521_v25 = vld [vmem:[%s5961_s19 + $0xa0] sm:$0xff]  ;;  %v522_v27 = vld [vmem:[%s5961_s19 + $0xa8] sm:$0xff]  ;;  %v507_v28 = vld [vmem:[%s5961_s19 + $0x30] sm:$0xff]  ;;  %s4545_s18 = scalar_lea.hbm %s9251_s23, %s4897_s4  ;;  %s5556_s24 = scalar_lea.hbm %s9251_s23, 512 }
  0x6e   : > { %v523_v29 = vld [vmem:[%s5961_s19 + $0xb0] sm:$0xff]  ;;  %v508_v30 = vld [vmem:[%s5961_s19 + $0x38] sm:$0xff]  ;;  %v509_v32 = vld [vmem:[%s5961_s19 + $0x40] sm:$0xff]  ;;  %s4548_s20 = sshll.u32 %s4545_s18, 4  ;;  %s4549_s20 = int_to_ptr.hbm [resolvable:$true] %s4548_s20 }
  0x6f   : > { %541 = vmatpush.msra.mxu0 %v494_v5  ;;  %4903 = vmatpush.msra.mxu2 %v494_v5  ;;  %v524_v31 = vld [vmem:[%s5961_s19 + $0xb8] sm:$0xff]  ;;  %v525_v33 = vld [vmem:[%s5961_s19 + $0xc0] sm:$0xff]  ;;  %v510_v34 = vld [vmem:[%s5961_s19 + $0x48] sm:$0xff]  ;;  %s5550_s15 = sshra.s32 %s4549_s20, 4  ;;  %s5551_s15 = int_to_ptr.hbm [resolvable:$true] %s5550_s15 }
  0x70   : > { %v526_v35 = vld [vmem:[%s5961_s19 + $0xc8] sm:$0xff]  ;;  %v511_v36 = vld [vmem:[%s5961_s19 + $0x50] sm:$0xff]  ;;  %v2148_v37 = vld [vmem:[#allocation11 + $0xf8] sm:$0xff]  ;;  %s5552_s2 = scalar_lea.hbm %s5551_s15, 256  ;;  %p5557_p5 = scmp.lt.s32.totalorder %s5551_s15, %s9251_s23 }
  0x71   : > { %542 = vmatpush.msra.mxu0 %v493_v6  ;;  %4904 = vmatpush.msra.mxu2 %v493_v6  ;;  %v527_v38 = vld [vmem:[%s5961_s19 + $0xd0] sm:$0xff]  ;;  %v2146_v40 = vld [vmem:[#allocation11 + $0xe8] sm:$0xff]  ;;  %v2145_v41 = vld [vmem:[#allocation11 + $0xe0] sm:$0xff]  ;;  %p5553_p2 = scmp.ne.s32.totalorder %s5551_s15, %s5552_s2  ;;  %p5558_p11 = scmp.lt.s32.totalorder %s5556_s24, %s5552_s2 }
  0x72   : > { %v2147_v39 = vld [vmem:[#allocation11 + $0xf0] sm:$0xff]  ;;  %v512_v42 = vld [vmem:[%s5961_s19 + $0x58] sm:$0xff]  ;;  %v2142_v45 = vld [vmem:[#allocation11 + $0xc8] sm:$0xff] }
  0x73   : > { %543 = vmatpush.msra.mxu0 %v492_v7  ;;  %4905 = vmatpush.msra.mxu2 %v492_v7  ;;  %v2144_v43 = vld [vmem:[#allocation11 + $0xd8] sm:$0xff]  ;;  %v2143_v44 = vld [vmem:[#allocation11 + $0xd0] sm:$0xff]  ;;  %v2141_v46 = vld [vmem:[#allocation11 + $0xc0] sm:$0xff]  ;;  %p5554_p7 = pnand %p5553_p2, %p9252_p4  ;;  %p5559_p12 = por %p5558_p11, %p5557_p5 }
  0x74   : > { %v513_v47 = vld [vmem:[%s5961_s19 + $0x60] sm:$0xff]  ;;  %v528_v48 = vld [vmem:[%s5961_s19 + $0xd8] sm:$0xff]  ;;  %v2325_v51 = vld [vmem:[#allocation11 + $0x170] sm:$0xff] }
  0x75   : > { %544 = vmatpush.msra.mxu0 %v491_v8  ;;  %4906 = vmatpush.msra.mxu2 %v491_v8  ;;  %v2326_v49 = vld [vmem:[#allocation11 + $0x178] sm:$0xff]  ;;  %v2139_v52 = vld [vmem:[#allocation11 + $0xb0] sm:$0xff]  ;;  %v2324_v53 = vld [vmem:[#allocation11 + $0x168] sm:$0xff]  ;;  %p5555_p10 = pneg %p5554_p7 }
  0x76   : > { %v2140_v50 = vld [vmem:[#allocation11 + $0xb8] sm:$0xff]  ;;  %2343 = vmatpush.msra.mxu1 %v2326_v49  ;;  %4914 = vmatpush.msra.mxu3 %v2326_v49  ;;  %v2138_v54 = vld [vmem:[#allocation11 + $0xa8] sm:$0xff]  ;;  %v2323_v55 = vld [vmem:[#allocation11 + $0x160] sm:$0xff] }
  0x77   : > { %545 = vmatpush.msra.mxu0 %v490_v9  ;;  %4907 = vmatpush.msra.mxu2 %v490_v9  ;;  %v514_v56 = vld [vmem:[%s5961_s19 + $0x68] sm:$0xff]  ;;  %v529_v57 = vld [vmem:[%s5961_s19 + $0xe0] sm:$0xff]  ;;  %v2322_v59 = vld [vmem:[#allocation11 + $0x158] sm:$0xff]  ;;  %p5560_p0 = pnand %p5559_p12, %p5555_p10 }
  0x78   : > { %2344 = vmatpush.msra.mxu1 %v2325_v51  ;;  %4915 = vmatpush.msra.mxu3 %v2325_v51  ;;  %v2137_v58 = vld [vmem:[#allocation11 + $0xa0] sm:$0xff]  ;;  %v2342_v60 = vld [vmem:[#allocation11 + $0x1f8] sm:$0xff]  ;;  %v2321_v62 = vld [vmem:[#allocation11 + $0x150] sm:$0xff]  ;;  %v1476_v51 = vlaneseq }
  0x79   : > { %546 = vmatpush.msra.mxu0 %v489_v10  ;;  %4908 = vmatpush.msra.mxu2 %v489_v10  ;;  %v2136_v61 = vld [vmem:[#allocation11 + $0x98] sm:$0xff]  ;;  %v2341_v63 = vld [vmem:[#allocation11 + $0x1f0] sm:$0xff]  ;;  %v2320_v1 = vld [vmem:[#allocation11 + $0x148] sm:$0xff] }
  0x7a   : > { %2345 = vmatpush.msra.mxu1 %v2324_v53  ;;  %4916 = vmatpush.msra.mxu3 %v2324_v53  ;;  %v2135_v0 = vld [vmem:[#allocation11 + $0x90] sm:$0xff]  ;;  %v2340_v2 = vld [vmem:[#allocation11 + $0x1e8] sm:$0xff]  ;;  %v2319_v5 = vld [vmem:[#allocation11 + $0x140] sm:$0xff] }
  0x7b   : > { %547 = vmatpush.msra.mxu0 %v488_v11  ;;  %4909 = vmatpush.msra.mxu2 %v488_v11  ;;  %v2134_v3 = vld [vmem:[#allocation11 + $0x88] sm:$0xff]  ;;  %v515_v4 = vld [vmem:[%s5961_s19 + $0x70] sm:$0xff]  ;;  %v2339_v6 = vld [vmem:[#allocation11 + $0x1e0] sm:$0xff]  ;;  %v5684_v11 = vmov 0.0  }
  0x7c   : > { %2346 = vmatpush.msra.mxu1 %v2323_v55  ;;  %4917 = vmatpush.msra.mxu3 %v2323_v55  ;;  %v530_v7 = vld [vmem:[%s5961_s19 + $0xe8] sm:$0xff]  ;;  %v2133_v8 = vld [vmem:[#allocation11 + $0x80] sm:$0xff]  ;;  %v2318_v9 = vld [vmem:[#allocation11 + $0x138] sm:$0xff]  ;;  %1398 = vst [vmem:[#allocation2 + $0x8] sm:$0xff] %v5684_v11 }
  0x7d   : > { %548 = vmatpush.msra.mxu0 %v487_v12  ;;  %4910 = vmatpush.msra.mxu2 %v487_v12  ;;  %v2338_v10 = vld [vmem:[#allocation11 + $0x1d8] sm:$0xff]  ;;  %1321 = vst [vmem:[#allocation2] sm:$0xff] %v5684_v11  ;;  %v2317_v12 = vld [vmem:[#allocation11 + $0x130] sm:$0xff] }
  0x7e   : > { %2347 = vmatpush.msra.mxu1 %v2322_v59  ;;  %4918 = vmatpush.msra.mxu3 %v2322_v59  ;;  %1322 = vst [vmem:[#allocation2 + $0x128] sm:$0xff] %v5684_v11 }
  0x7f   : > { %549 = vmatpush.msra.mxu0 %v486_v13  ;;  %4911 = vmatpush.msra.mxu2 %v486_v13  ;;  %v2337_v13 = vld [vmem:[#allocation11 + $0x1d0] sm:$0xff]  ;;  %1399 = vst [vmem:[#allocation2 + $0x10] sm:$0xff] %v5684_v11 }
  0x80   : > { %2348 = vmatpush.msra.mxu1 %v2321_v62  ;;  %4919 = vmatpush.msra.mxu3 %v2321_v62  ;;  %1474 = vst [vmem:[#allocation2 + $0x118] sm:$0xff] %v5684_v11 }
  0x81   : > { %550 = vmatpush.msra.mxu0 %v485_v14  ;;  %4912 = vmatpush.msra.mxu2 %v485_v14  ;;  %v2316_v14 = vld [vmem:[#allocation11 + $0x128] sm:$0xff]  ;;  %1475 = vst [vmem:[#allocation2 + $0x120] sm:$0xff] %v5684_v11 }
  0x82   : > { %2349 = vmatpush.msra.mxu1 %v2320_v1  ;;  %4920 = vmatpush.msra.mxu3 %v2320_v1 }
  0x83   : > { %551 = vmatpush.msra.mxu0 %v484_v15  ;;  %4913 = vmatpush.msra.mxu2 %v484_v15  ;;  %v2336_v15 = vld [vmem:[#allocation11 + $0x1c8] sm:$0xff] }
  0x84   : > { %552 = vmatmul.f32.vlgmr.msra.gmra.mxu0 %v501_v16  ;;  %600 = vmatmul.f32.vlgmr.msra.gmra.mxu2 %v517_v17  ;;  %v516_v16 = vld [vmem:[%s5961_s19 + $0x78] sm:$0xff]  ;;  %v2315_v17 = vld [vmem:[#allocation11 + $0x120] sm:$0xff] }
  0x85   : > { %2682 = vmatpush.msrb.mxu0 %v2148_v37  ;;  %2456 = vmatpush.msrb.mxu2 %v2342_v60 }
  0x86   : > { %2350 = vmatpush.msra.mxu1 %v2319_v5  ;;  %4921 = vmatpush.msra.mxu3 %v2319_v5 }
  0x87   : > { %2683 = vmatpush.msrb.mxu0 %v2147_v39  ;;  %2457 = vmatpush.msrb.mxu2 %v2341_v63 }
  0x88   : > { %2351 = vmatpush.msra.mxu1 %v2318_v9  ;;  %4922 = vmatpush.msra.mxu3 %v2318_v9 }
  0x89   : > { %2684 = vmatpush.msrb.mxu0 %v2146_v40  ;;  %2458 = vmatpush.msrb.mxu2 %v2340_v2 }
  0x8a   : > { %2352 = vmatpush.msra.mxu1 %v2317_v12  ;;  %4923 = vmatpush.msra.mxu3 %v2317_v12 }
  0x8b   : > { %2685 = vmatpush.msrb.mxu0 %v2145_v41  ;;  %2459 = vmatpush.msrb.mxu2 %v2339_v6 }
  0x8c   : > { %555 = vmatmul.f32.gmra.mxu0 %v502_v18  ;;  %603 = vmatmul.f32.gmra.mxu2 %v518_v19  ;;  %v2335_v18 = vld [vmem:[#allocation11 + $0x1c0] sm:$0xff]  ;;  %v531_v19 = vld [vmem:[%s5961_s19 + $0xf0] sm:$0xff] }
  0x8d   : > { %2686 = vmatpush.msrb.mxu0 %v2144_v43  ;;  %2460 = vmatpush.msrb.mxu2 %v2338_v10 }
  0x8e   : > { %2353 = vmatpush.msra.mxu1 %v2316_v14  ;;  %4924 = vmatpush.msra.mxu3 %v2316_v14 }
  0x8f   : > { %2687 = vmatpush.msrb.mxu0 %v2143_v44  ;;  %2461 = vmatpush.msrb.mxu2 %v2337_v13 }
  0x90   : > { %2354 = vmatpush.msra.mxu1 %v2315_v17  ;;  %4925 = vmatpush.msra.mxu3 %v2315_v17 }
  0x91   : > { %2688 = vmatpush.msrb.mxu0 %v2142_v45  ;;  %2462 = vmatpush.msrb.mxu2 %v2336_v15 }
  0x93   : > { %2689 = vmatpush.msrb.mxu0 %v2141_v46  ;;  %2463 = vmatpush.msrb.mxu2 %v2335_v18 }
  0x94   : > { %558 = vmatmul.f32.gmra.mxu0 %v503_v20  ;;  %606 = vmatmul.f32.gmra.mxu2 %v519_v21  ;;  %v2314_v20 = vld [vmem:[#allocation11 + $0x118] sm:$0xff] }
  0x95   : > { %2690 = vmatpush.msrb.mxu0 %v2140_v50  ;;  %v2334_v21 = vld [vmem:[#allocation11 + $0x1b8] sm:$0xff]  ;;  %2355 = vmatpush.msra.mxu1 %v2314_v20 }
  0x96   : > { %2464 = vmatpush.msrb.mxu2 %v2334_v21  ;;  %4926 = vmatpush.msra.mxu3 %v2314_v20 }
  0x97   : > { %2691 = vmatpush.msrb.mxu0 %v2139_v52 }
  0x99   : > { %2692 = vmatpush.msrb.mxu0 %v2138_v54 }
  0x9b   : > { %2693 = vmatpush.msrb.mxu0 %v2137_v58  ;;  %v6042_v58 = vshrl.u32 %v1476_v51, 7 }
  0x9c   : > { %561 = vmatmul.f32.gmra.mxu0 %v504_v22  ;;  %609 = vmatmul.f32.gmra.mxu2 %v520_v23  ;;  %v2313_v22 = vld [vmem:[#allocation11 + $0x110] sm:$0xff] }
  0x9d   : > { %2694 = vmatpush.msrb.mxu0 %v2136_v61  ;;  %v2333_v23 = vld [vmem:[#allocation11 + $0x1b0] sm:$0xff]  ;;  %2356 = vmatpush.msra.mxu1 %v2313_v22  ;;  %v1513_v14 = vand.u32 15, %v6042_v58 }
  0x9e   : > { %2465 = vmatpush.msrb.mxu2 %v2333_v23  ;;  %4927 = vmatpush.msra.mxu3 %v2313_v22 }
  0x9f   : > { %2695 = vmatpush.msrb.mxu0 %v2135_v0  ;;  %vm6065_vm9 = vcmp.ne.s32.totalorder %v1513_v14, 0 }
  0xa1   : > { %2696 = vmatpush.msrb.mxu0 %v2134_v3 }
  0xa3   : > { %2697 = vmatpush.msrb.mxu0 %v2133_v8 }
  0xa4   : > { %564 = vmatmul.f32.gmra.mxu0 %v505_v24  ;;  %612 = vmatmul.f32.gmra.mxu2 %v521_v25  ;;  %v6020_v24 = vld [vmem:[%s8797_s1] ss:$0 sm:$0xff]  ;;  %v2312_v25 = vld [vmem:[#allocation11 + $0x108] sm:$0xff] }
  0xa5   : > { %2357 = vmatpush.msra.mxu1 %v2312_v25  ;;  %4928 = vmatpush.msra.mxu3 %v2312_v25 }
  0xac   : > { %567 = vmatmul.f32.gmra.mxu0 %v506_v26  ;;  %615 = vmatmul.f32.gmra.mxu2 %v522_v27  ;;  %v2332_v26 = vld [vmem:[#allocation11 + $0x1a8] sm:$0xff] }
  0xad   : > { %2466 = vmatpush.msrb.mxu2 %v2332_v26  ;;  %v8800_v26 = vmov 0 }
  0xae   : > { %v8801_v26 = vsel %vm6065_vm9, 4294967295, %v8800_v26 }
  0xaf   : > { %8802 = vst [vmem:[#allocation24_spill] sm:$0xff] %v8801_v26 }
  0xb4   : > { %570 = vmatmul.f32.gmra.mxu0 %v507_v28  ;;  %618 = vmatmul.f32.gmra.mxu2 %v523_v29  ;;  %v2311_v28 = vld [vmem:[#allocation11 + $0x100] sm:$0xff] }
  0xb5   : > { %v2331_v29 = vld [vmem:[#allocation11 + $0x1a0] sm:$0xff]  ;;  %2358 = vmatpush.msra.mxu1 %v2311_v28  ;;  %4929 = vmatpush.msra.mxu3 %v2311_v28 }
  0xb6   : > { %2467 = vmatpush.msrb.mxu2 %v2331_v29 }
  0xbc   : > { %573 = vmatmul.f32.gmra.mxu0 %v508_v30  ;;  %621 = vmatmul.f32.gmra.mxu2 %v524_v31  ;;  %v532_v31 = vld [vmem:[%s5961_s19 + $0xf8] sm:$0xff] }
  0xc4   : > { %576 = vmatmul.f32.gmra.mxu0 %v509_v32  ;;  %624 = vmatmul.f32.gmra.mxu2 %v525_v33  ;;  %v2149_v32 = vld [vmem:[#allocation2 + $0x9] sm:$0xff] }
  0xc5   : > { %v2330_v33 = vld [vmem:[#allocation11 + $0x198] sm:$0xff]  ;;  %2359 = vmatmul.f32.vlgmr.msra.gmra.mxu1 %v2149_v32 }
  0xc6   : > { %2468 = vmatpush.msrb.mxu2 %v2330_v33 }
  0xcc   : > { %579 = vmatmul.f32.gmra.mxu0 %v510_v34  ;;  %627 = vmatmul.f32.gmra.mxu2 %v526_v35  ;;  %v2329_v35 = vld [vmem:[#allocation11 + $0x190] sm:$0xff] }
  0xcd   : > { %2469 = vmatpush.msrb.mxu2 %v2329_v35 }
  0xd4   : > { %582 = vmatmul.f32.gmra.mxu0 %v511_v36  ;;  %630 = vmatmul.f32.gmra.mxu2 %v527_v38  ;;  %v2328_v36 = vld [vmem:[#allocation11 + $0x188] sm:$0xff]  ;;  %v2327_v38 = vld [vmem:[#allocation11 + $0x180] sm:$0xff] }
  0xd5   : > { %2470 = vmatpush.msrb.mxu2 %v2328_v36 }
  0xd7   : > { %2471 = vmatpush.msrb.mxu2 %v2327_v38 }
  0xdc   : > { %585 = vmatmul.f32.gmra.mxu0 %v512_v42  ;;  %633 = vmatmul.f32.gmra.mxu2 %v528_v48 }
  0xe4   : > { %588 = vmatmul.f32.gmra.mxu0 %v513_v47  ;;  %636 = vmatmul.f32.gmra.mxu2 %v529_v57 }
  0xec   : > { %591 = vmatmul.f32.gmra.mxu0 %v514_v56  ;;  %639 = vmatmul.f32.gmra.mxu2 %v530_v7 }
  0xf4   : > { %594 = vmatmul.f32.gmra.mxu0 %v515_v4  ;;  %642 = vmatmul.f32.gmra.mxu2 %v531_v19  ;;  %v1478_v4 = vadd.s32 8, %v6042_v58 }
  0xf6   : > { %v1520_v13 = vand.u32 15, %v1478_v4 }
  0xf8   : > { %vm6061_vm8 = vcmp.ne.s32.totalorder %v1520_v13, 15 }
  0xfc   : > { %597 = vmatmul.f32.gmra.mxu0 %v516_v16  ;;  %645 = vmatmul.f32.gmra.mxu2 %v532_v31 }
 0x101   : > { %v553_v27 = vpop.f32.mrf.mxu0 }
 0x102   : > { %v6023_v30 = vadd.f32 %v6020_v24, %v553_v27 }
 0x104   : > { %v4725_v34 = vmul.f32 -1.442695, %v6023_v30  ;;  %2698 = vmatmul.f32.vlgmr.msrb.gmra.mxu0 %v5684_v11 }
 0x106   : > { %5078 = vpow2.f32 %v4725_v34 }
 0x107   : > { %v6037_v49 = vpop.f32.mrf.mxu2 }
 0x109   : > { %v556_v37 = vpop.f32.mrf.mxu0 }
 0x10a   : > { %v6029_v39 = vadd.f32 %v6020_v24, %v556_v37  ;;  %v6083_v37 = vadd.f32 %v6020_v24, %v6037_v49 }
 0x10c   : > { %v5079_v40 = vpop.eup %5078  ;;  %v4726_v41 = vmul.f32 -1.442695, %v6029_v39  ;;  %2701 = vmatmul.f32.gmra.mxu0 %v5684_v11 }
 0x10d   : > { %v745_v42 = vadd.f32 1.0, %v5079_v40 }
 0x10e   : > { %5080 = vpow2.f32 %v4726_v41  ;;  %v1480_v41 = vadd.s32 24, %v6042_v58 }
 0x10f   : > { %5082 = vrcp.f32 %v745_v42  ;;  %v788_v53 = vand.u32 2147483648, %v745_v42  ;;  %v786_v56 = vand.u32 2147483647, %v745_v42  ;;  %vm782_vm1 = vweird.f32 %v745_v42  ;;  %v6049_v5 = vpop.f32.mrf.mxu2 }
 0x111   : > { %v559_v43 = vpop.f32.mrf.mxu0  ;;  %v789_v63 = vor.u32 1.1754944e-38, %v788_v53  ;;  %vm787_vm3 = vcmp.eq.f32.partialorder %v786_v56, 8.507059e+37  ;;  %v1534_v53 = vand.u32 15, %v1480_v41 }
 0x112   : > { %v6034_v44 = vadd.f32 %v6020_v24, %v559_v43 }
 0x114   : > { %v5081_v45 = vpop.eup %5080  ;;  %v4727_v46 = vmul.f32 -1.442695, %v6034_v44 }
 0x115   : > { %v5083_v47 = vpop.eup %5082  ;;  %v746_v48 = vadd.f32 1.0, %v5081_v45 }
 0x116   : > { %v778_v50 = vmul.f32 %v5083_v47, %v745_v42  ;;  %5084 = vpow2.f32 %v4727_v46  ;;  %vm783_vm0 = vweird.f32 %v5083_v47  ;;  %v4741_v46 = vmul.f32 -1.442695, %v6083_v37 }
 0x117   : > { %5086 = vrcp.f32 %v746_v48  ;;  %vm784_vm2 = vmor %vm782_vm1, %vm783_vm0  ;;  %v803_v8 = vand.u32 2147483648, %v746_v48  ;;  %v801_v11 = vand.u32 2147483647, %v746_v48  ;;  %vm797_vm5 = vweird.f32 %v746_v48  ;;  %v6071_v33 = vpop.f32.mrf.mxu2 }
 0x118   : > { %v779_v52 = vsub.f32 1.0, %v778_v50  ;;  %vm6108_vm0 = vcmp.ne.s32.totalorder %v1534_v53, 15 }
 0x119   : > { %v562_v54 = vpop.f32.mrf.mxu0  ;;  %v804_v19 = vor.u32 1.1754944e-38, %v803_v8  ;;  %vm802_vm7 = vcmp.eq.f32.partialorder %v801_v11, 8.507059e+37 }
 0x11a   : > { %v780_v55 = vmul.f32 %v5083_v47, %v779_v52  ;;  %v6040_v57 = vadd.f32 %v6020_v24, %v562_v54 }
 0x11c   : > { %v5085_v59 = vpop.eup %5084  ;;  %v781_v60 = vadd.f32 %v5083_v47, %v780_v55  ;;  %v4728_v61 = vmul.f32 -1.442695, %v6040_v57 }
 0x11d   : > { %v5087_v62 = vpop.eup %5086  ;;  %v6045_v0 = vadd.f32 1.0, %v5085_v59 }
 0x11e   : > { %v785_v1 = vsel %vm784_vm2, %v5083_v47, %v781_v60  ;;  %v793_v2 = vmul.f32 %v5087_v62, %v746_v48  ;;  %5088 = vpow2.f32 %v4728_v61  ;;  %vm798_vm4 = vweird.f32 %v5087_v62 }
 0x11f   : > { %v790_v3 = vsel %vm787_vm3, %v789_v63, %v785_v1  ;;  %5090 = vrcp.f32 %v6045_v0  ;;  %vm799_vm6 = vmor %vm797_vm5, %vm798_vm4  ;;  %v818_v29 = vand.u32 2147483648, %v6045_v0  ;;  %v816_v35 = vand.u32 2147483647, %v6045_v0 }
 0x120   : > { %v1257_v6 = vmul.f32 %v790_v3, %v6023_v30  ;;  %v794_v7 = vsub.f32 1.0, %v793_v2  ;;  %vm812_vm11 = vweird.f32 %v6045_v0  ;;  %v1479_v47 = vadd.s32 16, %v6042_v58 }
 0x121   : > { %v565_v9 = vpop.f32.mrf.mxu0  ;;  %v819_v43 = vor.u32 1.1754944e-38, %v818_v29  ;;  %vm817_vm13 = vcmp.eq.f32.partialorder %v816_v35, 8.507059e+37 }
 0x122   : > { %1289 = vst [vmem:[#allocation2 + $0x18] sm:$0xff] %v1257_v6  ;;  %v795_v10 = vmul.f32 %v5087_v62, %v794_v7  ;;  %v6053_v12 = vadd.f32 %v6020_v24, %v565_v9  ;;  %2704 = vmatmul.f32.gmra.mxu0 %v1257_v6  ;;  %v1527_v60 = vand.u32 15, %v1479_v47  ;;  %v8805_v9 = vmov 0 }
 0x124   : > { %v5089_v15 = vpop.eup %5088  ;;  %v796_v16 = vadd.f32 %v5087_v62, %v795_v10  ;;  %v4729_v17 = vmul.f32 -1.442695, %v6053_v12  ;;  %vm6115_vm2 = vcmp.ne.s32.totalorder %v1527_v60, 0 }
 0x125   : > { %v5091_v18 = vpop.eup %5090  ;;  %v6057_v20 = vadd.f32 1.0, %v5089_v15  ;;  %v8806_v9 = vsel %vm6115_vm2, 4294967295, %v8805_v9  ;;  %v1482_v15 = vadd.s32 40, %v6042_v58 }
 0x126   : > { %v800_v21 = vsel %vm799_vm6, %v5087_v62, %v796_v16  ;;  %v808_v22 = vmul.f32 %v5091_v18, %v6045_v0  ;;  %5092 = vpow2.f32 %v4729_v17  ;;  %vm813_vm10 = vweird.f32 %v5091_v18  ;;  %v6104_v0 = vpop.f32.mrf.mxu2  ;;  %8807 = vst [vmem:[#allocation25_spill] sm:$0xff] %v8806_v9 }
 0x127   : > { %v805_v23 = vsel %vm802_vm7, %v804_v19, %v800_v21  ;;  %5094 = vrcp.f32 %v6057_v20  ;;  %vm814_vm12 = vmor %vm812_vm11, %vm813_vm10  ;;  %v833_v54 = vand.u32 2147483648, %v6057_v20  ;;  %v831_v62 = vand.u32 2147483647, %v6057_v20 }
 0x128   : > { %v1258_v27 = vmul.f32 %v805_v23, %v6029_v39  ;;  %v809_v28 = vsub.f32 1.0, %v808_v22  ;;  %vm827_vm15 = vweird.f32 %v6057_v20  ;;  %v1481_v16 = vadd.s32 32, %v6042_v58 }
 0x129   : > { %v568_v30 = vpop.f32.mrf.mxu0  ;;  %v2150_v31 = vld [vmem:[#allocation2 + $0x11] sm:$0xff]  ;;  %v834_v7 = vor.u32 1.1754944e-38, %v833_v54  ;;  %vm832_vm3 = vcmp.eq.f32.partialorder %v831_v62, 8.507059e+37 }
 0x12a   : > { %v1959_v32 = vld [vmem:[#allocation2 + $0x17] sm:$0xff]  ;;  %1290 = vst [vmem:[#allocation2 + $0x20] sm:$0xff] %v1258_v27  ;;  %v810_v34 = vmul.f32 %v5091_v18, %v809_v28  ;;  %v6075_v36 = vadd.f32 %v6020_v24, %v568_v30  ;;  %4761 = vmatmul.msk.f32.gmra.mxu1 %vm6061_vm8, %v2150_v31  ;;  %2707 = vmatmul.f32.gmra.mxu0 %v1258_v27  ;;  %v1548_v30 = vand.u32 15, %v1482_v15  ;;  %v1541_v31 = vand.u32 15, %v1481_v16 }
 0x12b   : > { %4777 = vmatmul.msk.f32.vlgmr.msrb.gmra.mxu2 %vm6065_vm9, %v1959_v32 }
 0x12c   : > { %v5093_v38 = vpop.eup %5092  ;;  %v811_v39 = vadd.f32 %v5091_v18, %v810_v34  ;;  %v4730_v40 = vmul.f32 -1.442695, %v6075_v36 }
 0x12d   : > { %v5095_v42 = vpop.eup %5094  ;;  %v6088_v45 = vadd.f32 1.0, %v5093_v38 }
 0x12e   : > { %v815_v48 = vsel %vm814_vm12, %v5091_v18, %v811_v39  ;;  %v823_v49 = vmul.f32 %v5095_v42, %v6057_v20  ;;  %5096 = vpow2.f32 %v4730_v40  ;;  %vm828_vm14 = vweird.f32 %v5095_v42 }
 0x12f   : > { %v820_v50 = vsel %vm817_vm13, %v819_v43, %v815_v48  ;;  %5098 = vrcp.f32 %v6088_v45  ;;  %vm829_vm1 = vmor %vm827_vm15, %vm828_vm14  ;;  %v846_v19 = vand.u32 2147483647, %v6088_v45  ;;  %v848_v21 = vand.u32 2147483648, %v6088_v45 }
 0x130   : > { %v1259_v51 = vmul.f32 %v820_v50, %v6034_v44  ;;  %v824_v52 = vsub.f32 1.0, %v823_v49  ;;  %5100 = vpow2.f32 %v4741_v46  ;;  %v6102_v44 = vadd.f32 %v6020_v24, %v6049_v5 }
 0x131   : > { %v571_v55 = vpop.f32.mrf.mxu0  ;;  %v2151_v56 = vld [vmem:[#allocation2 + $0x19] sm:$0xff]  ;;  %vm842_vm5 = vweird.f32 %v6088_v45  ;;  %vm847_vm6 = vcmp.eq.f32.partialorder %v846_v19, 8.507059e+37  ;;  %v849_v38 = vor.u32 1.1754944e-38, %v848_v21  ;;  %v6154_v50 = vadd.f32 %v6020_v24, %v6071_v33 }
 0x132   : > { %v1960_v59 = vld [vmem:[#allocation2 + $0x1f] sm:$0xff]  ;;  %1291 = vst [vmem:[#allocation2 + $0x28] sm:$0xff] %v1259_v51  ;;  %v825_v61 = vmul.f32 %v5095_v42, %v824_v52  ;;  %v6098_v63 = vadd.f32 %v6020_v24, %v571_v55  ;;  %2365 = vmatmul.f32.gmra.mxu1 %v2151_v56  ;;  %2710 = vmatmul.f32.gmra.mxu0 %v1259_v51  ;;  %v4742_v5 = vmul.f32 -1.442695, %v6102_v44  ;;  %vm6156_vm12 = vcmp.ne.s32.totalorder %v1548_v30, 15 }
 0x133   : > { %2475 = vmatmul.f32.gmra.mxu2 %v1960_v59  ;;  %v8810_v51 = vmov 0  ;;  %vm6160_vm13 = vcmp.ne.s32.totalorder %v1541_v31, 0  ;;  %v8812_v52 = vmov 0  ;;  %v2827_v9 = vld [vmem:[#allocation2 + $0x19] sm:$0xff] }
 0x134   : > { %v5097_v1 = vpop.eup %5096  ;;  %v826_v2 = vadd.f32 %v5095_v42, %v825_v61  ;;  %v4731_v3 = vmul.f32 -1.442695, %v6098_v63  ;;  %v8811_v51 = vsel %vm6156_vm12, 4294967295, %v8810_v51  ;;  %v8813_v52 = vsel %vm6160_vm13, 4294967295, %v8812_v52 }
 0x135   : > { %v5099_v6 = vpop.eup %5098  ;;  %v6112_v8 = vadd.f32 1.0, %v5097_v1  ;;  %8814 = vst [vmem:[#allocation26_spill] sm:$0xff] %v8813_v52 }
 0x136   : > { %v5101_v10 = vpop.eup %5100  ;;  %v830_v11 = vsel %vm829_vm1, %v5095_v42, %v826_v2  ;;  %v838_v13 = vmul.f32 %v5099_v6, %v6088_v45  ;;  %5102 = vpow2.f32 %v4731_v3  ;;  %vm843_vm4 = vweird.f32 %v5099_v6  ;;  %v6142_v42 = vpop.f32.mrf.mxu2 }
 0x137   : > { %v835_v14 = vsel %vm832_vm3, %v834_v7, %v830_v11  ;;  %5104 = vrcp.f32 %v6112_v8  ;;  %v6125_v20 = vadd.f32 1.0, %v5101_v10  ;;  %v861_v29 = vand.u32 2147483647, %v6112_v8  ;;  %vm844_vm7 = vmor %vm842_vm5, %vm843_vm4 }
 0x138   : > { %v1260_v17 = vmul.f32 %v835_v14, %v6040_v57  ;;  %v839_v18 = vsub.f32 1.0, %v838_v13  ;;  %5106 = vpow2.f32 %v4742_v5  ;;  %v863_v39 = vand.u32 2147483648, %v6112_v8 }
 0x139   : > { %v574_v22 = vpop.f32.mrf.mxu0  ;;  %v2152_v23 = vld [vmem:[#allocation2 + $0x21] sm:$0xff]  ;;  %5108 = vrcp.f32 %v6125_v20  ;;  %vm857_vm10 = vweird.f32 %v6112_v8  ;;  %vm6146_vm11 = vcmp.eq.f32.partialorder %v861_v29, 8.507059e+37  ;;  %v1026_v49 = vand.u32 2147483647, %v6125_v20 }
 0x13a   : > { %v1961_v27 = vld [vmem:[#allocation2 + $0x27] sm:$0xff]  ;;  %1292 = vst [vmem:[#allocation2 + $0x30] sm:$0xff] %v1260_v17  ;;  %v840_v28 = vmul.f32 %v5099_v6, %v839_v18  ;;  %4762 = vmatmul.msk.f32.gmra.mxu1 %vm6108_vm0, %v2152_v23  ;;  %v6135_v57 = vadd.f32 %v6020_v24, %v574_v22  ;;  %2713 = vmatmul.f32.gmra.mxu0 %v1260_v17  ;;  %v1028_v56 = vand.u32 2147483648, %v6125_v20  ;;  %v864_v60 = vor.u32 1.1754944e-38, %v863_v39 }
 0x13b   : > { %4778 = vmatmul.msk.f32.gmra.mxu2 %vm6115_vm2, %v1961_v27  ;;  %vm1022_vm15 = vweird.f32 %v6125_v20  ;;  %v4743_v7 = vmul.f32 -1.442695, %v6154_v50  ;;  %vm6174_vm3 = vcmp.eq.f32.partialorder %v1026_v49, 8.507059e+37 }
 0x13c   : > { %v5103_v32 = vpop.eup %5102  ;;  %v841_v34 = vadd.f32 %v5099_v6, %v840_v28  ;;  %v4732_v41 = vmul.f32 -1.442695, %v6135_v57  ;;  %v1029_v11 = vor.u32 1.1754944e-38, %v1028_v56  ;;  %v6203_v28 = vadd.f32 %v6020_v24, %v6104_v0 }
 0x13d   : > { %v5105_v35 = vpop.eup %5104  ;;  %v6139_v40 = vadd.f32 1.0, %v5103_v32 }
 0x13e   : > { %v845_v43 = vsel %vm844_vm7, %v5099_v6, %v841_v34  ;;  %v853_v46 = vmul.f32 %v5105_v35, %v6112_v8  ;;  %v5107_v45 = vpop.eup %5106  ;;  %vm858_vm14 = vweird.f32 %v5105_v35  ;;  %v6205_v29 = vpop.f32.mrf.mxu2  ;;  %v4744_v39 = vmul.f32 -1.442695, %v6203_v28 }
 0x13f   : > { %v850_v48 = vsel %vm847_vm6, %v849_v38, %v845_v43  ;;  %5110 = vrcp.f32 %v6139_v40  ;;  %v5109_v53 = vpop.eup %5108  ;;  %v6166_v59 = vadd.f32 1.0, %v5107_v45  ;;  %v878_v61 = vand.u32 2147483648, %v6139_v40  ;;  %vm859_vm4 = vmor %vm857_vm10, %vm858_vm14 }
 0x140   : > { %v1261_v54 = vmul.f32 %v850_v48, %v6053_v12  ;;  %v854_v55 = vsub.f32 1.0, %v853_v46  ;;  %v1018_v33 = vmul.f32 %v5109_v53, %v6125_v20  ;;  %5112 = vpow2.f32 %v4732_v41 }
 0x141   : > { %v577_v62 = vpop.f32.mrf.mxu0  ;;  %v2153_v1 = vld [vmem:[#allocation2 + $0x29] sm:$0xff]  ;;  %v876_v6 = vand.u32 2147483647, %v6139_v40  ;;  %5114 = vrcp.f32 %v6166_v59  ;;  %vm1023_vm1 = vweird.f32 %v5109_v53  ;;  %vm872_vm5 = vweird.f32 %v6139_v40 }
 0x142   : > { %v1962_v2 = vld [vmem:[#allocation2 + $0x2f] sm:$0xff]  ;;  %1293 = vst [vmem:[#allocation2 + $0x38] sm:$0xff] %v1261_v54  ;;  %v855_v3 = vmul.f32 %v5105_v35, %v854_v55  ;;  %2371 = vmatmul.f32.gmra.mxu1 %v2153_v1  ;;  %v1019_v12 = vsub.f32 1.0, %v1018_v33  ;;  %2716 = vmatmul.f32.gmra.mxu0 %v1261_v54  ;;  %v6179_v13 = vadd.f32 %v6020_v24, %v577_v62  ;;  %v879_v16 = vor.u32 1.1754944e-38, %v878_v61  ;;  %vm6187_vm6 = vmor %vm1022_vm15, %vm1023_vm1 }
 0x143   : > { %2481 = vmatmul.f32.gmra.mxu2 %v1962_v2  ;;  %5116 = vpow2.f32 %v4743_v7  ;;  %vm6192_vm7 = vcmp.eq.f32.partialorder %v876_v6, 8.507059e+37  ;;  %vm1037_vm10 = vweird.f32 %v6166_v59  ;;  %v1043_v20 = vand.u32 2147483648, %v6166_v59 }
 0x144   : > { %v856_v5 = vadd.f32 %v5105_v35, %v855_v3  ;;  %v1020_v15 = vmul.f32 %v5109_v53, %v1019_v12  ;;  %v4733_v8 = vmul.f32 -1.442695, %v6179_v13  ;;  %v1484_v46 = vadd.s32 56, %v6042_v58 }
 0x145   : > { %v5111_v14 = vpop.eup %5110  ;;  %v1044_v3 = vor.u32 1.1754944e-38, %v1043_v20  ;;  %v6318_v7 = vadd.f32 %v6020_v24, %v6205_v29 }
 0x146   : > { %v860_v17 = vsel %vm859_vm4, %v5105_v35, %v856_v5  ;;  %v868_v19 = vmul.f32 %v5111_v14, %v6139_v40  ;;  %v5113_v22 = vpop.eup %5112  ;;  %v1021_v27 = vadd.f32 %v5109_v53, %v1020_v15  ;;  %5118 = vpow2.f32 %v4733_v8 }
 0x147   : > { %v865_v23 = vsel %vm6146_vm11, %v864_v60, %v860_v17  ;;  %v5115_v30 = vpop.eup %5114  ;;  %v6208_v34 = vadd.f32 1.0, %v5113_v22  ;;  %vm873_vm11 = vweird.f32 %v5111_v14  ;;  %v1562_v61 = vand.u32 15, %v1484_v46 }
 0x148   : > { %v1262_v31 = vmul.f32 %v865_v23, %v6075_v36  ;;  %v869_v32 = vsub.f32 1.0, %v868_v19  ;;  %v1025_v35 = vsel %vm6187_vm6, %v5109_v53, %v1021_v27  ;;  %v1033_v38 = vmul.f32 %v5115_v30, %v6166_v59  ;;  %vm874_vm15 = vmor %vm872_vm5, %vm873_vm11 }
 0x149   : > { %v580_v41 = vpop.f32.mrf.mxu0  ;;  %v2154_v43 = vld [vmem:[#allocation2 + $0x31] sm:$0xff]  ;;  %v1030_v36 = vsel %vm6174_vm3, %v1029_v11, %v1025_v35  ;;  %5120 = vrcp.f32 %v6208_v34  ;;  %v5117_v45 = vpop.eup %5116  ;;  %vm1038_vm14 = vweird.f32 %v5115_v30  ;;  %v1041_v53 = vand.u32 2147483647, %v6166_v59 }
 0x14a   : > { %v1963_v0 = vld [vmem:[#allocation2 + $0x37] sm:$0xff]  ;;  %1294 = vst [vmem:[#allocation2 + $0x40] sm:$0xff] %v1262_v31  ;;  %v870_v47 = vmul.f32 %v5111_v14, %v869_v32  ;;  %4763 = vmatmul.msk.f32.gmra.mxu1 %vm6156_vm12, %v2154_v43  ;;  %v1273_v48 = vmul.f32 %v1030_v36, %v6083_v37  ;;  %v1034_v49 = vsub.f32 1.0, %v1033_v38  ;;  %2719 = vmatmul.f32.gmra.mxu0 %v1262_v31  ;;  %v6224_v55 = vadd.f32 1.0, %v5117_v45  ;;  %vm6237_vm1 = vmor %vm1037_vm10, %vm1038_vm14 }
 0x14b   : > { %4779 = vmatmul.msk.f32.gmra.mxu2 %vm6160_vm13, %v1963_v0  ;;  %5122 = vpow2.f32 %v4744_v39  ;;  %v6227_v56 = vadd.f32 %v6020_v24, %v580_v41  ;;  %v891_v37 = vand.u32 2147483647, %v6208_v34  ;;  %v893_v33 = vand.u32 2147483648, %v6208_v34 }
 0x14c   : > { %v871_v54 = vadd.f32 %v5111_v14, %v870_v47  ;;  %1305 = vst [vmem:[#allocation2 + $0x98] sm:$0xff] %v1273_v48  ;;  %v1035_v60 = vmul.f32 %v5115_v30, %v1034_v49  ;;  %v5119_v62 = vpop.eup %5118  ;;  %5124 = vrcp.f32 %v6224_v55  ;;  %v1483_v40 = vadd.s32 48, %v6042_v58 }
 0x14d   : > { %vm6245_vm3 = vcmp.eq.f32.partialorder %v1041_v53, 8.507059e+37  ;;  %v6249_v5 = vadd.f32 1.0, %v5119_v62  ;;  %vm887_vm4 = vweird.f32 %v6208_v34  ;;  %v4734_v11 = vmul.f32 -1.442695, %v6227_v56 }
 0x14e   : > { %v875_v1 = vsel %vm874_vm15, %v5111_v14, %v871_v54  ;;  %v1036_v12 = vadd.f32 %v5115_v30, %v1035_v60  ;;  %vm6257_vm5 = vcmp.eq.f32.partialorder %v891_v37, 8.507059e+37  ;;  %v894_v17 = vor.u32 1.1754944e-38, %v893_v33 }
 0x14f   : > { %v880_v6 = vsel %vm6192_vm7, %v879_v16, %v875_v1  ;;  %v5121_v59 = vpop.eup %5120  ;;  %vm6261_vm6 = vcmp.ne.s32.totalorder %v1562_v61, 15  ;;  %v8827_v8 = vmov 0  ;;  %v1056_v27 = vand.u32 2147483647, %v6224_v55 }
 0x150   : > { %v1263_v10 = vmul.f32 %v880_v6, %v6098_v63  ;;  %v1040_v14 = vsel %vm6237_vm1, %v5115_v30, %v1036_v12  ;;  %v883_v15 = vmul.f32 %v5121_v59, %v6208_v34  ;;  %v8828_v8 = vsel %vm6261_vm6, 4294967295, %v8827_v8  ;;  %v6265_v63 = vpop.f32.mrf.mxu2 }
 0x151   : > { %v583_v18 = vpop.f32.mrf.mxu0  ;;  %v2155_v19 = vld [vmem:[#allocation2 + $0x39] sm:$0xff]  ;;  %v5123_v22 = vpop.eup %5122  ;;  %v1045_v23 = vsel %vm6245_vm3, %v1044_v3, %v1040_v14  ;;  %v1058_v20 = vand.u32 2147483648, %v6224_v55  ;;  %5126 = vrcp.f32 %v6249_v5  ;;  %v1555_v35 = vand.u32 15, %v1483_v40 }
 0x152   : > { %v1964_v21 = vld [vmem:[#allocation2 + $0x3f] sm:$0xff]  ;;  %1295 = vst [vmem:[#allocation2 + $0x48] sm:$0xff] %v1263_v10  ;;  %2377 = vmatmul.f32.gmra.mxu1 %v2155_v19  ;;  %v1274_v30 = vmul.f32 %v1045_v23, %v6102_v44  ;;  %v884_v31 = vsub.f32 1.0, %v883_v15  ;;  %v6273_v32 = vadd.f32 1.0, %v5123_v22  ;;  %2722 = vmatmul.f32.gmra.mxu0 %v1263_v10  ;;  %v5125_v38 = vpop.eup %5124  ;;  %v908_v39 = vand.u32 2147483648, %v6249_v5 }
 0x153   : > { %2487 = vmatmul.f32.gmra.mxu2 %v1964_v21  ;;  %5128 = vpow2.f32 %v4734_v11  ;;  %v6278_v41 = vadd.f32 %v6020_v24, %v6142_v42  ;;  %v6281_v43 = vadd.f32 %v6020_v24, %v583_v18  ;;  %vm888_vm7 = vweird.f32 %v5121_v59 }
 0x154   : > { %1306 = vst [vmem:[#allocation2 + $0xa0] sm:$0xff] %v1274_v30  ;;  %v885_v0 = vmul.f32 %v5121_v59, %v884_v31  ;;  %v1048_v44 = vmul.f32 %v5125_v38, %v6224_v55  ;;  %v906_v46 = vand.u32 2147483647, %v6249_v5  ;;  %vm6286_vm11 = vcmp.eq.f32.partialorder %v1056_v27, 8.507059e+37  ;;  %vm889_vm1 = vmor %vm887_vm4, %vm888_vm7 }
 0x155   : > { %v1059_v47 = vor.u32 1.1754944e-38, %v1058_v20  ;;  %5130 = vrcp.f32 %v6273_v32  ;;  %vm1053_vm14 = vweird.f32 %v5125_v38  ;;  %v4745_v48 = vmul.f32 -1.442695, %v6278_v41 }
 0x156   : > { %v886_v42 = vadd.f32 %v5121_v59, %v885_v0  ;;  %v1049_v45 = vsub.f32 1.0, %v1048_v44  ;;  %v909_v53 = vor.u32 1.1754944e-38, %v908_v39  ;;  %vm1067_vm3 = vweird.f32 %v6273_v32 }
 0x157   : > { %v5127_v49 = vpop.eup %5126  ;;  %v4735_v54 = vmul.f32 -1.442695, %v6281_v43  ;;  %vm6297_vm10 = vcmp.ne.s32.totalorder %v1555_v35, 0  ;;  %v8831_v60 = vmov 0  ;;  %vm6302_vm15 = vcmp.eq.f32.partialorder %v906_v46, 8.507059e+37 }
 0x158   : > { %v8832_v60 = vsel %vm6297_vm10, 4294967295, %v8831_v60  ;;  %v890_v37 = vsel %vm889_vm1, %v5121_v59, %v886_v42  ;;  %v1050_v33 = vmul.f32 %v5125_v38, %v1049_v45  ;;  %v898_v61 = vmul.f32 %v5127_v49, %v6249_v5  ;;  %v6330_v15 = vpop.f32.mrf.mxu2 }
 0x159   : > { %8833 = vst [vmem:[#allocation27_spill] sm:$0xff] %v8832_v60  ;;  %v1071_v34 = vand.u32 2147483647, %v6273_v32  ;;  %v586_v1 = vpop.f32.mrf.mxu0  ;;  %v2156_v2 = vld [vmem:[#allocation2 + $0x41] sm:$0xff]  ;;  %v5129_v40 = vpop.eup %5128  ;;  %v895_v6 = vsel %vm6257_vm5, %v894_v17, %v890_v37  ;;  %vm8836_vm4 = vweird.f32 %v6224_v55  ;;  %5132 = vpow2.f32 %v4745_v48 }
 0x15a   : > { %v1965_v3 = vld [vmem:[#allocation2 + $0x47] sm:$0xff]  ;;  %vm6312_vm7 = vmor %vm8836_vm4, %vm1053_vm14  ;;  %v6321_v59 = vadd.f32 %v6020_v24, %v586_v1  ;;  %4764 = vmatmul.msk.f32.gmra.mxu1 %vm6261_vm6, %v2156_v2  ;;  %v1264_v55 = vmul.f32 %v895_v6, %v6135_v57  ;;  %v1051_v10 = vadd.f32 %v5125_v38, %v1050_v33  ;;  %v899_v11 = vsub.f32 1.0, %v898_v61  ;;  %v5340_v60 = vld [vmem:[#allocation2 + $0x3f] sm:$0xff] }
 0x15b   : > { %4780 = vmatmul.msk.f32.gmra.mxu2 %vm6297_vm10, %v1965_v3  ;;  %v6328_v14 = vadd.f32 1.0, %v5129_v40  ;;  %v5131_v16 = vpop.eup %5130  ;;  %v1073_v29 = vand.u32 2147483648, %v6273_v32  ;;  %5134 = vpow2.f32 %v4735_v54  ;;  %v4746_v17 = vmul.f32 -1.442695, %v6318_v7 }
 0x15c   : > { %v1486_v18 = vadd.s32 72, %v6042_v58  ;;  %1296 = vst [vmem:[#allocation2 + $0x50] sm:$0xff] %v1264_v55  ;;  %v1055_v19 = vsel %vm6312_vm7, %v5125_v38, %v1051_v10  ;;  %v900_v21 = vmul.f32 %v5127_v49, %v899_v11  ;;  %vm903_vm5 = vweird.f32 %v5127_v49  ;;  %2725 = vmatmul.f32.gmra.mxu0 %v1264_v55 }
 0x15d   : > { %v1063_v57 = vmul.f32 %v5131_v16, %v6273_v32  ;;  %v1060_v22 = vsel %vm6286_vm11, %v1059_v47, %v1055_v19  ;;  %vm6340_vm14 = vcmp.eq.f32.partialorder %v1071_v34, 8.507059e+37  ;;  %5136 = vrcp.f32 %v6328_v14 }
 0x15e   : > { %v4736_v27 = vmul.f32 -1.442695, %v6321_v59  ;;  %v1275_v20 = vmul.f32 %v1060_v22, %v6154_v50  ;;  %v901_v30 = vadd.f32 %v5127_v49, %v900_v21  ;;  %vm1068_vm1 = vweird.f32 %v5131_v16  ;;  %v6474_v21 = vld [vmem:[%s8797_s1] ss:$0 sm:$0xff] }
 0x15f   : > { %v1064_v31 = vsub.f32 1.0, %v1063_v57  ;;  %v5133_v35 = vpop.eup %5132  ;;  %vm8841_vm4 = vweird.f32 %v6249_v5  ;;  %v1074_v38 = vor.u32 1.1754944e-38, %v1073_v29  ;;  %5138 = vpow2.f32 %v4746_v17  ;;  %vm6361_vm11 = vmor %vm1067_vm3, %vm1068_vm1 }
 0x160   : > { %vm904_vm7 = vmor %vm8841_vm4, %vm903_vm5  ;;  %v6351_v39 = vadd.f32 %v6020_v24, %v6265_v63  ;;  %v1576_v0 = vand.u32 15, %v1486_v18  ;;  %1307 = vst [vmem:[#allocation2 + $0xa8] sm:$0xff] %v1275_v20  ;;  %v921_v36 = vand.u32 2147483647, %v6328_v14  ;;  %v6354_v50 = vadd.f32 1.0, %v5133_v35  ;;  %v6380_v2 = vpop.f32.mrf.mxu2 }
 0x161   : > { %v905_v44 = vsel %vm904_vm7, %v5127_v49, %v901_v30  ;;  %v1065_v46 = vmul.f32 %v5131_v16, %v1064_v31  ;;  %v589_v47 = vpop.f32.mrf.mxu0  ;;  %v5135_v42 = vpop.eup %5134  ;;  %5140 = vpow2.f32 %v4736_v27  ;;  %v923_v37 = vand.u32 2147483648, %v6328_v14 }
 0x162   : > { %v910_v5 = vsel %vm6302_vm15, %v909_v53, %v905_v44  ;;  %v4747_v63 = vmul.f32 -1.442695, %v6351_v39  ;;  %v6367_v48 = vadd.f32 %v6020_v24, %v589_v47  ;;  %5142 = vrcp.f32 %v6354_v50 }
 0x163   : > { %v1265_v49 = vmul.f32 %v910_v5, %v6179_v13  ;;  %v1066_v54 = vadd.f32 %v5131_v16, %v1065_v46  ;;  %v5137_v53 = vpop.eup %5136  ;;  %vm917_vm15 = vweird.f32 %v6328_v14  ;;  %v1086_v32 = vand.u32 2147483647, %v6354_v50  ;;  %v2157_v61 = vld [vmem:[#allocation2 + $0x49] sm:$0xff] }
 0x164   : > { %v6374_v33 = vadd.f32 1.0, %v5135_v42  ;;  %v1966_v62 = vld [vmem:[#allocation2 + $0x4f] sm:$0xff]  ;;  %v913_v13 = vmul.f32 %v5137_v53, %v6328_v14  ;;  %5144 = vpow2.f32 %v4747_v63  ;;  %v4737_v1 = vmul.f32 -1.442695, %v6367_v48  ;;  %2383 = vmatmul.f32.gmra.mxu1 %v2157_v61 }
 0x165   : > { %1297 = vst [vmem:[#allocation2 + $0x58] sm:$0xff] %v1265_v49  ;;  %v1070_v34 = vsel %vm6361_vm11, %v5131_v16, %v1066_v54  ;;  %2493 = vmatmul.f32.gmra.mxu2 %v1966_v62  ;;  %v5139_v3 = vpop.eup %5138  ;;  %vm6384_vm3 = vcmp.eq.f32.partialorder %v921_v36, 8.507059e+37  ;;  %v1088_v12 = vand.u32 2147483648, %v6354_v50  ;;  %2728 = vmatmul.f32.gmra.mxu0 %v1265_v49  ;;  %v924_v11 = vor.u32 1.1754944e-38, %v923_v37 }
 0x166   : > { %v1075_v40 = vsel %vm6340_vm14, %v1074_v38, %v1070_v34  ;;  %5146 = vrcp.f32 %v6374_v33  ;;  %v914_v10 = vsub.f32 1.0, %v913_v13  ;;  %vm6391_vm5 = vcmp.ne.s32.totalorder %v1576_v0, 15 }
 0x167   : > { %v1276_v55 = vmul.f32 %v1075_v40, %v6203_v28  ;;  %v8846_v16 = vmov 0  ;;  %v5141_v29 = vpop.eup %5140  ;;  %vm918_vm1 = vweird.f32 %v5137_v53  ;;  %v6396_v17 = vadd.f32 1.0, %v5139_v3 }
 0x168   : > { %v8847_v16 = vsel %vm6391_vm5, 4294967295, %v8846_v16  ;;  %5148 = vpow2.f32 %v4737_v1  ;;  %v5143_v18 = vpop.eup %5142  ;;  %v915_v19 = vmul.f32 %v5137_v53, %v914_v10  ;;  %vm6398_vm4 = vcmp.eq.f32.partialorder %v1086_v32, 8.507059e+37  ;;  %vm919_vm14 = vmor %vm917_vm15, %vm918_vm1  ;;  %v6443_v61 = vpop.f32.mrf.mxu2 }
 0x169   : > { %1308 = vst [vmem:[#allocation2 + $0xb0] sm:$0xff] %v1276_v55  ;;  %v936_v28 = vand.u32 2147483647, %v6374_v33  ;;  %v6403_v57 = vadd.f32 1.0, %v5141_v29  ;;  %v592_v22 = vpop.f32.mrf.mxu0  ;;  %v1078_v23 = vmul.f32 %v5143_v18, %v6354_v50  ;;  %v1089_v27 = vor.u32 1.1754944e-38, %v1088_v12 }
 0x16a   : > { %v938_v20 = vand.u32 2147483648, %v6374_v33  ;;  %5150 = vrcp.f32 %v6396_v17  ;;  %v5145_v30 = vpop.eup %5144  ;;  %v916_v31 = vadd.f32 %v5137_v53, %v915_v19  ;;  %vm1083_vm7 = vweird.f32 %v5143_v18 }
 0x16b   : > { %v6411_v35 = vadd.f32 %v6020_v24, %v6330_v15  ;;  %v1079_v0 = vsub.f32 1.0, %v1078_v23  ;;  %v1101_v44 = vand.u32 2147483647, %v6396_v17  ;;  %v1103_v46 = vand.u32 2147483648, %v6396_v17 }
 0x16c   : > { %v5147_v38 = vpop.eup %5146  ;;  %5152 = vrcp.f32 %v6403_v57  ;;  %v2158_v36 = vld [vmem:[#allocation2 + $0x51] sm:$0xff]  ;;  %v920_v47 = vsel %vm919_vm14, %v5137_v53, %v916_v31  ;;  %vm6420_vm11 = vcmp.eq.f32.partialorder %v936_v28, 8.507059e+37  ;;  %v6427_v24 = vadd.s32 64, %v6042_v58 }
 0x16d   : > { %v928_v42 = vmul.f32 %v5147_v38, %v6374_v33  ;;  %4765 = vmatmul.msk.f32.gmra.mxu1 %vm6391_vm5, %v2158_v36  ;;  %v925_v15 = vsel %vm6384_vm3, %v924_v11, %v920_v47  ;;  %v1080_v45 = vmul.f32 %v5143_v18, %v1079_v0  ;;  %v939_v63 = vor.u32 1.1754944e-38, %v938_v20 }
 0x16e   : > { %v5149_v14 = vpop.eup %5148  ;;  %v1266_v49 = vmul.f32 %v925_v15, %v6227_v56  ;;  %vm8852_vm1 = vweird.f32 %v6354_v50  ;;  %v951_v53 = vand.u32 2147483647, %v6403_v57  ;;  %v6441_v32 = vadd.f32 1.0, %v5145_v30  ;;  %v1967_v15 = vld [vmem:[#allocation2 + $0x57] sm:$0xff] }
 0x16f   : > { %vm6436_vm14 = vmor %vm8852_vm1, %vm1083_vm7  ;;  %v929_v37 = vsub.f32 1.0, %v928_v42  ;;  %v1081_v34 = vadd.f32 %v5143_v18, %v1080_v45  ;;  %vm933_vm3 = vweird.f32 %v5147_v38  ;;  %vm6445_vm15 = vcmp.eq.f32.partialorder %v1101_v44, 8.507059e+37 }
 0x170   : > { %v5151_v62 = vpop.eup %5150  ;;  %v1104_v56 = vor.u32 1.1754944e-38, %v1103_v46  ;;  %1298 = vst [vmem:[#allocation2 + $0x60] sm:$0xff] %v1266_v49  ;;  %v953_v3 = vand.u32 2147483648, %v6403_v57  ;;  %v6452_v40 = vadd.f32 1.0, %v5149_v14  ;;  %2731 = vmatmul.f32.gmra.mxu0 %v1266_v49  ;;  %5154 = vrcp.f32 %v6441_v32 }
 0x171   : > { %v930_v50 = vmul.f32 %v5147_v38, %v929_v37  ;;  %v1093_v1 = vmul.f32 %v5151_v62, %v6396_v17  ;;  %v595_v6 = vpop.f32.mrf.mxu0  ;;  %v1085_v55 = vsel %vm6436_vm14, %v5143_v18, %v1081_v34  ;;  %v1116_v10 = vand.u32 2147483647, %v6441_v32  ;;  %v6506_v37 = vpop.f32.mrf.mxu2 }
 0x172   : > { %v5153_v12 = vpop.eup %5152  ;;  %v1090_v11 = vsel %vm6398_vm4, %v1089_v27, %v1085_v55  ;;  %vm6461_vm7 = vcmp.eq.f32.partialorder %v951_v53, 8.507059e+37  ;;  %vm8859_vm14 = vweird.f32 %v6374_v33  ;;  %v1118_v18 = vand.u32 2147483648, %v6441_v32 }
 0x173   : > { %v931_v29 = vadd.f32 %v5147_v38, %v930_v50  ;;  %v1094_v19 = vsub.f32 1.0, %v1093_v1  ;;  %v943_v28 = vmul.f32 %v5153_v12, %v6403_v57  ;;  %v1277_v20 = vmul.f32 %v1090_v11, %v6278_v41  ;;  %vm934_vm1 = vmor %vm8859_vm14, %vm933_vm3 }
 0x174   : > { %v4748_v30 = vmul.f32 -1.442695, %v6411_v35  ;;  %v6477_v27 = vadd.f32 %v6474_v21, %v592_v22  ;;  %5156 = vrcp.f32 %v6452_v40  ;;  %vm8860_vm4 = vweird.f32 %v5151_v62 }
 0x175   : > { %v935_v31 = vsel %vm934_vm1, %v5147_v38, %v931_v29  ;;  %v1095_v0 = vmul.f32 %v5151_v62, %v1094_v19  ;;  %v944_v44 = vsub.f32 1.0, %v943_v28  ;;  %1309 = vst [vmem:[#allocation2 + $0xb8] sm:$0xff] %v1277_v20  ;;  %vm8861_vm3 = vweird.f32 %v6396_v17  ;;  %v2906_v20 = vld [vmem:[#allocation11 + $0x278] sm:$0xff] }
 0x176   : > { %v940_v41 = vsel %vm6420_vm11, %v939_v63, %v935_v31  ;;  %vm6485_vm14 = vmor %vm8861_vm3, %vm8860_vm4  ;;  %vm948_vm5 = vweird.f32 %v5153_v12  ;;  %v954_v46 = vor.u32 1.1754944e-38, %v953_v3  ;;  %vm1112_vm6 = vweird.f32 %v6441_v32  ;;  %v6495_v42 = vpop.eup %5154  ;;  %2923 = vmatpush.msrb.mxu1 %v2906_v20 }
 0x177   : > { %v1267_v22 = vmul.f32 %v940_v41, %v6281_v43  ;;  %v1096_v38 = vadd.f32 %v5151_v62, %v1095_v0  ;;  %v945_v36 = vmul.f32 %v5153_v12, %v944_v44  ;;  %vm6491_vm1 = vcmp.eq.f32.partialorder %v1116_v10, 8.507059e+37  ;;  %v2159_v45 = vld [vmem:[#allocation2 + $0x59] sm:$0xff] }
 0x178   : > { %v6497_v5 = vor.u32 1.1754944e-38, %v1118_v18  ;;  %5158 = vpow2.f32 %v4748_v30  ;;  %v4738_v17 = vmul.f32 -1.442695, %v6477_v27  ;;  %v1569_v14 = vand.u32 15, %v6427_v24  ;;  %2389 = vmatmul.f32.gmra.mxu1 %v2159_v45  ;;  %v1968_v0 = vld [vmem:[#allocation2 + $0x5f] sm:$0xff] }
 0x179   : > { %1299 = vst [vmem:[#allocation2 + $0x68] sm:$0xff] %v1267_v22  ;;  %v1100_v43 = vsel %vm6485_vm14, %v5151_v62, %v1096_v38  ;;  %v946_v63 = vadd.f32 %v5153_v12, %v945_v36  ;;  %v1108_v49 = vmul.f32 %v6495_v42, %v6441_v32  ;;  %v966_v54 = vand.u32 2147483647, %v6452_v40  ;;  %2734 = vmatmul.f32.gmra.mxu0 %v1267_v22  ;;  %v598_v13 = vpop.f32.mrf.mxu0  ;;  %v2905_v41 = vld [vmem:[#allocation11 + $0x270] sm:$0xff]  ;;  %v6567_v38 = vpop.f32.mrf.mxu2 }
 0x17a   : > { %v1105_v53 = vsel %vm6445_vm15, %v1104_v56, %v1100_v43  ;;  %vm8866_vm11 = vweird.f32 %v6403_v57  ;;  %vm1113_vm3 = vweird.f32 %v6495_v42  ;;  %5160 = vpow2.f32 %v4738_v17  ;;  %v6518_v62 = vpop.eup %5156  ;;  %2924 = vmatpush.msrb.mxu1 %v2905_v41 }
 0x17b   : > { %vm949_vm4 = vmor %vm8866_vm11, %vm948_vm5  ;;  %vm6514_vm14 = vcmp.ne.s32.totalorder %v1569_v14, 0  ;;  %v8867_v24 = vmov 0  ;;  %v1278_v34 = vmul.f32 %v1105_v53, %v6318_v7  ;;  %v1109_v1 = vsub.f32 1.0, %v1108_v49 }
 0x17c   : > { %v8868_v24 = vsel %vm6514_vm14, 4294967295, %v8867_v24  ;;  %v950_v50 = vsel %vm949_vm4, %v5153_v12, %v946_v63  ;;  %4781 = vmatmul.msk.f32.gmra.mxu2 %vm6514_vm14, %v1967_v15  ;;  %v6525_v57 = vadd.f32 %v6474_v21, %v6380_v2  ;;  %v958_v3 = vmul.f32 %v6518_v62, %v6452_v40  ;;  %vm6546_vm5 = vmor %vm1112_vm6, %vm1113_vm3 }
 0x17d   : > { %8869 = vst [vmem:[#allocation28_spill] sm:$0xff] %v8868_v24  ;;  %v955_v56 = vsel %vm6461_vm7, %v954_v46, %v950_v50  ;;  %v968_v55 = vand.u32 2147483648, %v6452_v40  ;;  %v6533_v7 = vadd.f32 %v6474_v21, %v595_v6  ;;  %v1110_v10 = vmul.f32 %v6495_v42, %v1109_v1 }
 0x17e   : > { %1310 = vst [vmem:[#allocation2 + $0xc0] sm:$0xff] %v1278_v34  ;;  %v1268_v12 = vmul.f32 %v955_v56, %v6321_v59  ;;  %v4749_v2 = vmul.f32 -1.442695, %v6525_v57  ;;  %v6540_v11 = vadd.f32 %v6474_v21, %v6443_v61  ;;  %v5159_v29 = vpop.eup %5158  ;;  %v959_v6 = vsub.f32 1.0, %v958_v3 }
 0x17f   : > { %v4739_v59 = vmul.f32 -1.442695, %v6533_v7  ;;  %v6552_v28 = vadd.f32 %v6474_v21, %v598_v13  ;;  %v1488_v23 = vadd.s32 88, %v6042_v58  ;;  %v1111_v61 = vadd.f32 %v6495_v42, %v1110_v10 }
 0x180   : > { %1300 = vst [vmem:[#allocation2 + $0x70] sm:$0xff] %v1268_v12  ;;  %v6556_v18 = vadd.f32 1.0, %v5159_v29  ;;  %5162 = vpow2.f32 %v4749_v2  ;;  %v4750_v32 = vmul.f32 -1.442695, %v6540_v11  ;;  %v5161_v30 = vpop.eup %5160  ;;  %v960_v31 = vmul.f32 %v6518_v62, %v959_v6  ;;  %v2160_v22 = vld [vmem:[#allocation2 + $0x61] sm:$0xff] }
 0x181   : > { %vm963_vm6 = vweird.f32 %v6518_v62  ;;  %5164 = vpow2.f32 %v4739_v59  ;;  %v1590_v44 = vand.u32 15, %v1488_v23  ;;  %v1115_v33 = vsel %vm6546_vm5, %v6495_v42, %v1111_v61  ;;  %2737 = vmatmul.f32.gmra.mxu0 %v1268_v12  ;;  %v2904_v42 = vld [vmem:[#allocation11 + $0x268] sm:$0xff]  ;;  %v2901_v12 = vld [vmem:[#allocation11 + $0x250] sm:$0xff]  ;;  %v6613_v19 = vpop.f32.mrf.mxu2 }
 0x182   : > { %vm962_vm15 = vweird.f32 %v6452_v40  ;;  %5166 = vrcp.f32 %v6556_v18  ;;  %v4740_v46 = vmul.f32 -1.442695, %v6552_v28  ;;  %v1120_v36 = vsel %vm6491_vm1, %v6497_v5, %v1115_v33  ;;  %2925 = vmatpush.msrb.mxu1 %v2904_v42  ;;  %v2902_v40 = vld [vmem:[#allocation11 + $0x258] sm:$0xff] }
 0x183   : > { %v961_v17 = vadd.f32 %v6518_v62, %v960_v31  ;;  %v969_v14 = vor.u32 1.1754944e-38, %v968_v55  ;;  %v6573_v15 = vadd.f32 1.0, %v5161_v30  ;;  %v1279_v45 = vmul.f32 %v1120_v36, %v6351_v39  ;;  %vm964_vm7 = vmor %vm962_vm15, %vm963_vm6  ;;  %v2903_v39 = vld [vmem:[#allocation11 + $0x260] sm:$0xff] }
 0x184   : > { %v1131_v43 = vand.u32 2147483647, %v6556_v18  ;;  %2499 = vmatmul.f32.gmra.mxu2 %v1968_v0  ;;  %5168 = vpow2.f32 %v4750_v32  ;;  %vm6579_vm11 = vcmp.ne.s32.totalorder %v1590_v44, 15  ;;  %v8872_v63 = vmov 0  ;;  %2926 = vmatpush.msrb.mxu1 %v2903_v39  ;;  %v2900_v32 = vld [vmem:[#allocation11 + $0x248] sm:$0xff]  ;;  %v2899_v36 = vld [vmem:[#allocation11 + $0x240] sm:$0xff] }
 0x185   : > { %v8873_v63 = vsel %vm6579_vm11, 4294967295, %v8872_v63  ;;  %v965_v47 = vsel %vm964_vm7, %v6518_v62, %v961_v17  ;;  %vm967_vm1 = vcmp.eq.f32.partialorder %v966_v54, 8.507059e+37  ;;  %v1133_v5 = vand.u32 2147483648, %v6556_v18  ;;  %4766 = vmatmul.msk.f32.gmra.mxu1 %vm6579_vm11, %v2160_v22  ;;  %1311 = vst [vmem:[#allocation2 + $0xc8] sm:$0xff] %v1279_v45 }
 0x186   : > { %5170 = vrcp.f32 %v6573_v15  ;;  %v5163_v49 = vpop.eup %5162  ;;  %v970_v53 = vsel %vm967_vm1, %v969_v14, %v965_v47  ;;  %vm1127_vm4 = vweird.f32 %v6556_v18  ;;  %vm6596_vm3 = vcmp.eq.f32.partialorder %v1131_v43, 8.507059e+37  ;;  %2927 = vmatpush.msrb.mxu1 %v2902_v40 }
 0x187   : > { %5172 = vpow2.f32 %v4740_v46  ;;  %v5165_v34 = vpop.eup %5164  ;;  %v1269_v50 = vmul.f32 %v970_v53, %v6367_v48  ;;  %v6591_v62 = vadd.f32 1.0, %v5163_v49  ;;  %v981_v13 = vand.u32 2147483647, %v6573_v15  ;;  %v2161_v29 = vld [vmem:[#allocation2 + $0x69] sm:$0xff] }
 0x188   : > { %v6593_v54 = vpop.eup %5166  ;;  %v6601_v56 = vadd.f32 1.0, %v5165_v34  ;;  %v1134_v3 = vor.u32 1.1754944e-38, %v1133_v5  ;;  %v983_v55 = vand.u32 2147483648, %v6573_v15  ;;  %v6611_v2 = vadd.s32 80, %v6042_v58  ;;  %2928 = vmatpush.msrb.mxu1 %v2901_v12  ;;  %v2898_v5 = vld [vmem:[#allocation11 + $0x238] sm:$0xff] }
 0x189   : > { %1301 = vst [vmem:[#allocation2 + $0x78] sm:$0xff] %v1269_v50  ;;  %v1123_v48 = vmul.f32 %v6593_v54, %v6556_v18  ;;  %5174 = vrcp.f32 %v6591_v62  ;;  %vm1128_vm5 = vweird.f32 %v6593_v54  ;;  %v1146_v23 = vand.u32 2147483647, %v6591_v62  ;;  %2740 = vmatmul.f32.gmra.mxu0 %v1269_v50 }
 0x18a   : > { %v5169_v10 = vpop.eup %5168  ;;  %5176 = vrcp.f32 %v6601_v56  ;;  %v1148_v20 = vand.u32 2147483648, %v6591_v62  ;;  %vm6623_vm15 = vcmp.eq.f32.partialorder %v981_v13, 8.507059e+37  ;;  %v998_v44 = vand.u32 2147483648, %v6601_v56  ;;  %2929 = vmatpush.msrb.mxu1 %v2900_v32  ;;  %vm6639_vm7 = vmor %vm1127_vm4, %vm1128_vm5  ;;  %v2896_v32 = vld [vmem:[#allocation11 + $0x228] sm:$0xff]  ;;  %v1970_v13 = vld [vmem:[#allocation2 + $0x6f] sm:$0xff] }
 0x18b   : > { %v1124_v59 = vsub.f32 1.0, %v1123_v48  ;;  %v6619_v61 = vadd.f32 1.0, %v5169_v10  ;;  %v6630_v41 = vadd.f32 %v6474_v21, %v6506_v37  ;;  %v984_v46 = vor.u32 1.1754944e-38, %v983_v55  ;;  %v2897_v55 = vld [vmem:[#allocation11 + $0x230] sm:$0xff] }
 0x18c   : > { %v6615_v6 = vpop.eup %5170  ;;  %v996_v22 = vand.u32 2147483647, %v6601_v56  ;;  %v6646_v14 = vadd.s32 104, %v6042_v58  ;;  %2930 = vmatpush.msrb.mxu1 %v2899_v36  ;;  %vm6651_vm11 = vcmp.eq.f32.partialorder %v1146_v23, 8.507059e+37  ;;  %v6655_v18 = vor.u32 1.1754944e-38, %v1148_v20  ;;  %v2895_v36 = vld [vmem:[#allocation11 + $0x220] sm:$0xff] }
 0x18d   : > { %v5173_v30 = vpop.eup %5172  ;;  %v973_v31 = vmul.f32 %v6615_v6, %v6573_v15  ;;  %v1125_v33 = vmul.f32 %v6593_v54, %v1124_v59  ;;  %5178 = vrcp.f32 %v6619_v61  ;;  %2395 = vmatmul.f32.gmra.mxu1 %v2161_v29  ;;  %vm978_vm1 = vweird.f32 %v6615_v6  ;;  %v6685_v59 = vpop.f32.mrf.mxu0 }
 0x18e   : > { %v6658_v47 = vadd.f32 1.0, %v5173_v30  ;;  %v6665_v34 = vor.u32 1.1754944e-38, %v998_v44  ;;  %2931 = vmatpush.msrb.mxu1 %v2898_v5  ;;  %vm6674_vm6 = vcmp.eq.f32.partialorder %v996_v22, 8.507059e+37  ;;  %v1583_v48 = vand.u32 15, %v6611_v2  ;;  %v2894_v5 = vld [vmem:[#allocation11 + $0x218] sm:$0xff] }
 0x18f   : > { %v974_v37 = vsub.f32 1.0, %v973_v31  ;;  %v6648_v42 = vpop.eup %5174  ;;  %v1126_v45 = vadd.f32 %v6593_v54, %v1125_v33  ;;  %v4751_v2 = vmul.f32 -1.442695, %v6630_v41  ;;  %v1969_v33 = vld [vmem:[#allocation2 + $0x67] sm:$0xff] }
 0x190   : > { %v6660_v39 = vpop.eup %5176  ;;  %v1138_v53 = vmul.f32 %v6648_v42, %v6591_v62  ;;  %vm1143_vm4 = vweird.f32 %v6648_v42  ;;  %5180 = vrcp.f32 %v6658_v47  ;;  %2932 = vmatpush.msrb.mxu1 %v2897_v55 }
 0x191   : > { %v975_v49 = vmul.f32 %v6615_v6, %v974_v37  ;;  %v1130_v50 = vsel %vm6639_vm7, %v6593_v54, %v1126_v45  ;;  %v988_v40 = vmul.f32 %v6660_v39, %v6601_v56  ;;  %v6683_v54 = vpop.f32.mrf.mxu2  ;;  %vm8884_vm7 = vweird.f32 %v6573_v15 }
 0x192   : > { %v1135_v12 = vsel %vm6596_vm3, %v1134_v3, %v1130_v50  ;;  %v1139_v29 = vsub.f32 1.0, %v1138_v53  ;;  %vm979_vm3 = vmor %vm8884_vm7, %vm978_vm1  ;;  %v1161_v3 = vand.u32 2147483647, %v6619_v61  ;;  %2933 = vmatpush.msrb.mxu1 %v2896_v32  ;;  %vm8885_vm1 = vweird.f32 %v6591_v62 }
 0x193   : > { %v976_v10 = vadd.f32 %v6615_v6, %v975_v49  ;;  %v6687_v23 = vpop.eup %5178  ;;  %v6690_v20 = vmul.f32 %v1135_v12, %v6411_v35  ;;  %v989_v1 = vsub.f32 1.0, %v988_v40  ;;  %v1163_v35 = vand.u32 2147483648, %v6619_v61  ;;  %vm6710_vm7 = vmor %vm8885_vm1, %vm1143_vm4  ;;  %v2162_v12 = vld [vmem:[#allocation2 + $0x71] sm:$0xff] }
 0x194   : > { %v1140_v31 = vmul.f32 %v6648_v42, %v1139_v29  ;;  %v1153_v44 = vmul.f32 %v6687_v23, %v6619_v61  ;;  %v8888_v37 = vmov 0  ;;  %2934 = vmatpush.msrb.mxu1 %v2895_v36  ;;  %vm6724_vm4 = vcmp.eq.f32.partialorder %v1161_v3, 8.507059e+37  ;;  %v6801_v36 = vpop.f32.mrf.mxu1 }
 0x195   : > { %v980_v30 = vsel %vm979_vm3, %v6615_v6, %v976_v10  ;;  %1312 = vst [vmem:[#allocation2 + $0xd0] sm:$0xff] %v6690_v20  ;;  %v990_v22 = vmul.f32 %v6660_v39, %v989_v1  ;;  %vm993_vm3 = vweird.f32 %v6660_v39  ;;  %5182 = vpow2.f32 %v4751_v2  ;;  %v2893_v10 = vld [vmem:[#allocation11 + $0x210] sm:$0xff] }
 0x196   : > { %v985_v15 = vsel %vm6623_vm15, %v984_v46, %v980_v30  ;;  %v1141_v0 = vadd.f32 %v6648_v42, %v1140_v31  ;;  %v1154_v46 = vsub.f32 1.0, %v1153_v44  ;;  %vm6719_vm15 = vcmp.ne.s32.totalorder %v1583_v48, 0  ;;  %v6734_v49 = vpop.eup %5180  ;;  %2935 = vmatpush.msrb.mxu1 %v2894_v5  ;;  %v6785_v31 = vpop.f32.mrf.mxu0 }
 0x197   : > { %v1270_v17 = vmul.f32 %v985_v15, %v6477_v27  ;;  %v8889_v37 = vsel %vm6719_vm15, 4294967295, %v8888_v37  ;;  %v991_v62 = vadd.f32 %v6660_v39, %v990_v22  ;;  %4782 = vmatmul.msk.f32.gmra.mxu2 %vm6719_vm15, %v1969_v33  ;;  %v6732_v27 = vadd.f32 %v6474_v21, %v6567_v38  ;;  %8900 = vst [vmem:[#allocation30_spill] sm:$0xff] %v6785_v31  ;;  %v2891_v15 = vld [vmem:[#allocation11 + $0x200] sm:$0xff]  ;;  %v2909_v31 = vld [vmem:[#allocation11 + $0x290] sm:$0xff] }
 0x198   : > { %8890 = vst [vmem:[#allocation29_spill] sm:$0xff] %v8889_v37  ;;  %v1145_v53 = vsel %vm6710_vm7, %v6648_v42, %v1141_v0  ;;  %vm8893_vm1 = vweird.f32 %v6601_v56  ;;  %v1155_v50 = vmul.f32 %v6687_v23, %v1154_v46  ;;  %v1164_v40 = vor.u32 1.1754944e-38, %v1163_v35  ;;  %2936 = vmatpush.msrb.mxu1 %v2893_v10 }
 0x199   : > { %1302 = vst [vmem:[#allocation2 + $0x80] sm:$0xff] %v1270_v17  ;;  %vm994_vm5 = vmor %vm8893_vm1, %vm993_vm3  ;;  %v1604_v48 = vand.u32 15, %v6646_v14  ;;  %2743 = vmatmul.f32.gmra.mxu0 %v1270_v17  ;;  %v1150_v38 = vsel %vm6651_vm11, %v6655_v18, %v1145_v53  ;;  %vm8894_vm7 = vweird.f32 %v6687_v23  ;;  %vm8895_vm15 = vweird.f32 %v6619_v61  ;;  %v643_v29 = vpop.f32.mrf.mxu2 }
 0x19a   : > { %v995_v55 = vsel %vm994_vm5, %v6660_v39, %v991_v62  ;;  %vm6753_vm12 = vmor %vm8895_vm15, %vm8894_vm7  ;;  %v1003_v42 = vmul.f32 %v6734_v49, %v6658_v47  ;;  %v1011_v14 = vand.u32 2147483647, %v6658_v47  ;;  %v6761_v43 = vmul.f32 %v1150_v38, %v6525_v57  ;;  %v2892_v57 = vld [vmem:[#allocation11 + $0x208] sm:$0xff] }
 0x19b   : > { %v1000_v18 = vsel %vm6674_vm6, %v6665_v34, %v995_v55  ;;  %v1156_v61 = vadd.f32 %v6687_v23, %v1155_v50  ;;  %v4752_v39 = vmul.f32 -1.442695, %v6732_v27  ;;  %v1013_v2 = vand.u32 2147483648, %v6658_v47  ;;  %v5183_v44 = vpop.eup %5182  ;;  %2937 = vmatpush.msrb.mxu1 %v2892_v57  ;;  %v2132_v50 = vld [vmem:[#allocation11 + $0x78] sm:$0xff] }
 0x19c   : > { %v1271_v1 = vmul.f32 %v1000_v18, %v6533_v7  ;;  %v1004_v3 = vsub.f32 1.0, %v1003_v42  ;;  %vm6770_vm11 = vcmp.ne.s32.totalorder %v1604_v48, 15  ;;  %v8898_v32 = vmov 0  ;;  %1313 = vst [vmem:[#allocation2 + $0xd8] sm:$0xff] %v6761_v43  ;;  %2569 = vmatpush.msrb.mxu3 %v2132_v50 }
 0x19d   : > { %v8899_v32 = vsel %vm6770_vm11, 4294967295, %v8898_v32  ;;  %v1160_v34 = vsel %vm6753_vm12, %v6687_v23, %v1156_v61  ;;  %5184 = vpow2.f32 %v4752_v39  ;;  %4767 = vmatmul.msk.f32.gmra.mxu1 %vm6770_vm11, %v2162_v12  ;;  %v1489_v7 = vadd.s32 96, %v6042_v58 }
 0x19e   : > { %v6783_v30 = vadd.f32 %v6474_v21, %v6613_v19  ;;  %1303 = vst [vmem:[#allocation2 + $0x88] sm:$0xff] %v1271_v1  ;;  %v1165_v35 = vsel %vm6724_vm4, %v1164_v40, %v1160_v34  ;;  %v1005_v23 = vmul.f32 %v6734_v49, %v1004_v3  ;;  %vm1008_vm12 = vweird.f32 %v6734_v49  ;;  %2938 = vmatpush.msrb.mxu1 %v2891_v15 }
 0x19f   : > { %v6793_v33 = vadd.f32 %v6474_v21, %v6683_v54  ;;  %v6796_v19 = vmul.f32 %v1165_v35, %v6540_v11  ;;  %v6798_v6 = vadd.f32 1.0, %v5183_v44  ;;  %vm1007_vm6 = vweird.f32 %v6658_v47  ;;  %2505 = vmatmul.f32.gmra.mxu2 %v1970_v13  ;;  %v6829_v18 = vpop.f32.mrf.mxu0 }
 0x1a0   : > { %v4753_v22 = vmul.f32 -1.442695, %v6783_v30  ;;  %v1006_v17 = vadd.f32 %v6734_v49, %v1005_v23  ;;  %v6807_v54 = vadd.f32 %v6474_v21, %v643_v29  ;;  %vm1009_vm5 = vmor %vm1007_vm6, %vm1008_vm12  ;;  %v1014_v11 = vor.u32 1.1754944e-38, %v1013_v2  ;;  %v2163_v45 = vld [vmem:[#allocation2 + $0x79] sm:$0xff]  ;;  %8904 = vst [vmem:[#allocation32_spill] sm:$0xff] %v6829_v18 }
 0x1a1   : > { %v4754_v0 = vmul.f32 -1.442695, %v6793_v33  ;;  %1314 = vst [vmem:[#allocation2 + $0xe0] sm:$0xff] %v6796_v19  ;;  %5186 = vrcp.f32 %v6798_v6  ;;  %v1597_v46 = vand.u32 15, %v1489_v7  ;;  %v1492_v62 = vadd.s32 120, %v6042_v58  ;;  %2746 = vmatmul.f32.gmra.mxu0 %v1271_v1  ;;  %v646_v55 = vpop.f32.mrf.mxu2  ;;  %v2131_v1 = vld [vmem:[#allocation11 + $0x70] sm:$0xff] }
 0x1a2   : > { %v1010_v47 = vsel %vm1009_vm5, %v6734_v49, %v1006_v17  ;;  %vm1012_vm3 = vcmp.eq.f32.partialorder %v1011_v14, 8.507059e+37  ;;  %5188 = vpow2.f32 %v4753_v22  ;;  %v4755_v38 = vmul.f32 -1.442695, %v6807_v54  ;;  %v1971_v49 = vld [vmem:[#allocation2 + $0x77] sm:$0xff]  ;;  %2570 = vmatpush.msrb.mxu3 %v2131_v1 }
 0x1a3   : > { %v5185_v5 = vpop.eup %5184  ;;  %v1015_v53 = vsel %vm1012_vm3, %v1014_v11, %v1010_v47  ;;  %5190 = vpow2.f32 %v4754_v0  ;;  %vm6819_vm15 = vcmp.ne.s32.totalorder %v1597_v46, 0  ;;  %v8901_v56 = vmov 0  ;;  %v7412_v24 = vld [vmem:[#allocation2 + $0xd8] sm:$0xff] }
 0x1a4   : > { %v1272_v40 = vmul.f32 %v1015_v53, %v6552_v28  ;;  %v6816_v48 = vadd.f32 1.0, %v5185_v5  ;;  %v8902_v56 = vsel %vm6819_vm15, 4294967295, %v8901_v56  ;;  %v1618_v42 = vand.u32 15, %v1492_v62  ;;  %v1972_v53 = vld [vmem:[#allocation2 + $0x7f] sm:$0xff] }
 0x1a5   : > { %8903 = vst [vmem:[#allocation31_spill] sm:$0xff] %v8902_v56  ;;  %2401 = vmatmul.f32.gmra.mxu1 %v2163_v45  ;;  %v6824_v14 = vadd.f32 %v6474_v21, %v646_v55  ;;  %v1491_v28 = vadd.s32 112, %v6042_v58  ;;  %vm1172_vm4 = vweird.f32 %v6798_v6  ;;  %v1176_v29 = vand.u32 2147483647, %v6798_v6  ;;  %v2164_v35 = vld [vmem:[#allocation2 + $0x81] sm:$0xff] }
 0x1a6   : > { %1304 = vst [vmem:[#allocation2 + $0x90] sm:$0xff] %v1272_v40  ;;  %5192 = vrcp.f32 %v6816_v48  ;;  %v1494_v21 = vadd.s32 136, %v6042_v58  ;;  %v1178_v2 = vand.u32 2147483648, %v6798_v6  ;;  %vm6840_vm1 = vcmp.ne.s32.totalorder %v1618_v42, 15 }
 0x1a7   : > { %v5187_v12 = vpop.eup %5186  ;;  %5194 = vpow2.f32 %v4755_v38  ;;  %v4756_v10 = vmul.f32 -1.442695, %v6824_v14  ;;  %4783 = vmatmul.msk.f32.gmra.mxu2 %vm6819_vm15, %v1971_v49  ;;  %v8905_v34 = vmov 0  ;;  %v6844_v13 = vpop.f32.mrf.mxu1  ;;  %v1611_v23 = vand.u32 15, %v1491_v28 }
 0x1a8   : > { %v5189_v61 = vpop.eup %5188  ;;  %v1168_v39 = vmul.f32 %v5187_v12, %v6798_v6  ;;  %v8906_v34 = vsel %vm6840_vm1, 4294967295, %v8905_v34  ;;  %vm1173_vm7 = vweird.f32 %v5187_v12  ;;  %v1191_v15 = vand.u32 2147483647, %v6816_v48 }
 0x1a9   : > { %v5191_v3 = vpop.eup %5190  ;;  %v6838_v57 = vadd.f32 1.0, %v5189_v61  ;;  %2749 = vmatmul.f32.gmra.mxu0 %v1272_v40  ;;  %5196 = vpow2.f32 %v4756_v10  ;;  %v1193_v0 = vand.u32 2147483648, %v6816_v48  ;;  %v1632_v11 = vand.u32 15, %v1494_v21  ;;  %vm6856_vm12 = vmor %vm1172_vm4, %vm1173_vm7  ;;  %v2130_v21 = vld [vmem:[#allocation11 + $0x68] sm:$0xff] }
 0x1aa   : > { %v1169_v7 = vsub.f32 1.0, %v1168_v39  ;;  %v6846_v44 = vadd.f32 1.0, %v5191_v3  ;;  %vm6860_vm6 = vcmp.eq.f32.partialorder %v1176_v29, 8.507059e+37  ;;  %v1179_v45 = vor.u32 1.1754944e-38, %v1178_v2  ;;  %v6890_v29 = vld [vmem:[#allocation2 + $0x98] sm:$0xff]  ;;  %2571 = vmatpush.msrb.mxu3 %v2130_v21 }
 0x1ab   : > { %5198 = vrcp.f32 %v6838_v57  ;;  %vm6868_vm5 = vcmp.ne.s32.totalorder %v1611_v23, 0  ;;  %v8911_v6 = vmov 0  ;;  %v6875_v55 = vadd.s32 128, %v6042_v58 }
 0x1ac   : > { %v6850_v22 = vpop.eup %5192  ;;  %v1170_v17 = vmul.f32 %v5187_v12, %v1169_v7  ;;  %5200 = vrcp.f32 %v6846_v44  ;;  %v8912_v6 = vsel %vm6868_vm5, 4294967295, %v8911_v6  ;;  %vm1187_vm3 = vweird.f32 %v6816_v48 }
 0x1ad   : > { %v5195_v46 = vpop.eup %5194  ;;  %v1183_v5 = vmul.f32 %v6850_v22, %v6816_v48  ;;  %4768 = vmatmul.msk.f32.gmra.mxu1 %vm6840_vm1, %v2164_v35  ;;  %v2165_v50 = vld [vmem:[#allocation2 + $0x89] sm:$0xff]  ;;  %8913 = vst [vmem:[#allocation33_spill] sm:$0xff] %v8912_v6  ;;  %vm1188_vm4 = vweird.f32 %v6850_v22  ;;  %vm6879_vm7 = vcmp.eq.f32.partialorder %v1191_v15, 8.507059e+37  ;;  %v1194_v61 = vor.u32 1.1754944e-38, %v1193_v0  ;;  %v6902_v35 = vpop.f32.mrf.mxu0 }
 0x1ae   : > { %v1171_v40 = vadd.f32 %v5187_v12, %v1170_v17  ;;  %v6872_v38 = vadd.f32 1.0, %v5195_v46  ;;  %2407 = vmatmul.f32.vlgmr.msra.gmra.mxu3 %v2165_v50  ;;  %vm6886_vm1 = vcmp.ne.s32.totalorder %v1632_v11, 15  ;;  %v8916_v39 = vmov 0  ;;  %8919 = vst [vmem:[#allocation35_spill] sm:$0xff] %v6902_v35  ;;  %v7150_v35 = vld [vmem:[#allocation2 + $0x50] sm:$0xff]  ;;  %v5350_v6 = vld [vmem:[#allocation2 + $0x87] sm:$0xff] }
 0x1af   : > { %v5197_v49 = vpop.eup %5196  ;;  %v1184_v42 = vsub.f32 1.0, %v1183_v5  ;;  %2511 = vmatmul.f32.gmra.mxu2 %v1972_v53  ;;  %v8917_v39 = vsel %vm6886_vm1, 4294967295, %v8916_v39  ;;  %v6900_v7 = vpop.f32.mrf.mxu1  ;;  %v1208_v11 = vand.u32 2147483648, %v6838_v57  ;;  %v1221_v48 = vand.u32 2147483647, %v6846_v44  ;;  %v2795_v5 = vld [vmem:[#allocation2 + $0x18] sm:$0xff] }
 0x1b0   : > { %v1175_v10 = vsel %vm6856_vm12, %v5187_v12, %v1171_v40  ;;  %5202 = vrcp.f32 %v6872_v38  ;;  %v1206_v12 = vand.u32 2147483647, %v6838_v57  ;;  %8918 = vst [vmem:[#allocation34_spill] sm:$0xff] %v6900_v7  ;;  %v6920_v46 = vadd.f32 1.0, %v5197_v49  ;;  %v1973_v40 = vld [vmem:[#allocation2 + $0x87] sm:$0xff] }
 0x1b1   : > { %v6892_v1 = vpop.eup %5198  ;;  %v1180_v3 = vsel %vm6860_vm6, %v1179_v45, %v1175_v10  ;;  %v1185_v2 = vmul.f32 %v6850_v22, %v1184_v42  ;;  %2752 = vmatmul.f32.gmra.mxu0 %v6890_v29  ;;  %vm6913_vm6 = vmor %vm1187_vm3, %vm1188_vm4  ;;  %v1223_v45 = vand.u32 2147483648, %v6846_v44  ;;  %v1236_v49 = vand.u32 2147483647, %v6872_v38  ;;  %v2166_v42 = vld [vmem:[#allocation2 + $0x91] sm:$0xff] }
 0x1b2   : > { %v6904_v23 = vpop.eup %5200  ;;  %v6907_v15 = vmul.f32 %v1180_v3, %v6630_v41  ;;  %v1198_v0 = vmul.f32 %v6892_v1, %v6838_v57  ;;  %vm1203_vm3 = vweird.f32 %v6892_v1  ;;  %5204 = vrcp.f32 %v6920_v46 }
 0x1b3   : > { %v1186_v62 = vadd.f32 %v6850_v22, %v1185_v2  ;;  %v1213_v41 = vmul.f32 %v6904_v23, %v6846_v44  ;;  %vm6939_vm12 = vcmp.eq.f32.partialorder %v1206_v12, 8.507059e+37  ;;  %v7045_v2 = vld [vmem:[#allocation2 + $0x28] sm:$0xff] }
 0x1b4   : > { %1315 = vst [vmem:[#allocation2 + $0xe8] sm:$0xff] %v6907_v15  ;;  %v1199_v47 = vsub.f32 1.0, %v1198_v0 }
 0x1b5   : > { %v1190_v53 = vsel %vm6913_vm6, %v6850_v22, %v1186_v62  ;;  %v1214_v50 = vsub.f32 1.0, %v1213_v41  ;;  %2939 = vmatmul.f32.vlgmr.msrb.gmra.mxu1 %v2795_v5  ;;  %v1238_v22 = vand.u32 2147483648, %v6872_v38  ;;  %vm8924_vm6 = vweird.f32 %v6838_v57  ;;  %v6959_v62 = vpop.f32.mrf.mxu2  ;;  %v2129_v5 = vld [vmem:[#allocation11 + $0x60] sm:$0xff]  ;;  %v2167_v57 = vld [vmem:[#allocation2 + $0x99] sm:$0xff] }
 0x1b6   : > { %v5203_v10 = vpop.eup %5202  ;;  %v1195_v21 = vsel %vm6879_vm7, %v1194_v61, %v1190_v53  ;;  %v1200_v3 = vmul.f32 %v6892_v1, %v1199_v47  ;;  %4769 = vmatmul.msk.f32.gmra.mxu3 %vm6886_vm1, %v2166_v42  ;;  %vm6953_vm4 = vmor %vm8924_vm6, %vm1203_vm3  ;;  %v1209_v61 = vor.u32 1.1754944e-38, %v1208_v11  ;;  %vm8927_vm7 = vweird.f32 %v6904_v23  ;;  %v6977_v47 = vld [vmem:[#allocation2 + $0xa0] sm:$0xff] }
 0x1b7   : > { %v6947_v17 = vmul.f32 %v1195_v21, %v6732_v27  ;;  %v1215_v12 = vmul.f32 %v6904_v23, %v1214_v50  ;;  %v1228_v0 = vmul.f32 %v5203_v10, %v6872_v38  ;;  %vm8928_vm1 = vweird.f32 %v6846_v44  ;;  %4784 = vmatmul.msk.f32.gmra.mxu2 %vm6868_vm5, %v1973_v40  ;;  %2572 = vmatpush.msrb.mxu3 %v2129_v5  ;;  %v6999_v5 = vpop.f32.mrf.mxu0  ;;  %v1974_v27 = vld [vmem:[#allocation2 + $0x8f] sm:$0xff] }
 0x1b8   : > { %v1201_v41 = vadd.f32 %v6892_v1, %v1200_v3  ;;  %vm6966_vm11 = vmor %vm8928_vm1, %vm8927_vm7  ;;  %vm6970_vm3 = vcmp.eq.f32.partialorder %v1221_v48, 8.507059e+37  ;;  %v1224_v11 = vor.u32 1.1754944e-38, %v1223_v45  ;;  %vm1233_vm1 = vweird.f32 %v5203_v10  ;;  %v6986_v45 = vpop.f32.mrf.mxu1  ;;  %v5205_v50 = vpop.eup %5204  ;;  %8936 = vst [vmem:[#allocation37_spill] sm:$0xff] %v6999_v5 }
 0x1b9   : > { %1316 = vst [vmem:[#allocation2 + $0xf0] sm:$0xff] %v6947_v17  ;;  %v1216_v44 = vadd.f32 %v6904_v23, %v1215_v12  ;;  %v1229_v53 = vsub.f32 1.0, %v1228_v0  ;;  %vm6981_vm7 = vcmp.eq.f32.partialorder %v1236_v49, 8.507059e+37  ;;  %2755 = vmatmul.f32.gmra.mxu0 %v6977_v47  ;;  %v1239_v42 = vor.u32 1.1754944e-38, %v1238_v22 }
 0x1ba   : > { %8935 = vst [vmem:[#allocation36_spill] sm:$0xff] %v6986_v45  ;;  %v1205_v40 = vsel %vm6953_vm4, %v6892_v1, %v1201_v41  ;;  %v1496_v21 = vadd.s32 152, %v6042_v58  ;;  %v1243_v0 = vmul.f32 %v5205_v50, %v6920_v46  ;;  %vm8937_vm4 = vweird.f32 %v6872_v38  ;;  %v3307_v45 = vld [vmem:[#allocation11 + $0x3f0] sm:$0xff] }
 0x1bb   : > { %v1210_v49 = vsel %vm6939_vm12, %v1209_v61, %v1205_v40  ;;  %v1220_v3 = vsel %vm6966_vm11, %v6904_v23, %v1216_v44  ;;  %v1230_v12 = vmul.f32 %v5203_v10, %v1229_v53  ;;  %vm7009_vm6 = vmor %vm8937_vm4, %vm1233_vm1  ;;  %v1251_v23 = vand.u32 2147483647, %v6920_v46  ;;  %v2796_v61 = vld [vmem:[#allocation2 + $0x20] sm:$0xff] }
 0x1bc   : > { %v7002_v28 = vmul.f32 %v1210_v49, %v6783_v30  ;;  %v1225_v1 = vsel %vm6970_vm3, %v1224_v11, %v1220_v3  ;;  %v1253_v22 = vand.u32 2147483648, %v6920_v46  ;;  %v1244_v44 = vsub.f32 1.0, %v1243_v0  ;;  %v7030_v3 = vld [vmem:[#allocation2 + $0xa8] sm:$0xff] }
 0x1bd   : > { %v7016_v41 = vmul.f32 %v1225_v1, %v6793_v33  ;;  %v1231_v30 = vadd.f32 %v5203_v10, %v1230_v12  ;;  %vm1248_vm11 = vweird.f32 %v5205_v50  ;;  %2942 = vmatmul.f32.gmra.mxu1 %v2796_v61  ;;  %v1646_v53 = vand.u32 15, %v1496_v21  ;;  %v2128_v12 = vld [vmem:[#allocation11 + $0x58] sm:$0xff]  ;;  %v7034_v21 = vpop.f32.mrf.mxu2 }
 0x1be   : > { %1317 = vst [vmem:[#allocation2 + $0xf8] sm:$0xff] %v7002_v28  ;;  %2413 = vmatmul.f32.gmra.mxu3 %v2167_v57  ;;  %v1245_v11 = vmul.f32 %v5205_v50, %v1244_v44  ;;  %vm8940_vm12 = vweird.f32 %v6920_v46  ;;  %v1254_v49 = vor.u32 1.1754944e-38, %v1253_v22  ;;  %v2168_v22 = vld [vmem:[#allocation2 + $0xa1] sm:$0xff]  ;;  %v1498_v57 = vadd.s32 168, %v6042_v58 }
 0x1bf   : > { %1318 = vst [vmem:[#allocation2 + $0x100] sm:$0xff] %v7016_v41  ;;  %v1235_v38 = vsel %vm7009_vm6, %v5203_v10, %v1231_v30  ;;  %2517 = vmatmul.f32.gmra.mxu2 %v1974_v27  ;;  %vm7026_vm3 = vmor %vm8940_vm12, %vm1248_vm11  ;;  %vm1252_vm6 = vcmp.eq.f32.partialorder %v1251_v23, 8.507059e+37  ;;  %v1625_v10 = vand.u32 15, %v6875_v55  ;;  %2573 = vmatpush.msrb.mxu3 %v2128_v12  ;;  %vm7041_vm1 = vcmp.ne.s32.totalorder %v1646_v53, 15  ;;  %v7053_v61 = vpop.f32.mrf.mxu0  ;;  %v2127_v30 = vld [vmem:[#allocation11 + $0x50] sm:$0xff]  ;;  %v2169_v53 = vld [vmem:[#allocation2 + $0xa9] sm:$0xff] }
 0x1c0   : > { %v1240_v33 = vsel %vm6981_vm7, %v1239_v42, %v1235_v38  ;;  %v1246_v1 = vadd.f32 %v5205_v50, %v1245_v11  ;;  %v7037_v48 = vpop.f32.mrf.mxu1  ;;  %v8944_v42 = vmov 0  ;;  %v8947_v23 = vmov 0  ;;  %8950 = vst [vmem:[#allocation41_spill] sm:$0xff] %v7053_v61  ;;  %v7070_v38 = vld [vmem:[#allocation2 + $0x30] sm:$0xff]  ;;  %v7079_v12 = vld [vmem:[#allocation2 + $0xb8] sm:$0xff] }
 0x1c1   : > { %v1287_v0 = vmul.f32 %v1240_v33, %v6807_v54  ;;  %2758 = vmatmul.f32.gmra.mxu0 %v7030_v3  ;;  %8943 = vst [vmem:[#allocation38_spill] sm:$0xff] %v7037_v48  ;;  %v8945_v42 = vsel %vm7041_vm1, 4294967295, %v8944_v42  ;;  %vm7048_vm7 = vcmp.ne.s32.totalorder %v1625_v10, 0  ;;  %2574 = vmatpush.msrb.mxu3 %v2127_v30  ;;  %v1495_v11 = vadd.s32 144, %v6042_v58  ;;  %v7074_v33 = vld [vmem:[#allocation2 + $0x9f] sm:$0xff]  ;;  %v2170_v30 = vld [vmem:[#allocation2 + $0xb1] sm:$0xff] }
 0x1c2   : > { %v1250_v46 = vsel %vm7026_vm3, %v5205_v50, %v1246_v1  ;;  %8946 = vst [vmem:[#allocation39_spill] sm:$0xff] %v8945_v42  ;;  %v8948_v23 = vsel %vm7048_vm7, 4294967295, %v8947_v23  ;;  %v7057_v50 = vld [vmem:[#allocation2 + $0x97] sm:$0xff]  ;;  %v8954_v10 = vmov 0  ;;  %v7116_v61 = vld [vmem:[#allocation2 + $0xaf] sm:$0xff] }
 0x1c3   : > { %1319 = vst [vmem:[#allocation2 + $0x108] sm:$0xff] %v1287_v0  ;;  %v1255_v54 = vsel %vm1252_vm6, %v1254_v49, %v1250_v46  ;;  %v1660_v49 = vand.u32 15, %v1498_v57  ;;  %v2126_v0 = vld [vmem:[#allocation11 + $0x48] sm:$0xff]  ;;  %v1639_v1 = vand.u32 15, %v1495_v11  ;;  %v7099_v57 = vld [vmem:[#allocation2 + $0xa7] sm:$0xff] }
 0x1c4   : > { %v1288_v55 = vmul.f32 %v1255_v54, %v6824_v14  ;;  %8949 = vst [vmem:[#allocation40_spill] sm:$0xff] %v8948_v23  ;;  %v7062_v14 = vld [vmem:[#allocation2 + $0xb0] sm:$0xff]  ;;  %2575 = vmatpush.msrb.mxu3 %v2126_v0  ;;  %v7086_v46 = vld [vmem:[#allocation2 + $0x38] sm:$0xff]  ;;  %v7104_v11 = vld [vmem:[#allocation2 + $0xc0] sm:$0xff]  ;;  %v1500_v0 = vadd.s32 184, %v6042_v58 }
 0x1c5   : > { %2945 = vmatmul.f32.gmra.mxu1 %v7045_v2  ;;  %v7067_v44 = vpop.f32.mrf.mxu2  ;;  %vm7082_vm4 = vcmp.ne.s32.totalorder %v1660_v49, 15  ;;  %vm7090_vm11 = vcmp.ne.s32.totalorder %v1639_v1, 0  ;;  %v7110_v1 = vld [vmem:[#allocation2 + $0x40] sm:$0xff]  ;;  %8963 = vst [vmem:[#allocation50_spill] sm:$0xff] %v7116_v61  ;;  %v2173_v42 = vld [vmem:[#allocation2 + $0xc9] sm:$0xff] }
 0x1c6   : > { %4770 = vmatmul.msk.f32.gmra.mxu3 %vm7041_vm1, %v2168_v22  ;;  %1320 = vst [vmem:[#allocation2 + $0x110] sm:$0xff] %v1288_v55  ;;  %v8955_v10 = vsel %vm7082_vm4, 4294967295, %v8954_v10  ;;  %v7531_v23 = vld [vmem:[#allocation2 + $0x89] sm:$0xff] }
 0x1c7   : > { %4785 = vmatmul.msk.f32.gmra.mxu2 %vm7048_vm7, %v7057_v50  ;;  %8952 = vst [vmem:[#allocation43_spill] sm:$0xff] %v7067_v44  ;;  %v7076_v40 = vpop.f32.mrf.mxu0 }
 0x1c8   : > { %v7065_v27 = vpop.f32.mrf.mxu1  ;;  %8953 = vst [vmem:[#allocation44_spill] sm:$0xff] %v7076_v40  ;;  %v2171_v40 = vld [vmem:[#allocation2 + $0xb9] sm:$0xff] }
 0x1c9   : > { %2761 = vmatmul.f32.gmra.mxu0 %v7062_v14  ;;  %8951 = vst [vmem:[#allocation42_spill] sm:$0xff] %v7065_v27  ;;  %v2124_v27 = vld [vmem:[#allocation11 + $0x38] sm:$0xff] }
 0x1ca   : > { %8956 = vst [vmem:[#allocation45_spill] sm:$0xff] %v8955_v10 }
 0x1cd   : > { %2948 = vmatmul.f32.gmra.mxu1 %v7070_v38  ;;  %v7095_v22 = vpop.f32.mrf.mxu2 }
 0x1ce   : > { %2419 = vmatmul.f32.gmra.mxu3 %v2169_v53  ;;  %8960 = vst [vmem:[#allocation47_spill] sm:$0xff] %v7095_v22  ;;  %v2125_v53 = vld [vmem:[#allocation11 + $0x40] sm:$0xff] }
 0x1cf   : > { %2523 = vmatmul.f32.gmra.mxu2 %v7074_v33  ;;  %v7106_v49 = vpop.f32.mrf.mxu0  ;;  %2576 = vmatpush.msrb.mxu3 %v2125_v53  ;;  %v7121_v53 = vld [vmem:[#allocation2 + $0xc8] sm:$0xff] }
 0x1d0   : > { %v7088_v54 = vpop.f32.mrf.mxu1  ;;  %8961 = vst [vmem:[#allocation48_spill] sm:$0xff] %v7106_v49  ;;  %v1674_v49 = vand.u32 15, %v1500_v0  ;;  %v2172_v0 = vld [vmem:[#allocation2 + $0xc1] sm:$0xff] }
 0x1d1   : > { %2764 = vmatmul.f32.gmra.mxu0 %v7079_v12  ;;  %8957 = vst [vmem:[#allocation46_spill] sm:$0xff] %v7088_v54  ;;  %2577 = vmatpush.msrb.mxu3 %v2124_v27 }
 0x1d2   : > { %vm7126_vm12 = vcmp.ne.s32.totalorder %v1674_v49, 15  ;;  %v2123_v49 = vld [vmem:[#allocation11 + $0x30] sm:$0xff] }
 0x1d3   : > { %2578 = vmatpush.msrb.mxu3 %v2123_v49 }
 0x1d5   : > { %2951 = vmatmul.f32.gmra.mxu1 %v7086_v46  ;;  %v7118_v10 = vpop.f32.mrf.mxu2 }
 0x1d6   : > { %4771 = vmatmul.msk.f32.gmra.mxu3 %vm7082_vm4, %v2170_v30  ;;  %v1497_v30 = vadd.s32 160, %v6042_v58  ;;  %8964 = vst [vmem:[#allocation51_spill] sm:$0xff] %v7118_v10 }
 0x1d7   : > { %4786 = vmatmul.msk.f32.gmra.mxu2 %vm7090_vm11, %v7099_v57  ;;  %v7124_v48 = vpop.f32.mrf.mxu0 }
 0x1d8   : > { %v7114_v54 = vpop.f32.mrf.mxu1  ;;  %v1653_v5 = vand.u32 15, %v1497_v30  ;;  %8965 = vst [vmem:[#allocation52_spill] sm:$0xff] %v7124_v48  ;;  %v7139_v30 = vld [vmem:[#allocation2 + $0xb7] sm:$0xff] }
 0x1d9   : > { %2767 = vmatmul.f32.gmra.mxu0 %v7104_v11  ;;  %8962 = vst [vmem:[#allocation49_spill] sm:$0xff] %v7114_v54  ;;  %v7130_v54 = vld [vmem:[#allocation2 + $0x48] sm:$0xff] }
 0x1da   : > { %vm7132_vm3 = vcmp.ne.s32.totalorder %v1653_v5, 0  ;;  %8971 = vst [vmem:[#allocation54_spill] sm:$0xff] %v7139_v30  ;;  %v1502_v5 = vadd.s32 200, %v6042_v58 }
 0x1dd   : > { %2954 = vmatmul.f32.gmra.mxu1 %v7110_v1  ;;  %v7146_v48 = vpop.f32.mrf.mxu2 }
 0x1de   : > { %2425 = vmatmul.f32.gmra.mxu3 %v2171_v40  ;;  %v8966_v40 = vmov 0  ;;  %8973 = vst [vmem:[#allocation56_spill] sm:$0xff] %v7146_v48  ;;  %v2122_v48 = vld [vmem:[#allocation11 + $0x28] sm:$0xff] }
 0x1df   : > { %2529 = vmatmul.f32.gmra.mxu2 %v7116_v61  ;;  %v8967_v40 = vsel %vm7126_vm12, 4294967295, %v8966_v40  ;;  %2579 = vmatpush.msrb.mxu3 %v2122_v48  ;;  %v3305_v48 = vld [vmem:[#allocation11 + $0x3e0] sm:$0xff] }
 0x1e0   : > { %8968 = vst [vmem:[#allocation53_spill] sm:$0xff] %v8967_v40  ;;  %v7154_v40 = vpop.f32.mrf.mxu0 }
 0x1e1   : > { %2770 = vmatmul.f32.gmra.mxu0 %v7121_v53  ;;  %v7144_v27 = vpop.f32.mrf.mxu1  ;;  %8974 = vst [vmem:[#allocation57_spill] sm:$0xff] %v7154_v40  ;;  %v8978_v40 = vmov 0 }
 0x1e2   : > { %8972 = vst [vmem:[#allocation55_spill] sm:$0xff] %v7144_v27  ;;  %v1688_v27 = vand.u32 15, %v1502_v5  ;;  %v3306_v5 = vld [vmem:[#allocation11 + $0x3e8] sm:$0xff] }
 0x1e4   : > { %vm7164_vm6 = vcmp.ne.s32.totalorder %v1688_v27, 15  ;;  %v7177_v27 = vld [vmem:[#allocation2 + $0xc7] sm:$0xff] }
 0x1e5   : > { %2957 = vmatmul.f32.gmra.mxu1 %v7130_v54  ;;  %v7162_v18 = vpop.f32.mrf.mxu2  ;;  %v8979_v40 = vsel %vm7164_vm6, 4294967295, %v8978_v40  ;;  %8984 = vst [vmem:[#allocation63_spill] sm:$0xff] %v7177_v27 }
 0x1e6   : > { %4772 = vmatmul.msk.f32.gmra.mxu3 %vm7126_vm12, %v2172_v0  ;;  %v1499_v0 = vadd.s32 176, %v6042_v58  ;;  %8977 = vst [vmem:[#allocation60_spill] sm:$0xff] %v7162_v18  ;;  %v1501_v18 = vadd.s32 192, %v6042_v58 }
 0x1e7   : > { %4787 = vmatmul.msk.f32.gmra.mxu2 %vm7132_vm3, %v7139_v30  ;;  %v7156_v30 = vld [vmem:[#allocation2 + $0xbf] sm:$0xff]  ;;  %8980 = vst [vmem:[#allocation61_spill] sm:$0xff] %v8979_v40 }
 0x1e8   : > { %8975 = vst [vmem:[#allocation58_spill] sm:$0xff] %v7156_v30  ;;  %v1667_v49 = vand.u32 15, %v1499_v0  ;;  %v7179_v0 = vpop.f32.mrf.mxu0 }
 0x1e9   : > { %2773 = vmatmul.f32.gmra.mxu0 %v6690_v20  ;;  %v3308_v20 = vld [vmem:[#allocation11 + $0x3f8] sm:$0xff]  ;;  %8985 = vst [vmem:[#allocation64_spill] sm:$0xff] %v7179_v0  ;;  %v3302_v0 = vld [vmem:[#allocation11 + $0x3c8] sm:$0xff] }
 0x1ea   : > { %v7160_v22 = vpop.f32.mrf.mxu1  ;;  %3422 = vmatpush.msra.mxu0 %v3308_v20  ;;  %vm7170_vm12 = vcmp.ne.s32.totalorder %v1667_v49, 0  ;;  %v3304_v20 = vld [vmem:[#allocation11 + $0x3d8] sm:$0xff]  ;;  %v3303_v49 = vld [vmem:[#allocation11 + $0x3d0] sm:$0xff] }
 0x1eb   : > { %8976 = vst [vmem:[#allocation59_spill] sm:$0xff] %v7160_v22 }
 0x1ec   : > { %3423 = vmatpush.msra.mxu0 %v3307_v45  ;;  %v2121_v45 = vld [vmem:[#allocation11 + $0x20] sm:$0xff] }
 0x1ed   : > { %2960 = vmatmul.f32.gmra.mxu1 %v7150_v35  ;;  %2580 = vmatpush.msrb.mxu3 %v2121_v45  ;;  %v7190_v40 = vpop.f32.mrf.mxu2  ;;  %v7194_v45 = vld [vmem:[#allocation2 + $0xcf] sm:$0xff] }
 0x1ee   : > { %2431 = vmatmul.f32.gmra.mxu3 %v2173_v42  ;;  %v7168_v42 = vld [vmem:[#allocation2 + $0x58] sm:$0xff]  ;;  %3424 = vmatpush.msra.mxu0 %v3306_v5  ;;  %v7186_v5 = vld [vmem:[#allocation2 + $0x60] sm:$0xff]  ;;  %8987 = vst [vmem:[#allocation66_spill] sm:$0xff] %v7190_v40 }
 0x1ef   : > { %2535 = vmatmul.f32.gmra.mxu2 %v7156_v30  ;;  %v8981_v30 = vmov 0  ;;  %8988 = vst [vmem:[#allocation67_spill] sm:$0xff] %v7194_v45  ;;  %v3299_v40 = vld [vmem:[#allocation11 + $0x3b0] sm:$0xff] }
 0x1f0   : > { %v8982_v30 = vsel %vm7170_vm12, 4294967295, %v8981_v30  ;;  %3425 = vmatpush.msra.mxu0 %v3305_v48  ;;  %v2175_v48 = vld [vmem:[#allocation2 + $0xd9] sm:$0xff] }
 0x1f1   : > { %2776 = vmatmul.f32.gmra.mxu0 %v6761_v43  ;;  %8983 = vst [vmem:[#allocation62_spill] sm:$0xff] %v8982_v30  ;;  %v2174_v43 = vld [vmem:[#allocation2 + $0xd1] sm:$0xff]  ;;  %v7197_v30 = vpop.f32.mrf.mxu0 }
 0x1f2   : > { %3426 = vmatpush.msra.mxu0 %v3304_v20  ;;  %8989 = vst [vmem:[#allocation68_spill] sm:$0xff] %v7197_v30  ;;  %v2921_v30 = vld [vmem:[#allocation11 + $0x2f0] sm:$0xff] }
 0x1f4   : > { %3427 = vmatpush.msra.mxu0 %v3303_v49  ;;  %v1681_v49 = vand.u32 15, %v1501_v18  ;;  %v2176_v18 = vld [vmem:[#allocation2 + $0xe1] sm:$0xff] }
 0x1f5   : > { %2963 = vmatmul.f32.gmra.mxu1 %v7168_v42  ;;  %v7188_v22 = vpop.f32.mrf.mxu1 }
 0x1f6   : > { %4773 = vmatmul.msk.f32.gmra.mxu3 %vm7164_vm6, %v2174_v43  ;;  %v1504_v43 = vadd.s32 216, %v6042_v58  ;;  %8986 = vst [vmem:[#allocation65_spill] sm:$0xff] %v7188_v22  ;;  %3428 = vmatpush.msra.mxu0 %v3302_v0  ;;  %v3300_v22 = vld [vmem:[#allocation11 + $0x3b8] sm:$0xff]  ;;  %vm7206_vm4 = vcmp.ne.s32.totalorder %v1681_v49, 0 }
 0x1f7   : > { %4788 = vmatmul.msk.f32.gmra.mxu2 %vm7170_vm12, %v7177_v27  ;;  %v2120_v27 = vld [vmem:[#allocation11 + $0x18] sm:$0xff] }
 0x1f8   : > { %v1702_v20 = vand.u32 15, %v1504_v43  ;;  %2581 = vmatpush.msrb.mxu3 %v2120_v27  ;;  %v7204_v0 = vld [vmem:[#allocation2 + $0x68] sm:$0xff]  ;;  %v3298_v43 = vld [vmem:[#allocation11 + $0x3a8] sm:$0xff] }
 0x1f9   : > { %2779 = vmatmul.f32.gmra.mxu0 %v6796_v19  ;;  %v3301_v19 = vld [vmem:[#allocation11 + $0x3c0] sm:$0xff]  ;;  %v3296_v49 = vld [vmem:[#allocation11 + $0x398] sm:$0xff] }
 0x1fa   : > { %3429 = vmatpush.msra.mxu0 %v3301_v19  ;;  %vm7200_vm6 = vcmp.ne.s32.totalorder %v1702_v20, 15  ;;  %v2922_v20 = vld [vmem:[#allocation11 + $0x2f8] sm:$0xff] }
 0x1fb   : > { %3036 = vmatpush.msra.mxu2 %v2922_v20  ;;  %v7230_v20 = vld [vmem:[#allocation2 + $0xdf] sm:$0xff] }
 0x1fc   : > { %3430 = vmatpush.msra.mxu0 %v3300_v22  ;;  %v7215_v22 = vld [vmem:[#allocation2 + $0xd7] sm:$0xff]  ;;  %9000 = vst [vmem:[#allocation75_spill] sm:$0xff] %v7230_v20 }
 0x1fd   : > { %2966 = vmatmul.f32.gmra.mxu1 %v7186_v5  ;;  %8997 = vst [vmem:[#allocation72_spill] sm:$0xff] %v7215_v22  ;;  %3037 = vmatpush.msra.mxu2 %v2921_v30  ;;  %v2118_v30 = vld [vmem:[#allocation11 + $0x8] sm:$0xff] }
 0x1fe   : > { %2437 = vmatmul.f32.gmra.mxu3 %v2175_v48  ;;  %v8990_v48 = vmov 0  ;;  %3431 = vmatpush.msra.mxu0 %v3299_v40  ;;  %v2119_v40 = vld [vmem:[#allocation11 + $0x10] sm:$0xff] }
 0x1ff   : > { %2541 = vmatmul.f32.gmra.mxu2 %v7194_v45  ;;  %v8991_v48 = vsel %vm7200_vm6, 4294967295, %v8990_v48  ;;  %v8993_v45 = vmov 0  ;;  %v7217_v27 = vpop.f32.mrf.mxu2  ;;  %2582 = vmatpush.msrb.mxu3 %v2119_v40  ;;  %v2919_v40 = vld [vmem:[#allocation11 + $0x2e0] sm:$0xff] }
 0x200   : > { %8992 = vst [vmem:[#allocation69_spill] sm:$0xff] %v8991_v48  ;;  %v8994_v45 = vsel %vm7206_vm4, 4294967295, %v8993_v45  ;;  %3432 = vmatpush.msra.mxu0 %v3298_v43  ;;  %v3295_v43 = vld [vmem:[#allocation11 + $0x390] sm:$0xff]  ;;  %v1506_v48 = vadd.s32 232, %v6042_v58 }
 0x201   : > { %2782 = vmatmul.f32.gmra.mxu0 %v6907_v15  ;;  %8995 = vst [vmem:[#allocation70_spill] sm:$0xff] %v8994_v45  ;;  %v3297_v15 = vld [vmem:[#allocation11 + $0x3a0] sm:$0xff]  ;;  %2583 = vmatpush.msrb.mxu3 %v2118_v30  ;;  %v2913_v30 = vld [vmem:[#allocation11 + $0x2b0] sm:$0xff] }
 0x202   : > { %v7211_v19 = vpop.f32.mrf.mxu1  ;;  %8998 = vst [vmem:[#allocation73_spill] sm:$0xff] %v7217_v27  ;;  %3433 = vmatpush.msra.mxu0 %v3297_v15  ;;  %v7226_v27 = vld [vmem:[#allocation2 + $0x70] sm:$0xff]  ;;  %v1503_v15 = vadd.s32 208, %v6042_v58 }
 0x203   : > { %8996 = vst [vmem:[#allocation71_spill] sm:$0xff] %v7211_v19  ;;  %v2920_v19 = vld [vmem:[#allocation11 + $0x2e8] sm:$0xff] }
 0x204   : > { %3434 = vmatpush.msra.mxu0 %v3296_v49  ;;  %3038 = vmatpush.msra.mxu2 %v2920_v19  ;;  %v1716_v49 = vand.u32 15, %v1506_v48  ;;  %v1695_v44 = vand.u32 15, %v1503_v15  ;;  %v2917_v19 = vld [vmem:[#allocation11 + $0x2d0] sm:$0xff]  ;;  %v7242_v48 = vld [vmem:[#allocation2 + $0x78] sm:$0xff] }
 0x205   : > { %2969 = vmatmul.f32.gmra.mxu1 %v7204_v0  ;;  %v7253_v15 = vld [vmem:[#allocation2 + $0xe7] sm:$0xff] }
 0x206   : > { %4774 = vmatmul.msk.f32.gmra.mxu3 %vm7200_vm6, %v2176_v18  ;;  %v7223_v18 = vpop.f32.mrf.mxu0  ;;  %3435 = vmatpush.msra.mxu0 %v3295_v43  ;;  %v2918_v43 = vld [vmem:[#allocation11 + $0x2d8] sm:$0xff]  ;;  %vm7238_vm6 = vcmp.ne.s32.totalorder %v1716_v49, 15  ;;  %9009 = vst [vmem:[#allocation80_spill] sm:$0xff] %v7253_v15 }
 0x207   : > { %4789 = vmatmul.msk.f32.gmra.mxu2 %vm7206_vm4, %v7215_v22  ;;  %8999 = vst [vmem:[#allocation74_spill] sm:$0xff] %v7223_v18  ;;  %v3294_v22 = vld [vmem:[#allocation11 + $0x388] sm:$0xff]  ;;  %v3293_v18 = vld [vmem:[#allocation11 + $0x380] sm:$0xff]  ;;  %v7235_v61 = vpop.f32.mrf.mxu2  ;;  %vm7244_vm4 = vcmp.ne.s32.totalorder %v1695_v44, 0 }
 0x208   : > { %3436 = vmatpush.msra.mxu0 %v3294_v22  ;;  %9001 = vst [vmem:[#allocation76_spill] sm:$0xff] %v7235_v61  ;;  %3039 = vmatpush.msra.mxu2 %v2919_v40  ;;  %v2916_v22 = vld [vmem:[#allocation11 + $0x2c8] sm:$0xff]  ;;  %v2117_v44 = vld [vmem:[#allocation11] sm:$0xff]  ;;  %v2914_v40 = vld [vmem:[#allocation11 + $0x2b8] sm:$0xff] }
 0x209   : > { %2785 = vmatmul.f32.gmra.mxu0 %v6947_v17  ;;  %v2177_v17 = vld [vmem:[#allocation2 + $0xe9] sm:$0xff]  ;;  %2584 = vmatpush.msrb.mxu3 %v2117_v44 }
 0x20a   : > { %v7233_v45 = vpop.f32.mrf.mxu1  ;;  %3437 = vmatpush.msra.mxu0 %v3293_v18  ;;  %3040 = vmatpush.msra.mxu2 %v2918_v43  ;;  %v2915_v18 = vld [vmem:[#allocation11 + $0x2c0] sm:$0xff] }
 0x20c   : > { %3041 = vmatpush.msra.mxu2 %v2917_v19  ;;  %v1508_v19 = vadd.s32 248, %v6042_v58 }
 0x20d   : > { %2972 = vmatmul.f32.gmra.mxu1 %v7226_v27 }
 0x20e   : > { %2443 = vmatmul.f32.gmra.mxu3 %v2177_v17  ;;  %v9002_v17 = vmov 0  ;;  %v7248_v61 = vpop.f32.mrf.mxu0  ;;  %3042 = vmatpush.msra.mxu2 %v2916_v22  ;;  %v2912_v22 = vld [vmem:[#allocation11 + $0x2a8] sm:$0xff] }
 0x20f   : > { %2547 = vmatmul.f32.gmra.mxu2 %v7230_v20  ;;  %v9003_v17 = vsel %vm7238_vm6, 4294967295, %v9002_v17  ;;  %v9005_v20 = vmov 0  ;;  %9008 = vst [vmem:[#allocation79_spill] sm:$0xff] %v7248_v61  ;;  %v1505_v61 = vadd.s32 224, %v6042_v58 }
 0x210   : > { %9004 = vst [vmem:[#allocation77_spill] sm:$0xff] %v9003_v17  ;;  %v9006_v20 = vsel %vm7244_vm4, 4294967295, %v9005_v20  ;;  %3043 = vmatpush.msra.mxu2 %v2915_v18  ;;  %v2179_v17 = vld [vmem:[#allocation2 + $0xf9] sm:$0xff]  ;;  %v7268_v18 = vld [vmem:[#allocation2 + $0xef] sm:$0xff] }
 0x211   : > { %2788 = vmatmul.f32.gmra.mxu0 %v7002_v28  ;;  %9007 = vst [vmem:[#allocation78_spill] sm:$0xff] %v9006_v20  ;;  %v2178_v28 = vld [vmem:[#allocation2 + $0xf1] sm:$0xff]  ;;  %v1709_v20 = vand.u32 15, %v1505_v61 }
 0x212   : > { %3044 = vmatpush.msra.mxu2 %v2914_v40  ;;  %9011 = vst [vmem:[#allocation82_spill] sm:$0xff] %v7268_v18  ;;  %v3292_v40 = vld [vmem:[#allocation11 + $0x378] sm:$0xff]  ;;  %v2907_v61 = vld [vmem:[#allocation11 + $0x280] sm:$0xff] }
 0x213   : > { %3309 = vmatpush.msra.mxu3 %v3292_v40  ;;  %v1957_v40 = vld [vmem:[#allocation2 + $0x7] sm:$0xff] }
 0x214   : > { %3045 = vmatpush.msra.mxu2 %v2913_v30 }
 0x215   : > { %2975 = vmatmul.f32.gmra.mxu1 %v7242_v48 }
 0x216   : > { %4775 = vmatmul.msk.f32.gmra.mxu3 %vm7238_vm6, %v2178_v28  ;;  %v7264_v28 = vld [vmem:[#allocation2 + $0x80] sm:$0xff]  ;;  %v7270_v44 = vpop.f32.mrf.mxu0  ;;  %3046 = vmatpush.msra.mxu2 %v2912_v22  ;;  %v2908_v22 = vld [vmem:[#allocation11 + $0x288] sm:$0xff] }
 0x217   : > { %4790 = vmatmul.msk.f32.gmra.mxu2 %vm7244_vm4, %v7253_v15  ;;  %9012 = vst [vmem:[#allocation83_spill] sm:$0xff] %v7270_v44  ;;  %v1730_v15 = vand.u32 15, %v1508_v19  ;;  %v7280_v19 = vld [vmem:[#allocation2 + $0x88] sm:$0xff]  ;;  %vm7282_vm4 = vcmp.ne.s32.totalorder %v1709_v20, 0  ;;  %v9017_v44 = vmov 0 }
 0x218   : > { %v9018_v44 = vsel %vm7282_vm4, 4294967295, %v9017_v44  ;;  %v3646_v20 = vld [vmem:[#allocation11 + $0x478] sm:$0xff] }
 0x219   : > { %2791 = vmatmul.f32.gmra.mxu0 %v7016_v41  ;;  %v2911_v41 = vld [vmem:[#allocation11 + $0x2a0] sm:$0xff]  ;;  %vm7276_vm6 = vcmp.ne.s32.totalorder %v1730_v15, 15  ;;  %9019 = vst [vmem:[#allocation86_spill] sm:$0xff] %v9018_v44  ;;  %3647 = vmatpush.msra.mxu1 %v3646_v20 }
 0x21a   : > { %v7259_v49 = vpop.f32.mrf.mxu1  ;;  %v7261_v43 = vpop.f32.mrf.mxu2  ;;  %3047 = vmatpush.msra.mxu2 %v2911_v41  ;;  %v7292_v15 = vld [vmem:[#allocation2 + $0xf7] sm:$0xff] }
 0x21b   : > { %9010 = vst [vmem:[#allocation81_spill] sm:$0xff] %v7261_v43  ;;  %v2910_v43 = vld [vmem:[#allocation11 + $0x298] sm:$0xff] }
 0x21c   : > { %3048 = vmatpush.msra.mxu2 %v2910_v43  ;;  %9021 = vst [vmem:[#allocation88_spill] sm:$0xff] %v7292_v15 }
 0x21d   : > { %2978 = vmatmul.f32.gmra.mxu1 %v7264_v28 }
 0x21e   : > { %2449 = vmatmul.f32.gmra.mxu3 %v2179_v17  ;;  %v9014_v17 = vmov 0  ;;  %3049 = vmatpush.msra.mxu2 %v2909_v31  ;;  %v7297_v43 = vpop.f32.mrf.mxu0 }
 0x21f   : > { %2553 = vmatmul.f32.gmra.mxu2 %v7268_v18  ;;  %v9015_v17 = vsel %vm7276_vm6, 4294967295, %v9014_v17  ;;  %9022 = vst [vmem:[#allocation89_spill] sm:$0xff] %v7297_v43  ;;  %v7309_v43 = vld [vmem:[#allocation2 + $0xff] sm:$0xff] }
 0x220   : > { %9016 = vst [vmem:[#allocation85_spill] sm:$0xff] %v9015_v17  ;;  %3050 = vmatpush.msra.mxu2 %v2908_v22  ;;  %v1507_v22 = vadd.s32 240, %v6042_v58  ;;  %v1958_v58 = vld [vmem:[#allocation2 + $0xf] sm:$0xff] }
 0x221   : > { %3438 = vmatmul.f32.vlgmr.msra.gmra.mxu0 %v7045_v2  ;;  %v7287_v2 = vld [vmem:[#allocation2 + $0x101] sm:$0xff]  ;;  %9024 = vst [vmem:[#allocation91_spill] sm:$0xff] %v7309_v43 }
 0x222   : > { %v2402_v7 = vpop.f32.mrf.mxu1  ;;  %v7274_v30 = vpop.f32.mrf.mxu2  ;;  %9020 = vst [vmem:[#allocation87_spill] sm:$0xff] %v7287_v2  ;;  %3051 = vmatpush.msra.mxu2 %v2907_v61  ;;  %v1723_v61 = vand.u32 15, %v1507_v22  ;;  %v2277_v22 = vld [vmem:[#allocation2 + $0x107] sm:$0xff] }
 0x223   : > { %9013 = vst [vmem:[#allocation84_spill] sm:$0xff] %v7274_v30  ;;  %v7474_v30 = vld [vmem:[#allocation2 + $0x69] sm:$0xff] }
 0x225   : > { %2981 = vmatmul.f32.gmra.mxu1 %v7280_v19 }
 0x226   : > { %4776 = vmatmul.msk.f32.gmra.mxu3 %vm7276_vm6, %v7287_v2  ;;  %v7303_v2 = vld [vmem:[#allocation2 + $0x90] sm:$0xff]  ;;  %vm7320_vm6 = vcmp.ne.s32.totalorder %v1723_v61, 0 }
 0x227   : > { %4791 = vmatmul.msk.f32.gmra.mxu2 %vm7282_vm4, %v7292_v15  ;;  %v7315_v15 = vpop.f32.mrf.mxu0 }
 0x228   : > { %9025 = vst [vmem:[#allocation92_spill] sm:$0xff] %v7315_v15 }
 0x229   : > { %3441 = vmatmul.f32.gmra.mxu0 %v7070_v38  ;;  %v3291_v38 = vld [vmem:[#allocation11 + $0x370] sm:$0xff] }
 0x22a   : > { %v2405_v41 = vpop.f32.mrf.mxu1  ;;  %v2509_v31 = vpop.f32.mrf.mxu2  ;;  %3310 = vmatpush.msra.mxu3 %v3291_v38 }
 0x22b   : > { %v7301_v17 = vadd.f32 %v2509_v31, %v7233_v45 }
 0x22d   : > { %9023 = vst [vmem:[#allocation90_spill] sm:$0xff] %v7301_v17  ;;  %2984 = vmatmul.f32.gmra.mxu1 %v7303_v2  ;;  %v5347_v17 = vld [vmem:[#allocation2 + $0x6f] sm:$0xff] }
 0x22e   : > { %4793 = vmatmul.msk.f32.vlgmr.msrb.gmra.mxu3 %vm6065_vm9, %v1957_v40  ;;  %v9027_v40 = vmov 0 }
 0x22f   : > { %2559 = vmatmul.f32.gmra.mxu2 %v7309_v43  ;;  %v9028_v40 = vsel %vm7320_vm6, 4294967295, %v9027_v40  ;;  %v7332_v61 = vpop.f32.mrf.mxu0 }
 0x230   : > { %9029 = vst [vmem:[#allocation94_spill] sm:$0xff] %v9028_v40  ;;  %v3640_v40 = vld [vmem:[#allocation11 + $0x448] sm:$0xff] }
 0x231   : > { %v2408_v20 = vpop.f32.mrf.mxu3  ;;  %3444 = vmatmul.f32.gmra.mxu0 %v7086_v46  ;;  %v3645_v46 = vld [vmem:[#allocation11 + $0x470] sm:$0xff]  ;;  %9031 = vst [vmem:[#allocation96_spill] sm:$0xff] %v7332_v61 }
 0x232   : > { %v7313_v45 = vpop.f32.mrf.mxu1  ;;  %v2512_v31 = vpop.f32.mrf.mxu2  ;;  %3648 = vmatpush.msra.mxu1 %v3645_v46 }
 0x233   : > { %v7318_v18 = vadd.f32 %v2512_v31, %v7259_v49 }
 0x235   : > { %9026 = vst [vmem:[#allocation93_spill] sm:$0xff] %v7318_v18  ;;  %2987 = vmatmul.f32.gmra.mxu1 %v6890_v29  ;;  %v5335_v29 = vld [vmem:[#allocation2 + $0x17] sm:$0xff]  ;;  %v7462_v18 = vld [vmem:[#allocation2 + $0x61] sm:$0xff] }
 0x236   : > { %2588 = vmatmul.f32.gmra.mxu3 %v1958_v58  ;;  %v2278_v58 = vld [vmem:[#allocation2 + $0x10f] sm:$0xff] }
 0x237   : > { %4792 = vmatmul.msk.f32.gmra.mxu2 %vm7320_vm6, %v2277_v22  ;;  %v3290_v22 = vld [vmem:[#allocation11 + $0x368] sm:$0xff]  ;;  %v7343_v61 = vpop.f32.mrf.mxu0 }
 0x238   : > { %3311 = vmatpush.msra.mxu3 %v3290_v22  ;;  %9033 = vst [vmem:[#allocation98_spill] sm:$0xff] %v7343_v61  ;;  %v5338_v61 = vld [vmem:[#allocation2 + $0x2f] sm:$0xff] }
 0x239   : > { %v2411_v38 = vpop.f32.mrf.mxu3  ;;  %3447 = vmatmul.f32.gmra.mxu0 %v7110_v1 }
 0x23a   : > { %v7328_v15 = vpop.f32.mrf.mxu1  ;;  %v2515_v49 = vpop.f32.mrf.mxu2 }
 0x23b   : > { %v7330_v31 = vadd.f32 %v2515_v49, %v2402_v7  ;;  %v5336_v49 = vld [vmem:[#allocation2 + $0x1f] sm:$0xff] }
 0x23d   : > { %9030 = vst [vmem:[#allocation95_spill] sm:$0xff] %v7330_v31  ;;  %2990 = vmatmul.f32.gmra.mxu1 %v6977_v47 }
 0x23e   : > { %4794 = vmatmul.msk.f32.gmra.mxu3 %vm6115_vm2, %v5335_v29  ;;  %v3644_v29 = vld [vmem:[#allocation11 + $0x468] sm:$0xff] }
 0x23f   : > { %2565 = vmatmul.f32.gmra.mxu2 %v2278_v58  ;;  %3649 = vmatpush.msra.mxu1 %v3644_v29 }
 0x241   : > { %v2414_v26 = vpop.f32.mrf.mxu3  ;;  %3450 = vmatmul.f32.gmra.mxu0 %v7130_v54 }
 0x242   : > { %v7338_v1 = vpop.f32.mrf.mxu1  ;;  %v2518_v46 = vpop.f32.mrf.mxu2 }
 0x243   : > { %v7340_v7 = vadd.f32 %v2518_v46, %v2405_v41  ;;  %v5337_v41 = vld [vmem:[#allocation2 + $0x27] sm:$0xff] }
 0x244   : > { %v2828_v46 = vld [vmem:[#allocation2 + $0x21] sm:$0xff] }
 0x245   : > { %9032 = vst [vmem:[#allocation97_spill] sm:$0xff] %v7340_v7  ;;  %2993 = vmatmul.f32.gmra.mxu1 %v7030_v3 }
 0x246   : > { %2594 = vmatmul.f32.gmra.mxu3 %v5336_v49  ;;  %v7355_v49 = vpop.f32.mrf.mxu0 }
 0x247   : > { %3052 = vmatmul.f32.vlgmr.msra.gmra.mxu2 %v2827_v9  ;;  %v3289_v9 = vld [vmem:[#allocation11 + $0x360] sm:$0xff]  ;;  %9035 = vst [vmem:[#allocation100_spill] sm:$0xff] %v7355_v49 }
 0x248   : > { %3312 = vmatpush.msra.mxu3 %v3289_v9 }
 0x249   : > { %v2417_v58 = vpop.f32.mrf.mxu3  ;;  %3453 = vmatmul.f32.gmra.mxu0 %v7150_v35 }
 0x24a   : > { %v7346_v54 = vpop.f32.mrf.mxu1  ;;  %v2521_v22 = vpop.f32.mrf.mxu2 }
 0x24b   : > { %v7348_v43 = vadd.f32 %v2521_v22, %v2408_v20 }
 0x24d   : > { %9034 = vst [vmem:[#allocation99_spill] sm:$0xff] %v7348_v43  ;;  %2996 = vmatmul.f32.gmra.mxu1 %v7062_v14 }
 0x24e   : > { %4795 = vmatmul.msk.f32.gmra.mxu3 %vm6160_vm13, %v5337_v41  ;;  %v7363_v41 = vld [vmem:[#allocation2 + $0x29] sm:$0xff]  ;;  %vm9049_vm13 = vnez %v8828_v8 }
 0x24f   : > { %4809 = vmatmul.msk.f32.gmra.mxu2 %vm6061_vm8, %v2828_v46  ;;  %v3643_v46 = vld [vmem:[#allocation11 + $0x460] sm:$0xff] }
 0x250   : > { %3650 = vmatpush.msra.mxu1 %v3643_v46 }
 0x251   : > { %v2420_v35 = vpop.f32.mrf.mxu3  ;;  %3456 = vmatmul.f32.gmra.mxu0 %v7168_v42  ;;  %v7367_v42 = vpop.f32.mrf.mxu0 }
 0x252   : > { %v2524_v29 = vpop.f32.mrf.mxu2  ;;  %v7358_v20 = vpop.f32.mrf.mxu1  ;;  %9037 = vst [vmem:[#allocation102_spill] sm:$0xff] %v7367_v42 }
 0x253   : > { %v7360_v22 = vadd.f32 %v2524_v29, %v2411_v38  ;;  %v5339_v29 = vld [vmem:[#allocation2 + $0x37] sm:$0xff] }
 0x255   : > { %9036 = vst [vmem:[#allocation101_spill] sm:$0xff] %v7360_v22  ;;  %2999 = vmatmul.f32.gmra.mxu1 %v7079_v12  ;;  %v3642_v22 = vld [vmem:[#allocation11 + $0x458] sm:$0xff] }
 0x256   : > { %2600 = vmatmul.f32.gmra.mxu3 %v5338_v61  ;;  %v7376_v61 = vld [vmem:[#allocation2 + $0x31] sm:$0xff]  ;;  %3651 = vmatpush.msra.mxu1 %v3642_v22 }
 0x257   : > { %3058 = vmatmul.f32.gmra.mxu2 %v7363_v41 }
 0x259   : > { %v2423_v52 = vpop.f32.mrf.mxu3  ;;  %3459 = vmatmul.f32.gmra.mxu0 %v7186_v5  ;;  %v3288_v5 = vld [vmem:[#allocation11 + $0x358] sm:$0xff]  ;;  %v7384_v42 = vpop.f32.mrf.mxu0 }
 0x25a   : > { %v2527_v9 = vpop.f32.mrf.mxu2  ;;  %v7371_v38 = vpop.f32.mrf.mxu1  ;;  %3313 = vmatpush.msra.mxu3 %v3288_v5  ;;  %9040 = vst [vmem:[#allocation105_spill] sm:$0xff] %v7384_v42  ;;  %v7395_v5 = vld [vmem:[#allocation2 + $0xd0] sm:$0xff]  ;;  %v7402_v42 = vld [vmem:[#allocation2 + $0x41] sm:$0xff] }
 0x25b   : > { %v7369_v49 = vadd.f32 %v2527_v9, %v2414_v26 }
 0x25d   : > { %9038 = vst [vmem:[#allocation103_spill] sm:$0xff] %v7369_v49  ;;  %3002 = vmatmul.f32.gmra.mxu1 %v7104_v11 }
 0x25e   : > { %4796 = vmatmul.msk.f32.gmra.mxu3 %vm6297_vm10, %v5339_v29  ;;  %v7387_v29 = vld [vmem:[#allocation2 + $0x39] sm:$0xff]  ;;  %vm9043_vm10 = vnez %v8811_v51  ;;  %v3280_v51 = vld [vmem:[#allocation11 + $0x318] sm:$0xff] }
 0x25f   : > { %4810 = vmatmul.msk.f32.gmra.mxu2 %vm6108_vm0, %v7376_v61 }
 0x261   : > { %v2426_v46 = vpop.f32.mrf.mxu3  ;;  %3462 = vmatmul.f32.gmra.mxu0 %v7204_v0 }
 0x262   : > { %v2530_v26 = vpop.f32.mrf.mxu2  ;;  %v7389_v49 = vpop.f32.mrf.mxu1 }
 0x263   : > { %v7382_v9 = vadd.f32 %v2530_v26, %v2417_v58  ;;  %v5341_v26 = vld [vmem:[#allocation2 + $0x47] sm:$0xff] }
 0x265   : > { %9039 = vst [vmem:[#allocation104_spill] sm:$0xff] %v7382_v9  ;;  %3005 = vmatmul.f32.gmra.mxu1 %v7121_v53  ;;  %v3641_v9 = vld [vmem:[#allocation11 + $0x450] sm:$0xff] }
 0x266   : > { %2606 = vmatmul.f32.gmra.mxu3 %v5340_v60  ;;  %v7400_v60 = vpop.f32.mrf.mxu0  ;;  %3652 = vmatpush.msra.mxu1 %v3641_v9 }
 0x267   : > { %3064 = vmatmul.f32.gmra.mxu2 %v7387_v29  ;;  %9042 = vst [vmem:[#allocation107_spill] sm:$0xff] %v7400_v60  ;;  %v7415_v60 = vld [vmem:[#allocation2 + $0x49] sm:$0xff] }
 0x268   : > { %3653 = vmatpush.msra.mxu1 %v3640_v40  ;;  %v3638_v40 = vld [vmem:[#allocation11 + $0x438] sm:$0xff] }
 0x269   : > { %v2429_v43 = vpop.f32.mrf.mxu3  ;;  %3465 = vmatmul.f32.gmra.mxu0 %v7226_v27  ;;  %v3287_v27 = vld [vmem:[#allocation11 + $0x350] sm:$0xff] }
 0x26a   : > { %v2533_v0 = vpop.f32.mrf.mxu2  ;;  %v7407_v22 = vpop.f32.mrf.mxu1  ;;  %3314 = vmatpush.msra.mxu3 %v3287_v27 }
 0x26b   : > { %v7393_v58 = vadd.f32 %v2533_v0, %v2420_v35 }
 0x26d   : > { %9041 = vst [vmem:[#allocation106_spill] sm:$0xff] %v7393_v58  ;;  %3008 = vmatmul.f32.gmra.mxu1 %v7395_v5 }
 0x26e   : > { %4797 = vmatmul.msk.f32.gmra.mxu3 %vm6514_vm14, %v5341_v26  ;;  %v5342_v26 = vld [vmem:[#allocation2 + $0x4f] sm:$0xff]  ;;  %v7418_v7 = vpop.f32.mrf.mxu0  ;;  %vm9048_vm14 = vnez %v8889_v37 }
 0x26f   : > { %4811 = vmatmul.msk.f32.gmra.mxu2 %vm9043_vm10, %v7402_v42  ;;  %9045 = vst [vmem:[#allocation109_spill] sm:$0xff] %v7418_v7 }
 0x271   : > { %v2432_v35 = vpop.f32.mrf.mxu3  ;;  %3468 = vmatmul.f32.gmra.mxu0 %v7242_v48 }
 0x272   : > { %v2536_v0 = vpop.f32.mrf.mxu2 }
 0x273   : > { %v7410_v58 = vadd.f32 %v2536_v0, %v2423_v52  ;;  %v7421_v52 = vpop.f32.mrf.mxu1  ;;  %v7425_v0 = vld [vmem:[#allocation2 + $0xe0] sm:$0xff] }
 0x274   : > { %9046 = vst [vmem:[#allocation110_spill] sm:$0xff] %v7421_v52  ;;  %v7440_v52 = vld [vmem:[#allocation2 + $0xe8] sm:$0xff] }
 0x275   : > { %9044 = vst [vmem:[#allocation108_spill] sm:$0xff] %v7410_v58  ;;  %3011 = vmatmul.f32.gmra.mxu1 %v7412_v24  ;;  %v7430_v58 = vld [vmem:[#allocation2 + $0x51] sm:$0xff] }
 0x276   : > { %2612 = vmatmul.f32.gmra.mxu3 %v5342_v26  ;;  %v5343_v26 = vld [vmem:[#allocation2 + $0x57] sm:$0xff] }
 0x277   : > { %3070 = vmatmul.f32.gmra.mxu2 %v7415_v60 }
 0x279   : > { %v2435_v31 = vpop.f32.mrf.mxu3  ;;  %3471 = vmatmul.f32.gmra.mxu0 %v7264_v28  ;;  %v3286_v28 = vld [vmem:[#allocation11 + $0x348] sm:$0xff] }
 0x27a   : > { %v2539_v48 = vpop.f32.mrf.mxu2  ;;  %3315 = vmatpush.msra.mxu3 %v3286_v28 }
 0x27b   : > { %v7423_v27 = vadd.f32 %v2539_v48, %v2426_v46  ;;  %v7436_v46 = vpop.f32.mrf.mxu0  ;;  %v7442_v37 = vpop.f32.mrf.mxu1 }
 0x27c   : > { %9050 = vst [vmem:[#allocation112_spill] sm:$0xff] %v7436_v46  ;;  %v3639_v46 = vld [vmem:[#allocation11 + $0x440] sm:$0xff] }
 0x27d   : > { %9047 = vst [vmem:[#allocation111_spill] sm:$0xff] %v7423_v27  ;;  %3014 = vmatmul.f32.gmra.mxu1 %v7425_v0  ;;  %v7445_v27 = vld [vmem:[#allocation2 + $0x59] sm:$0xff] }
 0x27e   : > { %4798 = vmatmul.msk.f32.gmra.mxu3 %vm9048_vm14, %v5343_v26  ;;  %9052 = vst [vmem:[#allocation114_spill] sm:$0xff] %v7442_v37  ;;  %v5344_v26 = vld [vmem:[#allocation2 + $0x5f] sm:$0xff]  ;;  %3654 = vmatpush.msra.mxu1 %v3639_v46  ;;  %vm9056_vm14 = vnez %v8847_v16 }
 0x27f   : > { %4812 = vmatmul.msk.f32.gmra.mxu2 %vm9049_vm13, %v7430_v58  ;;  %v7469_v46 = vld [vmem:[#allocation2 + $0xf8] sm:$0xff] }
 0x280   : > { %3655 = vmatpush.msra.mxu1 %v3638_v40  ;;  %v3278_v16 = vld [vmem:[#allocation11 + $0x308] sm:$0xff] }
 0x281   : > { %v2438_v9 = vpop.f32.mrf.mxu3  ;;  %3474 = vmatmul.f32.gmra.mxu0 %v7280_v19 }
 0x282   : > { %v2542_v48 = vpop.f32.mrf.mxu2 }
 0x283   : > { %v7438_v7 = vadd.f32 %v2542_v48, %v2429_v43  ;;  %v7453_v48 = vld [vmem:[#allocation2 + $0xf0] sm:$0xff]  ;;  %v7455_v37 = vpop.f32.mrf.mxu0 }
 0x284   : > { %9054 = vst [vmem:[#allocation116_spill] sm:$0xff] %v7455_v37  ;;  %v3637_v37 = vld [vmem:[#allocation11 + $0x430] sm:$0xff] }
 0x285   : > { %9051 = vst [vmem:[#allocation113_spill] sm:$0xff] %v7438_v7  ;;  %3017 = vmatmul.f32.gmra.mxu1 %v7440_v52  ;;  %v7460_v7 = vpop.f32.mrf.mxu1 }
 0x286   : > { %2618 = vmatmul.f32.gmra.mxu3 %v5344_v26  ;;  %v5345_v26 = vld [vmem:[#allocation2 + $0x67] sm:$0xff]  ;;  %9055 = vst [vmem:[#allocation117_spill] sm:$0xff] %v7460_v7  ;;  %3656 = vmatpush.msra.mxu1 %v3637_v37  ;;  %v3635_v7 = vld [vmem:[#allocation11 + $0x420] sm:$0xff] }
 0x287   : > { %3076 = vmatmul.f32.gmra.mxu2 %v7445_v27  ;;  %v3633_v37 = vld [vmem:[#allocation11 + $0x410] sm:$0xff] }
 0x289   : > { %v7448_v19 = vpop.f32.mrf.mxu3  ;;  %3477 = vmatmul.f32.gmra.mxu0 %v7303_v2  ;;  %v3285_v2 = vld [vmem:[#allocation11 + $0x340] sm:$0xff] }
 0x28a   : > { %v2545_v43 = vpop.f32.mrf.mxu2  ;;  %3316 = vmatpush.msra.mxu3 %v3285_v2  ;;  %v3634_v2 = vld [vmem:[#allocation11 + $0x418] sm:$0xff] }
 0x28b   : > { %v7451_v28 = vadd.f32 %v2545_v43, %v2432_v35  ;;  %v5346_v43 = vld [vmem:[#allocation2 + $0x98] sm:$0xff]  ;;  %v7472_v44 = vpop.f32.mrf.mxu0 }
 0x28c   : > { %9058 = vst [vmem:[#allocation119_spill] sm:$0xff] %v7472_v44  ;;  %v3631_v44 = vld [vmem:[#allocation11 + $0x400] sm:$0xff] }
 0x28d   : > { %9053 = vst [vmem:[#allocation115_spill] sm:$0xff] %v7451_v28  ;;  %3020 = vmatmul.f32.gmra.mxu1 %v7453_v48 }
 0x28e   : > { %4799 = vmatmul.msk.f32.gmra.mxu3 %vm6819_vm15, %v5345_v26  ;;  %v3636_v26 = vld [vmem:[#allocation11 + $0x428] sm:$0xff]  ;;  %vm9060_vm15 = vnez %v8873_v63  ;;  %v9126_v63 = vld [vmem:[#allocation90_spill] sm:$0xff] }
 0x28f   : > { %4813 = vmatmul.msk.f32.gmra.mxu2 %vm9056_vm14, %v7462_v18  ;;  %3657 = vmatpush.msra.mxu1 %v3636_v26  ;;  %v3632_v26 = vld [vmem:[#allocation11 + $0x408] sm:$0xff] }
 0x291   : > { %v2444_v35 = vpop.f32.mrf.mxu3  ;;  %3480 = vmatmul.f32.gmra.mxu0 %v5346_v43  ;;  %3658 = vmatpush.msra.mxu1 %v3635_v7  ;;  %v7487_v7 = vld [vmem:[#allocation2 + $0x71] sm:$0xff] }
 0x292   : > { %v2548_v28 = vpop.f32.mrf.mxu2 }
 0x293   : > { %v7467_v56 = vadd.f32 %v2548_v28, %v2435_v31  ;;  %v7477_v31 = vpop.f32.mrf.mxu1  ;;  %3659 = vmatpush.msra.mxu1 %v3634_v2 }
 0x294   : > { %9059 = vst [vmem:[#allocation120_spill] sm:$0xff] %v7477_v31  ;;  %v5349_v31 = vld [vmem:[#allocation2 + $0x7f] sm:$0xff] }
 0x295   : > { %9057 = vst [vmem:[#allocation118_spill] sm:$0xff] %v7467_v56  ;;  %3023 = vmatmul.f32.gmra.mxu1 %v7469_v46  ;;  %v5348_v56 = vld [vmem:[#allocation2 + $0x77] sm:$0xff] }
 0x296   : > { %2624 = vmatmul.f32.gmra.mxu3 %v5347_v17  ;;  %v7482_v17 = vld [vmem:[#allocation2 + $0x100] sm:$0xff]  ;;  %3660 = vmatpush.msra.mxu1 %v3633_v37 }
 0x297   : > { %3082 = vmatmul.f32.gmra.mxu2 %v7474_v30 }
 0x298   : > { %3661 = vmatpush.msra.mxu1 %v3632_v26  ;;  %v7500_v26 = vld [vmem:[#allocation2 + $0x108] sm:$0xff] }
 0x299   : > { %v2447_v28 = vpop.f32.mrf.mxu3  ;;  %3483 = vmatmul.f32.gmra.mxu0 %v6977_v47  ;;  %v3284_v47 = vld [vmem:[#allocation11 + $0x338] sm:$0xff] }
 0x29a   : > { %v2551_v40 = vpop.f32.mrf.mxu2  ;;  %3662 = vmatpush.msra.mxu1 %v3631_v44  ;;  %3317 = vmatpush.msra.mxu3 %v3284_v47  ;;  %v7503_v44 = vld [vmem:[#allocation2 + $0x79] sm:$0xff] }
 0x29b   : > { %v7480_v43 = vadd.f32 %v2551_v40, %v2438_v9  ;;  %v7492_v9 = vpop.f32.mrf.mxu0  ;;  %v7495_v37 = vpop.f32.mrf.mxu1 }
 0x29c   : > { %9061 = vst [vmem:[#allocation121_spill] sm:$0xff] %v7492_v9 }
 0x29d   : > { %3026 = vmatmul.f32.gmra.mxu1 %v7482_v17  ;;  %9062 = vst [vmem:[#allocation122_spill] sm:$0xff] %v7495_v37 }
 0x29e   : > { %4800 = vmatmul.msk.f32.gmra.mxu3 %vm6868_vm5, %v5348_v56  ;;  %vm9067_vm5 = vnez %v8899_v32  ;;  %v9137_v32 = vld [vmem:[#allocation91_spill] sm:$0xff] }
 0x29f   : > { %4814 = vmatmul.msk.f32.gmra.mxu2 %vm9060_vm15, %v7487_v7 }
 0x2a1   : > { %v2450_v2 = vpop.f32.mrf.mxu3  ;;  %3486 = vmatmul.f32.gmra.mxu0 %v7030_v3  ;;  %v7507_v3 = vld [vmem:[#allocation2 + $0x110] sm:$0xff] }
 0x2a2   : > { %v2554_v40 = vpop.f32.mrf.mxu2 }
 0x2a3   : > { %v7498_v56 = vadd.f32 %v2554_v40, %v7448_v19  ;;  %v7509_v47 = vpop.f32.mrf.mxu0  ;;  %v7513_v40 = vpop.f32.mrf.mxu1 }
 0x2a4   : > { %9064 = vst [vmem:[#allocation124_spill] sm:$0xff] %v7509_v47 }
 0x2a5   : > { %9063 = vst [vmem:[#allocation123_spill] sm:$0xff] %v7498_v56  ;;  %3029 = vmatmul.f32.gmra.mxu1 %v7500_v26 }
 0x2a6   : > { %2630 = vmatmul.f32.gmra.mxu3 %v5349_v31  ;;  %9066 = vst [vmem:[#allocation126_spill] sm:$0xff] %v7513_v40  ;;  %v7518_v31 = vld [vmem:[#allocation2 + $0x81] sm:$0xff]  ;;  %v5351_v40 = vld [vmem:[#allocation2 + $0x8f] sm:$0xff] }
 0x2a7   : > { %3088 = vmatmul.f32.gmra.mxu2 %v7503_v44 }
 0x2a9   : > { %v2453_v9 = vpop.f32.mrf.mxu3  ;;  %3489 = vmatmul.f32.gmra.mxu0 %v7062_v14  ;;  %v3283_v14 = vld [vmem:[#allocation11 + $0x330] sm:$0xff] }
 0x2aa   : > { %v2557_v37 = vpop.f32.mrf.mxu2  ;;  %3318 = vmatpush.msra.mxu3 %v3283_v14 }
 0x2ab   : > { %v7511_v19 = vadd.f32 %v2557_v37, %v2444_v35  ;;  %v7526_v47 = vpop.f32.mrf.mxu0 }
 0x2ac   : > { %9068 = vst [vmem:[#allocation127_spill] sm:$0xff] %v7526_v47 }
 0x2ad   : > { %9065 = vst [vmem:[#allocation125_spill] sm:$0xff] %v7511_v19  ;;  %3032 = vmatmul.f32.gmra.mxu1 %v7507_v3 }
 0x2ae   : > { %4801 = vmatmul.msk.f32.gmra.mxu3 %vm7048_vm7, %v5350_v6  ;;  %v7529_v6 = vpop.f32.mrf.mxu1  ;;  %vm9070_vm7 = vnez %v8906_v34  ;;  %v7789_v34 = vld [vmem:[#allocation2 + $0x109] sm:$0xff] }
 0x2af   : > { %4815 = vmatmul.msk.f32.gmra.mxu2 %vm9067_vm5, %v7518_v31 }
 0x2b1   : > { %v2586_v56 = vpop.f32.mrf.mxu3  ;;  %3492 = vmatmul.f32.gmra.mxu0 %v7079_v12 }
 0x2b2   : > { %v2560_v35 = vpop.f32.mrf.mxu2 }
 0x2b3   : > { %v7524_v37 = vadd.f32 %v2560_v35, %v2447_v28  ;;  %v7545_v28 = vld [vmem:[#allocation2 + $0x91] sm:$0xff]  ;;  %v7559_v35 = vld [vmem:[#allocation2 + $0x99] sm:$0xff] }
 0x2b5   : > { %3663 = vmatmul.f32.vlgmr.msra.gmra.mxu1 %v7363_v41  ;;  %v7543_v41 = vpop.f32.mrf.mxu0 }
 0x2b6   : > { %2636 = vmatmul.f32.gmra.mxu3 %v5351_v40  ;;  %9069 = vst [vmem:[#allocation128_spill] sm:$0xff] %v7543_v41  ;;  %v7550_v40 = vpop.f32.mrf.mxu1 }
 0x2b7   : > { %3094 = vmatmul.f32.gmra.mxu2 %v7531_v23  ;;  %9071 = vst [vmem:[#allocation129_spill] sm:$0xff] %v7550_v40  ;;  %v9144_v40 = vld [vmem:[#allocation99_spill] sm:$0xff] }
 0x2b9   : > { %v2589_v19 = vpop.f32.mrf.mxu3  ;;  %3495 = vmatmul.f32.gmra.mxu0 %v7104_v11  ;;  %v3282_v11 = vld [vmem:[#allocation11 + $0x328] sm:$0xff] }
 0x2ba   : > { %v2563_v12 = vpop.f32.mrf.mxu2  ;;  %3319 = vmatpush.msra.mxu3 %v3282_v11 }
 0x2bb   : > { %v7535_v14 = vadd.f32 %v2563_v12, %v2450_v2 }
 0x2bd   : > { %4841 = vmatmul.msk.f32.gmra.mxu1 %vm6061_vm8, %v7376_v61  ;;  %v7562_v41 = vpop.f32.mrf.mxu0  ;;  %vm9074_vm8 = vnez %v8917_v39  ;;  %v3184_v39 = vld [vmem:[#allocation2 + $0x3f] sm:$0xff] }
 0x2be   : > { %4802 = vmatmul.msk.f32.gmra.mxu3 %vm7090_vm11, %v7057_v50  ;;  %v2474_v50 = vadd.f32 %v6959_v62, %v6801_v36  ;;  %9072 = vst [vmem:[#allocation130_spill] sm:$0xff] %v7562_v41  ;;  %v2477_v36 = vadd.f32 %v7034_v21, %v6844_v13  ;;  %v9075_v21 = vld [vmem:[#allocation30_spill] sm:$0xff]  ;;  %v9104_v41 = vld [vmem:[#allocation67_spill] sm:$0xff] }
 0x2bf   : > { %4816 = vmatmul.msk.f32.gmra.mxu2 %vm9070_vm7, %v7545_v28 }
 0x2c0   : > { %v2587_v12 = vadd.f32 %v2586_v56, %v2474_v50 }
 0x2c1   : > { %v2592_v2 = vpop.f32.mrf.mxu3  ;;  %3498 = vmatmul.f32.gmra.mxu0 %v7121_v53  ;;  %v7565_v53 = vpop.f32.mrf.mxu1 }
 0x2c2   : > { %v2566_v25 = vpop.f32.mrf.mxu2  ;;  %9073 = vst [vmem:[#allocation131_spill] sm:$0xff] %v7565_v53 }
 0x2c3   : > { %v7553_v61 = vadd.f32 %v2566_v25, %v2453_v9  ;;  %v9078_v25 = vld [vmem:[#allocation43_spill] sm:$0xff] }
 0x2c5   : > { %3669 = vmatmul.f32.gmra.mxu1 %v7387_v29  ;;  %v2700_v29 = vadd.f32 %v6685_v59, %v2587_v12  ;;  %v3281_v59 = vld [vmem:[#allocation11 + $0x320] sm:$0xff]  ;;  %v7585_v4 = vpop.f32.mrf.mxu0 }
 0x2c6   : > { %2642 = vmatmul.f32.gmra.mxu3 %v7074_v33  ;;  %v7579_v33 = vld [vmem:[#allocation2 + $0xa1] sm:$0xff] }
 0x2c7   : > { %3100 = vmatmul.f32.gmra.mxu2 %v7559_v35  ;;  %3320 = vmatpush.msra.mxu3 %v3281_v59 }
 0x2c9   : > { %v2595_v47 = vpop.f32.mrf.mxu3  ;;  %3501 = vmatmul.f32.gmra.mxu0 %v7395_v5  ;;  %v2590_v5 = vadd.f32 %v2589_v19, %v2477_v36  ;;  %v9077_v19 = vld [vmem:[#allocation34_spill] sm:$0xff]  ;;  %v9080_v36 = vld [vmem:[#allocation32_spill] sm:$0xff]  ;;  %3321 = vmatpush.msra.mxu3 %v3280_v51 }
 0x2ca   : > { %v3053_v9 = vpop.f32.mrf.mxu2  ;;  %v2480_v50 = vadd.f32 %v9078_v25, %v9077_v19  ;;  %v7617_v25 = vld [vmem:[#allocation2 + $0xb1] sm:$0xff] }
 0x2cb   : > { %v3054_v11 = vadd.f32 %v3053_v9, %v7313_v45  ;;  %v9079_v9 = vld [vmem:[#allocation50_spill] sm:$0xff] }
 0x2cd   : > { %4842 = vmatmul.msk.f32.gmra.mxu1 %vm6108_vm0, %v7402_v42  ;;  %v7574_v62 = vadd.f32 %v3054_v11, %v2700_v29  ;;  %v2703_v42 = vadd.f32 %v9075_v21, %v2590_v5  ;;  %v2593_v29 = vadd.f32 %v2592_v2, %v2480_v50  ;;  %v7603_v59 = vpop.f32.mrf.mxu0  ;;  %v9082_v21 = vld [vmem:[#allocation47_spill] sm:$0xff]  ;;  %v3187_v50 = vld [vmem:[#allocation2 + $0x57] sm:$0xff] }
 0x2ce   : > { %4803 = vmatmul.msk.f32.gmra.mxu3 %vm7132_vm3, %v7099_v57  ;;  %v7589_v57 = vpop.f32.mrf.mxu1 }
 0x2cf   : > { %4817 = vmatmul.msk.f32.gmra.mxu2 %vm9074_vm8, %v7579_v33  ;;  %9076 = vst [vmem:[#allocation30_spill] sm:$0xff] %v7589_v57  ;;  %v2706_v5 = vadd.f32 %v9080_v36, %v2593_v29  ;;  %v9087_v29 = vld [vmem:[#allocation35_spill] sm:$0xff] }
 0x2d1   : > { %v2598_v45 = vpop.f32.mrf.mxu3  ;;  %3504 = vmatmul.f32.gmra.mxu0 %v7412_v24  ;;  %v7597_v24 = vld [vmem:[#allocation2 + $0xa9] sm:$0xff] }
 0x2d2   : > { %v3056_v13 = vpop.f32.mrf.mxu2 }
 0x2d3   : > { %v3057_v56 = vadd.f32 %v3056_v13, %v7328_v15  ;;  %v9081_v13 = vld [vmem:[#allocation36_spill] sm:$0xff] }
 0x2d5   : > { %3675 = vmatmul.f32.gmra.mxu1 %v7415_v60  ;;  %v7594_v12 = vadd.f32 %v3057_v56, %v2703_v42  ;;  %v2483_v42 = vadd.f32 %v9082_v21, %v9081_v13  ;;  %v9083_v56 = vld [vmem:[#allocation54_spill] sm:$0xff] }
 0x2d6   : > { %2648 = vmatmul.f32.gmra.mxu3 %v9079_v9  ;;  %v9090_v21 = vld [vmem:[#allocation58_spill] sm:$0xff] }
 0x2d7   : > { %3106 = vmatmul.f32.gmra.mxu2 %v7597_v24 }
 0x2d9   : > { %v2601_v11 = vpop.f32.mrf.mxu3  ;;  %3507 = vmatmul.f32.gmra.mxu0 %v7425_v0  ;;  %v7615_v0 = vpop.f32.mrf.mxu1 }
 0x2da   : > { %v3059_v15 = vpop.f32.mrf.mxu2  ;;  %9085 = vst [vmem:[#allocation34_spill] sm:$0xff] %v7615_v0  ;;  %v9134_v0 = vld [vmem:[#allocation95_spill] sm:$0xff] }
 0x2db   : > { %v3060_v60 = vadd.f32 %v3059_v15, %v7338_v1  ;;  %v2596_v1 = vadd.f32 %v2595_v47, %v2483_v42  ;;  %v7631_v42 = vpop.f32.mrf.mxu0 }
 0x2dd   : > { %4843 = vmatmul.msk.f32.gmra.mxu1 %vm9043_vm10, %v7430_v58  ;;  %v7610_v2 = vadd.f32 %v3060_v60, %v2706_v5  ;;  %v2709_v15 = vadd.f32 %v9087_v29, %v2596_v1  ;;  %v9088_v5 = vld [vmem:[#allocation38_spill] sm:$0xff]  ;;  %v9089_v60 = vld [vmem:[#allocation51_spill] sm:$0xff] }
 0x2de   : > { %4804 = vmatmul.msk.f32.gmra.mxu3 %vm7170_vm12, %v9083_v56  ;;  %v2486_v13 = vadd.f32 %v9089_v60, %v9088_v5  ;;  %v7633_v56 = vld [vmem:[#allocation2 + $0xb9] sm:$0xff]  ;;  %v9095_v60 = vld [vmem:[#allocation63_spill] sm:$0xff] }
 0x2df   : > { %4818 = vmatmul.msk.f32.gmra.mxu2 %vm7041_vm1, %v7617_v25 }
 0x2e1   : > { %v2604_v58 = vpop.f32.mrf.mxu3  ;;  %3510 = vmatmul.f32.gmra.mxu0 %v7440_v52  ;;  %v2599_v52 = vadd.f32 %v2598_v45, %v2486_v13  ;;  %v7636_v51 = vpop.f32.mrf.mxu1  ;;  %v9096_v13 = vld [vmem:[#allocation70_spill] sm:$0xff] }
 0x2e2   : > { %v3062_v9 = vpop.f32.mrf.mxu2  ;;  %9091 = vst [vmem:[#allocation43_spill] sm:$0xff] %v7636_v51  ;;  %vm9097_vm0 = vnez %v9096_v13  ;;  %v7671_v51 = vld [vmem:[#allocation2 + $0xc9] sm:$0xff] }
 0x2e3   : > { %v3063_v36 = vadd.f32 %v3062_v9, %v7346_v54 }
 0x2e5   : > { %3681 = vmatmul.f32.gmra.mxu1 %v7445_v27  ;;  %v7628_v47 = vadd.f32 %v3063_v36, %v2709_v15  ;;  %v9092_v27 = vld [vmem:[#allocation37_spill] sm:$0xff]  ;;  %v9093_v15 = vld [vmem:[#allocation42_spill] sm:$0xff]  ;;  %v9094_v36 = vld [vmem:[#allocation56_spill] sm:$0xff] }
 0x2e6   : > { %2654 = vmatmul.f32.gmra.mxu3 %v9090_v21  ;;  %v2712_v9 = vadd.f32 %v9092_v27, %v2599_v52  ;;  %v2489_v5 = vadd.f32 %v9094_v36, %v9093_v15  ;;  %v7651_v21 = vld [vmem:[#allocation2 + $0xc1] sm:$0xff]  ;;  %v9098_v52 = vld [vmem:[#allocation45_spill] sm:$0xff]  ;;  %v9103_v36 = vld [vmem:[#allocation60_spill] sm:$0xff] }
 0x2e7   : > { %3112 = vmatmul.f32.gmra.mxu2 %v7633_v56  ;;  %vm9099_vm10 = vnez %v9098_v52 }
 0x2e9   : > { %v2607_v1 = vpop.f32.mrf.mxu3  ;;  %3513 = vmatmul.f32.gmra.mxu0 %v7453_v48  ;;  %v2602_v48 = vadd.f32 %v2601_v11, %v2489_v5  ;;  %v9102_v11 = vld [vmem:[#allocation46_spill] sm:$0xff] }
 0x2ea   : > { %v3065_v54 = vpop.f32.mrf.mxu2  ;;  %v2492_v5 = vadd.f32 %v9103_v36, %v9102_v11  ;;  %v9109_v36 = vld [vmem:[#allocation72_spill] sm:$0xff] }
 0x2eb   : > { %v3066_v29 = vadd.f32 %v3065_v54, %v7358_v20  ;;  %v3279_v20 = vld [vmem:[#allocation11 + $0x310] sm:$0xff]  ;;  %v7656_v54 = vpop.f32.mrf.mxu0 }
 0x2ec   : > { %3322 = vmatpush.msra.mxu3 %v3279_v20 }
 0x2ed   : > { %4844 = vmatmul.msk.f32.gmra.mxu1 %vm9049_vm13, %v7462_v18  ;;  %v7646_v45 = vadd.f32 %v3066_v29, %v2712_v9  ;;  %v7661_v18 = vpop.f32.mrf.mxu1  ;;  %v9101_v9 = vld [vmem:[#allocation41_spill] sm:$0xff] }
 0x2ee   : > { %4805 = vmatmul.msk.f32.gmra.mxu3 %vm9097_vm0, %v9095_v60  ;;  %9100 = vst [vmem:[#allocation50_spill] sm:$0xff] %v7661_v18  ;;  %v2715_v29 = vadd.f32 %v9101_v9, %v2602_v48 }
 0x2ef   : > { %4819 = vmatmul.msk.f32.gmra.mxu2 %vm9099_vm10, %v7651_v21  ;;  %3323 = vmatpush.msra.mxu3 %v3278_v16 }
 0x2f1   : > { %v7658_v8 = vpop.f32.mrf.mxu3  ;;  %3516 = vmatmul.f32.gmra.mxu0 %v7469_v46  ;;  %v2605_v46 = vadd.f32 %v2604_v58, %v2492_v5  ;;  %v9108_v58 = vld [vmem:[#allocation66_spill] sm:$0xff]  ;;  %v7693_v5 = vld [vmem:[#allocation2 + $0xd1] sm:$0xff] }
 0x2f2   : > { %v3068_v27 = vpop.f32.mrf.mxu2 }
 0x2f3   : > { %v3069_v15 = vadd.f32 %v3068_v27, %v7371_v38  ;;  %v7677_v48 = vpop.f32.mrf.mxu0 }
 0x2f5   : > { %3687 = vmatmul.f32.gmra.mxu1 %v7474_v30  ;;  %v7668_v60 = vadd.f32 %v3069_v15, %v2715_v29  ;;  %v9105_v30 = vld [vmem:[#allocation44_spill] sm:$0xff]  ;;  %v7681_v29 = vpop.f32.mrf.mxu1 }
 0x2f6   : > { %2660 = vmatmul.f32.gmra.mxu3 %v9104_v41  ;;  %v2718_v27 = vadd.f32 %v9105_v30, %v2605_v46  ;;  %9106 = vst [vmem:[#allocation32_spill] sm:$0xff] %v7681_v29  ;;  %v9107_v41 = vld [vmem:[#allocation49_spill] sm:$0xff] }
 0x2f7   : > { %3118 = vmatmul.f32.gmra.mxu2 %v7671_v51  ;;  %v2495_v15 = vadd.f32 %v9108_v58, %v9107_v41  ;;  %v9112_v46 = vld [vmem:[#allocation65_spill] sm:$0xff]  ;;  %v9116_v41 = vld [vmem:[#allocation48_spill] sm:$0xff] }
 0x2f8   : > { %v9113_v30 = vld [vmem:[#allocation81_spill] sm:$0xff] }
 0x2f9   : > { %v7674_v20 = vpop.f32.mrf.mxu3  ;;  %3519 = vmatmul.f32.gmra.mxu0 %v7482_v17  ;;  %v9110_v17 = vld [vmem:[#allocation78_spill] sm:$0xff]  ;;  %v9114_v29 = vld [vmem:[#allocation53_spill] sm:$0xff] }
 0x2fa   : > { %v3071_v38 = vpop.f32.mrf.mxu2  ;;  %vm9111_vm13 = vnez %v9110_v17  ;;  %vm9115_vm0 = vnez %v9114_v29  ;;  %v3191_v29 = vld [vmem:[#allocation2 + $0x77] sm:$0xff] }
 0x2fb   : > { %v3072_v9 = vadd.f32 %v3071_v38, %v7389_v49  ;;  %v2504_v49 = vadd.f32 %v9113_v30, %v9112_v46  ;;  %v2608_v38 = vadd.f32 %v2607_v1, %v2495_v15  ;;  %v7705_v18 = vpop.f32.mrf.mxu0  ;;  %v9117_v15 = vld [vmem:[#allocation75_spill] sm:$0xff]  ;;  %v7713_v30 = vld [vmem:[#allocation2 + $0xd9] sm:$0xff] }
 0x2fd   : > { %4845 = vmatmul.msk.f32.gmra.mxu1 %vm9056_vm14, %v7487_v7  ;;  %v7688_v11 = vadd.f32 %v3072_v9, %v2718_v27  ;;  %v2721_v58 = vadd.f32 %v9116_v41, %v2608_v38  ;;  %v7711_v46 = vpop.f32.mrf.mxu1  ;;  %v7729_v41 = vld [vmem:[#allocation2 + $0xe1] sm:$0xff] }
 0x2fe   : > { %4806 = vmatmul.msk.f32.gmra.mxu3 %vm9111_vm13, %v9109_v36  ;;  %9118 = vst [vmem:[#allocation36_spill] sm:$0xff] %v7711_v46 }
 0x2ff   : > { %4820 = vmatmul.msk.f32.gmra.mxu2 %vm9115_vm0, %v7693_v5 }
 0x301   : > { %v2616_v7 = vpop.f32.mrf.mxu3  ;;  %3522 = vmatmul.f32.gmra.mxu0 %v7500_v26  ;;  %v9119_v26 = vld [vmem:[#allocation71_spill] sm:$0xff] }
 0x302   : > { %v7701_v27 = vadd.f32 %v2616_v7, %v2504_v49  ;;  %v3074_v9 = vpop.f32.mrf.mxu2  ;;  %v9120_v49 = vld [vmem:[#allocation84_spill] sm:$0xff] }
 0x303   : > { %v3075_v36 = vadd.f32 %v3074_v9, %v7407_v22  ;;  %v2507_v16 = vadd.f32 %v9120_v49, %v9119_v26  ;;  %v7727_v9 = vpop.f32.mrf.mxu0  ;;  %v5352_v26 = vld [vmem:[#allocation2 + $0x8] sm:$0xff]  ;;  %v9127_v49 = vld [vmem:[#allocation82_spill] sm:$0xff] }
 0x305   : > { %3693 = vmatmul.f32.gmra.mxu1 %v7503_v44  ;;  %v7708_v1 = vadd.f32 %v3075_v36, %v2721_v58  ;;  %v9121_v44 = vld [vmem:[#allocation80_spill] sm:$0xff]  ;;  %v9123_v58 = vld [vmem:[#allocation61_spill] sm:$0xff] }
 0x306   : > { %2666 = vmatmul.f32.gmra.mxu3 %v9117_v15  ;;  %vm9124_vm14 = vnez %v9123_v58  ;;  %v3277_v36 = vld [vmem:[#allocation11 + $0x300] sm:$0xff] }
 0x307   : > { %3124 = vmatmul.f32.gmra.mxu2 %v7713_v30  ;;  %3324 = vmatpush.msra.mxu3 %v3277_v36 }
 0x309   : > { %v2619_v38 = vpop.f32.mrf.mxu3  ;;  %3525 = vmatmul.f32.gmra.mxu0 %v7507_v3  ;;  %v7734_v3 = vpop.f32.mrf.mxu1 }
 0x30a   : > { %v7719_v22 = vadd.f32 %v2619_v38, %v2507_v16  ;;  %9125 = vst [vmem:[#allocation47_spill] sm:$0xff] %v7734_v3  ;;  %v7741_v16 = vld [vmem:[#allocation2 + $0xe9] sm:$0xff]  ;;  %v9128_v3 = vld [vmem:[#allocation93_spill] sm:$0xff] }
 0x30b   : > { %v7744_v38 = vpop.f32.mrf.mxu0 }
 0x30d   : > { %4846 = vmatmul.msk.f32.gmra.mxu1 %vm9060_vm15, %v7518_v31 }
 0x30e   : > { %4807 = vmatmul.msk.f32.gmra.mxu3 %vm7282_vm4, %v9121_v44 }
 0x30f   : > { %4821 = vmatmul.msk.f32.gmra.mxu2 %vm9124_vm14, %v7729_v41 }
 0x311   : > { %v2622_v15 = vpop.f32.mrf.mxu3  ;;  %3528 = vmatmul.f32.gmra.mxu0 %v5352_v26  ;;  %v7749_v36 = vpop.f32.mrf.mxu1 }
 0x312   : > { %v7737_v31 = vadd.f32 %v2622_v15, %v9126_v63  ;;  %9129 = vst [vmem:[#allocation54_spill] sm:$0xff] %v7749_v36  ;;  %v7757_v63 = vld [vmem:[#allocation2 + $0xf1] sm:$0xff] }
 0x313   : > { %v9138_v36 = vld [vmem:[#allocation97_spill] sm:$0xff] }
 0x315   : > { %3699 = vmatmul.f32.gmra.mxu1 %v7531_v23  ;;  %v9130_v23 = vld [vmem:[#allocation88_spill] sm:$0xff] }
 0x316   : > { %2672 = vmatmul.f32.gmra.mxu3 %v9127_v49  ;;  %v9132_v49 = vld [vmem:[#allocation69_spill] sm:$0xff] }
 0x317   : > { %3130 = vmatmul.f32.gmra.mxu2 %v7741_v16  ;;  %vm9133_vm15 = vnez %v9132_v49 }
 0x319   : > { %v2625_v44 = vpop.f32.mrf.mxu3  ;;  %3531 = vmatmul.f32.gmra.mxu0 %v5352_v26 }
 0x31a   : > { %v7747_v46 = vadd.f32 %v2625_v44, %v9128_v3  ;;  %v7765_v44 = vpop.f32.mrf.mxu1 }
 0x31b   : > { %9136 = vst [vmem:[#allocation39_spill] sm:$0xff] %v7765_v44 }
 0x31d   : > { %4847 = vmatmul.msk.f32.gmra.mxu1 %vm9067_vm5, %v7545_v28  ;;  %v7769_v28 = vld [vmem:[#allocation2 + $0xf9] sm:$0xff] }
 0x31e   : > { %4808 = vmatmul.msk.f32.gmra.mxu3 %vm7320_vm6, %v9130_v23 }
 0x31f   : > { %4822 = vmatmul.msk.f32.gmra.mxu2 %vm9133_vm15, %v7757_v63 }
 0x321   : > { %v2628_v26 = vpop.f32.mrf.mxu3 }
 0x322   : > { %v7763_v3 = vadd.f32 %v2628_v26, %v9134_v0  ;;  %v3181_v0 = vld [vmem:[#allocation2 + $0x27] sm:$0xff]  ;;  %v7780_v44 = vpop.f32.mrf.mxu1 }
 0x323   : > { %9140 = vst [vmem:[#allocation35_spill] sm:$0xff] %v7780_v44 }
 0x324   : > { %9135 = vst [vmem:[#allocation62_spill] sm:$0xff] %v7763_v3 }
 0x325   : > { %3705 = vmatmul.f32.gmra.mxu1 %v7559_v35  ;;  %v9141_v35 = vld [vmem:[#allocation87_spill] sm:$0xff] }
 0x326   : > { %2678 = vmatmul.f32.gmra.mxu3 %v9137_v32  ;;  %v9142_v32 = vld [vmem:[#allocation77_spill] sm:$0xff] }
 0x327   : > { %3136 = vmatmul.f32.gmra.mxu2 %v7769_v28  ;;  %vm9143_vm5 = vnez %v9142_v32 }
 0x329   : > { %v2631_v23 = vpop.f32.mrf.mxu3 }
 0x32a   : > { %v7773_v57 = vadd.f32 %v2631_v23, %v9138_v36  ;;  %v3182_v36 = vld [vmem:[#allocation2 + $0x2f] sm:$0xff] }
 0x32d   : > { %4848 = vmatmul.msk.f32.gmra.mxu1 %vm9070_vm7, %v7579_v33  ;;  %v7792_v33 = vpop.f32.mrf.mxu1 }
 0x32e   : > { %4825 = vmatmul.msk.f32.vlgmr.msra.gmra.mxu3 %vm6065_vm9, %v3181_v0  ;;  %9146 = vst [vmem:[#allocation51_spill] sm:$0xff] %v7792_v33  ;;  %v9147_v0 = vld [vmem:[#allocation101_spill] sm:$0xff]  ;;  %v9152_v33 = vld [vmem:[#allocation103_spill] sm:$0xff] }
 0x32f   : > { %4823 = vmatmul.msk.f32.gmra.mxu2 %vm9143_vm5, %v9141_v35  ;;  %v9150_v35 = vld [vmem:[#allocation85_spill] sm:$0xff] }
 0x330   : > { %vm9151_vm9 = vnez %v9150_v35 }
 0x331   : > { %v2634_v53 = vpop.f32.mrf.mxu3 }
 0x332   : > { %v7786_v3 = vadd.f32 %v2634_v53, %v9144_v40  ;;  %v3183_v40 = vld [vmem:[#allocation2 + $0x37] sm:$0xff] }
 0x334   : > { %9145 = vst [vmem:[#allocation38_spill] sm:$0xff] %v7786_v3  ;;  %v9156_v3 = vld [vmem:[#allocation26_spill] sm:$0xff] }
 0x335   : > { %3711 = vmatmul.f32.gmra.mxu1 %v7597_v24  ;;  %v7802_v24 = vld [vmem:[#allocation2 + $0x111] sm:$0xff] }
 0x336   : > { %3328 = vmatmul.f32.gmra.mxu3 %v3182_v36 }
 0x337   : > { %3142 = vmatmul.f32.gmra.mxu2 %v7789_v34 }
 0x339   : > { %v2637_v23 = vpop.f32.mrf.mxu3 }
 0x33a   : > { %v7795_v26 = vadd.f32 %v2637_v23, %v9147_v0  ;;  %v7810_v23 = vpop.f32.mrf.mxu1  ;;  %v9154_v0 = vld [vmem:[#allocation104_spill] sm:$0xff] }
 0x33b   : > { %9153 = vst [vmem:[#allocation37_spill] sm:$0xff] %v7810_v23 }
 0x33c   : > { %9148 = vst [vmem:[#allocation58_spill] sm:$0xff] %v7795_v26  ;;  %v3185_v26 = vld [vmem:[#allocation2 + $0x47] sm:$0xff] }
 0x33d   : > { %4849 = vmatmul.msk.f32.gmra.mxu1 %vm9074_vm8, %v7617_v25 }
 0x33e   : > { %4826 = vmatmul.msk.f32.gmra.mxu3 %vm6115_vm2, %v3183_v40  ;;  %vm9157_vm2 = vnez %v9156_v3 }
 0x33f   : > { %4824 = vmatmul.msk.f32.gmra.mxu2 %vm9151_vm9, %v7802_v24 }
 0x341   : > { %v2640_v36 = vpop.f32.mrf.mxu3 }
 0x342   : > { %v7808_v44 = vadd.f32 %v2640_v36, %v9152_v33  ;;  %v7816_v40 = vpop.f32.mrf.mxu1  ;;  %v9158_v36 = vld [vmem:[#allocation106_spill] sm:$0xff] }
 0x343   : > { %9155 = vst [vmem:[#allocation42_spill] sm:$0xff] %v7816_v40 }
 0x345   : > { %3717 = vmatmul.f32.gmra.mxu1 %v7633_v56  ;;  %v3186_v56 = vld [vmem:[#allocation2 + $0x4f] sm:$0xff] }
 0x346   : > { %3334 = vmatmul.f32.gmra.mxu3 %v3184_v39 }
 0x349   : > { %v2643_v25 = vpop.f32.mrf.mxu3 }
 0x34a   : > { %v7814_v53 = vadd.f32 %v2643_v25, %v9154_v0  ;;  %v7827_v39 = vpop.f32.mrf.mxu1  ;;  %v9160_v0 = vld [vmem:[#allocation108_spill] sm:$0xff] }
 0x34b   : > { %9159 = vst [vmem:[#allocation56_spill] sm:$0xff] %v7827_v39 }
 0x34d   : > { %4850 = vmatmul.msk.f32.gmra.mxu1 %vm7041_vm1, %v7651_v21  ;;  %v9161_v21 = vld [vmem:[#allocation27_spill] sm:$0xff] }
 0x34e   : > { %4827 = vmatmul.msk.f32.gmra.mxu3 %vm9157_vm2, %v3185_v26  ;;  %vm9162_vm1 = vnez %v9161_v21 }
 0x351   : > { %v2646_v33 = vpop.f32.mrf.mxu3 }
 0x352   : > { %v7824_v23 = vadd.f32 %v2646_v33, %v9158_v36  ;;  %v7837_v3 = vpop.f32.mrf.mxu1  ;;  %v3188_v36 = vld [vmem:[#allocation2 + $0x5f] sm:$0xff] }
 0x353   : > { %9163 = vst [vmem:[#allocation63_spill] sm:$0xff] %v7837_v3 }
 0x355   : > { %3723 = vmatmul.f32.gmra.mxu1 %v7671_v51  ;;  %v9164_v51 = vld [vmem:[#allocation111_spill] sm:$0xff] }
 0x356   : > { %3340 = vmatmul.f32.gmra.mxu3 %v3186_v56 }
 0x359   : > { %v2649_v25 = vpop.f32.mrf.mxu3 }
 0x35a   : > { %v7830_v40 = vadd.f32 %v2649_v25, %v9160_v0  ;;  %v9165_v25 = vld [vmem:[#allocation113_spill] sm:$0xff]  ;;  %v3664_v52 = vpop.f32.mrf.mxu1 }
 0x35d   : > { %4851 = vmatmul.msk.f32.gmra.mxu1 %vm9099_vm10, %v7693_v5  ;;  %v3189_v5 = vld [vmem:[#allocation2 + $0x67] sm:$0xff] }
 0x35e   : > { %4828 = vmatmul.msk.f32.gmra.mxu3 %vm9162_vm1, %v3187_v50  ;;  %v9166_v50 = vld [vmem:[#allocation28_spill] sm:$0xff] }
 0x35f   : > { %vm9167_vm7 = vnez %v9166_v50 }
 0x361   : > { %v2652_v26 = vpop.f32.mrf.mxu3 }
 0x362   : > { %v7840_v33 = vadd.f32 %v2652_v26, %v9164_v51  ;;  %v9168_v26 = vld [vmem:[#allocation115_spill] sm:$0xff] }
 0x365   : > { %3729 = vmatmul.f32.gmra.mxu1 %v7713_v30  ;;  %v3667_v30 = vpop.f32.mrf.mxu1 }
 0x366   : > { %3346 = vmatmul.f32.gmra.mxu3 %v3188_v36  ;;  %v3190_v36 = vld [vmem:[#allocation2 + $0x6f] sm:$0xff] }
 0x369   : > { %v2655_v56 = vpop.f32.mrf.mxu3 }
 0x36a   : > { %v7844_v0 = vadd.f32 %v2655_v56, %v9165_v25  ;;  %v9169_v25 = vld [vmem:[#allocation118_spill] sm:$0xff] }
 0x36d   : > { %4852 = vmatmul.msk.f32.gmra.mxu1 %vm9115_vm0, %v7729_v41  ;;  %v9171_v41 = vld [vmem:[#allocation29_spill] sm:$0xff] }
 0x36e   : > { %4829 = vmatmul.msk.f32.gmra.mxu3 %vm9167_vm7, %v3189_v5  ;;  %vm9172_vm8 = vnez %v9171_v41  ;;  %v7863_v5 = vpop.f32.mrf.mxu1  ;;  %v9178_v41 = vld [vmem:[#allocation125_spill] sm:$0xff] }
 0x371   : > { %v2658_v21 = vpop.f32.mrf.mxu3 }
 0x372   : > { %v7852_v51 = vadd.f32 %v2658_v21, %v9168_v26 }
 0x375   : > { %3735 = vmatmul.f32.gmra.mxu1 %v7741_v16  ;;  %v3192_v16 = vld [vmem:[#allocation2 + $0x7f] sm:$0xff] }
 0x376   : > { %3352 = vmatmul.f32.gmra.mxu3 %v3190_v36  ;;  %v7869_v26 = vpop.f32.mrf.mxu1 }
 0x379   : > { %v2661_v56 = vpop.f32.mrf.mxu3 }
 0x37a   : > { %v7856_v3 = vadd.f32 %v2661_v56, %v9169_v25  ;;  %v9174_v56 = vld [vmem:[#allocation123_spill] sm:$0xff] }
 0x37b   : > { %v3193_v25 = vld [vmem:[#allocation2 + $0x87] sm:$0xff] }
 0x37c   : > { %9170 = vst [vmem:[#allocation70_spill] sm:$0xff] %v7856_v3  ;;  %v5353_v3 = vld [vmem:[%s5961_s19] sm:$0xff] }
 0x37d   : > { %4853 = vmatmul.msk.f32.gmra.mxu1 %vm9124_vm14, %v7757_v63  ;;  %v3594_v63 = vld [vmem:[#allocation2 + $0x101] sm:$0xff] }
 0x37e   : > { %4830 = vmatmul.msk.f32.gmra.mxu3 %vm9172_vm8, %v3191_v29  ;;  %v9176_v29 = vld [vmem:[#allocation31_spill] sm:$0xff] }
 0x37f   : > { %vm9177_vm0 = vnez %v9176_v29 }
 0x381   : > { %v2664_v50 = vpop.f32.mrf.mxu3 }
 0x382   : > { %v7866_v21 = vadd.f32 %v2664_v50, %v7480_v43 }
 0x384   : > { %9173 = vst [vmem:[#allocation45_spill] sm:$0xff] %v7866_v21 }
 0x385   : > { %3741 = vmatmul.f32.gmra.mxu1 %v7769_v28  ;;  %v7881_v28 = vpop.f32.mrf.mxu1 }
 0x386   : > { %3358 = vmatmul.f32.gmra.mxu3 %v3192_v16  ;;  %v3194_v16 = vld [vmem:[#allocation2 + $0x8f] sm:$0xff] }
 0x389   : > { %v2667_v36 = vpop.f32.mrf.mxu3 }
 0x38a   : > { %v7872_v58 = vadd.f32 %v2667_v36, %v9174_v56 }
 0x38c   : > { %9175 = vst [vmem:[#allocation41_spill] sm:$0xff] %v7872_v58 }
 0x38d   : > { %4854 = vmatmul.msk.f32.gmra.mxu1 %vm9133_vm15, %v3594_v63  ;;  %v7887_v49 = vpop.f32.mrf.mxu1  ;;  %v3195_v63 = vld [vmem:[#allocation2 + $0x97] sm:$0xff] }
 0x38e   : > { %4831 = vmatmul.msk.f32.gmra.mxu3 %vm9177_vm0, %v3193_v25  ;;  %v9181_v25 = vld [vmem:[#allocation33_spill] sm:$0xff] }
 0x38f   : > { %vm9182_vm10 = vnez %v9181_v25  ;;  %v3198_v25 = vld [vmem:[#allocation2 + $0xaf] sm:$0xff] }
 0x391   : > { %v2670_v43 = vpop.f32.mrf.mxu3 }
 0x392   : > { %v7879_v50 = vadd.f32 %v2670_v43, %v9178_v41 }
 0x394   : > { %9179 = vst [vmem:[#allocation46_spill] sm:$0xff] %v7879_v50 }
 0x395   : > { %3747 = vmatmul.f32.gmra.mxu1 %v7789_v34  ;;  %v3196_v34 = vld [vmem:[#allocation2 + $0x9f] sm:$0xff]  ;;  %v7903_v39 = vpop.f32.mrf.mxu1 }
 0x396   : > { %3364 = vmatmul.f32.gmra.mxu3 %v3194_v16  ;;  %v3197_v16 = vld [vmem:[#allocation2 + $0xa7] sm:$0xff] }
 0x399   : > { %v2673_v36 = vpop.f32.mrf.mxu3 }
 0x39a   : > { %v7885_v56 = vadd.f32 %v2673_v36, %v7524_v37  ;;  %v9185_v36 = vld [vmem:[#allocation40_spill] sm:$0xff] }
 0x39b   : > { %vm9186_vm14 = vnez %v9185_v36  ;;  %v3199_v36 = vld [vmem:[#allocation2 + $0xb7] sm:$0xff] }
 0x39c   : > { %9180 = vst [vmem:[#allocation60_spill] sm:$0xff] %v7885_v56 }
 0x39d   : > { %4855 = vmatmul.msk.f32.gmra.mxu1 %vm9143_vm5, %v7802_v24 }
 0x39e   : > { %4832 = vmatmul.msk.f32.gmra.mxu3 %vm9182_vm10, %v3195_v63 }
 0x3a1   : > { %v2676_v29 = vpop.f32.mrf.mxu3 }
 0x3a2   : > { %v7895_v43 = vadd.f32 %v2676_v29, %v7535_v14  ;;  %v7909_v14 = vld [vmem:[%s9187_s14] ss:$0 sm:$0xff] }
 0x3a4   : > { %9183 = vst [vmem:[#allocation67_spill] sm:$0xff] %v7895_v43 }
 0x3a6   : > { %3370 = vmatmul.f32.gmra.mxu3 %v3196_v34 }
 0x3a9   : > { %v2679_v41 = vpop.f32.mrf.mxu3 }
 0x3aa   : > { %v7898_v37 = vadd.f32 %v2679_v41, %v7553_v61 }
 0x3ac   : > { %9184 = vst [vmem:[#allocation44_spill] sm:$0xff] %v7898_v37 }
 0x3ae   : > { %4833 = vmatmul.msk.f32.gmra.mxu3 %vm9186_vm14, %v3197_v16 }
 0x3b1   : > { %v3326_v32 = vpop.f32.mrf.mxu3 }
 0x3b2   : > { %v3440_v24 = vadd.f32 %v7585_v4, %v3326_v32  ;;  %v7919_v32 = vpop.f32.mrf.mxu1 }
 0x3b4   : > { %v3535_v63 = vadd.f32 %v3440_v24, %v7574_v62  ;;  %v7917_v62 = vpop.f32.mrf.mxu2 }
 0x3b6   : > { %v3760_v29 = vadd.f32 %v3664_v52, %v3535_v63  ;;  %3376 = vmatmul.f32.gmra.mxu3 %v3198_v25 }
 0x3b8   : > { %v7912_v61 = vadd.f32 %v7909_v14, %v3760_v29 }
 0x3b9   : > { %v3329_v34 = vpop.f32.mrf.mxu3 }
 0x3ba   : > { %v4857_v41 = vmul.f32 -1.442695, %v7912_v61  ;;  %v3443_v4 = vadd.f32 %v7603_v59, %v3329_v34  ;;  %v7928_v34 = vpop.f32.mrf.mxu0 }
 0x3bc   : > { %5206 = vpow2.f32 %v4857_v41  ;;  %v3536_v16 = vadd.f32 %v3443_v4, %v7594_v12  ;;  %v7932_v4 = vpop.f32.mrf.mxu2 }
 0x3be   : > { %v3761_v24 = vadd.f32 %v3667_v30, %v3536_v16  ;;  %4834 = vmatmul.msk.f32.gmra.mxu3 %vm7090_vm11, %v3199_v36  ;;  %v3200_v30 = vld [vmem:[#allocation2 + $0xbf] sm:$0xff]  ;;  %v7934_v16 = vpop.f32.mrf.mxu1 }
 0x3c0   : > { %v7924_v52 = vadd.f32 %v7909_v14, %v3761_v24 }
 0x3c1   : > { %v3332_v63 = vpop.f32.mrf.mxu3 }
 0x3c2   : > { %v5207_v25 = vpop.eup %5206  ;;  %v4858_v29 = vmul.f32 -1.442695, %v7924_v52  ;;  %v3446_v59 = vadd.f32 %v7631_v42, %v3332_v63 }
 0x3c3   : > { %v3924_v12 = vadd.f32 1.0, %v5207_v25 }
 0x3c4   : > { %5208 = vpow2.f32 %v4858_v29  ;;  %v3537_v41 = vadd.f32 %v3446_v59, %v7610_v2 }
 0x3c5   : > { %5210 = vrcp.f32 %v3924_v12  ;;  %v3967_v43 = vand.u32 2147483648, %v3924_v12  ;;  %vm3961_vm15 = vweird.f32 %v3924_v12 }
 0x3c6   : > { %v3762_v55 = vadd.f32 %v7863_v5, %v3537_v41  ;;  %3382 = vmatmul.f32.gmra.mxu3 %v3200_v30  ;;  %v7942_v41 = vpop.f32.mrf.mxu0  ;;  %v3201_v30 = vld [vmem:[#allocation2 + $0xc7] sm:$0xff] }
 0x3c8   : > { %v7937_v36 = vadd.f32 %v7909_v14, %v3762_v55 }
 0x3c9   : > { %v3335_v24 = vpop.f32.mrf.mxu3 }
 0x3ca   : > { %v5209_v42 = vpop.eup %5208  ;;  %v4859_v63 = vmul.f32 -1.442695, %v7937_v36  ;;  %v3449_v25 = vadd.f32 %v7656_v54, %v3335_v24  ;;  %v3965_v54 = vand.u32 2147483647, %v3924_v12 }
 0x3cb   : > { %v5211_v29 = vpop.eup %5210  ;;  %v3925_v2 = vadd.f32 1.0, %v5209_v42  ;;  %v7950_v42 = vpop.f32.mrf.mxu2 }
 0x3cc   : > { %v3957_v59 = vmul.f32 %v5211_v29, %v3924_v12  ;;  %5212 = vpow2.f32 %v4859_v63  ;;  %v3538_v5 = vadd.f32 %v3449_v25, %v7628_v47  ;;  %vm3962_vm11 = vweird.f32 %v5211_v29  ;;  %v7952_v25 = vpop.f32.mrf.mxu1 }
 0x3cd   : > { %5214 = vrcp.f32 %v3925_v2  ;;  %vm3966_vm5 = vcmp.eq.f32.partialorder %v3965_v54, 8.507059e+37  ;;  %vm3976_vm1 = vweird.f32 %v3925_v2 }
 0x3ce   : > { %v3958_v37 = vsub.f32 1.0, %v3957_v59  ;;  %v3763_v55 = vadd.f32 %v7869_v26, %v3538_v5  ;;  %4835 = vmatmul.msk.f32.gmra.mxu3 %vm7132_vm3, %v3201_v30  ;;  %vm3963_vm3 = vmor %vm3961_vm15, %vm3962_vm11 }
 0x3d0   : > { %v3959_v56 = vmul.f32 %v5211_v29, %v3958_v37  ;;  %v7948_v24 = vadd.f32 %v7909_v14, %v3763_v55  ;;  %v3968_v37 = vor.u32 1.1754944e-38, %v3967_v43  ;;  %v3980_v43 = vand.u32 2147483647, %v3925_v2 }
 0x3d1   : > { %v3338_v47 = vpop.f32.mrf.mxu3 }
 0x3d2   : > { %v5213_v63 = vpop.eup %5212  ;;  %v3960_v50 = vadd.f32 %v5211_v29, %v3959_v56  ;;  %v4860_v26 = vmul.f32 -1.442695, %v7948_v24  ;;  %v3452_v10 = vadd.f32 %v7677_v48, %v3338_v47  ;;  %v3202_v56 = vld [vmem:[#allocation2 + $0xcf] sm:$0xff]  ;;  %v7961_v47 = vpop.f32.mrf.mxu0  ;;  %vm3981_vm8 = vcmp.eq.f32.partialorder %v3980_v43, 8.507059e+37  ;;  %v5354_v43 = vld [vmem:[%s5961_s19 + $0x8] sm:$0xff] }
 0x3d3   : > { %v5215_v59 = vpop.eup %5214  ;;  %v7956_v5 = vadd.f32 1.0, %v5213_v63  ;;  %v3982_v63 = vand.u32 2147483648, %v3925_v2 }
 0x3d4   : > { %v3964_v30 = vsel %vm3963_vm3, %v5211_v29, %v3960_v50  ;;  %v3972_v55 = vmul.f32 %v5215_v59, %v3925_v2  ;;  %5216 = vpow2.f32 %v4860_v26  ;;  %v3539_v48 = vadd.f32 %v3452_v10, %v7646_v45  ;;  %v7973_v10 = vpop.f32.mrf.mxu2 }
 0x3d5   : > { %v3969_v58 = vsel %vm3966_vm5, %v3968_v37, %v3964_v30  ;;  %5218 = vrcp.f32 %v7956_v5  ;;  %vm3977_vm2 = vweird.f32 %v5215_v59  ;;  %v7978_v30 = vpop.f32.mrf.mxu1  ;;  %vm3991_vm10 = vweird.f32 %v7956_v5 }
 0x3d6   : > { %v4436_v12 = vmul.f32 %v3969_v58, %v7912_v61  ;;  %v3973_v21 = vsub.f32 1.0, %v3972_v55  ;;  %3388 = vmatmul.f32.gmra.mxu3 %v3202_v56  ;;  %v3764_v54 = vadd.f32 %v7881_v28, %v3539_v48  ;;  %vm3978_vm7 = vmor %vm3976_vm1, %vm3977_vm2  ;;  %v3203_v48 = vld [vmem:[#allocation2 + $0xd7] sm:$0xff]  ;;  %vm9191_vm2 = vnez %v9096_v13 }
 0x3d8   : > { %v4468_v50 = vadd.f32 %v5353_v3, %v4436_v12  ;;  %v3974_v29 = vmul.f32 %v5215_v59, %v3973_v21  ;;  %v7971_v45 = vadd.f32 %v7909_v14, %v3764_v54  ;;  %v3983_v3 = vor.u32 1.1754944e-38, %v3982_v63 }
 0x3d9   : > { %v3341_v26 = vpop.f32.mrf.mxu3 }
 0x3da   : > { %v5217_v37 = vpop.eup %5216  ;;  %4500 = vst [vmem:[%s7967_s16] sm:$0xff] %v4468_v50  ;;  %v3975_v58 = vadd.f32 %v5215_v59, %v3974_v29  ;;  %v3455_v28 = vadd.f32 %v7705_v18, %v3341_v26  ;;  %v4861_v2 = vmul.f32 -1.442695, %v7971_v45  ;;  %v3997_v18 = vand.u32 2147483648, %v7956_v5 }
 0x3db   : > { %v5219_v61 = vpop.eup %5218  ;;  %v7975_v21 = vadd.f32 1.0, %v5217_v37  ;;  %v3995_v26 = vand.u32 2147483647, %v7956_v5  ;;  %v7990_v37 = vpop.f32.mrf.mxu0 }
 0x3dc   : > { %v3979_v55 = vsel %vm3978_vm7, %v5215_v59, %v3975_v58  ;;  %v3987_v56 = vmul.f32 %v5219_v61, %v7956_v5  ;;  %v3540_v59 = vadd.f32 %v3455_v28, %v7668_v60  ;;  %vm3992_vm0 = vweird.f32 %v5219_v61 }
 0x3dd   : > { %v3984_v12 = vsel %vm3981_vm8, %v3983_v3, %v3979_v55  ;;  %5220 = vrcp.f32 %v7975_v21  ;;  %v3998_v60 = vor.u32 1.1754944e-38, %v3997_v18  ;;  %vm3996_vm14 = vcmp.eq.f32.partialorder %v3995_v26, 8.507059e+37  ;;  %v8006_v18 = vpop.f32.mrf.mxu1 }
 0x3de   : > { %v4437_v63 = vmul.f32 %v3984_v12, %v7924_v52  ;;  %v3988_v50 = vsub.f32 1.0, %v3987_v56  ;;  %5222 = vpow2.f32 %v4861_v2  ;;  %4836 = vmatmul.msk.f32.gmra.mxu3 %vm7170_vm12, %v3203_v48  ;;  %v3765_v58 = vadd.f32 %v7887_v49, %v3540_v59  ;;  %vm3993_vm12 = vmor %vm3991_vm10, %vm3992_vm0  ;;  %v8001_v48 = vpop.f32.mrf.mxu2 }
 0x3df   : > { %vm4006_vm15 = vweird.f32 %v7975_v21 }
 0x3e0   : > { %v4469_v29 = vadd.f32 %v5354_v43, %v4437_v63  ;;  %v3989_v54 = vmul.f32 %v5219_v61, %v3988_v50  ;;  %v7997_v28 = vadd.f32 %v7909_v14, %v3765_v58  ;;  %v3204_v50 = vld [vmem:[#allocation2 + $0xdf] sm:$0xff] }
 0x3e1   : > { %v3344_v52 = vpop.f32.mrf.mxu3 }
 0x3e2   : > { %4501 = vst [vmem:[%s7967_s16 + $0x8] sm:$0xff] %v4469_v29  ;;  %v3990_v3 = vadd.f32 %v5219_v61, %v3989_v54  ;;  %v3458_v19 = vadd.f32 %v7727_v9, %v3344_v52  ;;  %v4862_v9 = vmul.f32 -1.442695, %v7997_v28  ;;  %v4012_v29 = vand.u32 2147483648, %v7975_v21  ;;  %v5355_v54 = vld [vmem:[%s5961_s19 + $0x10] sm:$0xff] }
 0x3e3   : > { %v5221_v55 = vpop.eup %5220 }
 0x3e4   : > { %v5223_v56 = vpop.eup %5222  ;;  %v3994_v2 = vsel %vm3993_vm12, %v5219_v61, %v3990_v3  ;;  %v4002_v12 = vmul.f32 %v5221_v55, %v7975_v21  ;;  %v3541_v49 = vadd.f32 %v3458_v19, %v7688_v11  ;;  %vm4007_vm11 = vweird.f32 %v5221_v55  ;;  %v9188_v3 = vld [vmem:[#allocation55_spill] sm:$0xff] }
 0x3e5   : > { %v3999_v63 = vsel %vm3996_vm14, %v3998_v60, %v3994_v2  ;;  %v8003_v5 = vadd.f32 1.0, %v5223_v56  ;;  %v4010_v11 = vand.u32 2147483647, %v7975_v21  ;;  %vm4008_vm3 = vmor %vm4006_vm15, %vm4007_vm11 }
 0x3e6   : > { %v4438_v59 = vmul.f32 %v3999_v63, %v7937_v36  ;;  %v4003_v61 = vsub.f32 1.0, %v4002_v12  ;;  %v3766_v43 = vadd.f32 %v7903_v39, %v3541_v49  ;;  %3394 = vmatmul.f32.gmra.mxu3 %v3204_v50  ;;  %v9189_v36 = vld [vmem:[#allocation73_spill] sm:$0xff]  ;;  %v8024_v49 = vpop.f32.mrf.mxu0  ;;  %v4013_v63 = vor.u32 1.1754944e-38, %v4012_v29 }
 0x3e7   : > { %5224 = vrcp.f32 %v8003_v5  ;;  %v2498_v19 = vadd.f32 %v9189_v36, %v9188_v3  ;;  %vm4011_vm5 = vcmp.eq.f32.partialorder %v4010_v11, 8.507059e+37  ;;  %v5356_v3 = vld [vmem:[%s5961_s19 + $0x18] sm:$0xff]  ;;  %v4027_v13 = vand.u32 2147483648, %v8003_v5 }
 0x3e8   : > { %v4470_v26 = vadd.f32 %v5355_v54, %v4438_v59  ;;  %v4004_v58 = vmul.f32 %v5221_v55, %v4003_v61  ;;  %5226 = vpow2.f32 %v4862_v9  ;;  %v8015_v52 = vadd.f32 %v7909_v14, %v3766_v43  ;;  %v9190_v61 = vld [vmem:[#allocation110_spill] sm:$0xff] }
 0x3e9   : > { %v3347_v60 = vpop.f32.mrf.mxu3  ;;  %v2611_v12 = vadd.f32 %v7658_v8, %v2498_v19  ;;  %v3078_v21 = vadd.f32 %v7917_v62, %v9190_v61  ;;  %v3205_v54 = vld [vmem:[#allocation2 + $0xe7] sm:$0xff]  ;;  %v8040_v62 = vpop.f32.mrf.mxu1  ;;  %vm4021_vm7 = vweird.f32 %v8003_v5 }
 0x3ea   : > { %4502 = vst [vmem:[%s7967_s16 + $0x10] sm:$0xff] %v4470_v26  ;;  %v4005_v39 = vadd.f32 %v5221_v55, %v4004_v58  ;;  %v4863_v56 = vmul.f32 -1.442695, %v8015_v52  ;;  %v3461_v2 = vadd.f32 %v7744_v38, %v3347_v60 }
 0x3ec   : > { %v4009_v9 = vsel %vm4008_vm3, %v5221_v55, %v4005_v39  ;;  %5228 = vpow2.f32 %v4863_v56  ;;  %v3542_v50 = vadd.f32 %v3461_v2, %v7708_v1  ;;  %v9192_v55 = vld [vmem:[#allocation52_spill] sm:$0xff]  ;;  %v8036_v1 = vpop.f32.mrf.mxu2 }
 0x3ed   : > { %v5225_v59 = vpop.eup %5224  ;;  %v4014_v43 = vsel %vm4011_vm5, %v4013_v63, %v4009_v9  ;;  %v2724_v11 = vadd.f32 %v9192_v55, %v2611_v12  ;;  %v9193_v9 = vld [vmem:[#allocation59_spill] sm:$0xff] }
 0x3ee   : > { %v5227_v38 = vpop.eup %5226  ;;  %v4439_v8 = vmul.f32 %v4014_v43, %v7948_v24  ;;  %v4017_v26 = vmul.f32 %v5225_v59, %v8003_v5  ;;  %v3767_v58 = vadd.f32 %v7919_v32, %v3542_v50  ;;  %4837 = vmatmul.msk.f32.gmra.mxu3 %vm9191_vm2, %v3205_v54  ;;  %v4025_v32 = vand.u32 2147483647, %v8003_v5  ;;  %v9194_v50 = vld [vmem:[#allocation76_spill] sm:$0xff] }
 0x3ef   : > { %v8038_v29 = vadd.f32 1.0, %v5227_v38  ;;  %v3157_v60 = vadd.f32 %v3078_v21, %v2724_v11  ;;  %vm4022_vm1 = vweird.f32 %v5225_v59  ;;  %v2501_v61 = vadd.f32 %v9194_v50, %v9193_v9 }
 0x3f0   : > { %v4471_v36 = vadd.f32 %v5356_v3, %v4439_v8  ;;  %v4018_v19 = vsub.f32 1.0, %v4017_v26  ;;  %v8044_v24 = vadd.f32 %v7909_v14, %v3767_v58  ;;  %v8058_v8 = vpop.f32.mrf.mxu0  ;;  %vm4023_vm8 = vmor %vm4021_vm7, %vm4022_vm1  ;;  %v4028_v26 = vor.u32 1.1754944e-38, %v4027_v13  ;;  %v3206_v58 = vld [vmem:[#allocation2 + $0xef] sm:$0xff]  ;;  %v9195_v3 = vld [vmem:[#allocation114_spill] sm:$0xff] }
 0x3f1   : > { %5230 = vrcp.f32 %v8038_v29  ;;  %v3350_v39 = vpop.f32.mrf.mxu3  ;;  %v2614_v38 = vadd.f32 %v7674_v20, %v2501_v61  ;;  %vm4026_vm0 = vcmp.eq.f32.partialorder %v4025_v32, 8.507059e+37  ;;  %v3081_v5 = vadd.f32 %v7932_v4, %v9195_v3  ;;  %v9196_v13 = vld [vmem:[#allocation57_spill] sm:$0xff] }
 0x3f2   : > { %v5229_v56 = vpop.eup %5228  ;;  %4503 = vst [vmem:[%s7967_s16 + $0x18] sm:$0xff] %v4471_v36  ;;  %v4019_v2 = vmul.f32 %v5225_v59, %v4018_v19  ;;  %v4864_v12 = vmul.f32 -1.442695, %v8044_v24  ;;  %v3464_v63 = vadd.f32 %v7928_v34, %v3350_v39  ;;  %v4040_v61 = vand.u32 2147483647, %v8038_v29 }
 0x3f3   : > { %v8054_v43 = vadd.f32 1.0, %v5229_v56  ;;  %v2727_v39 = vadd.f32 %v9196_v13, %v2614_v38  ;;  %v8072_v56 = vpop.f32.mrf.mxu1  ;;  %vm4036_vm12 = vweird.f32 %v8038_v29 }
 0x3f4   : > { %v4020_v21 = vadd.f32 %v5225_v59, %v4019_v2  ;;  %5232 = vpow2.f32 %v4864_v12  ;;  %v3543_v54 = vadd.f32 %v3464_v63, %v3157_v60  ;;  %v5357_v2 = vld [vmem:[%s5961_s19 + $0x20] sm:$0xff]  ;;  %vm4041_vm11 = vcmp.eq.f32.partialorder %v4040_v61, 8.507059e+37 }
 0x3f5   : > { %5234 = vrcp.f32 %v8054_v43  ;;  %v3158_v50 = vadd.f32 %v3081_v5, %v2727_v39 }
 0x3f6   : > { %v4024_v34 = vsel %vm4023_vm8, %v5225_v59, %v4020_v21  ;;  %v3768_v55 = vadd.f32 %v7934_v16, %v3543_v54  ;;  %3400 = vmatmul.f32.gmra.mxu3 %v3206_v58  ;;  %v8070_v59 = vpop.f32.mrf.mxu2  ;;  %v4042_v21 = vand.u32 2147483648, %v8038_v29  ;;  %v3207_v58 = vld [vmem:[#allocation2 + $0xf7] sm:$0xff] }
 0x3f7   : > { %v5231_v11 = vpop.eup %5230  ;;  %v4029_v36 = vsel %vm4026_vm0, %v4028_v26, %v4024_v34 }
 0x3f8   : > { %v4440_v20 = vmul.f32 %v4029_v36, %v7971_v45  ;;  %v4032_v19 = vmul.f32 %v5231_v11, %v8038_v29  ;;  %v8067_v60 = vadd.f32 %v7909_v14, %v3768_v55  ;;  %vm4037_vm10 = vweird.f32 %v5231_v11  ;;  %v8087_v3 = vpop.f32.mrf.mxu0  ;;  %v9197_v29 = vld [vmem:[#allocation117_spill] sm:$0xff] }
 0x3f9   : > { %v3353_v32 = vpop.f32.mrf.mxu3  ;;  %vm4038_vm14 = vmor %vm4036_vm12, %vm4037_vm10  ;;  %v4043_v5 = vor.u32 1.1754944e-38, %v4042_v21  ;;  %v4055_v36 = vand.u32 2147483647, %v8054_v43 }
 0x3fa   : > { %v5233_v16 = vpop.eup %5232  ;;  %v4472_v12 = vadd.f32 %v5357_v2, %v4440_v20  ;;  %v4033_v4 = vsub.f32 1.0, %v4032_v19  ;;  %v4865_v63 = vmul.f32 -1.442695, %v8067_v60  ;;  %v3467_v45 = vadd.f32 %v7942_v41, %v3353_v32 }
 0x3fb   : > { %v5235_v9 = vpop.eup %5234  ;;  %v8079_v54 = vadd.f32 1.0, %v5233_v16  ;;  %v4057_v20 = vand.u32 2147483648, %v8054_v43  ;;  %v3084_v32 = vadd.f32 %v7950_v42, %v9197_v29  ;;  %vm4056_vm5 = vcmp.eq.f32.partialorder %v4055_v36, 8.507059e+37 }
 0x3fc   : > { %4504 = vst [vmem:[%s7967_s16 + $0x20] sm:$0xff] %v4472_v12  ;;  %v4034_v38 = vmul.f32 %v5231_v11, %v4033_v4  ;;  %v4047_v26 = vmul.f32 %v5235_v9, %v8054_v43  ;;  %5236 = vpow2.f32 %v4865_v63  ;;  %v3544_v55 = vadd.f32 %v3467_v45, %v3158_v50  ;;  %v9198_v45 = vld [vmem:[#allocation64_spill] sm:$0xff] }
 0x3fd   : > { %5238 = vrcp.f32 %v8079_v54  ;;  %vm4052_vm15 = vweird.f32 %v5235_v9  ;;  %v2730_v50 = vadd.f32 %v9198_v45, %v7701_v27  ;;  %v4058_v42 = vor.u32 1.1754944e-38, %v4057_v20 }
 0x3fe   : > { %v4035_v34 = vadd.f32 %v5231_v11, %v4034_v38  ;;  %v4048_v41 = vsub.f32 1.0, %v4047_v26  ;;  %4838 = vmatmul.msk.f32.gmra.mxu3 %vm9111_vm13, %v3207_v58  ;;  %v3769_v39 = vadd.f32 %v7952_v25, %v3544_v55  ;;  %vm4051_vm13 = vweird.f32 %v8054_v43  ;;  %v8101_v25 = vpop.f32.mrf.mxu2  ;;  %v5358_v38 = vld [vmem:[%s5961_s19 + $0x28] sm:$0xff]  ;;  %v9199_v55 = vld [vmem:[#allocation120_spill] sm:$0xff] }
 0x3ff   : > { %vm4053_vm3 = vmor %vm4051_vm13, %vm4052_vm15  ;;  %vm4066_vm1 = vweird.f32 %v8079_v54 }
 0x400   : > { %v4039_v19 = vsel %vm4038_vm14, %v5231_v11, %v4035_v34  ;;  %v4049_v13 = vmul.f32 %v5235_v9, %v4048_v41  ;;  %v8097_v63 = vadd.f32 %v7909_v14, %v3769_v39  ;;  %v3159_v34 = vadd.f32 %v3084_v32, %v2730_v50  ;;  %v3208_v41 = vld [vmem:[#allocation2 + $0xff] sm:$0xff] }
 0x401   : > { %v4044_v17 = vsel %vm4041_vm11, %v4043_v5, %v4039_v19  ;;  %v3356_v16 = vpop.f32.mrf.mxu3  ;;  %v3087_v5 = vadd.f32 %v7973_v10, %v9199_v55  ;;  %v4072_v39 = vand.u32 2147483648, %v8079_v54  ;;  %v5359_v32 = vld [vmem:[%s5961_s19 + $0x30] sm:$0xff]  ;;  %v8121_v10 = vpop.f32.mrf.mxu0 }
 0x402   : > { %v5237_v2 = vpop.eup %5236  ;;  %v4441_v12 = vmul.f32 %v4044_v17, %v7997_v28  ;;  %v4050_v4 = vadd.f32 %v5235_v9, %v4049_v13  ;;  %v3470_v21 = vadd.f32 %v7961_v47, %v3356_v16  ;;  %v8106_v28 = vpop.f32.mrf.mxu1  ;;  %v4866_v19 = vmul.f32 -1.442695, %v8097_v63 }
 0x403   : > { %v5239_v11 = vpop.eup %5238  ;;  %v8103_v61 = vadd.f32 1.0, %v5237_v2  ;;  %v4070_v13 = vand.u32 2147483647, %v8079_v54  ;;  %v4073_v50 = vor.u32 1.1754944e-38, %v4072_v39 }
 0x404   : > { %v4473_v43 = vadd.f32 %v5358_v38, %v4441_v12  ;;  %v4054_v26 = vsel %vm4053_vm3, %v5235_v9, %v4050_v4  ;;  %v4062_v58 = vmul.f32 %v5239_v11, %v8079_v54  ;;  %v9200_v9 = vld [vmem:[#allocation68_spill] sm:$0xff]  ;;  %v3545_v29 = vadd.f32 %v3470_v21, %v3159_v34  ;;  %v3209_v34 = vld [vmem:[#allocation2 + $0x107] sm:$0xff] }
 0x405   : > { %v4059_v27 = vsel %vm4056_vm5, %v4058_v42, %v4054_v26  ;;  %5240 = vrcp.f32 %v8103_v61  ;;  %v2733_v36 = vadd.f32 %v9200_v9, %v7719_v22  ;;  %vm4067_vm2 = vweird.f32 %v5239_v11 }
 0x406   : > { %4505 = vst [vmem:[%s7967_s16 + $0x28] sm:$0xff] %v4473_v43  ;;  %v4442_v47 = vmul.f32 %v4059_v27, %v8015_v52  ;;  %v4063_v20 = vsub.f32 1.0, %v4062_v58  ;;  %3406 = vmatmul.f32.gmra.mxu3 %v3208_v41  ;;  %5242 = vpow2.f32 %v4866_v19  ;;  %v3770_v52 = vadd.f32 %v7978_v30, %v3545_v29  ;;  %vm4068_vm7 = vmor %vm4066_vm1, %vm4067_vm2  ;;  %v9201_v30 = vld [vmem:[#allocation122_spill] sm:$0xff]  ;;  %v8133_v58 = vpop.f32.mrf.mxu2 }
 0x407   : > { %v3160_v12 = vadd.f32 %v3087_v5, %v2733_v36  ;;  %vm4071_vm8 = vcmp.eq.f32.partialorder %v4070_v13, 8.507059e+37  ;;  %v3090_v26 = vadd.f32 %v8001_v48, %v9201_v30  ;;  %v9202_v41 = vld [vmem:[#allocation74_spill] sm:$0xff]  ;;  %v4085_v48 = vand.u32 2147483647, %v8103_v61  ;;  %v5360_v36 = vld [vmem:[%s5961_s19 + $0x38] sm:$0xff] }
 0x408   : > { %v4474_v17 = vadd.f32 %v5359_v32, %v4442_v47  ;;  %v4064_v16 = vmul.f32 %v5239_v11, %v4063_v20  ;;  %v8128_v42 = vadd.f32 %v7909_v14, %v3770_v52  ;;  %v2736_v55 = vadd.f32 %v9202_v41, %v7737_v31  ;;  %v9204_v30 = vld [vmem:[#allocation79_spill] sm:$0xff] }
 0x409   : > { %v3359_v2 = vpop.f32.mrf.mxu3  ;;  %v4087_v19 = vand.u32 2147483648, %v8103_v61  ;;  %vm4086_vm12 = vcmp.eq.f32.partialorder %v4085_v48, 8.507059e+37 }
 0x40a   : > { %4506 = vst [vmem:[%s7967_s16 + $0x30] sm:$0xff] %v4474_v17  ;;  %v4065_v4 = vadd.f32 %v5239_v11, %v4064_v16  ;;  %v3473_v22 = vadd.f32 %v7990_v37, %v3359_v2  ;;  %v4867_v37 = vmul.f32 -1.442695, %v8128_v42  ;;  %v8138_v5 = vpop.f32.mrf.mxu1  ;;  %v3161_v39 = vadd.f32 %v3090_v26, %v2736_v55  ;;  %v8157_v17 = vpop.f32.mrf.mxu0 }
 0x40b   : > { %v5241_v45 = vpop.eup %5240  ;;  %v4088_v16 = vor.u32 1.1754944e-38, %v4087_v19  ;;  %v2739_v26 = vadd.f32 %v9204_v30, %v7747_v46 }
 0x40c   : > { %v4069_v21 = vsel %vm4068_vm7, %v5239_v11, %v4065_v4  ;;  %v4077_v38 = vmul.f32 %v5241_v45, %v8103_v61  ;;  %v3546_v43 = vadd.f32 %v3473_v22, %v3160_v12  ;;  %v5243_v27 = vpop.eup %5242  ;;  %5244 = vpow2.f32 %v4867_v37  ;;  %v3210_v22 = vld [vmem:[#allocation2 + $0x10f] sm:$0xff] }
 0x40d   : > { %v4074_v54 = vsel %vm4071_vm8, %v4073_v50, %v4069_v21  ;;  %v8146_v9 = vadd.f32 1.0, %v5243_v27  ;;  %vm4082_vm0 = vweird.f32 %v5241_v45  ;;  %v9203_v50 = vld [vmem:[#allocation126_spill] sm:$0xff]  ;;  %v5361_v37 = vld [vmem:[%s5961_s19 + $0x40] sm:$0xff] }
 0x40e   : > { %v4443_v11 = vmul.f32 %v4074_v54, %v8044_v24  ;;  %v4078_v47 = vsub.f32 1.0, %v4077_v38  ;;  %v3771_v20 = vadd.f32 %v8006_v18, %v3546_v43  ;;  %4839 = vmatmul.msk.f32.gmra.mxu3 %vm7282_vm4, %v3209_v34  ;;  %vm4081_vm4 = vweird.f32 %v8103_v61 }
 0x40f   : > { %5246 = vrcp.f32 %v8146_v9  ;;  %vm4083_vm10 = vmor %vm4081_vm4, %vm4082_vm0  ;;  %v3093_v21 = vadd.f32 %v8036_v1, %v9203_v50  ;;  %v4102_v46 = vand.u32 2147483648, %v8146_v9  ;;  %vm4096_vm11 = vweird.f32 %v8146_v9 }
 0x410   : > { %v4475_v31 = vadd.f32 %v5360_v36, %v4443_v11  ;;  %v4079_v13 = vmul.f32 %v5241_v45, %v4078_v47  ;;  %v8150_v24 = vadd.f32 %v7909_v14, %v3771_v20  ;;  %v4100_v36 = vand.u32 2147483647, %v8146_v9 }
 0x411   : > { %v3362_v18 = vpop.f32.mrf.mxu3  ;;  %v3162_v55 = vadd.f32 %v3093_v21, %v2739_v26 }
 0x412   : > { %4507 = vst [vmem:[%s7967_s16 + $0x38] sm:$0xff] %v4475_v31  ;;  %v4080_v7 = vadd.f32 %v5241_v45, %v4079_v13  ;;  %v4868_v29 = vmul.f32 -1.442695, %v8150_v24  ;;  %v3476_v32 = vadd.f32 %v8024_v49, %v3362_v18  ;;  %v5245_v12 = vpop.eup %5244  ;;  %v8169_v54 = vpop.f32.mrf.mxu1  ;;  %vm4101_vm13 = vcmp.eq.f32.partialorder %v4100_v36, 8.507059e+37 }
 0x413   : > { %v8162_v38 = vadd.f32 1.0, %v5245_v12  ;;  %v8184_v13 = vpop.f32.mrf.mxu0  ;;  %v9205_v12 = vld [vmem:[#allocation62_spill] sm:$0xff] }
 0x414   : > { %v4084_v52 = vsel %vm4083_vm10, %v5241_v45, %v4080_v7  ;;  %5248 = vpow2.f32 %v4868_v29  ;;  %v3547_v2 = vadd.f32 %v3476_v32, %v3161_v39  ;;  %v8165_v45 = vpop.f32.mrf.mxu2  ;;  %v3211_v39 = vld [vmem:[#allocation2 + $0x117] sm:$0xff]  ;;  %v3096_v29 = vadd.f32 %v8070_v59, %v7529_v6  ;;  %v3598_v59 = vld [vmem:[#allocation2 + $0x121] sm:$0xff] }
 0x415   : > { %v4089_v4 = vsel %vm4086_vm12, %v4088_v16, %v4084_v52  ;;  %v5247_v43 = vpop.eup %5246  ;;  %5250 = vrcp.f32 %v8162_v38  ;;  %v4103_v32 = vor.u32 1.1754944e-38, %v4102_v46  ;;  %v4115_v50 = vand.u32 2147483647, %v8162_v38  ;;  %v9208_v46 = vld [vmem:[#allocation89_spill] sm:$0xff] }
 0x416   : > { %v4444_v61 = vmul.f32 %v4089_v4, %v8067_v60  ;;  %v3772_v49 = vadd.f32 %v8040_v62, %v3547_v2  ;;  %3412 = vmatmul.f32.gmra.mxu3 %v3210_v22  ;;  %v4092_v1 = vmul.f32 %v5247_v43, %v8146_v9  ;;  %v3597_v62 = vld [vmem:[#allocation2 + $0x119] sm:$0xff]  ;;  %vm4097_vm14 = vweird.f32 %v5247_v43  ;;  %v9206_v9 = vld [vmem:[#allocation83_spill] sm:$0xff] }
 0x417   : > { %3753 = vmatmul.f32.gmra.mxu1 %v3597_v62  ;;  %vm4098_vm15 = vmor %vm4096_vm11, %vm4097_vm14  ;;  %v2742_v4 = vadd.f32 %v9206_v9, %v9205_v12  ;;  %v9207_v62 = vld [vmem:[#allocation129_spill] sm:$0xff]  ;;  %vm4111_vm3 = vweird.f32 %v8162_v38  ;;  %vm4116_vm5 = vcmp.eq.f32.partialorder %v4115_v50, 8.507059e+37 }
 0x418   : > { %v4476_v34 = vadd.f32 %v5361_v37, %v4444_v61  ;;  %v8175_v60 = vadd.f32 %v7909_v14, %v3772_v49  ;;  %v4093_v11 = vsub.f32 1.0, %v4092_v1  ;;  %v4117_v49 = vand.u32 2147483648, %v8162_v38  ;;  %v3212_v1 = vld [vmem:[#allocation2 + $0x11f] sm:$0xff] }
 0x419   : > { %v3365_v27 = vpop.f32.mrf.mxu3  ;;  %v3163_v37 = vadd.f32 %v3096_v29, %v2742_v4 }
 0x41a   : > { %v5249_v41 = vpop.eup %5248  ;;  %4508 = vst [vmem:[%s7967_s16 + $0x40] sm:$0xff] %v4476_v34  ;;  %v3479_v47 = vadd.f32 %v8058_v8, %v3365_v27  ;;  %v4869_v48 = vmul.f32 -1.442695, %v8175_v60  ;;  %v4094_v19 = vmul.f32 %v5247_v43, %v4093_v11  ;;  %v8202_v21 = vpop.f32.mrf.mxu1 }
 0x41b   : > { %v8180_v20 = vadd.f32 1.0, %v5249_v41  ;;  %v5251_v18 = vpop.eup %5250  ;;  %v3099_v41 = vadd.f32 %v8101_v25, %v9207_v62  ;;  %v8220_v25 = vpop.f32.mrf.mxu0  ;;  %v5364_v62 = vld [vmem:[%s5961_s19 + $0x58] sm:$0xff] }
 0x41c   : > { %v3548_v31 = vadd.f32 %v3479_v47, %v3162_v55  ;;  %v4095_v7 = vadd.f32 %v5247_v43, %v4094_v19  ;;  %v4107_v16 = vmul.f32 %v5251_v18, %v8162_v38  ;;  %v8199_v22 = vpop.f32.mrf.mxu2  ;;  %v4118_v19 = vor.u32 1.1754944e-38, %v4117_v49 }
 0x41d   : > { %5252 = vrcp.f32 %v8180_v20  ;;  %v4132_v38 = vand.u32 2147483648, %v8180_v20  ;;  %vm4126_vm1 = vweird.f32 %v8180_v20 }
 0x41e   : > { %5254 = vpow2.f32 %v4869_v48  ;;  %v3773_v8 = vadd.f32 %v8072_v56, %v3548_v31  ;;  %4840 = vmatmul.msk.f32.gmra.mxu3 %vm7320_vm6, %v3211_v39  ;;  %v4099_v52 = vsel %vm4098_vm15, %v5247_v43, %v4095_v7  ;;  %v4108_v15 = vsub.f32 1.0, %v4107_v16 }
 0x41f   : > { %v4104_v56 = vsel %vm4101_vm13, %v4103_v32, %v4099_v52  ;;  %4856 = vmatmul.msk.f32.gmra.mxu1 %vm9151_vm9, %v3598_v59  ;;  %vm4112_vm6 = vweird.f32 %v5251_v18  ;;  %v2745_v48 = vadd.f32 %v9208_v46, %v7773_v57  ;;  %v4130_v39 = vand.u32 2147483647, %v8180_v20 }
 0x420   : > { %v8195_v2 = vadd.f32 %v7909_v14, %v3773_v8  ;;  %v4445_v61 = vmul.f32 %v4104_v56, %v8097_v63  ;;  %v4109_v34 = vmul.f32 %v5251_v18, %v4108_v15  ;;  %v5362_v63 = vld [vmem:[%s5961_s19 + $0x48] sm:$0xff]  ;;  %vm4113_vm9 = vmor %vm4111_vm3, %vm4112_vm6  ;;  %v5363_v56 = vld [vmem:[%s5961_s19 + $0x50] sm:$0xff] }
 0x421   : > { %v3368_v6 = vpop.f32.mrf.mxu3  ;;  %v3164_v29 = vadd.f32 %v3099_v41, %v2745_v48  ;;  %vm4131_vm8 = vcmp.eq.f32.partialorder %v4130_v39, 8.507059e+37 }
 0x422   : > { %v4870_v43 = vmul.f32 -1.442695, %v8195_v2  ;;  %v3482_v30 = vadd.f32 %v8087_v3, %v3368_v6  ;;  %v4477_v55 = vadd.f32 %v5362_v63, %v4445_v61  ;;  %v4110_v47 = vadd.f32 %v5251_v18, %v4109_v34  ;;  %v9210_v34 = vld [vmem:[#allocation38_spill] sm:$0xff] }
 0x423   : > { %v5253_v26 = vpop.eup %5252 }
 0x424   : > { %v5255_v27 = vpop.eup %5254  ;;  %v4122_v11 = vmul.f32 %v5253_v26, %v8180_v20  ;;  %5256 = vpow2.f32 %v4870_v43  ;;  %v3549_v3 = vadd.f32 %v3482_v30, %v3163_v37  ;;  %4509 = vst [vmem:[%s7967_s16 + $0x48] sm:$0xff] %v4477_v55  ;;  %v4114_v31 = vsel %vm4113_vm9, %v5251_v18, %v4110_v47  ;;  %v8232_v4 = vpop.f32.mrf.mxu2 }
 0x425   : > { %v8215_v35 = vadd.f32 1.0, %v5255_v27  ;;  %v4119_v7 = vsel %vm4116_vm5, %v4118_v19, %v4114_v31  ;;  %vm4127_vm2 = vweird.f32 %v5253_v26  ;;  %v8250_v55 = vpop.f32.mrf.mxu0 }
 0x426   : > { %v4123_v36 = vsub.f32 1.0, %v4122_v11  ;;  %3418 = vmatmul.f32.gmra.mxu3 %v3212_v1  ;;  %v3774_v57 = vadd.f32 %v8106_v28, %v3549_v3  ;;  %v4446_v32 = vmul.f32 %v4119_v7, %v8128_v42  ;;  %vm4128_vm7 = vmor %vm4126_vm1, %vm4127_vm2  ;;  %v4133_v28 = vor.u32 1.1754944e-38, %v4132_v38  ;;  %v8237_v42 = vpop.f32.mrf.mxu1  ;;  %v9211_v1 = vld [vmem:[#allocation92_spill] sm:$0xff]  ;;  %v9212_v7 = vld [vmem:[#allocation30_spill] sm:$0xff] }
 0x427   : > { %5258 = vrcp.f32 %v8215_v35  ;;  %v2748_v27 = vadd.f32 %v9211_v1, %v9210_v34  ;;  %v4145_v11 = vand.u32 2147483647, %v8215_v35  ;;  %v4147_v47 = vand.u32 2147483648, %v8215_v35 }
 0x428   : > { %v4124_v8 = vmul.f32 %v5253_v26, %v4123_v36  ;;  %v8229_v18 = vadd.f32 %v7909_v14, %v3774_v57  ;;  %v4478_v15 = vadd.f32 %v5363_v56, %v4446_v32  ;;  %vm4141_vm4 = vweird.f32 %v8215_v35 }
 0x429   : > { %v3371_v16 = vpop.f32.mrf.mxu3  ;;  %vm4146_vm12 = vcmp.eq.f32.partialorder %v4145_v11, 8.507059e+37 }
 0x42a   : > { %v5257_v52 = vpop.eup %5256  ;;  %v4125_v12 = vadd.f32 %v5253_v26, %v4124_v8  ;;  %v3485_v9 = vadd.f32 %v8121_v10, %v3371_v16  ;;  %v4871_v20 = vmul.f32 -1.442695, %v8229_v18  ;;  %4510 = vst [vmem:[%s7967_s16 + $0x50] sm:$0xff] %v4478_v15  ;;  %v9209_v10 = vld [vmem:[#allocation131_spill] sm:$0xff]  ;;  %v3105_v8 = vadd.f32 %v8165_v45, %v9212_v7 }
 0x42b   : > { %v8235_v50 = vadd.f32 1.0, %v5257_v52  ;;  %v3102_v43 = vadd.f32 %v8133_v58, %v9209_v10 }
 0x42c   : > { %v4129_v6 = vsel %vm4128_vm7, %v5253_v26, %v4125_v12  ;;  %v3550_v59 = vadd.f32 %v3485_v9, %v3164_v29  ;;  %v8264_v57 = vpop.f32.mrf.mxu2  ;;  %v4148_v29 = vor.u32 1.1754944e-38, %v4147_v47  ;;  %v9213_v12 = vld [vmem:[#allocation58_spill] sm:$0xff]  ;;  %v9214_v9 = vld [vmem:[#allocation96_spill] sm:$0xff] }
 0x42d   : > { %v5259_v61 = vpop.eup %5258  ;;  %v4134_v49 = vsel %vm4131_vm8, %v4133_v28, %v4129_v6  ;;  %5260 = vrcp.f32 %v8235_v50  ;;  %v3165_v3 = vadd.f32 %v3102_v43, %v2748_v27  ;;  %v2751_v56 = vadd.f32 %v9214_v9, %v9213_v12 }
 0x42e   : > { %v4447_v30 = vmul.f32 %v4134_v49, %v8150_v24  ;;  %v4137_v37 = vmul.f32 %v5259_v61, %v8215_v35  ;;  %5262 = vpow2.f32 %v4871_v20  ;;  %v3775_v26 = vadd.f32 %v8138_v5, %v3550_v59  ;;  %v5365_v49 = vld [vmem:[%s5961_s19 + $0x60] sm:$0xff] }
 0x42f   : > { %vm4142_vm0 = vweird.f32 %v5259_v61  ;;  %v4160_v45 = vand.u32 2147483647, %v8235_v50  ;;  %v4162_v28 = vand.u32 2147483648, %v8235_v50  ;;  %v3166_v59 = vadd.f32 %v3105_v8, %v2751_v56 }
 0x430   : > { %v4479_v41 = vadd.f32 %v5364_v62, %v4447_v30  ;;  %v4138_v63 = vsub.f32 1.0, %v4137_v37  ;;  %v8255_v58 = vadd.f32 %v7909_v14, %v3775_v26  ;;  %vm4143_vm10 = vmor %vm4141_vm4, %vm4142_vm0  ;;  %vm4156_vm11 = vweird.f32 %v8235_v50  ;;  %v8283_v26 = vpop.f32.mrf.mxu0 }
 0x431   : > { %v3374_v24 = vpop.f32.mrf.mxu3  ;;  %vm4161_vm13 = vcmp.eq.f32.partialorder %v4160_v45, 8.507059e+37 }
 0x432   : > { %4511 = vst [vmem:[%s7967_s16 + $0x58] sm:$0xff] %v4479_v41  ;;  %v4139_v46 = vmul.f32 %v5259_v61, %v4138_v63  ;;  %v3488_v5 = vadd.f32 %v8157_v17, %v3374_v24  ;;  %v4872_v19 = vmul.f32 -1.442695, %v8255_v58  ;;  %v8266_v17 = vpop.f32.mrf.mxu1 }
 0x433   : > { %v5261_v48 = vpop.eup %5260 }
 0x434   : > { %v4140_v36 = vadd.f32 %v5259_v61, %v4139_v46  ;;  %v4152_v31 = vmul.f32 %v5261_v48, %v8235_v50  ;;  %v3551_v39 = vadd.f32 %v3488_v5, %v3165_v3  ;;  %v5263_v38 = vpop.eup %5262  ;;  %5264 = vpow2.f32 %v4872_v19  ;;  %v9215_v50 = vld [vmem:[#allocation34_spill] sm:$0xff]  ;;  %v8293_v11 = vpop.f32.mrf.mxu2 }
 0x435   : > { %v8268_v52 = vadd.f32 1.0, %v5263_v38  ;;  %vm4157_vm14 = vweird.f32 %v5261_v48  ;;  %v9216_v3 = vld [vmem:[#allocation98_spill] sm:$0xff] }
 0x436   : > { %v4144_v32 = vsel %vm4143_vm10, %v5259_v61, %v4140_v36  ;;  %v4153_v16 = vsub.f32 1.0, %v4152_v31  ;;  %v3776_v35 = vadd.f32 %v8169_v54, %v3551_v39  ;;  %vm4158_vm15 = vmor %vm4156_vm11, %vm4157_vm14  ;;  %v2754_v46 = vadd.f32 %v9216_v3, %v7808_v44  ;;  %v9219_v3 = vld [vmem:[#allocation50_spill] sm:$0xff] }
 0x437   : > { %v4149_v15 = vsel %vm4146_vm12, %v4148_v29, %v4144_v32  ;;  %5266 = vrcp.f32 %v8268_v52  ;;  %v4175_v8 = vand.u32 2147483647, %v8268_v52  ;;  %vm4171_vm3 = vweird.f32 %v8268_v52 }
 0x438   : > { %v4448_v6 = vmul.f32 %v4149_v15, %v8175_v60  ;;  %v4154_v20 = vmul.f32 %v5261_v48, %v4153_v16  ;;  %v8278_v61 = vadd.f32 %v7909_v14, %v3776_v35  ;;  %v4163_v60 = vor.u32 1.1754944e-38, %v4162_v28  ;;  %v8317_v12 = vpop.f32.mrf.mxu0 }
 0x439   : > { %v3377_v54 = vpop.f32.mrf.mxu3  ;;  %vm4176_vm5 = vcmp.eq.f32.partialorder %v4175_v8, 8.507059e+37 }
 0x43a   : > { %v4480_v10 = vadd.f32 %v5365_v49, %v4448_v6  ;;  %v4155_v43 = vadd.f32 %v5261_v48, %v4154_v20  ;;  %v3491_v30 = vadd.f32 %v8184_v13, %v3377_v54  ;;  %v5265_v37 = vpop.eup %5264  ;;  %v4873_v34 = vmul.f32 -1.442695, %v8278_v61  ;;  %v8299_v5 = vpop.f32.mrf.mxu1 }
 0x43b   : > { %v8287_v14 = vadd.f32 1.0, %v5265_v37  ;;  %v3108_v13 = vadd.f32 %v8199_v22, %v9215_v50 }
 0x43c   : > { %4512 = vst [vmem:[%s7967_s16 + $0x60] sm:$0xff] %v4480_v10  ;;  %v4159_v1 = vsel %vm4158_vm15, %v5261_v48, %v4155_v43  ;;  %v3552_v27 = vadd.f32 %v3491_v30, %v3166_v59  ;;  %5268 = vpow2.f32 %v4873_v34  ;;  %v5366_v48 = vld [vmem:[%s5961_s19 + $0x68] sm:$0xff]  ;;  %v9218_v59 = vld [vmem:[#allocation100_spill] sm:$0xff]  ;;  %v8329_v43 = vpop.f32.mrf.mxu2 }
 0x43d   : > { %v4164_v62 = vsel %vm4161_vm13, %v4163_v60, %v4159_v1  ;;  %v5267_v41 = vpop.eup %5266  ;;  %5270 = vrcp.f32 %v8287_v14  ;;  %v3167_v39 = vadd.f32 %v3108_v13, %v2754_v46  ;;  %v2757_v54 = vadd.f32 %v9218_v59, %v7814_v53  ;;  %v9221_v59 = vld [vmem:[#allocation32_spill] sm:$0xff] }
 0x43e   : > { %v4449_v63 = vmul.f32 %v4164_v62, %v8195_v2  ;;  %v4167_v47 = vmul.f32 %v5267_v41, %v8268_v52  ;;  %v3777_v24 = vadd.f32 %v8202_v21, %v3552_v27  ;;  %v8305_v2 = vld [vmem:[%s9187_s14] ss:$0 sm:$0xff]  ;;  %v4177_v21 = vand.u32 2147483648, %v8268_v52 }
 0x43f   : > { %vm4172_vm6 = vweird.f32 %v5267_v41  ;;  %v4190_v49 = vand.u32 2147483647, %v8287_v14  ;;  %v4192_v10 = vand.u32 2147483648, %v8287_v14  ;;  %v5368_v27 = vld [vmem:[%s5961_s19 + $0x70] sm:$0xff]  ;;  %vm4186_vm1 = vweird.f32 %v8287_v14 }
 0x440   : > { %v4481_v19 = vadd.f32 %v5366_v48, %v4449_v63  ;;  %v4168_v36 = vsub.f32 1.0, %v4167_v47  ;;  %v8308_v22 = vadd.f32 %v8305_v2, %v3777_v24  ;;  %vm4173_vm9 = vmor %vm4171_vm3, %vm4172_vm6  ;;  %v4178_v45 = vor.u32 1.1754944e-38, %v4177_v21 }
 0x441   : > { %v3380_v31 = vpop.f32.mrf.mxu3  ;;  %v4193_v13 = vor.u32 1.1754944e-38, %v4192_v10  ;;  %vm4191_vm8 = vcmp.eq.f32.partialorder %v4190_v49, 8.507059e+37  ;;  %v3114_v46 = vadd.f32 %v8264_v57, %v9219_v3 }
 0x442   : > { %4513 = vst [vmem:[%s7967_s16 + $0x68] sm:$0xff] %v4481_v19  ;;  %v3494_v44 = vadd.f32 %v8220_v25, %v3380_v31  ;;  %v5269_v38 = vpop.eup %5268  ;;  %v4169_v7 = vmul.f32 %v5267_v41, %v4168_v36  ;;  %v4874_v29 = vmul.f32 -1.442695, %v8308_v22  ;;  %v9217_v25 = vld [vmem:[#allocation43_spill] sm:$0xff]  ;;  %v8335_v34 = vpop.f32.mrf.mxu1 }
 0x443   : > { %v5271_v32 = vpop.eup %5270  ;;  %v8315_v16 = vadd.f32 1.0, %v5269_v38  ;;  %v3111_v15 = vadd.f32 %v8232_v4, %v9217_v25 }
 0x444   : > { %v3553_v35 = vadd.f32 %v3494_v44, %v3167_v39  ;;  %v4170_v9 = vadd.f32 %v5267_v41, %v4169_v7  ;;  %v4182_v56 = vmul.f32 %v5271_v32, %v8287_v14  ;;  %5272 = vpow2.f32 %v4874_v29  ;;  %v8348_v14 = vpop.f32.mrf.mxu0  ;;  %v9220_v39 = vld [vmem:[#allocation102_spill] sm:$0xff]  ;;  %v5369_v7 = vld [vmem:[%s5961_s19 + $0x78] sm:$0xff] }
 0x445   : > { %5274 = vrcp.f32 %v8315_v16  ;;  %vm4187_vm2 = vweird.f32 %v5271_v32  ;;  %v2760_v21 = vadd.f32 %v9220_v39, %v7824_v23  ;;  %v4205_v44 = vand.u32 2147483647, %v8315_v16 }
 0x446   : > { %v4174_v28 = vsel %vm4173_vm9, %v5267_v41, %v4170_v9  ;;  %v4183_v6 = vsub.f32 1.0, %v4182_v56  ;;  %v3778_v20 = vadd.f32 %v8237_v42, %v3553_v35  ;;  %v3168_v42 = vadd.f32 %v3111_v15, %v2757_v54  ;;  %vm4188_vm7 = vmor %vm4186_vm1, %vm4187_vm2 }
 0x447   : > { %v4179_v52 = vsel %vm4176_vm5, %v4178_v45, %v4174_v28  ;;  %v4207_v38 = vand.u32 2147483648, %v8315_v16  ;;  %vm4201_vm4 = vweird.f32 %v8315_v16  ;;  %vm4206_vm12 = vcmp.eq.f32.partialorder %v4205_v44, 8.507059e+37  ;;  %v9224_v44 = vld [vmem:[#allocation107_spill] sm:$0xff] }
 0x448   : > { %v4450_v4 = vmul.f32 %v4179_v52, %v8229_v18  ;;  %v4184_v30 = vmul.f32 %v5271_v32, %v4183_v6  ;;  %v8333_v37 = vadd.f32 %v8305_v2, %v3778_v20  ;;  %v3117_v54 = vadd.f32 %v8293_v11, %v9221_v59  ;;  %v9225_v59 = vld [vmem:[#allocation47_spill] sm:$0xff] }
 0x449   : > { %v3383_v60 = vpop.f32.mrf.mxu3  ;;  %v4208_v45 = vor.u32 1.1754944e-38, %v4207_v38  ;;  %v2766_v38 = vadd.f32 %v9224_v44, %v7840_v33 }
 0x44a   : > { %v3497_v53 = vadd.f32 %v8250_v55, %v3383_v60  ;;  %v5273_v1 = vpop.eup %5272  ;;  %v4482_v62 = vadd.f32 %v5368_v27, %v4450_v4  ;;  %v4185_v41 = vadd.f32 %v5271_v32, %v4184_v30  ;;  %v4875_v18 = vmul.f32 -1.442695, %v8333_v37  ;;  %v8366_v15 = vpop.f32.mrf.mxu1  ;;  %v9222_v4 = vld [vmem:[#allocation105_spill] sm:$0xff] }
 0x44b   : > { %v5275_v50 = vpop.eup %5274  ;;  %v8341_v63 = vadd.f32 1.0, %v5273_v1  ;;  %v2763_v30 = vadd.f32 %v9222_v4, %v7830_v40  ;;  %v5370_v1 = vld [vmem:[%s5961_s19 + $0x80] sm:$0xff]  ;;  %v9226_v4 = vld [vmem:[#allocation109_spill] sm:$0xff] }
 0x44c   : > { %v3554_v47 = vadd.f32 %v3497_v53, %v3168_v42  ;;  %4514 = vst [vmem:[%s7967_s16 + $0x70] sm:$0xff] %v4482_v62  ;;  %v4189_v24 = vsel %vm4188_vm7, %v5271_v32, %v4185_v41  ;;  %v4197_v55 = vmul.f32 %v5275_v50, %v8315_v16  ;;  %5276 = vpow2.f32 %v4875_v18  ;;  %v8380_v53 = vpop.f32.mrf.mxu0 }
 0x44d   : > { %v4194_v48 = vsel %vm4191_vm8, %v4193_v13, %v4189_v24  ;;  %5278 = vrcp.f32 %v8341_v63  ;;  %vm4202_vm0 = vweird.f32 %v5275_v50  ;;  %v4220_v60 = vand.u32 2147483647, %v8341_v63 }
 0x44e   : > { %v4451_v19 = vmul.f32 %v4194_v48, %v8255_v58  ;;  %v4198_v36 = vsub.f32 1.0, %v4197_v55  ;;  %v3779_v31 = vadd.f32 %v8266_v17, %v3554_v47  ;;  %v3169_v58 = vadd.f32 %v3114_v46, %v2760_v21  ;;  %v8361_v17 = vpop.f32.mrf.mxu2  ;;  %vm4203_vm10 = vmor %vm4201_vm4, %vm4202_vm0  ;;  %v9223_v48 = vld [vmem:[#allocation36_spill] sm:$0xff] }
 0x44f   : > { %v4222_v42 = vand.u32 2147483648, %v8341_v63  ;;  %v3170_v41 = vadd.f32 %v3117_v54, %v2763_v30  ;;  %vm4216_vm11 = vweird.f32 %v8341_v63  ;;  %vm4221_vm13 = vcmp.eq.f32.partialorder %v4220_v60, 8.507059e+37 }
 0x450   : > { %v4483_v57 = vadd.f32 %v5369_v7, %v4451_v19  ;;  %v4199_v8 = vmul.f32 %v5275_v50, %v4198_v36  ;;  %v8358_v29 = vadd.f32 %v8305_v2, %v3779_v31  ;;  %v3120_v19 = vadd.f32 %v8329_v43, %v9223_v48 }
 0x451   : > { %v3386_v32 = vpop.f32.mrf.mxu3  ;;  %v4223_v47 = vor.u32 1.1754944e-38, %v4222_v42  ;;  %v3123_v54 = vadd.f32 %v8361_v17, %v9225_v59  ;;  %v2769_v30 = vadd.f32 %v9226_v4, %v7844_v0 }
 0x452   : > { %v3500_v35 = vadd.f32 %v8283_v26, %v3386_v32  ;;  %v5277_v9 = vpop.eup %5276  ;;  %4515 = vst [vmem:[%s7967_s16 + $0x78] sm:$0xff] %v4483_v57  ;;  %v4200_v23 = vadd.f32 %v5275_v50, %v4199_v8  ;;  %v4876_v56 = vmul.f32 -1.442695, %v8358_v29  ;;  %v5371_v8 = vld [vmem:[%s5961_s19 + $0x88] sm:$0xff] }
 0x453   : > { %v5279_v25 = vpop.eup %5278  ;;  %v8368_v28 = vadd.f32 1.0, %v5277_v9 }
 0x454   : > { %v3555_v6 = vadd.f32 %v3500_v35, %v3169_v58  ;;  %v4204_v20 = vsel %vm4203_vm10, %v5275_v50, %v4200_v23  ;;  %v4212_v26 = vmul.f32 %v5279_v25, %v8341_v63  ;;  %5280 = vpow2.f32 %v4876_v56  ;;  %v8397_v63 = vpop.f32.mrf.mxu1 }
 0x455   : > { %v4209_v16 = vsel %vm4206_vm12, %v4208_v45, %v4204_v20  ;;  %5282 = vrcp.f32 %v8368_v28  ;;  %vm4217_vm14 = vweird.f32 %v5279_v25  ;;  %v4235_v7 = vand.u32 2147483647, %v8368_v28 }
 0x456   : > { %v4452_v52 = vmul.f32 %v4209_v16, %v8278_v61  ;;  %v4213_v49 = vsub.f32 1.0, %v4212_v26  ;;  %v3780_v10 = vadd.f32 %v8299_v5, %v3555_v6  ;;  %vm4218_vm15 = vmor %vm4216_vm11, %vm4217_vm14  ;;  %v8392_v3 = vpop.f32.mrf.mxu2  ;;  %v4237_v57 = vand.u32 2147483648, %v8368_v28 }
 0x457   : > { %vm4231_vm3 = vweird.f32 %v8368_v28  ;;  %vm4236_vm5 = vcmp.eq.f32.partialorder %v4235_v7, 8.507059e+37 }
 0x458   : > { %v4484_v11 = vadd.f32 %v5370_v1, %v4452_v52  ;;  %v4214_v27 = vmul.f32 %v5279_v25, %v4213_v49  ;;  %v8384_v62 = vadd.f32 %v8305_v2, %v3780_v10  ;;  %v4238_v45 = vor.u32 1.1754944e-38, %v4237_v57  ;;  %v5372_v1 = vld [vmem:[%s5961_s19 + $0x90] sm:$0xff]  ;;  %v5373_v57 = vld [vmem:[%s5961_s19 + $0x98] sm:$0xff] }
 0x459   : > { %v3389_v61 = vpop.f32.mrf.mxu3 }
 0x45a   : > { %v3503_v5 = vadd.f32 %v8317_v12, %v3389_v61  ;;  %v5281_v18 = vpop.eup %5280  ;;  %4516 = vst [vmem:[%s7967_s16 + $0x80] sm:$0xff] %v4484_v11  ;;  %v4215_v40 = vadd.f32 %v5279_v25, %v4214_v27  ;;  %v4877_v50 = vmul.f32 -1.442695, %v8384_v62 }
 0x45b   : > { %v5283_v13 = vpop.eup %5282  ;;  %v8390_v24 = vadd.f32 1.0, %v5281_v18 }
 0x45c   : > { %v3556_v55 = vadd.f32 %v3503_v5, %v3170_v41  ;;  %v4219_v46 = vsel %vm4218_vm15, %v5279_v25, %v4215_v40  ;;  %v4227_v12 = vmul.f32 %v5283_v13, %v8368_v28  ;;  %5284 = vpow2.f32 %v4877_v50  ;;  %v8428_v60 = vpop.f32.mrf.mxu1 }
 0x45d   : > { %v4224_v36 = vsel %vm4221_vm13, %v4223_v47, %v4219_v46  ;;  %5286 = vrcp.f32 %v8390_v24  ;;  %vm4232_vm6 = vweird.f32 %v5283_v13  ;;  %v4250_v42 = vand.u32 2147483647, %v8390_v24 }
 0x45e   : > { %v4453_v31 = vmul.f32 %v4224_v36, %v8308_v22  ;;  %v4228_v39 = vsub.f32 1.0, %v4227_v12  ;;  %v3781_v21 = vadd.f32 %v8335_v34, %v3556_v55  ;;  %v3171_v22 = vadd.f32 %v3120_v19, %v2766_v38  ;;  %v8411_v34 = vpop.f32.mrf.mxu0  ;;  %vm4233_vm9 = vmor %vm4231_vm3, %vm4232_vm6  ;;  %v8422_v28 = vpop.f32.mrf.mxu2 }
 0x45f   : > { %v4252_v17 = vand.u32 2147483648, %v8390_v24  ;;  %v3172_v41 = vadd.f32 %v3123_v54, %v2769_v30  ;;  %vm4246_vm1 = vweird.f32 %v8390_v24  ;;  %vm4251_vm8 = vcmp.eq.f32.partialorder %v4250_v42, 8.507059e+37  ;;  %v5374_v42 = vld [vmem:[%s5961_s19 + $0xa0] sm:$0xff] }
 0x460   : > { %v4485_v43 = vadd.f32 %v5371_v8, %v4453_v31  ;;  %v4229_v32 = vmul.f32 %v5283_v13, %v4228_v39  ;;  %v8408_v58 = vadd.f32 %v8305_v2, %v3781_v21  ;;  %v9228_v39 = vld [vmem:[#allocation112_spill] sm:$0xff] }
 0x461   : > { %v3392_v35 = vpop.f32.mrf.mxu3  ;;  %v4253_v50 = vor.u32 1.1754944e-38, %v4252_v17  ;;  %v2772_v21 = vadd.f32 %v9228_v39, %v7852_v51 }
 0x462   : > { %v3506_v9 = vadd.f32 %v8348_v14, %v3392_v35  ;;  %v5285_v23 = vpop.eup %5284  ;;  %4517 = vst [vmem:[%s7967_s16 + $0x88] sm:$0xff] %v4485_v43  ;;  %v4230_v33 = vadd.f32 %v5283_v13, %v4229_v32  ;;  %v4878_v56 = vmul.f32 -1.442695, %v8408_v58 }
 0x463   : > { %v5287_v25 = vpop.eup %5286  ;;  %v8416_v6 = vadd.f32 1.0, %v5285_v23 }
 0x464   : > { %v3557_v20 = vadd.f32 %v3506_v9, %v3171_v22  ;;  %v4234_v26 = vsel %vm4233_vm9, %v5283_v13, %v4230_v33  ;;  %v4242_v14 = vmul.f32 %v5287_v25, %v8390_v24  ;;  %5288 = vpow2.f32 %v4878_v56  ;;  %v3739_v35 = vpop.f32.mrf.mxu1 }
 0x465   : > { %v4239_v16 = vsel %vm4236_vm5, %v4238_v45, %v4234_v26  ;;  %5290 = vrcp.f32 %v8416_v6  ;;  %vm4247_vm2 = vweird.f32 %v5287_v25  ;;  %v4265_v44 = vand.u32 2147483647, %v8416_v6 }
 0x466   : > { %v4454_v52 = vmul.f32 %v4239_v16, %v8333_v37  ;;  %v4243_v49 = vsub.f32 1.0, %v4242_v14  ;;  %v3782_v10 = vadd.f32 %v8366_v15, %v3557_v20  ;;  %vm4248_vm7 = vmor %vm4246_vm1, %vm4247_vm2  ;;  %v3514_v55 = vpop.f32.mrf.mxu0  ;;  %v4267_v38 = vand.u32 2147483648, %v8416_v6  ;;  %v3131_v7 = vpop.f32.mrf.mxu2 }
 0x467   : > { %vm4261_vm4 = vweird.f32 %v8416_v6  ;;  %vm4266_vm12 = vcmp.eq.f32.partialorder %v4265_v44, 8.507059e+37 }
 0x468   : > { %v4486_v11 = vadd.f32 %v5372_v1, %v4454_v52  ;;  %v4244_v27 = vmul.f32 %v5287_v25, %v4243_v49  ;;  %v8434_v61 = vadd.f32 %v8305_v2, %v3782_v10  ;;  %v4268_v33 = vor.u32 1.1754944e-38, %v4267_v38  ;;  %v9230_v52 = vld [vmem:[#allocation70_spill] sm:$0xff]  ;;  %v9231_v49 = vld [vmem:[#allocation116_spill] sm:$0xff]  ;;  %v5375_v38 = vld [vmem:[%s5961_s19 + $0xa8] sm:$0xff] }
 0x469   : > { %v3395_v37 = vpop.f32.mrf.mxu3  ;;  %v2775_v10 = vadd.f32 %v9231_v49, %v9230_v52 }
 0x46a   : > { %v3509_v15 = vadd.f32 %v8380_v53, %v3395_v37  ;;  %v5289_v5 = vpop.eup %5288  ;;  %4518 = vst [vmem:[%s7967_s16 + $0x90] sm:$0xff] %v4486_v11  ;;  %v4245_v0 = vadd.f32 %v5287_v25, %v4244_v27  ;;  %v4879_v18 = vmul.f32 -1.442695, %v8434_v61  ;;  %v9227_v53 = vld [vmem:[#allocation54_spill] sm:$0xff] }
 0x46b   : > { %v5291_v40 = vpop.eup %5290  ;;  %v8440_v13 = vadd.f32 1.0, %v5289_v5  ;;  %v3126_v48 = vadd.f32 %v8392_v3, %v9227_v53 }
 0x46c   : > { %v3558_v47 = vadd.f32 %v3509_v15, %v3172_v41  ;;  %v4249_v46 = vsel %vm4248_vm7, %v5287_v25, %v4245_v0  ;;  %v4257_v12 = vmul.f32 %v5291_v40, %v8416_v6  ;;  %5292 = vpow2.f32 %v4879_v18  ;;  %v3742_v0 = vpop.f32.mrf.mxu1 }
 0x46d   : > { %v4254_v19 = vsel %vm4251_vm8, %v4253_v50, %v4249_v46  ;;  %5294 = vrcp.f32 %v8440_v13  ;;  %vm4262_vm0 = vweird.f32 %v5291_v40  ;;  %v3173_v32 = vadd.f32 %v3126_v48, %v2772_v21  ;;  %v9232_v46 = vld [vmem:[#allocation35_spill] sm:$0xff] }
 0x46e   : > { %v4455_v24 = vmul.f32 %v4254_v19, %v8358_v29  ;;  %v4258_v36 = vsub.f32 1.0, %v4257_v12  ;;  %v3783_v31 = vadd.f32 %v8397_v63, %v3558_v47  ;;  %vm4263_vm10 = vmor %vm4261_vm4, %vm4262_vm0  ;;  %v3517_v6 = vpop.f32.mrf.mxu0  ;;  %v4280_v4 = vand.u32 2147483647, %v8440_v13  ;;  %v3134_v41 = vpop.f32.mrf.mxu2 }
 0x46f   : > { %v4282_v30 = vand.u32 2147483648, %v8440_v13  ;;  %vm4276_vm11 = vweird.f32 %v8440_v13  ;;  %v3132_v12 = vadd.f32 %v3131_v7, %v9232_v46 }
 0x470   : > { %v4487_v8 = vadd.f32 %v5373_v57, %v4455_v24  ;;  %v4259_v3 = vmul.f32 %v5291_v40, %v4258_v36  ;;  %v8454_v43 = vadd.f32 %v8305_v2, %v3783_v31  ;;  %vm4281_vm13 = vcmp.eq.f32.partialorder %v4280_v4, 8.507059e+37  ;;  %v9233_v24 = vld [vmem:[#allocation45_spill] sm:$0xff]  ;;  %v9234_v36 = vld [vmem:[#allocation119_spill] sm:$0xff]  ;;  %v5376_v4 = vld [vmem:[%s5961_s19 + $0xb0] sm:$0xff] }
 0x471   : > { %v3398_v29 = vpop.f32.mrf.mxu3  ;;  %v4283_v18 = vor.u32 1.1754944e-38, %v4282_v30  ;;  %v2778_v31 = vadd.f32 %v9234_v36, %v9233_v24 }
 0x472   : > { %v3512_v63 = vadd.f32 %v8411_v34, %v3398_v29  ;;  %v5293_v22 = vpop.eup %5292  ;;  %4519 = vst [vmem:[%s7967_s16 + $0x98] sm:$0xff] %v4487_v8  ;;  %v4260_v51 = vadd.f32 %v5291_v40, %v4259_v3  ;;  %v4880_v9 = vmul.f32 -1.442695, %v8454_v43  ;;  %v9229_v34 = vld [vmem:[#allocation39_spill] sm:$0xff] }
 0x473   : > { %v5295_v23 = vpop.eup %5294  ;;  %v8460_v56 = vadd.f32 1.0, %v5293_v22  ;;  %v3129_v26 = vadd.f32 %v8422_v28, %v9229_v34 }
 0x474   : > { %v3559_v25 = vadd.f32 %v3512_v63, %v3173_v32  ;;  %v4264_v45 = vsel %vm4263_vm10, %v5291_v40, %v4260_v51  ;;  %v4272_v20 = vmul.f32 %v5295_v23, %v8440_v13  ;;  %5296 = vpow2.f32 %v4880_v9 }
 0x475   : > { %v4269_v14 = vsel %vm4266_vm12, %v4268_v33, %v4264_v45  ;;  %5298 = vrcp.f32 %v8460_v56  ;;  %vm4277_vm14 = vweird.f32 %v5295_v23  ;;  %v4295_v39 = vand.u32 2147483647, %v8460_v56 }
 0x476   : > { %v4456_v59 = vmul.f32 %v4269_v14, %v8384_v62  ;;  %v4273_v54 = vsub.f32 1.0, %v4272_v20  ;;  %v3784_v16 = vadd.f32 %v8428_v60, %v3559_v25  ;;  %v3174_v62 = vadd.f32 %v3129_v26, %v2775_v10  ;;  %vm4278_vm15 = vmor %vm4276_vm11, %vm4277_vm14  ;;  %v3520_v44 = vpop.f32.mrf.mxu0  ;;  %v3137_v33 = vpop.f32.mrf.mxu2  ;;  %v9235_v20 = vld [vmem:[#allocation51_spill] sm:$0xff] }
 0x477   : > { %v4297_v21 = vand.u32 2147483648, %v8460_v56  ;;  %vm4291_vm3 = vweird.f32 %v8460_v56  ;;  %vm4296_vm5 = vcmp.eq.f32.partialorder %v4295_v39, 8.507059e+37  ;;  %v3135_v34 = vadd.f32 %v3134_v41, %v9235_v20  ;;  %v3745_v26 = vpop.f32.mrf.mxu1 }
 0x478   : > { %v4488_v17 = vadd.f32 %v5374_v42, %v4456_v59  ;;  %v4274_v28 = vmul.f32 %v5295_v23, %v4273_v54  ;;  %v8474_v1 = vadd.f32 %v8305_v2, %v3784_v16  ;;  %v9236_v54 = vld [vmem:[#allocation41_spill] sm:$0xff] }
 0x479   : > { %v3401_v11 = vpop.f32.mrf.mxu3  ;;  %v4298_v51 = vor.u32 1.1754944e-38, %v4297_v21  ;;  %v9237_v16 = vld [vmem:[#allocation121_spill] sm:$0xff]  ;;  %v5377_v21 = vld [vmem:[%s5961_s19 + $0xb8] sm:$0xff] }
 0x47a   : > { %v3515_v27 = vadd.f32 %v3514_v55, %v3401_v11  ;;  %v5297_v37 = vpop.eup %5296  ;;  %4520 = vst [vmem:[%s7967_s16 + $0xa0] sm:$0xff] %v4488_v17  ;;  %v4275_v60 = vadd.f32 %v5295_v23, %v4274_v28  ;;  %v4881_v15 = vmul.f32 -1.442695, %v8474_v1  ;;  %v2781_v52 = vadd.f32 %v9237_v16, %v9236_v54 }
 0x47b   : > { %v5299_v5 = vpop.eup %5298  ;;  %v8479_v40 = vadd.f32 1.0, %v5297_v37 }
 0x47c   : > { %v3560_v50 = vadd.f32 %v3515_v27, %v3174_v62  ;;  %v4279_v47 = vsel %vm4278_vm15, %v5295_v23, %v4275_v60  ;;  %v4287_v55 = vmul.f32 %v5299_v5, %v8460_v56  ;;  %5300 = vpow2.f32 %v4881_v15 }
 0x47d   : > { %v4284_v53 = vsel %vm4281_vm13, %v4283_v18, %v4279_v47  ;;  %5302 = vrcp.f32 %v8479_v40  ;;  %vm4292_vm6 = vweird.f32 %v5299_v5  ;;  %v4310_v49 = vand.u32 2147483647, %v8479_v40  ;;  %v9238_v47 = vld [vmem:[#allocation37_spill] sm:$0xff] }
 0x47e   : > { %v4457_v13 = vmul.f32 %v4284_v53, %v8408_v58  ;;  %v4288_v48 = vsub.f32 1.0, %v4287_v55  ;;  %v3785_v19 = vadd.f32 %v3739_v35, %v3560_v50  ;;  %v3175_v58 = vadd.f32 %v3132_v12, %v2778_v31  ;;  %vm4293_vm9 = vmor %vm4291_vm3, %vm4292_vm6  ;;  %v3523_v27 = vpop.f32.mrf.mxu0 }
 0x47f   : > { %v4312_v10 = vand.u32 2147483648, %v8479_v40  ;;  %v3176_v11 = vadd.f32 %v3135_v34, %v2781_v52  ;;  %vm4306_vm1 = vweird.f32 %v8479_v40  ;;  %vm4311_vm8 = vcmp.eq.f32.partialorder %v4310_v49, 8.507059e+37  ;;  %v3748_v36 = vpop.f32.mrf.mxu1  ;;  %v5378_v49 = vld [vmem:[%s5961_s19 + $0xc0] sm:$0xff] }
 0x480   : > { %v4489_v57 = vadd.f32 %v5375_v38, %v4457_v13  ;;  %v4289_v8 = vmul.f32 %v5299_v5, %v4288_v48  ;;  %v8491_v7 = vadd.f32 %v8305_v2, %v3785_v19  ;;  %v3138_v55 = vadd.f32 %v3137_v33, %v9238_v47  ;;  %v9239_v48 = vld [vmem:[#allocation46_spill] sm:$0xff]  ;;  %v9240_v19 = vld [vmem:[#allocation124_spill] sm:$0xff] }
 0x481   : > { %v3404_v3 = vpop.f32.mrf.mxu3  ;;  %v4313_v15 = vor.u32 1.1754944e-38, %v4312_v10  ;;  %v2784_v24 = vadd.f32 %v9240_v19, %v9239_v48  ;;  %v9244_v47 = vld [vmem:[#allocation56_spill] sm:$0xff] }
 0x482   : > { %v3518_v29 = vadd.f32 %v3517_v6, %v3404_v3  ;;  %v5301_v32 = vpop.eup %5300  ;;  %4521 = vst [vmem:[%s7967_s16 + $0xa8] sm:$0xff] %v4489_v57  ;;  %v4290_v35 = vadd.f32 %v5299_v5, %v4289_v8  ;;  %v4882_v63 = vmul.f32 -1.442695, %v8491_v7 }
 0x483   : > { %v5303_v22 = vpop.eup %5302  ;;  %v8496_v9 = vadd.f32 1.0, %v5301_v32 }
 0x484   : > { %v3561_v23 = vadd.f32 %v3518_v29, %v3175_v58  ;;  %v4294_v25 = vsel %vm4293_vm9, %v5299_v5, %v4290_v35  ;;  %v4302_v45 = vmul.f32 %v5303_v22, %v8479_v40  ;;  %5304 = vpow2.f32 %v4882_v63  ;;  %v3140_v40 = vpop.f32.mrf.mxu2 }
 0x485   : > { %v4299_v14 = vsel %vm4296_vm5, %v4298_v51, %v4294_v25  ;;  %5306 = vrcp.f32 %v8496_v9  ;;  %vm4307_vm2 = vweird.f32 %v5303_v22  ;;  %v4325_v31 = vand.u32 2147483647, %v8496_v9 }
 0x486   : > { %v4458_v56 = vmul.f32 %v4299_v14, %v8434_v61  ;;  %v4303_v6 = vsub.f32 1.0, %v4302_v45  ;;  %v3786_v59 = vadd.f32 %v3742_v0, %v3561_v23  ;;  %vm4308_vm7 = vmor %vm4306_vm1, %vm4307_vm2  ;;  %v4327_v39 = vand.u32 2147483648, %v8496_v9  ;;  %v3526_v23 = vpop.f32.mrf.mxu0  ;;  %v9241_v45 = vld [vmem:[#allocation42_spill] sm:$0xff] }
 0x487   : > { %vm4321_vm4 = vweird.f32 %v8496_v9  ;;  %vm4326_vm12 = vcmp.eq.f32.partialorder %v4325_v31, 8.507059e+37  ;;  %v3141_v20 = vadd.f32 %v3140_v40, %v9241_v45 }
 0x488   : > { %v4490_v30 = vadd.f32 %v5376_v4, %v4458_v56  ;;  %v4304_v42 = vmul.f32 %v5303_v22, %v4303_v6  ;;  %v8508_v17 = vadd.f32 %v8305_v2, %v3786_v59  ;;  %v4328_v63 = vor.u32 1.1754944e-38, %v4327_v39  ;;  %v9242_v56 = vld [vmem:[#allocation60_spill] sm:$0xff]  ;;  %v9243_v6 = vld [vmem:[#allocation127_spill] sm:$0xff] }
 0x489   : > { %v3407_v28 = vpop.f32.mrf.mxu3  ;;  %v2787_v59 = vadd.f32 %v9243_v6, %v9242_v56  ;;  %v9249_v56 = vld [vmem:[#allocation130_spill] sm:$0xff] }
 0x48a   : > { %v3521_v61 = vadd.f32 %v3520_v44, %v3407_v28  ;;  %v5305_v62 = vpop.eup %5304  ;;  %4522 = vst [vmem:[%s7967_s16 + $0xb0] sm:$0xff] %v4490_v30  ;;  %v4305_v37 = vadd.f32 %v5303_v22, %v4304_v42  ;;  %v4883_v41 = vmul.f32 -1.442695, %v8508_v17  ;;  %v3751_v28 = vpop.f32.mrf.mxu1 }
 0x48b   : > { %v5307_v60 = vpop.eup %5306  ;;  %v8513_v5 = vadd.f32 1.0, %v5305_v62 }
 0x48c   : > { %v3562_v0 = vadd.f32 %v3521_v61, %v3176_v11  ;;  %v4309_v18 = vsel %vm4308_vm7, %v5303_v22, %v4305_v37  ;;  %v4317_v50 = vmul.f32 %v5307_v60, %v8496_v9  ;;  %5308 = vpow2.f32 %v4883_v41  ;;  %v3143_v52 = vpop.f32.mrf.mxu2 }
 0x48d   : > { %v4314_v46 = vsel %vm4311_vm8, %v4313_v15, %v4309_v18  ;;  %5310 = vrcp.f32 %v8513_v5  ;;  %vm4322_vm0 = vweird.f32 %v5307_v60  ;;  %v4340_v54 = vand.u32 2147483647, %v8513_v5 }
 0x48e   : > { %v4459_v12 = vmul.f32 %v4314_v46, %v8454_v43  ;;  %v4318_v53 = vsub.f32 1.0, %v4317_v50  ;;  %v3787_v13 = vadd.f32 %v3745_v26, %v3562_v0  ;;  %v3177_v43 = vadd.f32 %v3138_v55, %v2784_v24  ;;  %vm4323_vm10 = vmor %vm4321_vm4, %vm4322_vm0  ;;  %v3529_v50 = vpop.f32.mrf.mxu0 }
 0x48f   : > { %v4342_v16 = vand.u32 2147483648, %v8513_v5  ;;  %vm4336_vm11 = vweird.f32 %v8513_v5  ;;  %vm4341_vm13 = vcmp.eq.f32.partialorder %v4340_v54, 8.507059e+37  ;;  %v3144_v55 = vadd.f32 %v3143_v52, %v9244_v47 }
 0x490   : > { %v4491_v44 = vadd.f32 %v5377_v21, %v4459_v12  ;;  %v4319_v38 = vmul.f32 %v5307_v60, %v4318_v53  ;;  %v8525_v57 = vadd.f32 %v8305_v2, %v3787_v13  ;;  %v9245_v53 = vld [vmem:[#allocation67_spill] sm:$0xff]  ;;  %v9246_v13 = vld [vmem:[#allocation128_spill] sm:$0xff] }
 0x491   : > { %v3410_v8 = vpop.f32.mrf.mxu3  ;;  %v4343_v41 = vor.u32 1.1754944e-38, %v4342_v16  ;;  %v2790_v48 = vadd.f32 %v9246_v13, %v9245_v53  ;;  %v5380_v16 = vld [vmem:[%s5961_s19 + $0xd0] sm:$0xff] }
 0x492   : > { %v3524_v3 = vadd.f32 %v3523_v27, %v3410_v8  ;;  %v5309_v58 = vpop.eup %5308  ;;  %4523 = vst [vmem:[%s7967_s16 + $0xb8] sm:$0xff] %v4491_v44  ;;  %v4320_v29 = vadd.f32 %v5307_v60, %v4319_v38  ;;  %v4884_v32 = vmul.f32 -1.442695, %v8525_v57 }
 0x493   : > { %v5311_v35 = vpop.eup %5310  ;;  %v8530_v22 = vadd.f32 1.0, %v5309_v58  ;;  %v3179_v38 = vadd.f32 %v3144_v55, %v2790_v48 }
 0x494   : > { %v3563_v51 = vadd.f32 %v3524_v3, %v3177_v43  ;;  %v4324_v33 = vsel %vm4323_vm10, %v5307_v60, %v4320_v29  ;;  %v4332_v25 = vmul.f32 %v5311_v35, %v8513_v5  ;;  %5312 = vpow2.f32 %v4884_v32  ;;  %v3754_v8 = vpop.f32.mrf.mxu1  ;;  %v3146_v3 = vpop.f32.mrf.mxu2 }
 0x495   : > { %v4329_v34 = vsel %vm4326_vm12, %v4328_v63, %v4324_v33  ;;  %5314 = vrcp.f32 %v8530_v22  ;;  %vm4337_vm14 = vweird.f32 %v5311_v35  ;;  %v4355_v19 = vand.u32 2147483647, %v8530_v22 }
 0x496   : > { %v4460_v9 = vmul.f32 %v4329_v34, %v8474_v1  ;;  %v4333_v26 = vsub.f32 1.0, %v4332_v25  ;;  %v3788_v14 = vadd.f32 %v3748_v36, %v3563_v51  ;;  %v3178_v1 = vadd.f32 %v3141_v20, %v2787_v59  ;;  %vm4338_vm15 = vmor %vm4336_vm11, %vm4337_vm14  ;;  %v5379_v36 = vld [vmem:[%s5961_s19 + $0xc8] sm:$0xff]  ;;  %v9247_v25 = vld [vmem:[#allocation63_spill] sm:$0xff] }
 0x497   : > { %v4357_v24 = vand.u32 2147483648, %v8530_v22  ;;  %vm4351_vm3 = vweird.f32 %v8530_v22  ;;  %vm4356_vm5 = vcmp.eq.f32.partialorder %v4355_v19, 8.507059e+37  ;;  %v3147_v45 = vadd.f32 %v3146_v3, %v9247_v25 }
 0x498   : > { %v4492_v10 = vadd.f32 %v5378_v49, %v4460_v9  ;;  %v4334_v4 = vmul.f32 %v5311_v35, %v4333_v26  ;;  %v8542_v30 = vadd.f32 %v8305_v2, %v3788_v14  ;;  %v3532_v26 = vpop.f32.mrf.mxu0  ;;  %v9248_v14 = vld [vmem:[#allocation44_spill] sm:$0xff] }
 0x499   : > { %v3413_v42 = vpop.f32.mrf.mxu3  ;;  %v2793_v6 = vadd.f32 %v9249_v56, %v9248_v14 }
 0x49a   : > { %v3527_v11 = vadd.f32 %v3526_v23, %v3413_v42  ;;  %v5313_v61 = vpop.eup %5312  ;;  %4524 = vst [vmem:[%s7967_s16 + $0xc0] sm:$0xff] %v4492_v10  ;;  %v4335_v62 = vadd.f32 %v5311_v35, %v4334_v4  ;;  %v4885_v27 = vmul.f32 -1.442695, %v8542_v30 }
 0x49b   : > { %v5315_v37 = vpop.eup %5314  ;;  %v8547_v60 = vadd.f32 1.0, %v5313_v61 }
 0x49c   : > { %v3564_v15 = vadd.f32 %v3527_v11, %v3178_v1  ;;  %v4339_v0 = vsel %vm4338_vm15, %v5311_v35, %v4335_v62  ;;  %v4347_v18 = vmul.f32 %v5315_v37, %v8530_v22  ;;  %5316 = vpow2.f32 %v4885_v27 }
 0x49d   : > { %v4344_v46 = vsel %vm4341_vm13, %v4343_v41, %v4339_v0  ;;  %5318 = vrcp.f32 %v8547_v60  ;;  %vm4352_vm6 = vweird.f32 %v5315_v37  ;;  %v4358_v35 = vor.u32 1.1754944e-38, %v4357_v24  ;;  %v3757_v41 = vpop.f32.mrf.mxu1 }
 0x49e   : > { %v4461_v5 = vmul.f32 %v4344_v46, %v8491_v7  ;;  %v4348_v40 = vsub.f32 1.0, %v4347_v18  ;;  %v3789_v12 = vadd.f32 %v3751_v28, %v3564_v15  ;;  %vm4353_vm9 = vmor %vm4351_vm3, %vm4352_vm6  ;;  %v4370_v59 = vand.u32 2147483647, %v8547_v60 }
 0x49f   : > { %v4372_v54 = vand.u32 2147483648, %v8547_v60  ;;  %vm4366_vm1 = vweird.f32 %v8547_v60 }
 0x4a0   : > { %v4493_v31 = vadd.f32 %v5379_v36, %v4461_v5  ;;  %v4349_v39 = vmul.f32 %v5315_v37, %v4348_v40  ;;  %v8559_v21 = vadd.f32 %v8305_v2, %v3789_v12  ;;  %vm4371_vm8 = vcmp.eq.f32.partialorder %v4370_v59, 8.507059e+37  ;;  %v5381_v5 = vld [vmem:[%s5961_s19 + $0xd8] sm:$0xff] }
 0x4a1   : > { %v3416_v44 = vpop.f32.mrf.mxu3  ;;  %v4373_v62 = vor.u32 1.1754944e-38, %v4372_v54 }
 0x4a2   : > { %v3530_v7 = vadd.f32 %v3529_v50, %v3416_v44  ;;  %v5317_v43 = vpop.eup %5316  ;;  %4525 = vst [vmem:[%s7967_s16 + $0xc8] sm:$0xff] %v4493_v31  ;;  %v4350_v58 = vadd.f32 %v5315_v37, %v4349_v39  ;;  %v4886_v29 = vmul.f32 -1.442695, %v8559_v21 }
 0x4a3   : > { %v5319_v32 = vpop.eup %5318  ;;  %v3952_v63 = vadd.f32 1.0, %v5317_v43 }
 0x4a4   : > { %v3565_v51 = vadd.f32 %v3530_v7, %v3179_v38  ;;  %v4354_v23 = vsel %vm4353_vm9, %v5315_v37, %v4350_v58  ;;  %v4362_v33 = vmul.f32 %v5319_v32, %v8547_v60  ;;  %5320 = vpow2.f32 %v4886_v29 }
 0x4a5   : > { %v4359_v20 = vsel %vm4356_vm5, %v4358_v35, %v4354_v23  ;;  %5322 = vrcp.f32 %v3952_v63  ;;  %vm4367_vm2 = vweird.f32 %v5319_v32  ;;  %v4385_v55 = vand.u32 2147483647, %v3952_v63 }
 0x4a6   : > { %v4462_v34 = vmul.f32 %v4359_v20, %v8508_v17  ;;  %v4363_v22 = vsub.f32 1.0, %v4362_v33  ;;  %v3790_v9 = vadd.f32 %v3754_v8, %v3565_v51  ;;  %v3180_v17 = vadd.f32 %v3147_v45, %v2793_v6  ;;  %vm4368_vm7 = vmor %vm4366_vm1, %vm4367_vm2  ;;  %v5382_v8 = vld [vmem:[%s5961_s19 + $0xe0] sm:$0xff] }
 0x4a7   : > { %v4387_v46 = vand.u32 2147483648, %v3952_v63  ;;  %vm4381_vm4 = vweird.f32 %v3952_v63  ;;  %vm4386_vm12 = vcmp.eq.f32.partialorder %v4385_v55, 8.507059e+37 }
 0x4a8   : > { %v4494_v52 = vadd.f32 %v5380_v16, %v4462_v34  ;;  %v4364_v49 = vmul.f32 %v5319_v32, %v4363_v22  ;;  %v8573_v10 = vadd.f32 %v8305_v2, %v3790_v9  ;;  %v5383_v34 = vld [vmem:[%s5961_s19 + $0xe8] sm:$0xff] }
 0x4a9   : > { %v3419_v4 = vpop.f32.mrf.mxu3 }
 0x4aa   : > { %v3533_v42 = vadd.f32 %v3532_v26, %v3419_v4  ;;  %v5321_v1 = vpop.eup %5320  ;;  %4526 = vst [vmem:[%s7967_s16 + $0xd0] sm:$0xff] %v4494_v52  ;;  %v4365_v28 = vadd.f32 %v5319_v32, %v4364_v49  ;;  %v4887_v11 = vmul.f32 -1.442695, %v8573_v10  ;;  %v5384_v4 = vld [vmem:[%s5961_s19 + $0xf0] sm:$0xff] }
 0x4ab   : > { %v5323_v61 = vpop.eup %5322  ;;  %v3953_v27 = vadd.f32 1.0, %v5321_v1 }
 0x4ac   : > { %v3566_v37 = vadd.f32 %v3533_v42, %v3180_v17  ;;  %v4369_v15 = vsel %vm4368_vm7, %v5319_v32, %v4365_v28  ;;  %v4377_v0 = vmul.f32 %v5323_v61, %v3952_v63  ;;  %5324 = vpow2.f32 %v4887_v11 }
 0x4ad   : > { %v4374_v18 = vsel %vm4371_vm8, %v4373_v62, %v4369_v15  ;;  %5326 = vrcp.f32 %v3953_v27  ;;  %vm4382_vm0 = vweird.f32 %v5323_v61  ;;  %v4402_v7 = vand.u32 2147483648, %v3953_v27 }
 0x4ae   : > { %v4463_v50 = vmul.f32 %v4374_v18, %v8525_v57  ;;  %v4378_v47 = vsub.f32 1.0, %v4377_v0  ;;  %v3791_v60 = vadd.f32 %v3757_v41, %v3566_v37  ;;  %vm4383_vm10 = vmor %vm4381_vm4, %vm4382_vm0  ;;  %v4388_v57 = vor.u32 1.1754944e-38, %v4387_v46 }
 0x4af   : > { %v4400_v58 = vand.u32 2147483647, %v3953_v27  ;;  %vm4396_vm11 = vweird.f32 %v3953_v27  ;;  %v4403_v63 = vor.u32 1.1754944e-38, %v4402_v7 }
 0x4b0   : > { %v4495_v40 = vadd.f32 %v5381_v5, %v4463_v50  ;;  %v4379_v12 = vmul.f32 %v5323_v61, %v4378_v47  ;;  %v8581_v53 = vadd.f32 %v8305_v2, %v3791_v60 }
 0x4b1   : > { %vm4401_vm13 = vcmp.eq.f32.partialorder %v4400_v58, 8.507059e+37 }
 0x4b2   : > { %v5325_v13 = vpop.eup %5324  ;;  %4527 = vst [vmem:[%s7967_s16 + $0xd8] sm:$0xff] %v4495_v40  ;;  %v4380_v48 = vadd.f32 %v5323_v61, %v4379_v12  ;;  %v4888_v19 = vmul.f32 -1.442695, %v8581_v53 }
 0x4b3   : > { %v5327_v24 = vpop.eup %5326  ;;  %v3954_v36 = vadd.f32 1.0, %v5325_v13 }
 0x4b4   : > { %v4384_v31 = vsel %vm4383_vm10, %v5323_v61, %v4380_v48  ;;  %v4392_v39 = vmul.f32 %v5327_v24, %v3953_v27  ;;  %5328 = vpow2.f32 %v4888_v19  ;;  %vm4397_vm14 = vweird.f32 %v5327_v24  ;;  %v5385_v27 = vld [vmem:[%s5961_s19 + $0xf8] sm:$0xff] }
 0x4b5   : > { %v4389_v44 = vsel %vm4386_vm12, %v4388_v57, %v4384_v31  ;;  %5330 = vrcp.f32 %v3954_v36  ;;  %vm4398_vm15 = vmor %vm4396_vm11, %vm4397_vm14  ;;  %v4417_v20 = vand.u32 2147483648, %v3954_v36  ;;  %v4415_v26 = vand.u32 2147483647, %v3954_v36 }
 0x4b6   : > { %v4464_v2 = vmul.f32 %v4389_v44, %v8542_v30  ;;  %v4393_v38 = vsub.f32 1.0, %v4392_v39  ;;  %vm4411_vm3 = vweird.f32 %v3954_v36 }
 0x4b7   : > { %v4418_v6 = vor.u32 1.1754944e-38, %v4417_v20  ;;  %vm4416_vm5 = vcmp.eq.f32.partialorder %v4415_v26, 8.507059e+37 }
 0x4b8   : > { %v4496_v43 = vadd.f32 %v5382_v8, %v4464_v2  ;;  %v4394_v3 = vmul.f32 %v5327_v24, %v4393_v38 }
 0x4ba   : > { %v5329_v29 = vpop.eup %5328  ;;  %4528 = vst [vmem:[%s7967_s16 + $0xe0] sm:$0xff] %v4496_v43  ;;  %v4395_v32 = vadd.f32 %v5327_v24, %v4394_v3 }
 0x4bb   : > { %v5331_v35 = vpop.eup %5330  ;;  %v3955_v51 = vadd.f32 1.0, %v5329_v29 }
 0x4bc   : > { %v4399_v23 = vsel %vm4398_vm15, %v5327_v24, %v4395_v32  ;;  %v4407_v30 = vmul.f32 %v5331_v35, %v3954_v36  ;;  %vm4412_vm6 = vweird.f32 %v5331_v35 }
 0x4bd   : > { %v4404_v33 = vsel %vm4401_vm13, %v4403_v63, %v4399_v23  ;;  %5332 = vrcp.f32 %v3955_v51  ;;  %vm4413_vm9 = vmor %vm4411_vm3, %vm4412_vm6  ;;  %v4432_v49 = vand.u32 2147483648, %v3955_v51  ;;  %v4430_v1 = vand.u32 2147483647, %v3955_v51 }
 0x4be   : > { %v4465_v25 = vmul.f32 %v4404_v33, %v8559_v21  ;;  %v4408_v45 = vsub.f32 1.0, %v4407_v30  ;;  %vm4426_vm1 = vweird.f32 %v3955_v51 }
 0x4bf   : > { %vm4431_vm8 = vcmp.eq.f32.partialorder %v4430_v1, 8.507059e+37 }
 0x4c0   : > { %v4497_v22 = vadd.f32 %v5383_v34, %v4465_v25  ;;  %v4409_v9 = vmul.f32 %v5331_v35, %v4408_v45 }
 0x4c2   : > { %4529 = vst [vmem:[%s7967_s16 + $0xe8] sm:$0xff] %v4497_v22  ;;  %v4410_v14 = vadd.f32 %v5331_v35, %v4409_v9 }
 0x4c3   : > { %v5333_v56 = vpop.eup %5332 }
 0x4c4   : > { %v4414_v59 = vsel %vm4413_vm9, %v5331_v35, %v4410_v14  ;;  %v4422_v54 = vmul.f32 %v5333_v56, %v3955_v51  ;;  %vm4427_vm2 = vweird.f32 %v5333_v56 }
 0x4c5   : > { %v4419_v21 = vsel %vm4416_vm5, %v4418_v6, %v4414_v59  ;;  %vm4428_vm7 = vmor %vm4426_vm1, %vm4427_vm2 }
 0x4c6   : > { %v4466_v16 = vmul.f32 %v4419_v21, %v8573_v10  ;;  %v4423_v52 = vsub.f32 1.0, %v4422_v54  ;;  %v4433_v10 = vor.u32 1.1754944e-38, %v4432_v49 }
 0x4c8   : > { %v4498_v17 = vadd.f32 %v5384_v4, %v4466_v16  ;;  %v4424_v42 = vmul.f32 %v5333_v56, %v4423_v52 }
 0x4ca   : > { %4530 = vst [vmem:[%s7967_s16 + $0xf0] sm:$0xff] %v4498_v17  ;;  %v4425_v28 = vadd.f32 %v5333_v56, %v4424_v42 }
 0x4cc   : > { %v4429_v11 = vsel %vm4428_vm7, %v5333_v56, %v4425_v28 }
 0x4cd   : > { %v4434_v61 = vsel %vm4431_vm8, %v4433_v10, %v4429_v11 }
 0x4ce   : > { %v4467_v62 = vmul.f32 %v4434_v61, %v8581_v53 }
 0x4d0   : > { %v4499_v37 = vadd.f32 %v5385_v27, %v4467_v62 }
 0x4d2   : > { %4531 = vst [vmem:[%s7967_s16 + $0xf8] sm:$0xff] %v4499_v37 }
 0x4d3   : > { %5563 = shalt.err (!%p5560_p0)
}
 0x4d4   : > { %s5685_s22 = smov 128   ;;  %s5686_s19 = smov 8  }
 0x4d5   : > { %4944 = dma.vmem_to_hbm [thread:$0]  (%p9252_p4), %s4547_s13, 4096, %s4549_s20, %s4533_s11, %s5685_s22, %s5685_s22, %s5686_s19  }
 0x4d6 PF: > { %s4563_s16 = sand.u32 1, %s5658_s30   ;;  %p9253_p9 = scmp.ne.s32.totalorder %s8787_s10, 0 }
 0x4d7   : > { %p9254_p13 = scmp.ge.s32.totalorder %s5678_s12, 2  ;;  %s4564_s0 = scalar_lea.sflag [#allocation5], %s4563_s16 }
 0x4d9   : > { %p4964_p6 = pnand %p9254_p13, %p9253_p9 }
 0x4db   : > { %p4965_p8 = pneg %p4964_p6 }
 0x4dd   : > { %5629 = dma.done.wait (%p4965_p8), %s4564_s0, 4096  }
 0x4de   : > { %5631 = vsyncadd (%p4965_p8), %s4564_s0, 4294963200  ;;  %s27_s12 = sadd.s32 1, %s5678_s12   ;;  %s9255_s7 = sld [smem:[#allocation18_spill]] }
 0x4df   : > { %p24_p1 = scmp.ge.s32.totalorder %s27_s12, 4   ;;  %s9256_s17 = smov %s5853_s28 }
 0x4e0   : > { %s9257_s18 = smov %s5881_s27  ;;  %s9258_s10 = sld [smem:[#allocation20_spill]] }
 0x4e1   : > { %s9259_s11 = sld [smem:[#allocation22_spill]]  ;;  %s9260_s24 = smov %s5638_s25 }
 0x4e2   : > { %s9261_s25 = smov %s5642_s26  ;;  %s9262_s26 = smov %s5941_s5 }
 0x4e3   : > { %s9264_s28 = smov %s5654_s29  ;;  %s9265_s29 = smov %s9256_s17 }
 0x4e4   : > { %s9263_s27 = smov %s9255_s7  ;;  %s9266_s30 = smov %s5662_s8 }
 0x4e5   : > { %s9267_s8 = smov %s5666_s9  ;;  %s9268_s9 = smov %s9257_s18 }
 0x4e6   :  { %26 = sbr.rel (!%p24_p1) target bundleno = 21 (0x15), region = 141 }
 0x4eb   :  { %4570 = vsyncpa [#allocation4], 1 }
 0x4ec   :  { %4572 = vsyncpa [#allocation4 + $0x1], 1 }
 0x4ed   :  { %4573 = vsyncpa [#allocation7], 1 }
 0x4ee   :  { %4575 = vsyncpa [#allocation7 + $0x1], 1 }
 0x4ef   :  { %4576 = vsyncpa [#allocation10], 1 }
 0x4f0   :  { %4577 = vsyncpa [#allocation5], 1 }
 0x4f1   :  { %4579 = vsyncpa [#allocation5 + $0x1], 1 }

// kernel: tpu_custom_call.1
= control target key start
LH: loop header
LB: loop body
LE: loop exit
PB: predicated region body
PF: predicated region fallthrough
CT: control target
= control target key end

     0   :  { %s8654_s0 = inlined_call_operand.hbm [shape: f32[512,128], index: 0, kind: input, shape index: {}]   ;;  %s8655_s1 = inlined_call_operand.hbm [shape: f32[512,128], index: 1, kind: input, shape index: {}]   ;;  %s8656_s2 = inlined_call_operand.hbm [shape: f32[512,128], index: 2, kind: input, shape index: {}]   ;;  %s8657_s3 = inlined_call_operand.hbm [shape: f32[128,128], index: 3, kind: input, shape index: {}]   ;;  %s8658_s4 = inlined_call_operand.vmem [shape: f32[1,128], index: 4, kind: input, shape index: {}]   ;;  %s8659_s5 = inlined_call_operand.hbm [shape: f32[1152,128], index: 5, kind: input, shape index: {}]   ;;  %s8660_s6 = inlined_call_operand.vmem [shape: f32[1,128], index: 6, kind: input, shape index: {}]   ;;  %s8661_s7 = inlined_call_operand.hbm [shape: f32[512,128], index: 7, kind: output, shape index: {}]  }
   0x1   :  { %8760 = sst [smem:[#allocation132_spill]] %s8654_s0 }
   0x2   :  { %8761 = sst [smem:[#allocation133_spill]] %s8655_s1 }
   0x3   :  { %8762 = sst [smem:[#allocation134_spill]] %s8656_s2 }
   0x4   :  { %8763 = sst [smem:[#allocation135_spill]] %s8657_s3 }
   0x5   :  { %8764 = sst [smem:[#allocation136_spill]] %s8658_s4 }
   0x6   :  { %8765 = sst [smem:[#allocation137_spill]] %s8659_s5 }
   0x7   :  { %8766 = sst [smem:[#allocation138_spill]] %s8660_s6 }
   0x8   :  { %8767 = sst [smem:[#allocation139_spill]] %s8661_s7 }
   0x9   :  { %12 = vsyncpa [#allocation4], 0 }
   0xa   :  { %14 = vsyncpa [#allocation4 + $0x1], 0 }
   0xb   :  { %15 = vsyncpa [#allocation7], 0 }
   0xc   :  { %17 = vsyncpa [#allocation7 + $0x1], 0 }
   0xd   :  { %18 = vsyncpa [#allocation10], 0 }
   0xe   :  { %19 = vsyncpa [#allocation5], 0 }
   0xf   :  { %21 = vsyncpa [#allocation5 + $0x1], 0  ;;  %s5727_s24 = smov 0   ;;  %s5729_s25 = smov 0  }
  0x10   :  { %s5731_s26 = smov 0   ;;  %s5733_s27 = smov 0  }
  0x11   :  { %s5735_s28 = smov 0   ;;  %s5737_s29 = smov 0  }
  0x12   :  { %s5739_s30 = smov 0   ;;  %s5741_s8 = smov 0  }
  0x13   :  { %s5743_s9 = smov 0   ;;  %s5745_s10 = smov 0  }
  0x14   :  { %s5747_s11 = smov 0   ;;  %s5749_s12 = smov 0  }
  0x15 LB: > { %8768 = sst [smem:[#allocation18_spill]] %s5650_s28  ;;  %s5788_s13 = sadd.s32 4294967295, %s5678_s12   ;;  %s5678_s12 = sphi %s5749_s12, %s27_s12   ;;  %s5674_s11 = sphi %s5747_s11, %s9259_s11   ;;  %s5670_s10 = sphi %s5745_s10, %s9258_s10   ;;  %s5666_s9 = sphi %s5743_s9, %s9268_s9   ;;  %s5662_s8 = sphi %s5741_s8, %s9267_s8   ;;  %s5658_s30 = sphi %s5739_s30, %s9266_s30   ;;  %s5654_s29 = sphi %s5737_s29, %s9265_s29   ;;  %s5650_s28 = sphi %s5735_s28, %s9264_s28   ;;  %s5646_s27 = sphi %s5733_s27, %s9263_s27   ;;  %s5642_s26 = sphi %s5731_s26, %s9262_s26   ;;  %s5638_s25 = sphi %s5729_s25, %s9261_s25   ;;  %s5634_s24 = sphi %s5727_s24, %s9260_s24  }
  0x16   : > { %8769 = sst [smem:[#allocation19_spill]] %s5670_s10  ;;  %p4702_p0 = scmp.ge.s32.totalorder %s5678_s12, 1 }
  0x17   : > { %8770 = sst [smem:[#allocation20_spill]] %s5674_s11  ;;  %p8675_p1 = scmp.eq.s32.totalorder %s5788_s13, 0 }
  0x18   : > { %p260_p2 = scmp.lt.s32.totalorder %s5678_s12, 3  ;;  %s8771_s3 = sld [smem:[#allocation135_spill]] }
  0x19   : > { %s5680_s18 = smov [#allocation9]   ;;  %s8663_s21 = smov 128  }
  0x1a   : > { %p5796_p3 = pnand %p4702_p0, %p260_p2  ;;  %s273_s19 = sshll.u32 %s5680_s18, 4  ;;  %s274_s19 = int_to_ptr.vmem [resolvable:$true] %s273_s19 }
  0x1b   : > { %s8665_s22 = smov 8   ;;  %s39_s23 = sadd.s32 1, %s5674_s11 }
  0x1c   : > { %s8772_s17 = scalar_select %p5796_p3, 1, 0 }
  0x1d   : > { %p4946_p4 = pneg %p5796_p3  ;;  %p41_p7 = scmp.ge.s32.totalorder %s39_s23, 2 }
  0x1e   : > { %s271_s16 = sshll.u32 %s8771_s3, 4  ;;  %8773 = sst [smem:[#allocation21_spill]] %s8772_s17  ;;  %s272_s16 = int_to_ptr.hbm [resolvable:$true] %s271_s16 }
  0x1f   : > { %p5804_p5 = pnand %p4946_p4, %p8675_p1  ;;  %p56_p8 = scmp.eq.s32.totalorder %s5678_s12, 0 }
  0x20   : > { %s4696_s14 = sshll.u32 %s5674_s11, 4  ;;  %s86_s15 = sadd.s32 1, %s5654_s29 }
  0x21   : > { %4949 = dma.hbm_to_vmem [thread:$0]  (!%p5804_p5), %s272_s16, 2048, %s274_s19, [#allocation10], %s8663_s21, %s8663_s21, %s8665_s22  }
  0x22   : > { %s9270_s23 = smov (%p41_p7, %s39_s23), 0  ;;  %s4697_s18 = sadd.s32 4294967295, %s4696_s14 }
  0x23   : > { %8775 = sst [smem:[#allocation22_spill]] %s9270_s23  ;;  %p93_p9 = scmp.ne.s32.totalorder %s5654_s29, %s5650_s28 }
  0x24   : > { %s45_s3 = ssub.s32 %s5674_s11, %s9270_s23  ;;  %p75_p10 = scmp.gt.s32.totalorder %s4697_s18, 0 }
  0x25   : > { %p5824_p11 = scmp.eq.s32.totalorder %s45_s3, 0  ;;  %s4698_s16 = sshll.u32 %s9270_s23, 4 }
  0x26   : > { %s9272_s18 = smov (!%p75_p10, %s4697_s18), 0  ;;  %s4699_s19 = sadd.s32 4294967295, %s4698_s16 }
  0x27   : > { %p5831_p12 = por %p93_p9, %p56_p8  ;;  %p81_p13 = scmp.gt.s32.totalorder %s4699_s19, 0 }
  0x28   : > { %p99_p0 = scmp.ne.s32.totalorder %s5650_s28, %s5646_s27  ;;  %s5837_s22 = sadd.s32 16, %s4696_s14 }
  0x29   : > { %s5839_s3 = sadd.s32 16, %s4698_s16  ;;  %s9274_s19 = smov (!%p81_p13, %s4699_s19), 0 }
  0x2a   : > { %p5843_p2 = por %p99_p0, %p8675_p1  ;;  %p113_p4 = scmp.lt.s32.totalorder %s5837_s22, 31 }
  0x2b   : > { %s83_s10 = ssub.s32 %s9272_s18, %s9274_s19  ;;  %p4969_p10 = scmp.lt.s32.totalorder %s5678_s12, 2 }
  0x2c   : > { %s8778_s23 = scalar_select %p5843_p2, 1, 0 }
  0x2d   : > { %p84_p9 = scmp.eq.s32.totalorder %s83_s10, 0  ;;  %s330_s27 = sand.u32 1, %s5678_s12  }
  0x2e   : > { %8779 = sst [smem:[#allocation23_spill]] %s8778_s23  ;;  %s332_s14 = sand.u32 1, %s5654_s29  }
  0x2f   : > { %s5853_s28 = scalar_select %p84_p9, %s5654_s29, %s86_s15  }
  0x30   : > { %s4709_s16 = sshll.u32 %s332_s14, 4  ;;  %s4895_s6 = sshll.u32 %s9272_s18, 4 }
  0x31   : > { %s8780_s1 = sld [smem:[#allocation133_spill]]  ;;  %s334_s23 = scalar_lea.vmem [#allocation6], %s4709_s16 }
  0x32   : > { %s348_s19 = sshll.u32 %s334_s23, 4  ;;  %p4957_p13 = pnand %p4969_p10, %p5831_p12  ;;  %s349_s19 = int_to_ptr.vmem [resolvable:$true] %s348_s19 }
  0x33   : > { %s8781_s5 = sld [smem:[#allocation137_spill]]  ;;  %s5865_s17 = scalar_lea.sflag [#allocation7], %s330_s27 }
  0x34   : > { %s8782_s23 = smov 8   ;;  %s8783_s18 = smov 128  }
  0x35   : > { %s4695_s14 = sadd.s32 4294967294, %s5678_s12   ;;  %s48_s16 = sadd.s32 1, %s5666_s9 }
  0x36   : > { %s5881_s27 = scalar_select %p5824_p11, %s5666_s9, %s48_s16  }
  0x37   : > { %s345_s2 = scalar_lea.hbm %s8780_s1, %s4895_s6  ;;  %p55_p12 = scmp.ne.s32.totalorder %s5666_s9, %s5662_s8 }
  0x38   : > { %s346_s10 = sshll.u32 %s345_s2, 4  ;;  %s5683_s2 = smov [#allocation11]   ;;  %s347_s10 = int_to_ptr.hbm [resolvable:$true] %s346_s10 }
  0x39   : > { %s288_s6 = sshll.u32 %s8781_s5, 4  ;;  %s290_s21 = sshll.u32 %s5683_s2, 4  ;;  %s289_s6 = int_to_ptr.hbm [resolvable:$true] %s288_s6  ;;  %s291_s21 = int_to_ptr.vmem [resolvable:$true] %s290_s21 }
  0x3a   : > { %4959 = dma.hbm_to_vmem [thread:$0]  (!%p4957_p13), %s347_s10, 256, %s349_s19, %s5865_s17, %s8783_s18, %s8783_s18, %s8782_s23  }
  0x3b   : > { %4952 = dma.hbm_to_vmem [thread:$0]  (!%p5804_p5), %s289_s6, 18432, %s291_s21, [#allocation10], %s8783_s18, %s8783_s18, %s8782_s23  }
  0x3c   : > { %p61_p0 = scmp.ne.s32.totalorder %s5662_s8, %s5658_s30  ;;  %p247_p9 = scmp.eq.s32.totalorder %s5788_s13, 1 }
  0x3d   : > { %p253_p13 = scmp.eq.s32.totalorder %s4695_s14, 1  ;;  %p5890_p6 = por %p56_p8, %p55_p12 }
  0x3e   : > { %p5896_p5 = por %p8675_p1, %p61_p0  ;;  %p5900_p11 = por %p247_p9, %p55_p12 }
  0x3f   : > { %p5904_p7 = por %p253_p13, %p61_p0  ;;  %s307_s15 = sand.u32 1, %s5666_s9  }
  0x40   : > { %s8786_s7 = scalar_select %p5900_p11, 1, 0 }
  0x41   : > { %s8787_s10 = scalar_select %p5904_p7, 1, 0 }
  0x42   : > { %s4894_s4 = sshll.u32 %s5674_s11, 8  ;;  %s4706_s6 = sshll.u32 %s307_s15, 8 }
  0x43   : > { %s8788_s0 = sld [smem:[#allocation132_spill]]  ;;  %s311_s1 = scalar_lea.vmem [#allocation3], %s4706_s6 }
  0x44   : > { %s320_s5 = sshll.u32 %s311_s1, 4  ;;  %p4954_p12 = pnand %p4969_p10, %p5890_p6  ;;  %s321_s5 = int_to_ptr.vmem [resolvable:$true] %s320_s5 }
  0x45   : > { %s308_s11 = scalar_lea.sflag [#allocation4], %s307_s15  ;;  %s9276_s22 = smov (!%p113_p4, %s5837_s22), 31 }
  0x46   : > { %p8789_p0 = scmp.lt.s32.totalorder %s5839_s3, 31  ;;  %p131_p9 = scmp.ne.s32.totalorder %s5642_s26, %s5638_s25 }
  0x47   : > { %p137_p13 = scmp.ne.s32.totalorder %s5638_s25, %s5634_s24  ;;  %p8790_p11 = scmp.eq.s32.totalorder %s5788_s13, 0 }
  0x48   : > { %s9278_s3 = smov (!%p8789_p0, %s5839_s3), 31  ;;  %p133_p7 = por %p131_p9, %p56_p8 }
  0x49   : > { %s317_s14 = scalar_lea.hbm %s8788_s0, %s4894_s4  ;;  %s124_s4 = sadd.s32 1, %s5642_s26 }
  0x4a   : > { %s318_s16 = sshll.u32 %s317_s14, 4  ;;  %s121_s6 = ssub.s32 %s9276_s22, %s9278_s3  ;;  %s319_s16 = int_to_ptr.hbm [resolvable:$true] %s318_s16 }
  0x4b   : > { %4956 = dma.hbm_to_vmem [thread:$0]  (!%p4954_p12), %s319_s16, 4096, %s321_s5, %s308_s11, %s8783_s18, %s8783_s18, %s8782_s23  }
  0x4c   : > { %p122_p1 = scmp.eq.s32.totalorder %s121_s6, 0  ;;  %p5935_p6 = por %p137_p13, %p8790_p11 }
  0x4d   : > { %s360_s19 = sand.u32 1, %s5642_s26   ;;  %s4896_s15 = sshll.u32 %s9276_s22, 4 }
  0x4e   : > { %s5941_s5 = scalar_select %p122_p1, %s5642_s26, %s124_s4  }
  0x4f   : > { %s4714_s11 = sshll.u32 %s360_s19, 4  ;;  %s8792_s14 = sld [smem:[#allocation134_spill]] }
  0x50   : > { %s362_s0 = scalar_lea.vmem [#allocation8], %s4714_s11  ;;  %p4960_p8 = pnand %p4969_p10, %p133_p7 }
  0x51   : > { %s376_s24 = sshll.u32 %s362_s0, 4  ;;  %s377_s24 = int_to_ptr.vmem [resolvable:$true] %s376_s24 }
  0x53   : > { %388 = sbr.rel (%p5796_p3) target bundleno = 1238 (0x4d6), region = 48 }
  0x55   : > { %s373_s16 = scalar_lea.hbm %s8792_s14, %s4896_s15 }
  0x56   : > { %s374_s3 = sshll.u32 %s373_s16, 4  ;;  %s375_s3 = int_to_ptr.hbm [resolvable:$true] %s374_s3 }
  0x57   : > { %4962 = dma.hbm_to_vmem [thread:$0]  (!%p4960_p8), %s375_s3, 256, %s377_s24, %s5865_s17, %s8783_s18, %s8783_s18, %s8782_s23  }
  0x58   : > { %s5955_s22 = sand.u32 1, %s5662_s8  }
  0x59   : > { %s4719_s4 = sshll.u32 %s5955_s22, 8  ;;  %s391_s0 = scalar_lea.sflag [#allocation4], %s5955_s22 }
  0x5a   : > { %s5961_s19 = scalar_lea.vmem [#allocation3], %s4719_s4 }
  0x5b   : > { %5613 = dma.done.wait (%p5896_p5), %s391_s0, 4096  }
  0x5c   : > { %5615 = vsyncadd (%p5896_p5), %s391_s0, 4294963200  ;;  %s400_s23 = sand.u32 1, %s5788_s13  }
  0x5d   : > { %s401_s18 = scalar_lea.sflag [#allocation7], %s400_s23 }
  0x5e   : > { %5617 = dma.done.wait (%p5843_p2), %s401_s18, 256  }
  0x5f   : > { %5619 = vsyncadd (%p5843_p2), %s401_s18, 4294967040 }
  0x60   : > { %5621 = dma.done.wait (%p5935_p6), %s401_s18, 256  }
  0x61   : > { %5623 = vsyncadd (%p5935_p6), %s401_s18, 4294967040  ;;  %p8795_p1 = scmp.eq.s32.totalorder %s5788_s13, 0 }
  0x63   : > { %5625 = dma.done.wait (%p8795_p1), [#allocation10], 20480   ;;  %p8796_p3 = pmov %p8795_p1 }
  0x64   : > { %v499_v0 = vld [vmem:[#allocation9 + $0x78] sm:$0xff]  ;;  %v498_v1 = vld [vmem:[#allocation9 + $0x70] sm:$0xff]  ;;  %v497_v2 = vld [vmem:[#allocation9 + $0x68] sm:$0xff]  ;;  %s8797_s1 = sld [smem:[#allocation136_spill]]  ;;  %s7967_s16 = scalar_lea.vmem [#allocation12], %s4719_s4 }
  0x65   : > { %5627 = vsyncadd (%p8796_p3), [#allocation10], 4294946816  ;;  %536 = vmatpush.msra.mxu0 %v499_v0  ;;  %4898 = vmatpush.msra.mxu2 %v499_v0  ;;  %v496_v3 = vld [vmem:[#allocation9 + $0x60] sm:$0xff]  ;;  %v495_v4 = vld [vmem:[#allocation9 + $0x58] sm:$0xff]  ;;  %s9187_s14 = sld [smem:[#allocation138_spill]]  ;;  %s4546_s13 = sshll.u32 %s7967_s16, 4  ;;  %s4547_s13 = int_to_ptr.vmem [resolvable:$true] %s4546_s13 }
  0x66   : > { %v494_v5 = vld [vmem:[#allocation9 + $0x50] sm:$0xff]  ;;  %v493_v6 = vld [vmem:[#allocation9 + $0x48] sm:$0xff]  ;;  %v492_v7 = vld [vmem:[#allocation9 + $0x40] sm:$0xff]  ;;  %s9250_s6 = sld [smem:[#allocation19_spill]]  ;;  %s4533_s11 = scalar_lea.sflag [#allocation5], %s5955_s22 }
  0x67   : > { %537 = vmatpush.msra.mxu0 %v498_v1  ;;  %4899 = vmatpush.msra.mxu2 %v498_v1  ;;  %v491_v8 = vld [vmem:[#allocation9 + $0x38] sm:$0xff]  ;;  %v490_v9 = vld [vmem:[#allocation9 + $0x30] sm:$0xff]  ;;  %v489_v10 = vld [vmem:[#allocation9 + $0x28] sm:$0xff]  ;;  %s9251_s23 = sld [smem:[#allocation139_spill]]  ;;  %p9252_p4 = scmp.ne.s32.totalorder %s8786_s7, 0 }
  0x68   : > { %v488_v11 = vld [vmem:[#allocation9 + $0x20] sm:$0xff]  ;;  %v487_v12 = vld [vmem:[#allocation9 + $0x18] sm:$0xff]  ;;  %v486_v13 = vld [vmem:[#allocation9 + $0x10] sm:$0xff] }
  0x69   : > { %538 = vmatpush.msra.mxu0 %v497_v2  ;;  %4900 = vmatpush.msra.mxu2 %v497_v2  ;;  %v485_v14 = vld [vmem:[#allocation9 + $0x8] sm:$0xff]  ;;  %v484_v15 = vld [vmem:[#allocation9] sm:$0xff]  ;;  %v503_v20 = vld [vmem:[%s5961_s19 + $0x10] sm:$0xff] }
  0x6a   : > { %v501_v16 = vld [vmem:[%s5961_s19] sm:$0xff]  ;;  %v502_v18 = vld [vmem:[%s5961_s19 + $0x8] sm:$0xff]  ;;  %v519_v21 = vld [vmem:[%s5961_s19 + $0x90] sm:$0xff] }
  0x6b   : > { %539 = vmatpush.msra.mxu0 %v496_v3  ;;  %4901 = vmatpush.msra.mxu2 %v496_v3  ;;  %v517_v17 = vld [vmem:[%s5961_s19 + $0x80] sm:$0xff]  ;;  %v518_v19 = vld [vmem:[%s5961_s19 + $0x88] sm:$0xff]  ;;  %v504_v22 = vld [vmem:[%s5961_s19 + $0x18] sm:$0xff] }
  0x6c   : > { %v520_v23 = vld [vmem:[%s5961_s19 + $0x98] sm:$0xff]  ;;  %v505_v24 = vld [vmem:[%s5961_s19 + $0x20] sm:$0xff]  ;;  %v506_v26 = vld [vmem:[%s5961_s19 + $0x28] sm:$0xff]  ;;  %s4897_s4 = sshll.u32 %s9250_s6, 8 }
  0x6d   : > { %540 = vmatpush.msra.mxu0 %v495_v4  ;;  %4902 = vmatpush.msra.mxu2 %v495_v4  ;;  %v521_v25 = vld [vmem:[%s5961_s19 + $0xa0] sm:$0xff]  ;;  %v522_v27 = vld [vmem:[%s5961_s19 + $0xa8] sm:$0xff]  ;;  %v507_v28 = vld [vmem:[%s5961_s19 + $0x30] sm:$0xff]  ;;  %s4545_s18 = scalar_lea.hbm %s9251_s23, %s4897_s4  ;;  %s5556_s24 = scalar_lea.hbm %s9251_s23, 512 }
  0x6e   : > { %v523_v29 = vld [vmem:[%s5961_s19 + $0xb0] sm:$0xff]  ;;  %v508_v30 = vld [vmem:[%s5961_s19 + $0x38] sm:$0xff]  ;;  %v509_v32 = vld [vmem:[%s5961_s19 + $0x40] sm:$0xff]  ;;  %s4548_s20 = sshll.u32 %s4545_s18, 4  ;;  %s4549_s20 = int_to_ptr.hbm [resolvable:$true] %s4548_s20 }
  0x6f   : > { %541 = vmatpush.msra.mxu0 %v494_v5  ;;  %4903 = vmatpush.msra.mxu2 %v494_v5  ;;  %v524_v31 = vld [vmem:[%s5961_s19 + $0xb8] sm:$0xff]  ;;  %v525_v33 = vld [vmem:[%s5961_s19 + $0xc0] sm:$0xff]  ;;  %v510_v34 = vld [vmem:[%s5961_s19 + $0x48] sm:$0xff]  ;;  %s5550_s15 = sshra.s32 %s4549_s20, 4  ;;  %s5551_s15 = int_to_ptr.hbm [resolvable:$true] %s5550_s15 }
  0x70   : > { %v526_v35 = vld [vmem:[%s5961_s19 + $0xc8] sm:$0xff]  ;;  %v511_v36 = vld [vmem:[%s5961_s19 + $0x50] sm:$0xff]  ;;  %v2148_v37 = vld [vmem:[#allocation11 + $0xf8] sm:$0xff]  ;;  %s5552_s2 = scalar_lea.hbm %s5551_s15, 256  ;;  %p5557_p5 = scmp.lt.s32.totalorder %s5551_s15, %s9251_s23 }
  0x71   : > { %542 = vmatpush.msra.mxu0 %v493_v6  ;;  %4904 = vmatpush.msra.mxu2 %v493_v6  ;;  %v527_v38 = vld [vmem:[%s5961_s19 + $0xd0] sm:$0xff]  ;;  %v2146_v40 = vld [vmem:[#allocation11 + $0xe8] sm:$0xff]  ;;  %v2145_v41 = vld [vmem:[#allocation11 + $0xe0] sm:$0xff]  ;;  %p5553_p2 = scmp.ne.s32.totalorder %s5551_s15, %s5552_s2  ;;  %p5558_p11 = scmp.lt.s32.totalorder %s5556_s24, %s5552_s2 }
  0x72   : > { %v2147_v39 = vld [vmem:[#allocation11 + $0xf0] sm:$0xff]  ;;  %v512_v42 = vld [vmem:[%s5961_s19 + $0x58] sm:$0xff]  ;;  %v2142_v45 = vld [vmem:[#allocation11 + $0xc8] sm:$0xff] }
  0x73   : > { %543 = vmatpush.msra.mxu0 %v492_v7  ;;  %4905 = vmatpush.msra.mxu2 %v492_v7  ;;  %v2144_v43 = vld [vmem:[#allocation11 + $0xd8] sm:$0xff]  ;;  %v2143_v44 = vld [vmem:[#allocation11 + $0xd0] sm:$0xff]  ;;  %v2141_v46 = vld [vmem:[#allocation11 + $0xc0] sm:$0xff]  ;;  %p5554_p7 = pnand %p5553_p2, %p9252_p4  ;;  %p5559_p12 = por %p5558_p11, %p5557_p5 }
  0x74   : > { %v513_v47 = vld [vmem:[%s5961_s19 + $0x60] sm:$0xff]  ;;  %v528_v48 = vld [vmem:[%s5961_s19 + $0xd8] sm:$0xff]  ;;  %v2325_v51 = vld [vmem:[#allocation11 + $0x170] sm:$0xff] }
  0x75   : > { %544 = vmatpush.msra.mxu0 %v491_v8  ;;  %4906 = vmatpush.msra.mxu2 %v491_v8  ;;  %v2326_v49 = vld [vmem:[#allocation11 + $0x178] sm:$0xff]  ;;  %v2139_v52 = vld [vmem:[#allocation11 + $0xb0] sm:$0xff]  ;;  %v2324_v53 = vld [vmem:[#allocation11 + $0x168] sm:$0xff]  ;;  %p5555_p10 = pneg %p5554_p7 }
  0x76   : > { %v2140_v50 = vld [vmem:[#allocation11 + $0xb8] sm:$0xff]  ;;  %2343 = vmatpush.msra.mxu1 %v2326_v49  ;;  %4914 = vmatpush.msra.mxu3 %v2326_v49  ;;  %v2138_v54 = vld [vmem:[#allocation11 + $0xa8] sm:$0xff]  ;;  %v2323_v55 = vld [vmem:[#allocation11 + $0x160] sm:$0xff] }
  0x77   : > { %545 = vmatpush.msra.mxu0 %v490_v9  ;;  %4907 = vmatpush.msra.mxu2 %v490_v9  ;;  %v514_v56 = vld [vmem:[%s5961_s19 + $0x68] sm:$0xff]  ;;  %v529_v57 = vld [vmem:[%s5961_s19 + $0xe0] sm:$0xff]  ;;  %v2322_v59 = vld [vmem:[#allocation11 + $0x158] sm:$0xff]  ;;  %p5560_p0 = pnand %p5559_p12, %p5555_p10 }
  0x78   : > { %2344 = vmatpush.msra.mxu1 %v2325_v51  ;;  %4915 = vmatpush.msra.mxu3 %v2325_v51  ;;  %v2137_v58 = vld [vmem:[#allocation11 + $0xa0] sm:$0xff]  ;;  %v2342_v60 = vld [vmem:[#allocation11 + $0x1f8] sm:$0xff]  ;;  %v2321_v62 = vld [vmem:[#allocation11 + $0x150] sm:$0xff]  ;;  %v1476_v51 = vlaneseq }
  0x79   : > { %546 = vmatpush.msra.mxu0 %v489_v10  ;;  %4908 = vmatpush.msra.mxu2 %v489_v10  ;;  %v2136_v61 = vld [vmem:[#allocation11 + $0x98] sm:$0xff]  ;;  %v2341_v63 = vld [vmem:[#allocation11 + $0x1f0] sm:$0xff]  ;;  %v2320_v1 = vld [vmem:[#allocation11 + $0x148] sm:$0xff] }
  0x7a   : > { %2345 = vmatpush.msra.mxu1 %v2324_v53  ;;  %4916 = vmatpush.msra.mxu3 %v2324_v53  ;;  %v2135_v0 = vld [vmem:[#allocation11 + $0x90] sm:$0xff]  ;;  %v2340_v2 = vld [vmem:[#allocation11 + $0x1e8] sm:$0xff]  ;;  %v2319_v5 = vld [vmem:[#allocation11 + $0x140] sm:$0xff] }
  0x7b   : > { %547 = vmatpush.msra.mxu0 %v488_v11  ;;  %4909 = vmatpush.msra.mxu2 %v488_v11  ;;  %v2134_v3 = vld [vmem:[#allocation11 + $0x88] sm:$0xff]  ;;  %v515_v4 = vld [vmem:[%s5961_s19 + $0x70] sm:$0xff]  ;;  %v2339_v6 = vld [vmem:[#allocation11 + $0x1e0] sm:$0xff]  ;;  %v5684_v11 = vmov 0.0  }
  0x7c   : > { %2346 = vmatpush.msra.mxu1 %v2323_v55  ;;  %4917 = vmatpush.msra.mxu3 %v2323_v55  ;;  %v530_v7 = vld [vmem:[%s5961_s19 + $0xe8] sm:$0xff]  ;;  %v2133_v8 = vld [vmem:[#allocation11 + $0x80] sm:$0xff]  ;;  %v2318_v9 = vld [vmem:[#allocation11 + $0x138] sm:$0xff]  ;;  %1398 = vst [vmem:[#allocation2 + $0x8] sm:$0xff] %v5684_v11 }
  0x7d   : > { %548 = vmatpush.msra.mxu0 %v487_v12  ;;  %4910 = vmatpush.msra.mxu2 %v487_v12  ;;  %v2338_v10 = vld [vmem:[#allocation11 + $0x1d8] sm:$0xff]  ;;  %1321 = vst [vmem:[#allocation2] sm:$0xff] %v5684_v11  ;;  %v2317_v12 = vld [vmem:[#allocation11 + $0x130] sm:$0xff] }
  0x7e   : > { %2347 = vmatpush.msra.mxu1 %v2322_v59  ;;  %4918 = vmatpush.msra.mxu3 %v2322_v59  ;;  %1322 = vst [vmem:[#allocation2 + $0x128] sm:$0xff] %v5684_v11 }
  0x7f   : > { %549 = vmatpush.msra.mxu0 %v486_v13  ;;  %4911 = vmatpush.msra.mxu2 %v486_v13  ;;  %v2337_v13 = vld [vmem:[#allocation11 + $0x1d0] sm:$0xff]  ;;  %1399 = vst [vmem:[#allocation2 + $0x10] sm:$0xff] %v5684_v11 }
  0x80   : > { %2348 = vmatpush.msra.mxu1 %v2321_v62  ;;  %4919 = vmatpush.msra.mxu3 %v2321_v62  ;;  %1474 = vst [vmem:[#allocation2 + $0x118] sm:$0xff] %v5684_v11 }
  0x81   : > { %550 = vmatpush.msra.mxu0 %v485_v14  ;;  %4912 = vmatpush.msra.mxu2 %v485_v14  ;;  %v2316_v14 = vld [vmem:[#allocation11 + $0x128] sm:$0xff]  ;;  %1475 = vst [vmem:[#allocation2 + $0x120] sm:$0xff] %v5684_v11 }
  0x82   : > { %2349 = vmatpush.msra.mxu1 %v2320_v1  ;;  %4920 = vmatpush.msra.mxu3 %v2320_v1 }
  0x83   : > { %551 = vmatpush.msra.mxu0 %v484_v15  ;;  %4913 = vmatpush.msra.mxu2 %v484_v15  ;;  %v2336_v15 = vld [vmem:[#allocation11 + $0x1c8] sm:$0xff] }
  0x84   : > { %552 = vmatmul.f32.vlgmr.msra.gmra.mxu0 %v501_v16  ;;  %600 = vmatmul.f32.vlgmr.msra.gmra.mxu2 %v517_v17  ;;  %v516_v16 = vld [vmem:[%s5961_s19 + $0x78] sm:$0xff]  ;;  %v2315_v17 = vld [vmem:[#allocation11 + $0x120] sm:$0xff] }
  0x85   : > { %2682 = vmatpush.msrb.mxu0 %v2148_v37  ;;  %2456 = vmatpush.msrb.mxu2 %v2342_v60 }
  0x86   : > { %2350 = vmatpush.msra.mxu1 %v2319_v5  ;;  %4921 = vmatpush.msra.mxu3 %v2319_v5 }
  0x87   : > { %2683 = vmatpush.msrb.mxu0 %v2147_v39  ;;  %2457 = vmatpush.msrb.mxu2 %v2341_v63 }
  0x88   : > { %2351 = vmatpush.msra.mxu1 %v2318_v9  ;;  %4922 = vmatpush.msra.mxu3 %v2318_v9 }
  0x89   : > { %2684 = vmatpush.msrb.mxu0 %v2146_v40  ;;  %2458 = vmatpush.msrb.mxu2 %v2340_v2 }
  0x8a   : > { %2352 = vmatpush.msra.mxu1 %v2317_v12  ;;  %4923 = vmatpush.msra.mxu3 %v2317_v12 }
  0x8b   : > { %2685 = vmatpush.msrb.mxu0 %v2145_v41  ;;  %2459 = vmatpush.msrb.mxu2 %v2339_v6 }
  0x8c   : > { %555 = vmatmul.f32.gmra.mxu0 %v502_v18  ;;  %603 = vmatmul.f32.gmra.mxu2 %v518_v19  ;;  %v2335_v18 = vld [vmem:[#allocation11 + $0x1c0] sm:$0xff]  ;;  %v531_v19 = vld [vmem:[%s5961_s19 + $0xf0] sm:$0xff] }
  0x8d   : > { %2686 = vmatpush.msrb.mxu0 %v2144_v43  ;;  %2460 = vmatpush.msrb.mxu2 %v2338_v10 }
  0x8e   : > { %2353 = vmatpush.msra.mxu1 %v2316_v14  ;;  %4924 = vmatpush.msra.mxu3 %v2316_v14 }
  0x8f   : > { %2687 = vmatpush.msrb.mxu0 %v2143_v44  ;;  %2461 = vmatpush.msrb.mxu2 %v2337_v13 }
  0x90   : > { %2354 = vmatpush.msra.mxu1 %v2315_v17  ;;  %4925 = vmatpush.msra.mxu3 %v2315_v17 }
  0x91   : > { %2688 = vmatpush.msrb.mxu0 %v2142_v45  ;;  %2462 = vmatpush.msrb.mxu2 %v2336_v15 }
  0x93   : > { %2689 = vmatpush.msrb.mxu0 %v2141_v46  ;;  %2463 = vmatpush.msrb.mxu2 %v2335_v18 }
  0x94   : > { %558 = vmatmul.f32.gmra.mxu0 %v503_v20  ;;  %606 = vmatmul.f32.gmra.mxu2 %v519_v21  ;;  %v2314_v20 = vld [vmem:[#allocation11 + $0x118] sm:$0xff] }
  0x95   : > { %2690 = vmatpush.msrb.mxu0 %v2140_v50  ;;  %v2334_v21 = vld [vmem:[#allocation11 + $0x1b8] sm:$0xff]  ;;  %2355 = vmatpush.msra.mxu1 %v2314_v20 }
  0x96   : > { %2464 = vmatpush.msrb.mxu2 %v2334_v21  ;;  %4926 = vmatpush.msra.mxu3 %v2314_v20 }
  0x97   : > { %2691 = vmatpush.msrb.mxu0 %v2139_v52 }
  0x99   : > { %2692 = vmatpush.msrb.mxu0 %v2138_v54 }
  0x9b   : > { %2693 = vmatpush.msrb.mxu0 %v2137_v58  ;;  %v6042_v58 = vshrl.u32 %v1476_v51, 7 }
  0x9c   : > { %561 = vmatmul.f32.gmra.mxu0 %v504_v22  ;;  %609 = vmatmul.f32.gmra.mxu2 %v520_v23  ;;  %v2313_v22 = vld [vmem:[#allocation11 + $0x110] sm:$0xff] }
  0x9d   : > { %2694 = vmatpush.msrb.mxu0 %v2136_v61  ;;  %v2333_v23 = vld [vmem:[#allocation11 + $0x1b0] sm:$0xff]  ;;  %2356 = vmatpush.msra.mxu1 %v2313_v22  ;;  %v1513_v14 = vand.u32 15, %v6042_v58 }
  0x9e   : > { %2465 = vmatpush.msrb.mxu2 %v2333_v23  ;;  %4927 = vmatpush.msra.mxu3 %v2313_v22 }
  0x9f   : > { %2695 = vmatpush.msrb.mxu0 %v2135_v0  ;;  %vm6065_vm9 = vcmp.ne.s32.totalorder %v1513_v14, 0 }
  0xa1   : > { %2696 = vmatpush.msrb.mxu0 %v2134_v3 }
  0xa3   : > { %2697 = vmatpush.msrb.mxu0 %v2133_v8 }
  0xa4   : > { %564 = vmatmul.f32.gmra.mxu0 %v505_v24  ;;  %612 = vmatmul.f32.gmra.mxu2 %v521_v25  ;;  %v6020_v24 = vld [vmem:[%s8797_s1] ss:$0 sm:$0xff]  ;;  %v2312_v25 = vld [vmem:[#allocation11 + $0x108] sm:$0xff] }
  0xa5   : > { %2357 = vmatpush.msra.mxu1 %v2312_v25  ;;  %4928 = vmatpush.msra.mxu3 %v2312_v25 }
  0xac   : > { %567 = vmatmul.f32.gmra.mxu0 %v506_v26  ;;  %615 = vmatmul.f32.gmra.mxu2 %v522_v27  ;;  %v2332_v26 = vld [vmem:[#allocation11 + $0x1a8] sm:$0xff] }
  0xad   : > { %2466 = vmatpush.msrb.mxu2 %v2332_v26  ;;  %v8800_v26 = vmov 0 }
  0xae   : > { %v8801_v26 = vsel %vm6065_vm9, 4294967295, %v8800_v26 }
  0xaf   : > { %8802 = vst [vmem:[#allocation24_spill] sm:$0xff] %v8801_v26 }
  0xb4   : > { %570 = vmatmul.f32.gmra.mxu0 %v507_v28  ;;  %618 = vmatmul.f32.gmra.mxu2 %v523_v29  ;;  %v2311_v28 = vld [vmem:[#allocation11 + $0x100] sm:$0xff] }
  0xb5   : > { %v2331_v29 = vld [vmem:[#allocation11 + $0x1a0] sm:$0xff]  ;;  %2358 = vmatpush.msra.mxu1 %v2311_v28  ;;  %4929 = vmatpush.msra.mxu3 %v2311_v28 }
  0xb6   : > { %2467 = vmatpush.msrb.mxu2 %v2331_v29 }
  0xbc   : > { %573 = vmatmul.f32.gmra.mxu0 %v508_v30  ;;  %621 = vmatmul.f32.gmra.mxu2 %v524_v31  ;;  %v532_v31 = vld [vmem:[%s5961_s19 + $0xf8] sm:$0xff] }
  0xc4   : > { %576 = vmatmul.f32.gmra.mxu0 %v509_v32  ;;  %624 = vmatmul.f32.gmra.mxu2 %v525_v33  ;;  %v2149_v32 = vld [vmem:[#allocation2 + $0x9] sm:$0xff] }
  0xc5   : > { %v2330_v33 = vld [vmem:[#allocation11 + $0x198] sm:$0xff]  ;;  %2359 = vmatmul.f32.vlgmr.msra.gmra.mxu1 %v2149_v32 }
  0xc6   : > { %2468 = vmatpush.msrb.mxu2 %v2330_v33 }
  0xcc   : > { %579 = vmatmul.f32.gmra.mxu0 %v510_v34  ;;  %627 = vmatmul.f32.gmra.mxu2 %v526_v35  ;;  %v2329_v35 = vld [vmem:[#allocation11 + $0x190] sm:$0xff] }
  0xcd   : > { %2469 = vmatpush.msrb.mxu2 %v2329_v35 }
  0xd4   : > { %582 = vmatmul.f32.gmra.mxu0 %v511_v36  ;;  %630 = vmatmul.f32.gmra.mxu2 %v527_v38  ;;  %v2328_v36 = vld [vmem:[#allocation11 + $0x188] sm:$0xff]  ;;  %v2327_v38 = vld [vmem:[#allocation11 + $0x180] sm:$0xff] }
  0xd5   : > { %2470 = vmatpush.msrb.mxu2 %v2328_v36 }
  0xd7   : > { %2471 = vmatpush.msrb.mxu2 %v2327_v38 }
  0xdc   : > { %585 = vmatmul.f32.gmra.mxu0 %v512_v42  ;;  %633 = vmatmul.f32.gmra.mxu2 %v528_v48 }
  0xe4   : > { %588 = vmatmul.f32.gmra.mxu0 %v513_v47  ;;  %636 = vmatmul.f32.gmra.mxu2 %v529_v57 }
  0xec   : > { %591 = vmatmul.f32.gmra.mxu0 %v514_v56  ;;  %639 = vmatmul.f32.gmra.mxu2 %v530_v7 }
  0xf4   : > { %594 = vmatmul.f32.gmra.mxu0 %v515_v4  ;;  %642 = vmatmul.f32.gmra.mxu2 %v531_v19  ;;  %v1478_v4 = vadd.s32 8, %v6042_v58 }
  0xf6   : > { %v1520_v13 = vand.u32 15, %v1478_v4 }
  0xf8   : > { %vm6061_vm8 = vcmp.ne.s32.totalorder %v1520_v13, 15 }
  0xfc   : > { %597 = vmatmul.f32.gmra.mxu0 %v516_v16  ;;  %645 = vmatmul.f32.gmra.mxu2 %v532_v31 }
 0x101   : > { %v553_v27 = vpop.f32.mrf.mxu0 }
 0x102   : > { %v6023_v30 = vadd.f32 %v6020_v24, %v553_v27 }
 0x104   : > { %v4725_v34 = vmul.f32 -1.442695, %v6023_v30  ;;  %2698 = vmatmul.f32.vlgmr.msrb.gmra.mxu0 %v5684_v11 }
 0x106   : > { %5078 = vpow2.f32 %v4725_v34 }
 0x107   : > { %v6037_v49 = vpop.f32.mrf.mxu2 }
 0x109   : > { %v556_v37 = vpop.f32.mrf.mxu0 }
 0x10a   : > { %v6029_v39 = vadd.f32 %v6020_v24, %v556_v37  ;;  %v6083_v37 = vadd.f32 %v6020_v24, %v6037_v49 }
 0x10c   : > { %v5079_v40 = vpop.eup %5078  ;;  %v4726_v41 = vmul.f32 -1.442695, %v6029_v39  ;;  %2701 = vmatmul.f32.gmra.mxu0 %v5684_v11 }
 0x10d   : > { %v745_v42 = vadd.f32 1.0, %v5079_v40 }
 0x10e   : > { %5080 = vpow2.f32 %v4726_v41  ;;  %v1480_v41 = vadd.s32 24, %v6042_v58 }
 0x10f   : > { %5082 = vrcp.f32 %v745_v42  ;;  %v788_v53 = vand.u32 2147483648, %v745_v42  ;;  %v786_v56 = vand.u32 2147483647, %v745_v42  ;;  %vm782_vm1 = vweird.f32 %v745_v42  ;;  %v6049_v5 = vpop.f32.mrf.mxu2 }
 0x111   : > { %v559_v43 = vpop.f32.mrf.mxu0  ;;  %v789_v63 = vor.u32 1.1754944e-38, %v788_v53  ;;  %vm787_vm3 = vcmp.eq.f32.partialorder %v786_v56, 8.507059e+37  ;;  %v1534_v53 = vand.u32 15, %v1480_v41 }
 0x112   : > { %v6034_v44 = vadd.f32 %v6020_v24, %v559_v43 }
 0x114   : > { %v5081_v45 = vpop.eup %5080  ;;  %v4727_v46 = vmul.f32 -1.442695, %v6034_v44 }
 0x115   : > { %v5083_v47 = vpop.eup %5082  ;;  %v746_v48 = vadd.f32 1.0, %v5081_v45 }
 0x116   : > { %v778_v50 = vmul.f32 %v5083_v47, %v745_v42  ;;  %5084 = vpow2.f32 %v4727_v46  ;;  %vm783_vm0 = vweird.f32 %v5083_v47  ;;  %v4741_v46 = vmul.f32 -1.442695, %v6083_v37 }
 0x117   : > { %5086 = vrcp.f32 %v746_v48  ;;  %vm784_vm2 = vmor %vm782_vm1, %vm783_vm0  ;;  %v803_v8 = vand.u32 2147483648, %v746_v48  ;;  %v801_v11 = vand.u32 2147483647, %v746_v48  ;;  %vm797_vm5 = vweird.f32 %v746_v48  ;;  %v6071_v33 = vpop.f32.mrf.mxu2 }
 0x118   : > { %v779_v52 = vsub.f32 1.0, %v778_v50  ;;  %vm6108_vm0 = vcmp.ne.s32.totalorder %v1534_v53, 15 }
 0x119   : > { %v562_v54 = vpop.f32.mrf.mxu0  ;;  %v804_v19 = vor.u32 1.1754944e-38, %v803_v8  ;;  %vm802_vm7 = vcmp.eq.f32.partialorder %v801_v11, 8.507059e+37 }
 0x11a   : > { %v780_v55 = vmul.f32 %v5083_v47, %v779_v52  ;;  %v6040_v57 = vadd.f32 %v6020_v24, %v562_v54 }
 0x11c   : > { %v5085_v59 = vpop.eup %5084  ;;  %v781_v60 = vadd.f32 %v5083_v47, %v780_v55  ;;  %v4728_v61 = vmul.f32 -1.442695, %v6040_v57 }
 0x11d   : > { %v5087_v62 = vpop.eup %5086  ;;  %v6045_v0 = vadd.f32 1.0, %v5085_v59 }
 0x11e   : > { %v785_v1 = vsel %vm784_vm2, %v5083_v47, %v781_v60  ;;  %v793_v2 = vmul.f32 %v5087_v62, %v746_v48  ;;  %5088 = vpow2.f32 %v4728_v61  ;;  %vm798_vm4 = vweird.f32 %v5087_v62 }
 0x11f   : > { %v790_v3 = vsel %vm787_vm3, %v789_v63, %v785_v1  ;;  %5090 = vrcp.f32 %v6045_v0  ;;  %vm799_vm6 = vmor %vm797_vm5, %vm798_vm4  ;;  %v818_v29 = vand.u32 2147483648, %v6045_v0  ;;  %v816_v35 = vand.u32 2147483647, %v6045_v0 }
 0x120   : > { %v1257_v6 = vmul.f32 %v790_v3, %v6023_v30  ;;  %v794_v7 = vsub.f32 1.0, %v793_v2  ;;  %vm812_vm11 = vweird.f32 %v6045_v0  ;;  %v1479_v47 = vadd.s32 16, %v6042_v58 }
 0x121   : > { %v565_v9 = vpop.f32.mrf.mxu0  ;;  %v819_v43 = vor.u32 1.1754944e-38, %v818_v29  ;;  %vm817_vm13 = vcmp.eq.f32.partialorder %v816_v35, 8.507059e+37 }
 0x122   : > { %1289 = vst [vmem:[#allocation2 + $0x18] sm:$0xff] %v1257_v6  ;;  %v795_v10 = vmul.f32 %v5087_v62, %v794_v7  ;;  %v6053_v12 = vadd.f32 %v6020_v24, %v565_v9  ;;  %2704 = vmatmul.f32.gmra.mxu0 %v1257_v6  ;;  %v1527_v60 = vand.u32 15, %v1479_v47  ;;  %v8805_v9 = vmov 0 }
 0x124   : > { %v5089_v15 = vpop.eup %5088  ;;  %v796_v16 = vadd.f32 %v5087_v62, %v795_v10  ;;  %v4729_v17 = vmul.f32 -1.442695, %v6053_v12  ;;  %vm6115_vm2 = vcmp.ne.s32.totalorder %v1527_v60, 0 }
 0x125   : > { %v5091_v18 = vpop.eup %5090  ;;  %v6057_v20 = vadd.f32 1.0, %v5089_v15  ;;  %v8806_v9 = vsel %vm6115_vm2, 4294967295, %v8805_v9  ;;  %v1482_v15 = vadd.s32 40, %v6042_v58 }
 0x126   : > { %v800_v21 = vsel %vm799_vm6, %v5087_v62, %v796_v16  ;;  %v808_v22 = vmul.f32 %v5091_v18, %v6045_v0  ;;  %5092 = vpow2.f32 %v4729_v17  ;;  %vm813_vm10 = vweird.f32 %v5091_v18  ;;  %v6104_v0 = vpop.f32.mrf.mxu2  ;;  %8807 = vst [vmem:[#allocation25_spill] sm:$0xff] %v8806_v9 }
 0x127   : > { %v805_v23 = vsel %vm802_vm7, %v804_v19, %v800_v21  ;;  %5094 = vrcp.f32 %v6057_v20  ;;  %vm814_vm12 = vmor %vm812_vm11, %vm813_vm10  ;;  %v833_v54 = vand.u32 2147483648, %v6057_v20  ;;  %v831_v62 = vand.u32 2147483647, %v6057_v20 }
 0x128   : > { %v1258_v27 = vmul.f32 %v805_v23, %v6029_v39  ;;  %v809_v28 = vsub.f32 1.0, %v808_v22  ;;  %vm827_vm15 = vweird.f32 %v6057_v20  ;;  %v1481_v16 = vadd.s32 32, %v6042_v58 }
 0x129   : > { %v568_v30 = vpop.f32.mrf.mxu0  ;;  %v2150_v31 = vld [vmem:[#allocation2 + $0x11] sm:$0xff]  ;;  %v834_v7 = vor.u32 1.1754944e-38, %v833_v54  ;;  %vm832_vm3 = vcmp.eq.f32.partialorder %v831_v62, 8.507059e+37 }
 0x12a   : > { %v1959_v32 = vld [vmem:[#allocation2 + $0x17] sm:$0xff]  ;;  %1290 = vst [vmem:[#allocation2 + $0x20] sm:$0xff] %v1258_v27  ;;  %v810_v34 = vmul.f32 %v5091_v18, %v809_v28  ;;  %v6075_v36 = vadd.f32 %v6020_v24, %v568_v30  ;;  %4761 = vmatmul.msk.f32.gmra.mxu1 %vm6061_vm8, %v2150_v31  ;;  %2707 = vmatmul.f32.gmra.mxu0 %v1258_v27  ;;  %v1548_v30 = vand.u32 15, %v1482_v15  ;;  %v1541_v31 = vand.u32 15, %v1481_v16 }
 0x12b   : > { %4777 = vmatmul.msk.f32.vlgmr.msrb.gmra.mxu2 %vm6065_vm9, %v1959_v32 }
 0x12c   : > { %v5093_v38 = vpop.eup %5092  ;;  %v811_v39 = vadd.f32 %v5091_v18, %v810_v34  ;;  %v4730_v40 = vmul.f32 -1.442695, %v6075_v36 }
 0x12d   : > { %v5095_v42 = vpop.eup %5094  ;;  %v6088_v45 = vadd.f32 1.0, %v5093_v38 }
 0x12e   : > { %v815_v48 = vsel %vm814_vm12, %v5091_v18, %v811_v39  ;;  %v823_v49 = vmul.f32 %v5095_v42, %v6057_v20  ;;  %5096 = vpow2.f32 %v4730_v40  ;;  %vm828_vm14 = vweird.f32 %v5095_v42 }
 0x12f   : > { %v820_v50 = vsel %vm817_vm13, %v819_v43, %v815_v48  ;;  %5098 = vrcp.f32 %v6088_v45  ;;  %vm829_vm1 = vmor %vm827_vm15, %vm828_vm14  ;;  %v846_v19 = vand.u32 2147483647, %v6088_v45  ;;  %v848_v21 = vand.u32 2147483648, %v6088_v45 }
 0x130   : > { %v1259_v51 = vmul.f32 %v820_v50, %v6034_v44  ;;  %v824_v52 = vsub.f32 1.0, %v823_v49  ;;  %5100 = vpow2.f32 %v4741_v46  ;;  %v6102_v44 = vadd.f32 %v6020_v24, %v6049_v5 }
 0x131   : > { %v571_v55 = vpop.f32.mrf.mxu0  ;;  %v2151_v56 = vld [vmem:[#allocation2 + $0x19] sm:$0xff]  ;;  %vm842_vm5 = vweird.f32 %v6088_v45  ;;  %vm847_vm6 = vcmp.eq.f32.partialorder %v846_v19, 8.507059e+37  ;;  %v849_v38 = vor.u32 1.1754944e-38, %v848_v21  ;;  %v6154_v50 = vadd.f32 %v6020_v24, %v6071_v33 }
 0x132   : > { %v1960_v59 = vld [vmem:[#allocation2 + $0x1f] sm:$0xff]  ;;  %1291 = vst [vmem:[#allocation2 + $0x28] sm:$0xff] %v1259_v51  ;;  %v825_v61 = vmul.f32 %v5095_v42, %v824_v52  ;;  %v6098_v63 = vadd.f32 %v6020_v24, %v571_v55  ;;  %2365 = vmatmul.f32.gmra.mxu1 %v2151_v56  ;;  %2710 = vmatmul.f32.gmra.mxu0 %v1259_v51  ;;  %v4742_v5 = vmul.f32 -1.442695, %v6102_v44  ;;  %vm6156_vm12 = vcmp.ne.s32.totalorder %v1548_v30, 15 }
 0x133   : > { %2475 = vmatmul.f32.gmra.mxu2 %v1960_v59  ;;  %v8810_v51 = vmov 0  ;;  %vm6160_vm13 = vcmp.ne.s32.totalorder %v1541_v31, 0  ;;  %v8812_v52 = vmov 0  ;;  %v2827_v9 = vld [vmem:[#allocation2 + $0x19] sm:$0xff] }
 0x134   : > { %v5097_v1 = vpop.eup %5096  ;;  %v826_v2 = vadd.f32 %v5095_v42, %v825_v61  ;;  %v4731_v3 = vmul.f32 -1.442695, %v6098_v63  ;;  %v8811_v51 = vsel %vm6156_vm12, 4294967295, %v8810_v51  ;;  %v8813_v52 = vsel %vm6160_vm13, 4294967295, %v8812_v52 }
 0x135   : > { %v5099_v6 = vpop.eup %5098  ;;  %v6112_v8 = vadd.f32 1.0, %v5097_v1  ;;  %8814 = vst [vmem:[#allocation26_spill] sm:$0xff] %v8813_v52 }
 0x136   : > { %v5101_v10 = vpop.eup %5100  ;;  %v830_v11 = vsel %vm829_vm1, %v5095_v42, %v826_v2  ;;  %v838_v13 = vmul.f32 %v5099_v6, %v6088_v45  ;;  %5102 = vpow2.f32 %v4731_v3  ;;  %vm843_vm4 = vweird.f32 %v5099_v6  ;;  %v6142_v42 = vpop.f32.mrf.mxu2 }
 0x137   : > { %v835_v14 = vsel %vm832_vm3, %v834_v7, %v830_v11  ;;  %5104 = vrcp.f32 %v6112_v8  ;;  %v6125_v20 = vadd.f32 1.0, %v5101_v10  ;;  %v861_v29 = vand.u32 2147483647, %v6112_v8  ;;  %vm844_vm7 = vmor %vm842_vm5, %vm843_vm4 }
 0x138   : > { %v1260_v17 = vmul.f32 %v835_v14, %v6040_v57  ;;  %v839_v18 = vsub.f32 1.0, %v838_v13  ;;  %5106 = vpow2.f32 %v4742_v5  ;;  %v863_v39 = vand.u32 2147483648, %v6112_v8 }
 0x139   : > { %v574_v22 = vpop.f32.mrf.mxu0  ;;  %v2152_v23 = vld [vmem:[#allocation2 + $0x21] sm:$0xff]  ;;  %5108 = vrcp.f32 %v6125_v20  ;;  %vm857_vm10 = vweird.f32 %v6112_v8  ;;  %vm6146_vm11 = vcmp.eq.f32.partialorder %v861_v29, 8.507059e+37  ;;  %v1026_v49 = vand.u32 2147483647, %v6125_v20 }
 0x13a   : > { %v1961_v27 = vld [vmem:[#allocation2 + $0x27] sm:$0xff]  ;;  %1292 = vst [vmem:[#allocation2 + $0x30] sm:$0xff] %v1260_v17  ;;  %v840_v28 = vmul.f32 %v5099_v6, %v839_v18  ;;  %4762 = vmatmul.msk.f32.gmra.mxu1 %vm6108_vm0, %v2152_v23  ;;  %v6135_v57 = vadd.f32 %v6020_v24, %v574_v22  ;;  %2713 = vmatmul.f32.gmra.mxu0 %v1260_v17  ;;  %v1028_v56 = vand.u32 2147483648, %v6125_v20  ;;  %v864_v60 = vor.u32 1.1754944e-38, %v863_v39 }
 0x13b   : > { %4778 = vmatmul.msk.f32.gmra.mxu2 %vm6115_vm2, %v1961_v27  ;;  %vm1022_vm15 = vweird.f32 %v6125_v20  ;;  %v4743_v7 = vmul.f32 -1.442695, %v6154_v50  ;;  %vm6174_vm3 = vcmp.eq.f32.partialorder %v1026_v49, 8.507059e+37 }
 0x13c   : > { %v5103_v32 = vpop.eup %5102  ;;  %v841_v34 = vadd.f32 %v5099_v6, %v840_v28  ;;  %v4732_v41 = vmul.f32 -1.442695, %v6135_v57  ;;  %v1029_v11 = vor.u32 1.1754944e-38, %v1028_v56  ;;  %v6203_v28 = vadd.f32 %v6020_v24, %v6104_v0 }
 0x13d   : > { %v5105_v35 = vpop.eup %5104  ;;  %v6139_v40 = vadd.f32 1.0, %v5103_v32 }
 0x13e   : > { %v845_v43 = vsel %vm844_vm7, %v5099_v6, %v841_v34  ;;  %v853_v46 = vmul.f32 %v5105_v35, %v6112_v8  ;;  %v5107_v45 = vpop.eup %5106  ;;  %vm858_vm14 = vweird.f32 %v5105_v35  ;;  %v6205_v29 = vpop.f32.mrf.mxu2  ;;  %v4744_v39 = vmul.f32 -1.442695, %v6203_v28 }
 0x13f   : > { %v850_v48 = vsel %vm847_vm6, %v849_v38, %v845_v43  ;;  %5110 = vrcp.f32 %v6139_v40  ;;  %v5109_v53 = vpop.eup %5108  ;;  %v6166_v59 = vadd.f32 1.0, %v5107_v45  ;;  %v878_v61 = vand.u32 2147483648, %v6139_v40  ;;  %vm859_vm4 = vmor %vm857_vm10, %vm858_vm14 }
 0x140   : > { %v1261_v54 = vmul.f32 %v850_v48, %v6053_v12  ;;  %v854_v55 = vsub.f32 1.0, %v853_v46  ;;  %v1018_v33 = vmul.f32 %v5109_v53, %v6125_v20  ;;  %5112 = vpow2.f32 %v4732_v41 }
 0x141   : > { %v577_v62 = vpop.f32.mrf.mxu0  ;;  %v2153_v1 = vld [vmem:[#allocation2 + $0x29] sm:$0xff]  ;;  %v876_v6 = vand.u32 2147483647, %v6139_v40  ;;  %5114 = vrcp.f32 %v6166_v59  ;;  %vm1023_vm1 = vweird.f32 %v5109_v53  ;;  %vm872_vm5 = vweird.f32 %v6139_v40 }
 0x142   : > { %v1962_v2 = vld [vmem:[#allocation2 + $0x2f] sm:$0xff]  ;;  %1293 = vst [vmem:[#allocation2 + $0x38] sm:$0xff] %v1261_v54  ;;  %v855_v3 = vmul.f32 %v5105_v35, %v854_v55  ;;  %2371 = vmatmul.f32.gmra.mxu1 %v2153_v1  ;;  %v1019_v12 = vsub.f32 1.0, %v1018_v33  ;;  %2716 = vmatmul.f32.gmra.mxu0 %v1261_v54  ;;  %v6179_v13 = vadd.f32 %v6020_v24, %v577_v62  ;;  %v879_v16 = vor.u32 1.1754944e-38, %v878_v61  ;;  %vm6187_vm6 = vmor %vm1022_vm15, %vm1023_vm1 }
 0x143   : > { %2481 = vmatmul.f32.gmra.mxu2 %v1962_v2  ;;  %5116 = vpow2.f32 %v4743_v7  ;;  %vm6192_vm7 = vcmp.eq.f32.partialorder %v876_v6, 8.507059e+37  ;;  %vm1037_vm10 = vweird.f32 %v6166_v59  ;;  %v1043_v20 = vand.u32 2147483648, %v6166_v59 }
 0x144   : > { %v856_v5 = vadd.f32 %v5105_v35, %v855_v3  ;;  %v1020_v15 = vmul.f32 %v5109_v53, %v1019_v12  ;;  %v4733_v8 = vmul.f32 -1.442695, %v6179_v13  ;;  %v1484_v46 = vadd.s32 56, %v6042_v58 }
 0x145   : > { %v5111_v14 = vpop.eup %5110  ;;  %v1044_v3 = vor.u32 1.1754944e-38, %v1043_v20  ;;  %v6318_v7 = vadd.f32 %v6020_v24, %v6205_v29 }
 0x146   : > { %v860_v17 = vsel %vm859_vm4, %v5105_v35, %v856_v5  ;;  %v868_v19 = vmul.f32 %v5111_v14, %v6139_v40  ;;  %v5113_v22 = vpop.eup %5112  ;;  %v1021_v27 = vadd.f32 %v5109_v53, %v1020_v15  ;;  %5118 = vpow2.f32 %v4733_v8 }
 0x147   : > { %v865_v23 = vsel %vm6146_vm11, %v864_v60, %v860_v17  ;;  %v5115_v30 = vpop.eup %5114  ;;  %v6208_v34 = vadd.f32 1.0, %v5113_v22  ;;  %vm873_vm11 = vweird.f32 %v5111_v14  ;;  %v1562_v61 = vand.u32 15, %v1484_v46 }
 0x148   : > { %v1262_v31 = vmul.f32 %v865_v23, %v6075_v36  ;;  %v869_v32 = vsub.f32 1.0, %v868_v19  ;;  %v1025_v35 = vsel %vm6187_vm6, %v5109_v53, %v1021_v27  ;;  %v1033_v38 = vmul.f32 %v5115_v30, %v6166_v59  ;;  %vm874_vm15 = vmor %vm872_vm5, %vm873_vm11 }
 0x149   : > { %v580_v41 = vpop.f32.mrf.mxu0  ;;  %v2154_v43 = vld [vmem:[#allocation2 + $0x31] sm:$0xff]  ;;  %v1030_v36 = vsel %vm6174_vm3, %v1029_v11, %v1025_v35  ;;  %5120 = vrcp.f32 %v6208_v34  ;;  %v5117_v45 = vpop.eup %5116  ;;  %vm1038_vm14 = vweird.f32 %v5115_v30  ;;  %v1041_v53 = vand.u32 2147483647, %v6166_v59 }
 0x14a   : > { %v1963_v0 = vld [vmem:[#allocation2 + $0x37] sm:$0xff]  ;;  %1294 = vst [vmem:[#allocation2 + $0x40] sm:$0xff] %v1262_v31  ;;  %v870_v47 = vmul.f32 %v5111_v14, %v869_v32  ;;  %4763 = vmatmul.msk.f32.gmra.mxu1 %vm6156_vm12, %v2154_v43  ;;  %v1273_v48 = vmul.f32 %v1030_v36, %v6083_v37  ;;  %v1034_v49 = vsub.f32 1.0, %v1033_v38  ;;  %2719 = vmatmul.f32.gmra.mxu0 %v1262_v31  ;;  %v6224_v55 = vadd.f32 1.0, %v5117_v45  ;;  %vm6237_vm1 = vmor %vm1037_vm10, %vm1038_vm14 }
 0x14b   : > { %4779 = vmatmul.msk.f32.gmra.mxu2 %vm6160_vm13, %v1963_v0  ;;  %5122 = vpow2.f32 %v4744_v39  ;;  %v6227_v56 = vadd.f32 %v6020_v24, %v580_v41  ;;  %v891_v37 = vand.u32 2147483647, %v6208_v34  ;;  %v893_v33 = vand.u32 2147483648, %v6208_v34 }
 0x14c   : > { %v871_v54 = vadd.f32 %v5111_v14, %v870_v47  ;;  %1305 = vst [vmem:[#allocation2 + $0x98] sm:$0xff] %v1273_v48  ;;  %v1035_v60 = vmul.f32 %v5115_v30, %v1034_v49  ;;  %v5119_v62 = vpop.eup %5118  ;;  %5124 = vrcp.f32 %v6224_v55  ;;  %v1483_v40 = vadd.s32 48, %v6042_v58 }
 0x14d   : > { %vm6245_vm3 = vcmp.eq.f32.partialorder %v1041_v53, 8.507059e+37  ;;  %v6249_v5 = vadd.f32 1.0, %v5119_v62  ;;  %vm887_vm4 = vweird.f32 %v6208_v34  ;;  %v4734_v11 = vmul.f32 -1.442695, %v6227_v56 }
 0x14e   : > { %v875_v1 = vsel %vm874_vm15, %v5111_v14, %v871_v54  ;;  %v1036_v12 = vadd.f32 %v5115_v30, %v1035_v60  ;;  %vm6257_vm5 = vcmp.eq.f32.partialorder %v891_v37, 8.507059e+37  ;;  %v894_v17 = vor.u32 1.1754944e-38, %v893_v33 }
 0x14f   : > { %v880_v6 = vsel %vm6192_vm7, %v879_v16, %v875_v1  ;;  %v5121_v59 = vpop.eup %5120  ;;  %vm6261_vm6 = vcmp.ne.s32.totalorder %v1562_v61, 15  ;;  %v8827_v8 = vmov 0  ;;  %v1056_v27 = vand.u32 2147483647, %v6224_v55 }
 0x150   : > { %v1263_v10 = vmul.f32 %v880_v6, %v6098_v63  ;;  %v1040_v14 = vsel %vm6237_vm1, %v5115_v30, %v1036_v12  ;;  %v883_v15 = vmul.f32 %v5121_v59, %v6208_v34  ;;  %v8828_v8 = vsel %vm6261_vm6, 4294967295, %v8827_v8  ;;  %v6265_v63 = vpop.f32.mrf.mxu2 }
 0x151   : > { %v583_v18 = vpop.f32.mrf.mxu0  ;;  %v2155_v19 = vld [vmem:[#allocation2 + $0x39] sm:$0xff]  ;;  %v5123_v22 = vpop.eup %5122  ;;  %v1045_v23 = vsel %vm6245_vm3, %v1044_v3, %v1040_v14  ;;  %v1058_v20 = vand.u32 2147483648, %v6224_v55  ;;  %5126 = vrcp.f32 %v6249_v5  ;;  %v1555_v35 = vand.u32 15, %v1483_v40 }
 0x152   : > { %v1964_v21 = vld [vmem:[#allocation2 + $0x3f] sm:$0xff]  ;;  %1295 = vst [vmem:[#allocation2 + $0x48] sm:$0xff] %v1263_v10  ;;  %2377 = vmatmul.f32.gmra.mxu1 %v2155_v19  ;;  %v1274_v30 = vmul.f32 %v1045_v23, %v6102_v44  ;;  %v884_v31 = vsub.f32 1.0, %v883_v15  ;;  %v6273_v32 = vadd.f32 1.0, %v5123_v22  ;;  %2722 = vmatmul.f32.gmra.mxu0 %v1263_v10  ;;  %v5125_v38 = vpop.eup %5124  ;;  %v908_v39 = vand.u32 2147483648, %v6249_v5 }
 0x153   : > { %2487 = vmatmul.f32.gmra.mxu2 %v1964_v21  ;;  %5128 = vpow2.f32 %v4734_v11  ;;  %v6278_v41 = vadd.f32 %v6020_v24, %v6142_v42  ;;  %v6281_v43 = vadd.f32 %v6020_v24, %v583_v18  ;;  %vm888_vm7 = vweird.f32 %v5121_v59 }
 0x154   : > { %1306 = vst [vmem:[#allocation2 + $0xa0] sm:$0xff] %v1274_v30  ;;  %v885_v0 = vmul.f32 %v5121_v59, %v884_v31  ;;  %v1048_v44 = vmul.f32 %v5125_v38, %v6224_v55  ;;  %v906_v46 = vand.u32 2147483647, %v6249_v5  ;;  %vm6286_vm11 = vcmp.eq.f32.partialorder %v1056_v27, 8.507059e+37  ;;  %vm889_vm1 = vmor %vm887_vm4, %vm888_vm7 }
 0x155   : > { %v1059_v47 = vor.u32 1.1754944e-38, %v1058_v20  ;;  %5130 = vrcp.f32 %v6273_v32  ;;  %vm1053_vm14 = vweird.f32 %v5125_v38  ;;  %v4745_v48 = vmul.f32 -1.442695, %v6278_v41 }
 0x156   : > { %v886_v42 = vadd.f32 %v5121_v59, %v885_v0  ;;  %v1049_v45 = vsub.f32 1.0, %v1048_v44  ;;  %v909_v53 = vor.u32 1.1754944e-38, %v908_v39  ;;  %vm1067_vm3 = vweird.f32 %v6273_v32 }
 0x157   : > { %v5127_v49 = vpop.eup %5126  ;;  %v4735_v54 = vmul.f32 -1.442695, %v6281_v43  ;;  %vm6297_vm10 = vcmp.ne.s32.totalorder %v1555_v35, 0  ;;  %v8831_v60 = vmov 0  ;;  %vm6302_vm15 = vcmp.eq.f32.partialorder %v906_v46, 8.507059e+37 }
 0x158   : > { %v8832_v60 = vsel %vm6297_vm10, 4294967295, %v8831_v60  ;;  %v890_v37 = vsel %vm889_vm1, %v5121_v59, %v886_v42  ;;  %v1050_v33 = vmul.f32 %v5125_v38, %v1049_v45  ;;  %v898_v61 = vmul.f32 %v5127_v49, %v6249_v5  ;;  %v6330_v15 = vpop.f32.mrf.mxu2 }
 0x159   : > { %8833 = vst [vmem:[#allocation27_spill] sm:$0xff] %v8832_v60  ;;  %v1071_v34 = vand.u32 2147483647, %v6273_v32  ;;  %v586_v1 = vpop.f32.mrf.mxu0  ;;  %v2156_v2 = vld [vmem:[#allocation2 + $0x41] sm:$0xff]  ;;  %v5129_v40 = vpop.eup %5128  ;;  %v895_v6 = vsel %vm6257_vm5, %v894_v17, %v890_v37  ;;  %vm8836_vm4 = vweird.f32 %v6224_v55  ;;  %5132 = vpow2.f32 %v4745_v48 }
 0x15a   : > { %v1965_v3 = vld [vmem:[#allocation2 + $0x47] sm:$0xff]  ;;  %vm6312_vm7 = vmor %vm8836_vm4, %vm1053_vm14  ;;  %v6321_v59 = vadd.f32 %v6020_v24, %v586_v1  ;;  %4764 = vmatmul.msk.f32.gmra.mxu1 %vm6261_vm6, %v2156_v2  ;;  %v1264_v55 = vmul.f32 %v895_v6, %v6135_v57  ;;  %v1051_v10 = vadd.f32 %v5125_v38, %v1050_v33  ;;  %v899_v11 = vsub.f32 1.0, %v898_v61  ;;  %v5340_v60 = vld [vmem:[#allocation2 + $0x3f] sm:$0xff] }
 0x15b   : > { %4780 = vmatmul.msk.f32.gmra.mxu2 %vm6297_vm10, %v1965_v3  ;;  %v6328_v14 = vadd.f32 1.0, %v5129_v40  ;;  %v5131_v16 = vpop.eup %5130  ;;  %v1073_v29 = vand.u32 2147483648, %v6273_v32  ;;  %5134 = vpow2.f32 %v4735_v54  ;;  %v4746_v17 = vmul.f32 -1.442695, %v6318_v7 }
 0x15c   : > { %v1486_v18 = vadd.s32 72, %v6042_v58  ;;  %1296 = vst [vmem:[#allocation2 + $0x50] sm:$0xff] %v1264_v55  ;;  %v1055_v19 = vsel %vm6312_vm7, %v5125_v38, %v1051_v10  ;;  %v900_v21 = vmul.f32 %v5127_v49, %v899_v11  ;;  %vm903_vm5 = vweird.f32 %v5127_v49  ;;  %2725 = vmatmul.f32.gmra.mxu0 %v1264_v55 }
 0x15d   : > { %v1063_v57 = vmul.f32 %v5131_v16, %v6273_v32  ;;  %v1060_v22 = vsel %vm6286_vm11, %v1059_v47, %v1055_v19  ;;  %vm6340_vm14 = vcmp.eq.f32.partialorder %v1071_v34, 8.507059e+37  ;;  %5136 = vrcp.f32 %v6328_v14 }
 0x15e   : > { %v4736_v27 = vmul.f32 -1.442695, %v6321_v59  ;;  %v1275_v20 = vmul.f32 %v1060_v22, %v6154_v50  ;;  %v901_v30 = vadd.f32 %v5127_v49, %v900_v21  ;;  %vm1068_vm1 = vweird.f32 %v5131_v16  ;;  %v6474_v21 = vld [vmem:[%s8797_s1] ss:$0 sm:$0xff] }
 0x15f   : > { %v1064_v31 = vsub.f32 1.0, %v1063_v57  ;;  %v5133_v35 = vpop.eup %5132  ;;  %vm8841_vm4 = vweird.f32 %v6249_v5  ;;  %v1074_v38 = vor.u32 1.1754944e-38, %v1073_v29  ;;  %5138 = vpow2.f32 %v4746_v17  ;;  %vm6361_vm11 = vmor %vm1067_vm3, %vm1068_vm1 }
 0x160   : > { %vm904_vm7 = vmor %vm8841_vm4, %vm903_vm5  ;;  %v6351_v39 = vadd.f32 %v6020_v24, %v6265_v63  ;;  %v1576_v0 = vand.u32 15, %v1486_v18  ;;  %1307 = vst [vmem:[#allocation2 + $0xa8] sm:$0xff] %v1275_v20  ;;  %v921_v36 = vand.u32 2147483647, %v6328_v14  ;;  %v6354_v50 = vadd.f32 1.0, %v5133_v35  ;;  %v6380_v2 = vpop.f32.mrf.mxu2 }
 0x161   : > { %v905_v44 = vsel %vm904_vm7, %v5127_v49, %v901_v30  ;;  %v1065_v46 = vmul.f32 %v5131_v16, %v1064_v31  ;;  %v589_v47 = vpop.f32.mrf.mxu0  ;;  %v5135_v42 = vpop.eup %5134  ;;  %5140 = vpow2.f32 %v4736_v27  ;;  %v923_v37 = vand.u32 2147483648, %v6328_v14 }
 0x162   : > { %v910_v5 = vsel %vm6302_vm15, %v909_v53, %v905_v44  ;;  %v4747_v63 = vmul.f32 -1.442695, %v6351_v39  ;;  %v6367_v48 = vadd.f32 %v6020_v24, %v589_v47  ;;  %5142 = vrcp.f32 %v6354_v50 }
 0x163   : > { %v1265_v49 = vmul.f32 %v910_v5, %v6179_v13  ;;  %v1066_v54 = vadd.f32 %v5131_v16, %v1065_v46  ;;  %v5137_v53 = vpop.eup %5136  ;;  %vm917_vm15 = vweird.f32 %v6328_v14  ;;  %v1086_v32 = vand.u32 2147483647, %v6354_v50  ;;  %v2157_v61 = vld [vmem:[#allocation2 + $0x49] sm:$0xff] }
 0x164   : > { %v6374_v33 = vadd.f32 1.0, %v5135_v42  ;;  %v1966_v62 = vld [vmem:[#allocation2 + $0x4f] sm:$0xff]  ;;  %v913_v13 = vmul.f32 %v5137_v53, %v6328_v14  ;;  %5144 = vpow2.f32 %v4747_v63  ;;  %v4737_v1 = vmul.f32 -1.442695, %v6367_v48  ;;  %2383 = vmatmul.f32.gmra.mxu1 %v2157_v61 }
 0x165   : > { %1297 = vst [vmem:[#allocation2 + $0x58] sm:$0xff] %v1265_v49  ;;  %v1070_v34 = vsel %vm6361_vm11, %v5131_v16, %v1066_v54  ;;  %2493 = vmatmul.f32.gmra.mxu2 %v1966_v62  ;;  %v5139_v3 = vpop.eup %5138  ;;  %vm6384_vm3 = vcmp.eq.f32.partialorder %v921_v36, 8.507059e+37  ;;  %v1088_v12 = vand.u32 2147483648, %v6354_v50  ;;  %2728 = vmatmul.f32.gmra.mxu0 %v1265_v49  ;;  %v924_v11 = vor.u32 1.1754944e-38, %v923_v37 }
 0x166   : > { %v1075_v40 = vsel %vm6340_vm14, %v1074_v38, %v1070_v34  ;;  %5146 = vrcp.f32 %v6374_v33  ;;  %v914_v10 = vsub.f32 1.0, %v913_v13  ;;  %vm6391_vm5 = vcmp.ne.s32.totalorder %v1576_v0, 15 }
 0x167   : > { %v1276_v55 = vmul.f32 %v1075_v40, %v6203_v28  ;;  %v8846_v16 = vmov 0  ;;  %v5141_v29 = vpop.eup %5140  ;;  %vm918_vm1 = vweird.f32 %v5137_v53  ;;  %v6396_v17 = vadd.f32 1.0, %v5139_v3 }
 0x168   : > { %v8847_v16 = vsel %vm6391_vm5, 4294967295, %v8846_v16  ;;  %5148 = vpow2.f32 %v4737_v1  ;;  %v5143_v18 = vpop.eup %5142  ;;  %v915_v19 = vmul.f32 %v5137_v53, %v914_v10  ;;  %vm6398_vm4 = vcmp.eq.f32.partialorder %v1086_v32, 8.507059e+37  ;;  %vm919_vm14 = vmor %vm917_vm15, %vm918_vm1  ;;  %v6443_v61 = vpop.f32.mrf.mxu2 }
 0x169   : > { %1308 = vst [vmem:[#allocation2 + $0xb0] sm:$0xff] %v1276_v55  ;;  %v936_v28 = vand.u32 2147483647, %v6374_v33  ;;  %v6403_v57 = vadd.f32 1.0, %v5141_v29  ;;  %v592_v22 = vpop.f32.mrf.mxu0  ;;  %v1078_v23 = vmul.f32 %v5143_v18, %v6354_v50  ;;  %v1089_v27 = vor.u32 1.1754944e-38, %v1088_v12 }
 0x16a   : > { %v938_v20 = vand.u32 2147483648, %v6374_v33  ;;  %5150 = vrcp.f32 %v6396_v17  ;;  %v5145_v30 = vpop.eup %5144  ;;  %v916_v31 = vadd.f32 %v5137_v53, %v915_v19  ;;  %vm1083_vm7 = vweird.f32 %v5143_v18 }
 0x16b   : > { %v6411_v35 = vadd.f32 %v6020_v24, %v6330_v15  ;;  %v1079_v0 = vsub.f32 1.0, %v1078_v23  ;;  %v1101_v44 = vand.u32 2147483647, %v6396_v17  ;;  %v1103_v46 = vand.u32 2147483648, %v6396_v17 }
 0x16c   : > { %v5147_v38 = vpop.eup %5146  ;;  %5152 = vrcp.f32 %v6403_v57  ;;  %v2158_v36 = vld [vmem:[#allocation2 + $0x51] sm:$0xff]  ;;  %v920_v47 = vsel %vm919_vm14, %v5137_v53, %v916_v31  ;;  %vm6420_vm11 = vcmp.eq.f32.partialorder %v936_v28, 8.507059e+37  ;;  %v6427_v24 = vadd.s32 64, %v6042_v58 }
 0x16d   : > { %v928_v42 = vmul.f32 %v5147_v38, %v6374_v33  ;;  %4765 = vmatmul.msk.f32.gmra.mxu1 %vm6391_vm5, %v2158_v36  ;;  %v925_v15 = vsel %vm6384_vm3, %v924_v11, %v920_v47  ;;  %v1080_v45 = vmul.f32 %v5143_v18, %v1079_v0  ;;  %v939_v63 = vor.u32 1.1754944e-38, %v938_v20 }
 0x16e   : > { %v5149_v14 = vpop.eup %5148  ;;  %v1266_v49 = vmul.f32 %v925_v15, %v6227_v56  ;;  %vm8852_vm1 = vweird.f32 %v6354_v50  ;;  %v951_v53 = vand.u32 2147483647, %v6403_v57  ;;  %v6441_v32 = vadd.f32 1.0, %v5145_v30  ;;  %v1967_v15 = vld [vmem:[#allocation2 + $0x57] sm:$0xff] }
 0x16f   : > { %vm6436_vm14 = vmor %vm8852_vm1, %vm1083_vm7  ;;  %v929_v37 = vsub.f32 1.0, %v928_v42  ;;  %v1081_v34 = vadd.f32 %v5143_v18, %v1080_v45  ;;  %vm933_vm3 = vweird.f32 %v5147_v38  ;;  %vm6445_vm15 = vcmp.eq.f32.partialorder %v1101_v44, 8.507059e+37 }
 0x170   : > { %v5151_v62 = vpop.eup %5150  ;;  %v1104_v56 = vor.u32 1.1754944e-38, %v1103_v46  ;;  %1298 = vst [vmem:[#allocation2 + $0x60] sm:$0xff] %v1266_v49  ;;  %v953_v3 = vand.u32 2147483648, %v6403_v57  ;;  %v6452_v40 = vadd.f32 1.0, %v5149_v14  ;;  %2731 = vmatmul.f32.gmra.mxu0 %v1266_v49  ;;  %5154 = vrcp.f32 %v6441_v32 }
 0x171   : > { %v930_v50 = vmul.f32 %v5147_v38, %v929_v37  ;;  %v1093_v1 = vmul.f32 %v5151_v62, %v6396_v17  ;;  %v595_v6 = vpop.f32.mrf.mxu0  ;;  %v1085_v55 = vsel %vm6436_vm14, %v5143_v18, %v1081_v34  ;;  %v1116_v10 = vand.u32 2147483647, %v6441_v32  ;;  %v6506_v37 = vpop.f32.mrf.mxu2 }
 0x172   : > { %v5153_v12 = vpop.eup %5152  ;;  %v1090_v11 = vsel %vm6398_vm4, %v1089_v27, %v1085_v55  ;;  %vm6461_vm7 = vcmp.eq.f32.partialorder %v951_v53, 8.507059e+37  ;;  %vm8859_vm14 = vweird.f32 %v6374_v33  ;;  %v1118_v18 = vand.u32 2147483648, %v6441_v32 }
 0x173   : > { %v931_v29 = vadd.f32 %v5147_v38, %v930_v50  ;;  %v1094_v19 = vsub.f32 1.0, %v1093_v1  ;;  %v943_v28 = vmul.f32 %v5153_v12, %v6403_v57  ;;  %v1277_v20 = vmul.f32 %v1090_v11, %v6278_v41  ;;  %vm934_vm1 = vmor %vm8859_vm14, %vm933_vm3 }
 0x174   : > { %v4748_v30 = vmul.f32 -1.442695, %v6411_v35  ;;  %v6477_v27 = vadd.f32 %v6474_v21, %v592_v22  ;;  %5156 = vrcp.f32 %v6452_v40  ;;  %vm8860_vm4 = vweird.f32 %v5151_v62 }
 0x175   : > { %v935_v31 = vsel %vm934_vm1, %v5147_v38, %v931_v29  ;;  %v1095_v0 = vmul.f32 %v5151_v62, %v1094_v19  ;;  %v944_v44 = vsub.f32 1.0, %v943_v28  ;;  %1309 = vst [vmem:[#allocation2 + $0xb8] sm:$0xff] %v1277_v20  ;;  %vm8861_vm3 = vweird.f32 %v6396_v17  ;;  %v2906_v20 = vld [vmem:[#allocation11 + $0x278] sm:$0xff] }
 0x176   : > { %v940_v41 = vsel %vm6420_vm11, %v939_v63, %v935_v31  ;;  %vm6485_vm14 = vmor %vm8861_vm3, %vm8860_vm4  ;;  %vm948_vm5 = vweird.f32 %v5153_v12  ;;  %v954_v46 = vor.u32 1.1754944e-38, %v953_v3  ;;  %vm1112_vm6 = vweird.f32 %v6441_v32  ;;  %v6495_v42 = vpop.eup %5154  ;;  %2923 = vmatpush.msrb.mxu1 %v2906_v20 }
 0x177   : > { %v1267_v22 = vmul.f32 %v940_v41, %v6281_v43  ;;  %v1096_v38 = vadd.f32 %v5151_v62, %v1095_v0  ;;  %v945_v36 = vmul.f32 %v5153_v12, %v944_v44  ;;  %vm6491_vm1 = vcmp.eq.f32.partialorder %v1116_v10, 8.507059e+37  ;;  %v2159_v45 = vld [vmem:[#allocation2 + $0x59] sm:$0xff] }
 0x178   : > { %v6497_v5 = vor.u32 1.1754944e-38, %v1118_v18  ;;  %5158 = vpow2.f32 %v4748_v30  ;;  %v4738_v17 = vmul.f32 -1.442695, %v6477_v27  ;;  %v1569_v14 = vand.u32 15, %v6427_v24  ;;  %2389 = vmatmul.f32.gmra.mxu1 %v2159_v45  ;;  %v1968_v0 = vld [vmem:[#allocation2 + $0x5f] sm:$0xff] }
 0x179   : > { %1299 = vst [vmem:[#allocation2 + $0x68] sm:$0xff] %v1267_v22  ;;  %v1100_v43 = vsel %vm6485_vm14, %v5151_v62, %v1096_v38  ;;  %v946_v63 = vadd.f32 %v5153_v12, %v945_v36  ;;  %v1108_v49 = vmul.f32 %v6495_v42, %v6441_v32  ;;  %v966_v54 = vand.u32 2147483647, %v6452_v40  ;;  %2734 = vmatmul.f32.gmra.mxu0 %v1267_v22  ;;  %v598_v13 = vpop.f32.mrf.mxu0  ;;  %v2905_v41 = vld [vmem:[#allocation11 + $0x270] sm:$0xff]  ;;  %v6567_v38 = vpop.f32.mrf.mxu2 }
 0x17a   : > { %v1105_v53 = vsel %vm6445_vm15, %v1104_v56, %v1100_v43  ;;  %vm8866_vm11 = vweird.f32 %v6403_v57  ;;  %vm1113_vm3 = vweird.f32 %v6495_v42  ;;  %5160 = vpow2.f32 %v4738_v17  ;;  %v6518_v62 = vpop.eup %5156  ;;  %2924 = vmatpush.msrb.mxu1 %v2905_v41 }
 0x17b   : > { %vm949_vm4 = vmor %vm8866_vm11, %vm948_vm5  ;;  %vm6514_vm14 = vcmp.ne.s32.totalorder %v1569_v14, 0  ;;  %v8867_v24 = vmov 0  ;;  %v1278_v34 = vmul.f32 %v1105_v53, %v6318_v7  ;;  %v1109_v1 = vsub.f32 1.0, %v1108_v49 }
 0x17c   : > { %v8868_v24 = vsel %vm6514_vm14, 4294967295, %v8867_v24  ;;  %v950_v50 = vsel %vm949_vm4, %v5153_v12, %v946_v63  ;;  %4781 = vmatmul.msk.f32.gmra.mxu2 %vm6514_vm14, %v1967_v15  ;;  %v6525_v57 = vadd.f32 %v6474_v21, %v6380_v2  ;;  %v958_v3 = vmul.f32 %v6518_v62, %v6452_v40  ;;  %vm6546_vm5 = vmor %vm1112_vm6, %vm1113_vm3 }
 0x17d   : > { %8869 = vst [vmem:[#allocation28_spill] sm:$0xff] %v8868_v24  ;;  %v955_v56 = vsel %vm6461_vm7, %v954_v46, %v950_v50  ;;  %v968_v55 = vand.u32 2147483648, %v6452_v40  ;;  %v6533_v7 = vadd.f32 %v6474_v21, %v595_v6  ;;  %v1110_v10 = vmul.f32 %v6495_v42, %v1109_v1 }
 0x17e   : > { %1310 = vst [vmem:[#allocation2 + $0xc0] sm:$0xff] %v1278_v34  ;;  %v1268_v12 = vmul.f32 %v955_v56, %v6321_v59  ;;  %v4749_v2 = vmul.f32 -1.442695, %v6525_v57  ;;  %v6540_v11 = vadd.f32 %v6474_v21, %v6443_v61  ;;  %v5159_v29 = vpop.eup %5158  ;;  %v959_v6 = vsub.f32 1.0, %v958_v3 }
 0x17f   : > { %v4739_v59 = vmul.f32 -1.442695, %v6533_v7  ;;  %v6552_v28 = vadd.f32 %v6474_v21, %v598_v13  ;;  %v1488_v23 = vadd.s32 88, %v6042_v58  ;;  %v1111_v61 = vadd.f32 %v6495_v42, %v1110_v10 }
 0x180   : > { %1300 = vst [vmem:[#allocation2 + $0x70] sm:$0xff] %v1268_v12  ;;  %v6556_v18 = vadd.f32 1.0, %v5159_v29  ;;  %5162 = vpow2.f32 %v4749_v2  ;;  %v4750_v32 = vmul.f32 -1.442695, %v6540_v11  ;;  %v5161_v30 = vpop.eup %5160  ;;  %v960_v31 = vmul.f32 %v6518_v62, %v959_v6  ;;  %v2160_v22 = vld [vmem:[#allocation2 + $0x61] sm:$0xff] }
 0x181   : > { %vm963_vm6 = vweird.f32 %v6518_v62  ;;  %5164 = vpow2.f32 %v4739_v59  ;;  %v1590_v44 = vand.u32 15, %v1488_v23  ;;  %v1115_v33 = vsel %vm6546_vm5, %v6495_v42, %v1111_v61  ;;  %2737 = vmatmul.f32.gmra.mxu0 %v1268_v12  ;;  %v2904_v42 = vld [vmem:[#allocation11 + $0x268] sm:$0xff]  ;;  %v2901_v12 = vld [vmem:[#allocation11 + $0x250] sm:$0xff]  ;;  %v6613_v19 = vpop.f32.mrf.mxu2 }
 0x182   : > { %vm962_vm15 = vweird.f32 %v6452_v40  ;;  %5166 = vrcp.f32 %v6556_v18  ;;  %v4740_v46 = vmul.f32 -1.442695, %v6552_v28  ;;  %v1120_v36 = vsel %vm6491_vm1, %v6497_v5, %v1115_v33  ;;  %2925 = vmatpush.msrb.mxu1 %v2904_v42  ;;  %v2902_v40 = vld [vmem:[#allocation11 + $0x258] sm:$0xff] }
 0x183   : > { %v961_v17 = vadd.f32 %v6518_v62, %v960_v31  ;;  %v969_v14 = vor.u32 1.1754944e-38, %v968_v55  ;;  %v6573_v15 = vadd.f32 1.0, %v5161_v30  ;;  %v1279_v45 = vmul.f32 %v1120_v36, %v6351_v39  ;;  %vm964_vm7 = vmor %vm962_vm15, %vm963_vm6  ;;  %v2903_v39 = vld [vmem:[#allocation11 + $0x260] sm:$0xff] }
 0x184   : > { %v1131_v43 = vand.u32 2147483647, %v6556_v18  ;;  %2499 = vmatmul.f32.gmra.mxu2 %v1968_v0  ;;  %5168 = vpow2.f32 %v4750_v32  ;;  %vm6579_vm11 = vcmp.ne.s32.totalorder %v1590_v44, 15  ;;  %v8872_v63 = vmov 0  ;;  %2926 = vmatpush.msrb.mxu1 %v2903_v39  ;;  %v2900_v32 = vld [vmem:[#allocation11 + $0x248] sm:$0xff]  ;;  %v2899_v36 = vld [vmem:[#allocation11 + $0x240] sm:$0xff] }
 0x185   : > { %v8873_v63 = vsel %vm6579_vm11, 4294967295, %v8872_v63  ;;  %v965_v47 = vsel %vm964_vm7, %v6518_v62, %v961_v17  ;;  %vm967_vm1 = vcmp.eq.f32.partialorder %v966_v54, 8.507059e+37  ;;  %v1133_v5 = vand.u32 2147483648, %v6556_v18  ;;  %4766 = vmatmul.msk.f32.gmra.mxu1 %vm6579_vm11, %v2160_v22  ;;  %1311 = vst [vmem:[#allocation2 + $0xc8] sm:$0xff] %v1279_v45 }
 0x186   : > { %5170 = vrcp.f32 %v6573_v15  ;;  %v5163_v49 = vpop.eup %5162  ;;  %v970_v53 = vsel %vm967_vm1, %v969_v14, %v965_v47  ;;  %vm1127_vm4 = vweird.f32 %v6556_v18  ;;  %vm6596_vm3 = vcmp.eq.f32.partialorder %v1131_v43, 8.507059e+37  ;;  %2927 = vmatpush.msrb.mxu1 %v2902_v40 }
 0x187   : > { %5172 = vpow2.f32 %v4740_v46  ;;  %v5165_v34 = vpop.eup %5164  ;;  %v1269_v50 = vmul.f32 %v970_v53, %v6367_v48  ;;  %v6591_v62 = vadd.f32 1.0, %v5163_v49  ;;  %v981_v13 = vand.u32 2147483647, %v6573_v15  ;;  %v2161_v29 = vld [vmem:[#allocation2 + $0x69] sm:$0xff] }
 0x188   : > { %v6593_v54 = vpop.eup %5166  ;;  %v6601_v56 = vadd.f32 1.0, %v5165_v34  ;;  %v1134_v3 = vor.u32 1.1754944e-38, %v1133_v5  ;;  %v983_v55 = vand.u32 2147483648, %v6573_v15  ;;  %v6611_v2 = vadd.s32 80, %v6042_v58  ;;  %2928 = vmatpush.msrb.mxu1 %v2901_v12  ;;  %v2898_v5 = vld [vmem:[#allocation11 + $0x238] sm:$0xff] }
 0x189   : > { %1301 = vst [vmem:[#allocation2 + $0x78] sm:$0xff] %v1269_v50  ;;  %v1123_v48 = vmul.f32 %v6593_v54, %v6556_v18  ;;  %5174 = vrcp.f32 %v6591_v62  ;;  %vm1128_vm5 = vweird.f32 %v6593_v54  ;;  %v1146_v23 = vand.u32 2147483647, %v6591_v62  ;;  %2740 = vmatmul.f32.gmra.mxu0 %v1269_v50 }
 0x18a   : > { %v5169_v10 = vpop.eup %5168  ;;  %5176 = vrcp.f32 %v6601_v56  ;;  %v1148_v20 = vand.u32 2147483648, %v6591_v62  ;;  %vm6623_vm15 = vcmp.eq.f32.partialorder %v981_v13, 8.507059e+37  ;;  %v998_v44 = vand.u32 2147483648, %v6601_v56  ;;  %2929 = vmatpush.msrb.mxu1 %v2900_v32  ;;  %vm6639_vm7 = vmor %vm1127_vm4, %vm1128_vm5  ;;  %v2896_v32 = vld [vmem:[#allocation11 + $0x228] sm:$0xff]  ;;  %v1970_v13 = vld [vmem:[#allocation2 + $0x6f] sm:$0xff] }
 0x18b   : > { %v1124_v59 = vsub.f32 1.0, %v1123_v48  ;;  %v6619_v61 = vadd.f32 1.0, %v5169_v10  ;;  %v6630_v41 = vadd.f32 %v6474_v21, %v6506_v37  ;;  %v984_v46 = vor.u32 1.1754944e-38, %v983_v55  ;;  %v2897_v55 = vld [vmem:[#allocation11 + $0x230] sm:$0xff] }
 0x18c   : > { %v6615_v6 = vpop.eup %5170  ;;  %v996_v22 = vand.u32 2147483647, %v6601_v56  ;;  %v6646_v14 = vadd.s32 104, %v6042_v58  ;;  %2930 = vmatpush.msrb.mxu1 %v2899_v36  ;;  %vm6651_vm11 = vcmp.eq.f32.partialorder %v1146_v23, 8.507059e+37  ;;  %v6655_v18 = vor.u32 1.1754944e-38, %v1148_v20  ;;  %v2895_v36 = vld [vmem:[#allocation11 + $0x220] sm:$0xff] }
 0x18d   : > { %v5173_v30 = vpop.eup %5172  ;;  %v973_v31 = vmul.f32 %v6615_v6, %v6573_v15  ;;  %v1125_v33 = vmul.f32 %v6593_v54, %v1124_v59  ;;  %5178 = vrcp.f32 %v6619_v61  ;;  %2395 = vmatmul.f32.gmra.mxu1 %v2161_v29  ;;  %vm978_vm1 = vweird.f32 %v6615_v6  ;;  %v6685_v59 = vpop.f32.mrf.mxu0 }
 0x18e   : > { %v6658_v47 = vadd.f32 1.0, %v5173_v30  ;;  %v6665_v34 = vor.u32 1.1754944e-38, %v998_v44  ;;  %2931 = vmatpush.msrb.mxu1 %v2898_v5  ;;  %vm6674_vm6 = vcmp.eq.f32.partialorder %v996_v22, 8.507059e+37  ;;  %v1583_v48 = vand.u32 15, %v6611_v2  ;;  %v2894_v5 = vld [vmem:[#allocation11 + $0x218] sm:$0xff] }
 0x18f   : > { %v974_v37 = vsub.f32 1.0, %v973_v31  ;;  %v6648_v42 = vpop.eup %5174  ;;  %v1126_v45 = vadd.f32 %v6593_v54, %v1125_v33  ;;  %v4751_v2 = vmul.f32 -1.442695, %v6630_v41  ;;  %v1969_v33 = vld [vmem:[#allocation2 + $0x67] sm:$0xff] }
 0x190   : > { %v6660_v39 = vpop.eup %5176  ;;  %v1138_v53 = vmul.f32 %v6648_v42, %v6591_v62  ;;  %vm1143_vm4 = vweird.f32 %v6648_v42  ;;  %5180 = vrcp.f32 %v6658_v47  ;;  %2932 = vmatpush.msrb.mxu1 %v2897_v55 }
 0x191   : > { %v975_v49 = vmul.f32 %v6615_v6, %v974_v37  ;;  %v1130_v50 = vsel %vm6639_vm7, %v6593_v54, %v1126_v45  ;;  %v988_v40 = vmul.f32 %v6660_v39, %v6601_v56  ;;  %v6683_v54 = vpop.f32.mrf.mxu2  ;;  %vm8884_vm7 = vweird.f32 %v6573_v15 }
 0x192   : > { %v1135_v12 = vsel %vm6596_vm3, %v1134_v3, %v1130_v50  ;;  %v1139_v29 = vsub.f32 1.0, %v1138_v53  ;;  %vm979_vm3 = vmor %vm8884_vm7, %vm978_vm1  ;;  %v1161_v3 = vand.u32 2147483647, %v6619_v61  ;;  %2933 = vmatpush.msrb.mxu1 %v2896_v32  ;;  %vm8885_vm1 = vweird.f32 %v6591_v62 }
 0x193   : > { %v976_v10 = vadd.f32 %v6615_v6, %v975_v49  ;;  %v6687_v23 = vpop.eup %5178  ;;  %v6690_v20 = vmul.f32 %v1135_v12, %v6411_v35  ;;  %v989_v1 = vsub.f32 1.0, %v988_v40  ;;  %v1163_v35 = vand.u32 2147483648, %v6619_v61  ;;  %vm6710_vm7 = vmor %vm8885_vm1, %vm1143_vm4  ;;  %v2162_v12 = vld [vmem:[#allocation2 + $0x71] sm:$0xff] }
 0x194   : > { %v1140_v31 = vmul.f32 %v6648_v42, %v1139_v29  ;;  %v1153_v44 = vmul.f32 %v6687_v23, %v6619_v61  ;;  %v8888_v37 = vmov 0  ;;  %2934 = vmatpush.msrb.mxu1 %v2895_v36  ;;  %vm6724_vm4 = vcmp.eq.f32.partialorder %v1161_v3, 8.507059e+37  ;;  %v6801_v36 = vpop.f32.mrf.mxu1 }
 0x195   : > { %v980_v30 = vsel %vm979_vm3, %v6615_v6, %v976_v10  ;;  %1312 = vst [vmem:[#allocation2 + $0xd0] sm:$0xff] %v6690_v20  ;;  %v990_v22 = vmul.f32 %v6660_v39, %v989_v1  ;;  %vm993_vm3 = vweird.f32 %v6660_v39  ;;  %5182 = vpow2.f32 %v4751_v2  ;;  %v2893_v10 = vld [vmem:[#allocation11 + $0x210] sm:$0xff] }
 0x196   : > { %v985_v15 = vsel %vm6623_vm15, %v984_v46, %v980_v30  ;;  %v1141_v0 = vadd.f32 %v6648_v42, %v1140_v31  ;;  %v1154_v46 = vsub.f32 1.0, %v1153_v44  ;;  %vm6719_vm15 = vcmp.ne.s32.totalorder %v1583_v48, 0  ;;  %v6734_v49 = vpop.eup %5180  ;;  %2935 = vmatpush.msrb.mxu1 %v2894_v5  ;;  %v6785_v31 = vpop.f32.mrf.mxu0 }
 0x197   : > { %v1270_v17 = vmul.f32 %v985_v15, %v6477_v27  ;;  %v8889_v37 = vsel %vm6719_vm15, 4294967295, %v8888_v37  ;;  %v991_v62 = vadd.f32 %v6660_v39, %v990_v22  ;;  %4782 = vmatmul.msk.f32.gmra.mxu2 %vm6719_vm15, %v1969_v33  ;;  %v6732_v27 = vadd.f32 %v6474_v21, %v6567_v38  ;;  %8900 = vst [vmem:[#allocation30_spill] sm:$0xff] %v6785_v31  ;;  %v2891_v15 = vld [vmem:[#allocation11 + $0x200] sm:$0xff]  ;;  %v2909_v31 = vld [vmem:[#allocation11 + $0x290] sm:$0xff] }
 0x198   : > { %8890 = vst [vmem:[#allocation29_spill] sm:$0xff] %v8889_v37  ;;  %v1145_v53 = vsel %vm6710_vm7, %v6648_v42, %v1141_v0  ;;  %vm8893_vm1 = vweird.f32 %v6601_v56  ;;  %v1155_v50 = vmul.f32 %v6687_v23, %v1154_v46  ;;  %v1164_v40 = vor.u32 1.1754944e-38, %v1163_v35  ;;  %2936 = vmatpush.msrb.mxu1 %v2893_v10 }
 0x199   : > { %1302 = vst [vmem:[#allocation2 + $0x80] sm:$0xff] %v1270_v17  ;;  %vm994_vm5 = vmor %vm8893_vm1, %vm993_vm3  ;;  %v1604_v48 = vand.u32 15, %v6646_v14  ;;  %2743 = vmatmul.f32.gmra.mxu0 %v1270_v17  ;;  %v1150_v38 = vsel %vm6651_vm11, %v6655_v18, %v1145_v53  ;;  %vm8894_vm7 = vweird.f32 %v6687_v23  ;;  %vm8895_vm15 = vweird.f32 %v6619_v61  ;;  %v643_v29 = vpop.f32.mrf.mxu2 }
 0x19a   : > { %v995_v55 = vsel %vm994_vm5, %v6660_v39, %v991_v62  ;;  %vm6753_vm12 = vmor %vm8895_vm15, %vm8894_vm7  ;;  %v1003_v42 = vmul.f32 %v6734_v49, %v6658_v47  ;;  %v1011_v14 = vand.u32 2147483647, %v6658_v47  ;;  %v6761_v43 = vmul.f32 %v1150_v38, %v6525_v57  ;;  %v2892_v57 = vld [vmem:[#allocation11 + $0x208] sm:$0xff] }
 0x19b   : > { %v1000_v18 = vsel %vm6674_vm6, %v6665_v34, %v995_v55  ;;  %v1156_v61 = vadd.f32 %v6687_v23, %v1155_v50  ;;  %v4752_v39 = vmul.f32 -1.442695, %v6732_v27  ;;  %v1013_v2 = vand.u32 2147483648, %v6658_v47  ;;  %v5183_v44 = vpop.eup %5182  ;;  %2937 = vmatpush.msrb.mxu1 %v2892_v57  ;;  %v2132_v50 = vld [vmem:[#allocation11 + $0x78] sm:$0xff] }
 0x19c   : > { %v1271_v1 = vmul.f32 %v1000_v18, %v6533_v7  ;;  %v1004_v3 = vsub.f32 1.0, %v1003_v42  ;;  %vm6770_vm11 = vcmp.ne.s32.totalorder %v1604_v48, 15  ;;  %v8898_v32 = vmov 0  ;;  %1313 = vst [vmem:[#allocation2 + $0xd8] sm:$0xff] %v6761_v43  ;;  %2569 = vmatpush.msrb.mxu3 %v2132_v50 }
 0x19d   : > { %v8899_v32 = vsel %vm6770_vm11, 4294967295, %v8898_v32  ;;  %v1160_v34 = vsel %vm6753_vm12, %v6687_v23, %v1156_v61  ;;  %5184 = vpow2.f32 %v4752_v39  ;;  %4767 = vmatmul.msk.f32.gmra.mxu1 %vm6770_vm11, %v2162_v12  ;;  %v1489_v7 = vadd.s32 96, %v6042_v58 }
 0x19e   : > { %v6783_v30 = vadd.f32 %v6474_v21, %v6613_v19  ;;  %1303 = vst [vmem:[#allocation2 + $0x88] sm:$0xff] %v1271_v1  ;;  %v1165_v35 = vsel %vm6724_vm4, %v1164_v40, %v1160_v34  ;;  %v1005_v23 = vmul.f32 %v6734_v49, %v1004_v3  ;;  %vm1008_vm12 = vweird.f32 %v6734_v49  ;;  %2938 = vmatpush.msrb.mxu1 %v2891_v15 }
 0x19f   : > { %v6793_v33 = vadd.f32 %v6474_v21, %v6683_v54  ;;  %v6796_v19 = vmul.f32 %v1165_v35, %v6540_v11  ;;  %v6798_v6 = vadd.f32 1.0, %v5183_v44  ;;  %vm1007_vm6 = vweird.f32 %v6658_v47  ;;  %2505 = vmatmul.f32.gmra.mxu2 %v1970_v13  ;;  %v6829_v18 = vpop.f32.mrf.mxu0 }
 0x1a0   : > { %v4753_v22 = vmul.f32 -1.442695, %v6783_v30  ;;  %v1006_v17 = vadd.f32 %v6734_v49, %v1005_v23  ;;  %v6807_v54 = vadd.f32 %v6474_v21, %v643_v29  ;;  %vm1009_vm5 = vmor %vm1007_vm6, %vm1008_vm12  ;;  %v1014_v11 = vor.u32 1.1754944e-38, %v1013_v2  ;;  %v2163_v45 = vld [vmem:[#allocation2 + $0x79] sm:$0xff]  ;;  %8904 = vst [vmem:[#allocation32_spill] sm:$0xff] %v6829_v18 }
 0x1a1   : > { %v4754_v0 = vmul.f32 -1.442695, %v6793_v33  ;;  %1314 = vst [vmem:[#allocation2 + $0xe0] sm:$0xff] %v6796_v19  ;;  %5186 = vrcp.f32 %v6798_v6  ;;  %v1597_v46 = vand.u32 15, %v1489_v7  ;;  %v1492_v62 = vadd.s32 120, %v6042_v58  ;;  %2746 = vmatmul.f32.gmra.mxu0 %v1271_v1  ;;  %v646_v55 = vpop.f32.mrf.mxu2  ;;  %v2131_v1 = vld [vmem:[#allocation11 + $0x70] sm:$0xff] }
 0x1a2   : > { %v1010_v47 = vsel %vm1009_vm5, %v6734_v49, %v1006_v17  ;;  %vm1012_vm3 = vcmp.eq.f32.partialorder %v1011_v14, 8.507059e+37  ;;  %5188 = vpow2.f32 %v4753_v22  ;;  %v4755_v38 = vmul.f32 -1.442695, %v6807_v54  ;;  %v1971_v49 = vld [vmem:[#allocation2 + $0x77] sm:$0xff]  ;;  %2570 = vmatpush.msrb.mxu3 %v2131_v1 }
 0x1a3   : > { %v5185_v5 = vpop.eup %5184  ;;  %v1015_v53 = vsel %vm1012_vm3, %v1014_v11, %v1010_v47  ;;  %5190 = vpow2.f32 %v4754_v0  ;;  %vm6819_vm15 = vcmp.ne.s32.totalorder %v1597_v46, 0  ;;  %v8901_v56 = vmov 0  ;;  %v7412_v24 = vld [vmem:[#allocation2 + $0xd8] sm:$0xff] }
 0x1a4   : > { %v1272_v40 = vmul.f32 %v1015_v53, %v6552_v28  ;;  %v6816_v48 = vadd.f32 1.0, %v5185_v5  ;;  %v8902_v56 = vsel %vm6819_vm15, 4294967295, %v8901_v56  ;;  %v1618_v42 = vand.u32 15, %v1492_v62  ;;  %v1972_v53 = vld [vmem:[#allocation2 + $0x7f] sm:$0xff] }
 0x1a5   : > { %8903 = vst [vmem:[#allocation31_spill] sm:$0xff] %v8902_v56  ;;  %2401 = vmatmul.f32.gmra.mxu1 %v2163_v45  ;;  %v6824_v14 = vadd.f32 %v6474_v21, %v646_v55  ;;  %v1491_v28 = vadd.s32 112, %v6042_v58  ;;  %vm1172_vm4 = vweird.f32 %v6798_v6  ;;  %v1176_v29 = vand.u32 2147483647, %v6798_v6  ;;  %v2164_v35 = vld [vmem:[#allocation2 + $0x81] sm:$0xff] }
 0x1a6   : > { %1304 = vst [vmem:[#allocation2 + $0x90] sm:$0xff] %v1272_v40  ;;  %5192 = vrcp.f32 %v6816_v48  ;;  %v1494_v21 = vadd.s32 136, %v6042_v58  ;;  %v1178_v2 = vand.u32 2147483648, %v6798_v6  ;;  %vm6840_vm1 = vcmp.ne.s32.totalorder %v1618_v42, 15 }
 0x1a7   : > { %v5187_v12 = vpop.eup %5186  ;;  %5194 = vpow2.f32 %v4755_v38  ;;  %v4756_v10 = vmul.f32 -1.442695, %v6824_v14  ;;  %4783 = vmatmul.msk.f32.gmra.mxu2 %vm6819_vm15, %v1971_v49  ;;  %v8905_v34 = vmov 0  ;;  %v6844_v13 = vpop.f32.mrf.mxu1  ;;  %v1611_v23 = vand.u32 15, %v1491_v28 }
 0x1a8   : > { %v5189_v61 = vpop.eup %5188  ;;  %v1168_v39 = vmul.f32 %v5187_v12, %v6798_v6  ;;  %v8906_v34 = vsel %vm6840_vm1, 4294967295, %v8905_v34  ;;  %vm1173_vm7 = vweird.f32 %v5187_v12  ;;  %v1191_v15 = vand.u32 2147483647, %v6816_v48 }
 0x1a9   : > { %v5191_v3 = vpop.eup %5190  ;;  %v6838_v57 = vadd.f32 1.0, %v5189_v61  ;;  %2749 = vmatmul.f32.gmra.mxu0 %v1272_v40  ;;  %5196 = vpow2.f32 %v4756_v10  ;;  %v1193_v0 = vand.u32 2147483648, %v6816_v48  ;;  %v1632_v11 = vand.u32 15, %v1494_v21  ;;  %vm6856_vm12 = vmor %vm1172_vm4, %vm1173_vm7  ;;  %v2130_v21 = vld [vmem:[#allocation11 + $0x68] sm:$0xff] }
 0x1aa   : > { %v1169_v7 = vsub.f32 1.0, %v1168_v39  ;;  %v6846_v44 = vadd.f32 1.0, %v5191_v3  ;;  %vm6860_vm6 = vcmp.eq.f32.partialorder %v1176_v29, 8.507059e+37  ;;  %v1179_v45 = vor.u32 1.1754944e-38, %v1178_v2  ;;  %v6890_v29 = vld [vmem:[#allocation2 + $0x98] sm:$0xff]  ;;  %2571 = vmatpush.msrb.mxu3 %v2130_v21 }
 0x1ab   : > { %5198 = vrcp.f32 %v6838_v57  ;;  %vm6868_vm5 = vcmp.ne.s32.totalorder %v1611_v23, 0  ;;  %v8911_v6 = vmov 0  ;;  %v6875_v55 = vadd.s32 128, %v6042_v58 }
 0x1ac   : > { %v6850_v22 = vpop.eup %5192  ;;  %v1170_v17 = vmul.f32 %v5187_v12, %v1169_v7  ;;  %5200 = vrcp.f32 %v6846_v44  ;;  %v8912_v6 = vsel %vm6868_vm5, 4294967295, %v8911_v6  ;;  %vm1187_vm3 = vweird.f32 %v6816_v48 }
 0x1ad   : > { %v5195_v46 = vpop.eup %5194  ;;  %v1183_v5 = vmul.f32 %v6850_v22, %v6816_v48  ;;  %4768 = vmatmul.msk.f32.gmra.mxu1 %vm6840_vm1, %v2164_v35  ;;  %v2165_v50 = vld [vmem:[#allocation2 + $0x89] sm:$0xff]  ;;  %8913 = vst [vmem:[#allocation33_spill] sm:$0xff] %v8912_v6  ;;  %vm1188_vm4 = vweird.f32 %v6850_v22  ;;  %vm6879_vm7 = vcmp.eq.f32.partialorder %v1191_v15, 8.507059e+37  ;;  %v1194_v61 = vor.u32 1.1754944e-38, %v1193_v0  ;;  %v6902_v35 = vpop.f32.mrf.mxu0 }
 0x1ae   : > { %v1171_v40 = vadd.f32 %v5187_v12, %v1170_v17  ;;  %v6872_v38 = vadd.f32 1.0, %v5195_v46  ;;  %2407 = vmatmul.f32.vlgmr.msra.gmra.mxu3 %v2165_v50  ;;  %vm6886_vm1 = vcmp.ne.s32.totalorder %v1632_v11, 15  ;;  %v8916_v39 = vmov 0  ;;  %8919 = vst [vmem:[#allocation35_spill] sm:$0xff] %v6902_v35  ;;  %v7150_v35 = vld [vmem:[#allocation2 + $0x50] sm:$0xff]  ;;  %v5350_v6 = vld [vmem:[#allocation2 + $0x87] sm:$0xff] }
 0x1af   : > { %v5197_v49 = vpop.eup %5196  ;;  %v1184_v42 = vsub.f32 1.0, %v1183_v5  ;;  %2511 = vmatmul.f32.gmra.mxu2 %v1972_v53  ;;  %v8917_v39 = vsel %vm6886_vm1, 4294967295, %v8916_v39  ;;  %v6900_v7 = vpop.f32.mrf.mxu1  ;;  %v1208_v11 = vand.u32 2147483648, %v6838_v57  ;;  %v1221_v48 = vand.u32 2147483647, %v6846_v44  ;;  %v2795_v5 = vld [vmem:[#allocation2 + $0x18] sm:$0xff] }
 0x1b0   : > { %v1175_v10 = vsel %vm6856_vm12, %v5187_v12, %v1171_v40  ;;  %5202 = vrcp.f32 %v6872_v38  ;;  %v1206_v12 = vand.u32 2147483647, %v6838_v57  ;;  %8918 = vst [vmem:[#allocation34_spill] sm:$0xff] %v6900_v7  ;;  %v6920_v46 = vadd.f32 1.0, %v5197_v49  ;;  %v1973_v40 = vld [vmem:[#allocation2 + $0x87] sm:$0xff] }
 0x1b1   : > { %v6892_v1 = vpop.eup %5198  ;;  %v1180_v3 = vsel %vm6860_vm6, %v1179_v45, %v1175_v10  ;;  %v1185_v2 = vmul.f32 %v6850_v22, %v1184_v42  ;;  %2752 = vmatmul.f32.gmra.mxu0 %v6890_v29  ;;  %vm6913_vm6 = vmor %vm1187_vm3, %vm1188_vm4  ;;  %v1223_v45 = vand.u32 2147483648, %v6846_v44  ;;  %v1236_v49 = vand.u32 2147483647, %v6872_v38  ;;  %v2166_v42 = vld [vmem:[#allocation2 + $0x91] sm:$0xff] }
 0x1b2   : > { %v6904_v23 = vpop.eup %5200  ;;  %v6907_v15 = vmul.f32 %v1180_v3, %v6630_v41  ;;  %v1198_v0 = vmul.f32 %v6892_v1, %v6838_v57  ;;  %vm1203_vm3 = vweird.f32 %v6892_v1  ;;  %5204 = vrcp.f32 %v6920_v46 }
 0x1b3   : > { %v1186_v62 = vadd.f32 %v6850_v22, %v1185_v2  ;;  %v1213_v41 = vmul.f32 %v6904_v23, %v6846_v44  ;;  %vm6939_vm12 = vcmp.eq.f32.partialorder %v1206_v12, 8.507059e+37  ;;  %v7045_v2 = vld [vmem:[#allocation2 + $0x28] sm:$0xff] }
 0x1b4   : > { %1315 = vst [vmem:[#allocation2 + $0xe8] sm:$0xff] %v6907_v15  ;;  %v1199_v47 = vsub.f32 1.0, %v1198_v0 }
 0x1b5   : > { %v1190_v53 = vsel %vm6913_vm6, %v6850_v22, %v1186_v62  ;;  %v1214_v50 = vsub.f32 1.0, %v1213_v41  ;;  %2939 = vmatmul.f32.vlgmr.msrb.gmra.mxu1 %v2795_v5  ;;  %v1238_v22 = vand.u32 2147483648, %v6872_v38  ;;  %vm8924_vm6 = vweird.f32 %v6838_v57  ;;  %v6959_v62 = vpop.f32.mrf.mxu2  ;;  %v2129_v5 = vld [vmem:[#allocation11 + $0x60] sm:$0xff]  ;;  %v2167_v57 = vld [vmem:[#allocation2 + $0x99] sm:$0xff] }
 0x1b6   : > { %v5203_v10 = vpop.eup %5202  ;;  %v1195_v21 = vsel %vm6879_vm7, %v1194_v61, %v1190_v53  ;;  %v1200_v3 = vmul.f32 %v6892_v1, %v1199_v47  ;;  %4769 = vmatmul.msk.f32.gmra.mxu3 %vm6886_vm1, %v2166_v42  ;;  %vm6953_vm4 = vmor %vm8924_vm6, %vm1203_vm3  ;;  %v1209_v61 = vor.u32 1.1754944e-38, %v1208_v11  ;;  %vm8927_vm7 = vweird.f32 %v6904_v23  ;;  %v6977_v47 = vld [vmem:[#allocation2 + $0xa0] sm:$0xff] }
 0x1b7   : > { %v6947_v17 = vmul.f32 %v1195_v21, %v6732_v27  ;;  %v1215_v12 = vmul.f32 %v6904_v23, %v1214_v50  ;;  %v1228_v0 = vmul.f32 %v5203_v10, %v6872_v38  ;;  %vm8928_vm1 = vweird.f32 %v6846_v44  ;;  %4784 = vmatmul.msk.f32.gmra.mxu2 %vm6868_vm5, %v1973_v40  ;;  %2572 = vmatpush.msrb.mxu3 %v2129_v5  ;;  %v6999_v5 = vpop.f32.mrf.mxu0  ;;  %v1974_v27 = vld [vmem:[#allocation2 + $0x8f] sm:$0xff] }
 0x1b8   : > { %v1201_v41 = vadd.f32 %v6892_v1, %v1200_v3  ;;  %vm6966_vm11 = vmor %vm8928_vm1, %vm8927_vm7  ;;  %vm6970_vm3 = vcmp.eq.f32.partialorder %v1221_v48, 8.507059e+37  ;;  %v1224_v11 = vor.u32 1.1754944e-38, %v1223_v45  ;;  %vm1233_vm1 = vweird.f32 %v5203_v10  ;;  %v6986_v45 = vpop.f32.mrf.mxu1  ;;  %v5205_v50 = vpop.eup %5204  ;;  %8936 = vst [vmem:[#allocation37_spill] sm:$0xff] %v6999_v5 }
 0x1b9   : > { %1316 = vst [vmem:[#allocation2 + $0xf0] sm:$0xff] %v6947_v17  ;;  %v1216_v44 = vadd.f32 %v6904_v23, %v1215_v12  ;;  %v1229_v53 = vsub.f32 1.0, %v1228_v0  ;;  %vm6981_vm7 = vcmp.eq.f32.partialorder %v1236_v49, 8.507059e+37  ;;  %2755 = vmatmul.f32.gmra.mxu0 %v6977_v47  ;;  %v1239_v42 = vor.u32 1.1754944e-38, %v1238_v22 }
 0x1ba   : > { %8935 = vst [vmem:[#allocation36_spill] sm:$0xff] %v6986_v45  ;;  %v1205_v40 = vsel %vm6953_vm4, %v6892_v1, %v1201_v41  ;;  %v1496_v21 = vadd.s32 152, %v6042_v58  ;;  %v1243_v0 = vmul.f32 %v5205_v50, %v6920_v46  ;;  %vm8937_vm4 = vweird.f32 %v6872_v38  ;;  %v3307_v45 = vld [vmem:[#allocation11 + $0x3f0] sm:$0xff] }
 0x1bb   : > { %v1210_v49 = vsel %vm6939_vm12, %v1209_v61, %v1205_v40  ;;  %v1220_v3 = vsel %vm6966_vm11, %v6904_v23, %v1216_v44  ;;  %v1230_v12 = vmul.f32 %v5203_v10, %v1229_v53  ;;  %vm7009_vm6 = vmor %vm8937_vm4, %vm1233_vm1  ;;  %v1251_v23 = vand.u32 2147483647, %v6920_v46  ;;  %v2796_v61 = vld [vmem:[#allocation2 + $0x20] sm:$0xff] }
 0x1bc   : > { %v7002_v28 = vmul.f32 %v1210_v49, %v6783_v30  ;;  %v1225_v1 = vsel %vm6970_vm3, %v1224_v11, %v1220_v3  ;;  %v1253_v22 = vand.u32 2147483648, %v6920_v46  ;;  %v1244_v44 = vsub.f32 1.0, %v1243_v0  ;;  %v7030_v3 = vld [vmem:[#allocation2 + $0xa8] sm:$0xff] }
 0x1bd   : > { %v7016_v41 = vmul.f32 %v1225_v1, %v6793_v33  ;;  %v1231_v30 = vadd.f32 %v5203_v10, %v1230_v12  ;;  %vm1248_vm11 = vweird.f32 %v5205_v50  ;;  %2942 = vmatmul.f32.gmra.mxu1 %v2796_v61  ;;  %v1646_v53 = vand.u32 15, %v1496_v21  ;;  %v2128_v12 = vld [vmem:[#allocation11 + $0x58] sm:$0xff]  ;;  %v7034_v21 = vpop.f32.mrf.mxu2 }
 0x1be   : > { %1317 = vst [vmem:[#allocation2 + $0xf8] sm:$0xff] %v7002_v28  ;;  %2413 = vmatmul.f32.gmra.mxu3 %v2167_v57  ;;  %v1245_v11 = vmul.f32 %v5205_v50, %v1244_v44  ;;  %vm8940_vm12 = vweird.f32 %v6920_v46  ;;  %v1254_v49 = vor.u32 1.1754944e-38, %v1253_v22  ;;  %v2168_v22 = vld [vmem:[#allocation2 + $0xa1] sm:$0xff]  ;;  %v1498_v57 = vadd.s32 168, %v6042_v58 }
 0x1bf   : > { %1318 = vst [vmem:[#allocation2 + $0x100] sm:$0xff] %v7016_v41  ;;  %v1235_v38 = vsel %vm7009_vm6, %v5203_v10, %v1231_v30  ;;  %2517 = vmatmul.f32.gmra.mxu2 %v1974_v27  ;;  %vm7026_vm3 = vmor %vm8940_vm12, %vm1248_vm11  ;;  %vm1252_vm6 = vcmp.eq.f32.partialorder %v1251_v23, 8.507059e+37  ;;  %v1625_v10 = vand.u32 15, %v6875_v55  ;;  %2573 = vmatpush.msrb.mxu3 %v2128_v12  ;;  %vm7041_vm1 = vcmp.ne.s32.totalorder %v1646_v53, 15  ;;  %v7053_v61 = vpop.f32.mrf.mxu0  ;;  %v2127_v30 = vld [vmem:[#allocation11 + $0x50] sm:$0xff]  ;;  %v2169_v53 = vld [vmem:[#allocation2 + $0xa9] sm:$0xff] }
 0x1c0   : > { %v1240_v33 = vsel %vm6981_vm7, %v1239_v42, %v1235_v38  ;;  %v1246_v1 = vadd.f32 %v5205_v50, %v1245_v11  ;;  %v7037_v48 = vpop.f32.mrf.mxu1  ;;  %v8944_v42 = vmov 0  ;;  %v8947_v23 = vmov 0  ;;  %8950 = vst [vmem:[#allocation41_spill] sm:$0xff] %v7053_v61  ;;  %v7070_v38 = vld [vmem:[#allocation2 + $0x30] sm:$0xff]  ;;  %v7079_v12 = vld [vmem:[#allocation2 + $0xb8] sm:$0xff] }
 0x1c1   : > { %v1287_v0 = vmul.f32 %v1240_v33, %v6807_v54  ;;  %2758 = vmatmul.f32.gmra.mxu0 %v7030_v3  ;;  %8943 = vst [vmem:[#allocation38_spill] sm:$0xff] %v7037_v48  ;;  %v8945_v42 = vsel %vm7041_vm1, 4294967295, %v8944_v42  ;;  %vm7048_vm7 = vcmp.ne.s32.totalorder %v1625_v10, 0  ;;  %2574 = vmatpush.msrb.mxu3 %v2127_v30  ;;  %v1495_v11 = vadd.s32 144, %v6042_v58  ;;  %v7074_v33 = vld [vmem:[#allocation2 + $0x9f] sm:$0xff]  ;;  %v2170_v30 = vld [vmem:[#allocation2 + $0xb1] sm:$0xff] }
 0x1c2   : > { %v1250_v46 = vsel %vm7026_vm3, %v5205_v50, %v1246_v1  ;;  %8946 = vst [vmem:[#allocation39_spill] sm:$0xff] %v8945_v42  ;;  %v8948_v23 = vsel %vm7048_vm7, 4294967295, %v8947_v23  ;;  %v7057_v50 = vld [vmem:[#allocation2 + $0x97] sm:$0xff]  ;;  %v8954_v10 = vmov 0  ;;  %v7116_v61 = vld [vmem:[#allocation2 + $0xaf] sm:$0xff] }
 0x1c3   : > { %1319 = vst [vmem:[#allocation2 + $0x108] sm:$0xff] %v1287_v0  ;;  %v1255_v54 = vsel %vm1252_vm6, %v1254_v49, %v1250_v46  ;;  %v1660_v49 = vand.u32 15, %v1498_v57  ;;  %v2126_v0 = vld [vmem:[#allocation11 + $0x48] sm:$0xff]  ;;  %v1639_v1 = vand.u32 15, %v1495_v11  ;;  %v7099_v57 = vld [vmem:[#allocation2 + $0xa7] sm:$0xff] }
 0x1c4   : > { %v1288_v55 = vmul.f32 %v1255_v54, %v6824_v14  ;;  %8949 = vst [vmem:[#allocation40_spill] sm:$0xff] %v8948_v23  ;;  %v7062_v14 = vld [vmem:[#allocation2 + $0xb0] sm:$0xff]  ;;  %2575 = vmatpush.msrb.mxu3 %v2126_v0  ;;  %v7086_v46 = vld [vmem:[#allocation2 + $0x38] sm:$0xff]  ;;  %v7104_v11 = vld [vmem:[#allocation2 + $0xc0] sm:$0xff]  ;;  %v1500_v0 = vadd.s32 184, %v6042_v58 }
 0x1c5   : > { %2945 = vmatmul.f32.gmra.mxu1 %v7045_v2  ;;  %v7067_v44 = vpop.f32.mrf.mxu2  ;;  %vm7082_vm4 = vcmp.ne.s32.totalorder %v1660_v49, 15  ;;  %vm7090_vm11 = vcmp.ne.s32.totalorder %v1639_v1, 0  ;;  %v7110_v1 = vld [vmem:[#allocation2 + $0x40] sm:$0xff]  ;;  %8963 = vst [vmem:[#allocation50_spill] sm:$0xff] %v7116_v61  ;;  %v2173_v42 = vld [vmem:[#allocation2 + $0xc9] sm:$0xff] }
 0x1c6   : > { %4770 = vmatmul.msk.f32.gmra.mxu3 %vm7041_vm1, %v2168_v22  ;;  %1320 = vst [vmem:[#allocation2 + $0x110] sm:$0xff] %v1288_v55  ;;  %v8955_v10 = vsel %vm7082_vm4, 4294967295, %v8954_v10  ;;  %v7531_v23 = vld [vmem:[#allocation2 + $0x89] sm:$0xff] }
 0x1c7   : > { %4785 = vmatmul.msk.f32.gmra.mxu2 %vm7048_vm7, %v7057_v50  ;;  %8952 = vst [vmem:[#allocation43_spill] sm:$0xff] %v7067_v44  ;;  %v7076_v40 = vpop.f32.mrf.mxu0 }
 0x1c8   : > { %v7065_v27 = vpop.f32.mrf.mxu1  ;;  %8953 = vst [vmem:[#allocation44_spill] sm:$0xff] %v7076_v40  ;;  %v2171_v40 = vld [vmem:[#allocation2 + $0xb9] sm:$0xff] }
 0x1c9   : > { %2761 = vmatmul.f32.gmra.mxu0 %v7062_v14  ;;  %8951 = vst [vmem:[#allocation42_spill] sm:$0xff] %v7065_v27  ;;  %v2124_v27 = vld [vmem:[#allocation11 + $0x38] sm:$0xff] }
 0x1ca   : > { %8956 = vst [vmem:[#allocation45_spill] sm:$0xff] %v8955_v10 }
 0x1cd   : > { %2948 = vmatmul.f32.gmra.mxu1 %v7070_v38  ;;  %v7095_v22 = vpop.f32.mrf.mxu2 }
 0x1ce   : > { %2419 = vmatmul.f32.gmra.mxu3 %v2169_v53  ;;  %8960 = vst [vmem:[#allocation47_spill] sm:$0xff] %v7095_v22  ;;  %v2125_v53 = vld [vmem:[#allocation11 + $0x40] sm:$0xff] }
 0x1cf   : > { %2523 = vmatmul.f32.gmra.mxu2 %v7074_v33  ;;  %v7106_v49 = vpop.f32.mrf.mxu0  ;;  %2576 = vmatpush.msrb.mxu3 %v2125_v53  ;;  %v7121_v53 = vld [vmem:[#allocation2 + $0xc8] sm:$0xff] }
 0x1d0   : > { %v7088_v54 = vpop.f32.mrf.mxu1  ;;  %8961 = vst [vmem:[#allocation48_spill] sm:$0xff] %v7106_v49  ;;  %v1674_v49 = vand.u32 15, %v1500_v0  ;;  %v2172_v0 = vld [vmem:[#allocation2 + $0xc1] sm:$0xff] }
 0x1d1   : > { %2764 = vmatmul.f32.gmra.mxu0 %v7079_v12  ;;  %8957 = vst [vmem:[#allocation46_spill] sm:$0xff] %v7088_v54  ;;  %2577 = vmatpush.msrb.mxu3 %v2124_v27 }
 0x1d2   : > { %vm7126_vm12 = vcmp.ne.s32.totalorder %v1674_v49, 15  ;;  %v2123_v49 = vld [vmem:[#allocation11 + $0x30] sm:$0xff] }
 0x1d3   : > { %2578 = vmatpush.msrb.mxu3 %v2123_v49 }
 0x1d5   : > { %2951 = vmatmul.f32.gmra.mxu1 %v7086_v46  ;;  %v7118_v10 = vpop.f32.mrf.mxu2 }
 0x1d6   : > { %4771 = vmatmul.msk.f32.gmra.mxu3 %vm7082_vm4, %v2170_v30  ;;  %v1497_v30 = vadd.s32 160, %v6042_v58  ;;  %8964 = vst [vmem:[#allocation51_spill] sm:$0xff] %v7118_v10 }
 0x1d7   : > { %4786 = vmatmul.msk.f32.gmra.mxu2 %vm7090_vm11, %v7099_v57  ;;  %v7124_v48 = vpop.f32.mrf.mxu0 }
 0x1d8   : > { %v7114_v54 = vpop.f32.mrf.mxu1  ;;  %v1653_v5 = vand.u32 15, %v1497_v30  ;;  %8965 = vst [vmem:[#allocation52_spill] sm:$0xff] %v7124_v48  ;;  %v7139_v30 = vld [vmem:[#allocation2 + $0xb7] sm:$0xff] }
 0x1d9   : > { %2767 = vmatmul.f32.gmra.mxu0 %v7104_v11  ;;  %8962 = vst [vmem:[#allocation49_spill] sm:$0xff] %v7114_v54  ;;  %v7130_v54 = vld [vmem:[#allocation2 + $0x48] sm:$0xff] }
 0x1da   : > { %vm7132_vm3 = vcmp.ne.s32.totalorder %v1653_v5, 0  ;;  %8971 = vst [vmem:[#allocation54_spill] sm:$0xff] %v7139_v30  ;;  %v1502_v5 = vadd.s32 200, %v6042_v58 }
 0x1dd   : > { %2954 = vmatmul.f32.gmra.mxu1 %v7110_v1  ;;  %v7146_v48 = vpop.f32.mrf.mxu2 }
 0x1de   : > { %2425 = vmatmul.f32.gmra.mxu3 %v2171_v40  ;;  %v8966_v40 = vmov 0  ;;  %8973 = vst [vmem:[#allocation56_spill] sm:$0xff] %v7146_v48  ;;  %v2122_v48 = vld [vmem:[#allocation11 + $0x28] sm:$0xff] }
 0x1df   : > { %2529 = vmatmul.f32.gmra.mxu2 %v7116_v61  ;;  %v8967_v40 = vsel %vm7126_vm12, 4294967295, %v8966_v40  ;;  %2579 = vmatpush.msrb.mxu3 %v2122_v48  ;;  %v3305_v48 = vld [vmem:[#allocation11 + $0x3e0] sm:$0xff] }
 0x1e0   : > { %8968 = vst [vmem:[#allocation53_spill] sm:$0xff] %v8967_v40  ;;  %v7154_v40 = vpop.f32.mrf.mxu0 }
 0x1e1   : > { %2770 = vmatmul.f32.gmra.mxu0 %v7121_v53  ;;  %v7144_v27 = vpop.f32.mrf.mxu1  ;;  %8974 = vst [vmem:[#allocation57_spill] sm:$0xff] %v7154_v40  ;;  %v8978_v40 = vmov 0 }
 0x1e2   : > { %8972 = vst [vmem:[#allocation55_spill] sm:$0xff] %v7144_v27  ;;  %v1688_v27 = vand.u32 15, %v1502_v5  ;;  %v3306_v5 = vld [vmem:[#allocation11 + $0x3e8] sm:$0xff] }
 0x1e4   : > { %vm7164_vm6 = vcmp.ne.s32.totalorder %v1688_v27, 15  ;;  %v7177_v27 = vld [vmem:[#allocation2 + $0xc7] sm:$0xff] }
 0x1e5   : > { %2957 = vmatmul.f32.gmra.mxu1 %v7130_v54  ;;  %v7162_v18 = vpop.f32.mrf.mxu2  ;;  %v8979_v40 = vsel %vm7164_vm6, 4294967295, %v8978_v40  ;;  %8984 = vst [vmem:[#allocation63_spill] sm:$0xff] %v7177_v27 }
 0x1e6   : > { %4772 = vmatmul.msk.f32.gmra.mxu3 %vm7126_vm12, %v2172_v0  ;;  %v1499_v0 = vadd.s32 176, %v6042_v58  ;;  %8977 = vst [vmem:[#allocation60_spill] sm:$0xff] %v7162_v18  ;;  %v1501_v18 = vadd.s32 192, %v6042_v58 }
 0x1e7   : > { %4787 = vmatmul.msk.f32.gmra.mxu2 %vm7132_vm3, %v7139_v30  ;;  %v7156_v30 = vld [vmem:[#allocation2 + $0xbf] sm:$0xff]  ;;  %8980 = vst [vmem:[#allocation61_spill] sm:$0xff] %v8979_v40 }
 0x1e8   : > { %8975 = vst [vmem:[#allocation58_spill] sm:$0xff] %v7156_v30  ;;  %v1667_v49 = vand.u32 15, %v1499_v0  ;;  %v7179_v0 = vpop.f32.mrf.mxu0 }
 0x1e9   : > { %2773 = vmatmul.f32.gmra.mxu0 %v6690_v20  ;;  %v3308_v20 = vld [vmem:[#allocation11 + $0x3f8] sm:$0xff]  ;;  %8985 = vst [vmem:[#allocation64_spill] sm:$0xff] %v7179_v0  ;;  %v3302_v0 = vld [vmem:[#allocation11 + $0x3c8] sm:$0xff] }
 0x1ea   : > { %v7160_v22 = vpop.f32.mrf.mxu1  ;;  %3422 = vmatpush.msra.mxu0 %v3308_v20  ;;  %vm7170_vm12 = vcmp.ne.s32.totalorder %v1667_v49, 0  ;;  %v3304_v20 = vld [vmem:[#allocation11 + $0x3d8] sm:$0xff]  ;;  %v3303_v49 = vld [vmem:[#allocation11 + $0x3d0] sm:$0xff] }
 0x1eb   : > { %8976 = vst [vmem:[#allocation59_spill] sm:$0xff] %v7160_v22 }
 0x1ec   : > { %3423 = vmatpush.msra.mxu0 %v3307_v45  ;;  %v2121_v45 = vld [vmem:[#allocation11 + $0x20] sm:$0xff] }
 0x1ed   : > { %2960 = vmatmul.f32.gmra.mxu1 %v7150_v35  ;;  %2580 = vmatpush.msrb.mxu3 %v2121_v45  ;;  %v7190_v40 = vpop.f32.mrf.mxu2  ;;  %v7194_v45 = vld [vmem:[#allocation2 + $0xcf] sm:$0xff] }
 0x1ee   : > { %2431 = vmatmul.f32.gmra.mxu3 %v2173_v42  ;;  %v7168_v42 = vld [vmem:[#allocation2 + $0x58] sm:$0xff]  ;;  %3424 = vmatpush.msra.mxu0 %v3306_v5  ;;  %v7186_v5 = vld [vmem:[#allocation2 + $0x60] sm:$0xff]  ;;  %8987 = vst [vmem:[#allocation66_spill] sm:$0xff] %v7190_v40 }
 0x1ef   : > { %2535 = vmatmul.f32.gmra.mxu2 %v7156_v30  ;;  %v8981_v30 = vmov 0  ;;  %8988 = vst [vmem:[#allocation67_spill] sm:$0xff] %v7194_v45  ;;  %v3299_v40 = vld [vmem:[#allocation11 + $0x3b0] sm:$0xff] }
 0x1f0   : > { %v8982_v30 = vsel %vm7170_vm12, 4294967295, %v8981_v30  ;;  %3425 = vmatpush.msra.mxu0 %v3305_v48  ;;  %v2175_v48 = vld [vmem:[#allocation2 + $0xd9] sm:$0xff] }
 0x1f1   : > { %2776 = vmatmul.f32.gmra.mxu0 %v6761_v43  ;;  %8983 = vst [vmem:[#allocation62_spill] sm:$0xff] %v8982_v30  ;;  %v2174_v43 = vld [vmem:[#allocation2 + $0xd1] sm:$0xff]  ;;  %v7197_v30 = vpop.f32.mrf.mxu0 }
 0x1f2   : > { %3426 = vmatpush.msra.mxu0 %v3304_v20  ;;  %8989 = vst [vmem:[#allocation68_spill] sm:$0xff] %v7197_v30  ;;  %v2921_v30 = vld [vmem:[#allocation11 + $0x2f0] sm:$0xff] }
 0x1f4   : > { %3427 = vmatpush.msra.mxu0 %v3303_v49  ;;  %v1681_v49 = vand.u32 15, %v1501_v18  ;;  %v2176_v18 = vld [vmem:[#allocation2 + $0xe1] sm:$0xff] }
 0x1f5   : > { %2963 = vmatmul.f32.gmra.mxu1 %v7168_v42  ;;  %v7188_v22 = vpop.f32.mrf.mxu1 }
 0x1f6   : > { %4773 = vmatmul.msk.f32.gmra.mxu3 %vm7164_vm6, %v2174_v43  ;;  %v1504_v43 = vadd.s32 216, %v6042_v58  ;;  %8986 = vst [vmem:[#allocation65_spill] sm:$0xff] %v7188_v22  ;;  %3428 = vmatpush.msra.mxu0 %v3302_v0  ;;  %v3300_v22 = vld [vmem:[#allocation11 + $0x3b8] sm:$0xff]  ;;  %vm7206_vm4 = vcmp.ne.s32.totalorder %v1681_v49, 0 }
 0x1f7   : > { %4788 = vmatmul.msk.f32.gmra.mxu2 %vm7170_vm12, %v7177_v27  ;;  %v2120_v27 = vld [vmem:[#allocation11 + $0x18] sm:$0xff] }
 0x1f8   : > { %v1702_v20 = vand.u32 15, %v1504_v43  ;;  %2581 = vmatpush.msrb.mxu3 %v2120_v27  ;;  %v7204_v0 = vld [vmem:[#allocation2 + $0x68] sm:$0xff]  ;;  %v3298_v43 = vld [vmem:[#allocation11 + $0x3a8] sm:$0xff] }
 0x1f9   : > { %2779 = vmatmul.f32.gmra.mxu0 %v6796_v19  ;;  %v3301_v19 = vld [vmem:[#allocation11 + $0x3c0] sm:$0xff]  ;;  %v3296_v49 = vld [vmem:[#allocation11 + $0x398] sm:$0xff] }
 0x1fa   : > { %3429 = vmatpush.msra.mxu0 %v3301_v19  ;;  %vm7200_vm6 = vcmp.ne.s32.totalorder %v1702_v20, 15  ;;  %v2922_v20 = vld [vmem:[#allocation11 + $0x2f8] sm:$0xff] }
 0x1fb   : > { %3036 = vmatpush.msra.mxu2 %v2922_v20  ;;  %v7230_v20 = vld [vmem:[#allocation2 + $0xdf] sm:$0xff] }
 0x1fc   : > { %3430 = vmatpush.msra.mxu0 %v3300_v22  ;;  %v7215_v22 = vld [vmem:[#allocation2 + $0xd7] sm:$0xff]  ;;  %9000 = vst [vmem:[#allocation75_spill] sm:$0xff] %v7230_v20 }
 0x1fd   : > { %2966 = vmatmul.f32.gmra.mxu1 %v7186_v5  ;;  %8997 = vst [vmem:[#allocation72_spill] sm:$0xff] %v7215_v22  ;;  %3037 = vmatpush.msra.mxu2 %v2921_v30  ;;  %v2118_v30 = vld [vmem:[#allocation11 + $0x8] sm:$0xff] }
 0x1fe   : > { %2437 = vmatmul.f32.gmra.mxu3 %v2175_v48  ;;  %v8990_v48 = vmov 0  ;;  %3431 = vmatpush.msra.mxu0 %v3299_v40  ;;  %v2119_v40 = vld [vmem:[#allocation11 + $0x10] sm:$0xff] }
 0x1ff   : > { %2541 = vmatmul.f32.gmra.mxu2 %v7194_v45  ;;  %v8991_v48 = vsel %vm7200_vm6, 4294967295, %v8990_v48  ;;  %v8993_v45 = vmov 0  ;;  %v7217_v27 = vpop.f32.mrf.mxu2  ;;  %2582 = vmatpush.msrb.mxu3 %v2119_v40  ;;  %v2919_v40 = vld [vmem:[#allocation11 + $0x2e0] sm:$0xff] }
 0x200   : > { %8992 = vst [vmem:[#allocation69_spill] sm:$0xff] %v8991_v48  ;;  %v8994_v45 = vsel %vm7206_vm4, 4294967295, %v8993_v45  ;;  %3432 = vmatpush.msra.mxu0 %v3298_v43  ;;  %v3295_v43 = vld [vmem:[#allocation11 + $0x390] sm:$0xff]  ;;  %v1506_v48 = vadd.s32 232, %v6042_v58 }
 0x201   : > { %2782 = vmatmul.f32.gmra.mxu0 %v6907_v15  ;;  %8995 = vst [vmem:[#allocation70_spill] sm:$0xff] %v8994_v45  ;;  %v3297_v15 = vld [vmem:[#allocation11 + $0x3a0] sm:$0xff]  ;;  %2583 = vmatpush.msrb.mxu3 %v2118_v30  ;;  %v2913_v30 = vld [vmem:[#allocation11 + $0x2b0] sm:$0xff] }
 0x202   : > { %v7211_v19 = vpop.f32.mrf.mxu1  ;;  %8998 = vst [vmem:[#allocation73_spill] sm:$0xff] %v7217_v27  ;;  %3433 = vmatpush.msra.mxu0 %v3297_v15  ;;  %v7226_v27 = vld [vmem:[#allocation2 + $0x70] sm:$0xff]  ;;  %v1503_v15 = vadd.s32 208, %v6042_v58 }
 0x203   : > { %8996 = vst [vmem:[#allocation71_spill] sm:$0xff] %v7211_v19  ;;  %v2920_v19 = vld [vmem:[#allocation11 + $0x2e8] sm:$0xff] }
 0x204   : > { %3434 = vmatpush.msra.mxu0 %v3296_v49  ;;  %3038 = vmatpush.msra.mxu2 %v2920_v19  ;;  %v1716_v49 = vand.u32 15, %v1506_v48  ;;  %v1695_v44 = vand.u32 15, %v1503_v15  ;;  %v2917_v19 = vld [vmem:[#allocation11 + $0x2d0] sm:$0xff]  ;;  %v7242_v48 = vld [vmem:[#allocation2 + $0x78] sm:$0xff] }
 0x205   : > { %2969 = vmatmul.f32.gmra.mxu1 %v7204_v0  ;;  %v7253_v15 = vld [vmem:[#allocation2 + $0xe7] sm:$0xff] }
 0x206   : > { %4774 = vmatmul.msk.f32.gmra.mxu3 %vm7200_vm6, %v2176_v18  ;;  %v7223_v18 = vpop.f32.mrf.mxu0  ;;  %3435 = vmatpush.msra.mxu0 %v3295_v43  ;;  %v2918_v43 = vld [vmem:[#allocation11 + $0x2d8] sm:$0xff]  ;;  %vm7238_vm6 = vcmp.ne.s32.totalorder %v1716_v49, 15  ;;  %9009 = vst [vmem:[#allocation80_spill] sm:$0xff] %v7253_v15 }
 0x207   : > { %4789 = vmatmul.msk.f32.gmra.mxu2 %vm7206_vm4, %v7215_v22  ;;  %8999 = vst [vmem:[#allocation74_spill] sm:$0xff] %v7223_v18  ;;  %v3294_v22 = vld [vmem:[#allocation11 + $0x388] sm:$0xff]  ;;  %v3293_v18 = vld [vmem:[#allocation11 + $0x380] sm:$0xff]  ;;  %v7235_v61 = vpop.f32.mrf.mxu2  ;;  %vm7244_vm4 = vcmp.ne.s32.totalorder %v1695_v44, 0 }
 0x208   : > { %3436 = vmatpush.msra.mxu0 %v3294_v22  ;;  %9001 = vst [vmem:[#allocation76_spill] sm:$0xff] %v7235_v61  ;;  %3039 = vmatpush.msra.mxu2 %v2919_v40  ;;  %v2916_v22 = vld [vmem:[#allocation11 + $0x2c8] sm:$0xff]  ;;  %v2117_v44 = vld [vmem:[#allocation11] sm:$0xff]  ;;  %v2914_v40 = vld [vmem:[#allocation11 + $0x2b8] sm:$0xff] }
 0x209   : > { %2785 = vmatmul.f32.gmra.mxu0 %v6947_v17  ;;  %v2177_v17 = vld [vmem:[#allocation2 + $0xe9] sm:$0xff]  ;;  %2584 = vmatpush.msrb.mxu3 %v2117_v44 }
 0x20a   : > { %v7233_v45 = vpop.f32.mrf.mxu1  ;;  %3437 = vmatpush.msra.mxu0 %v3293_v18  ;;  %3040 = vmatpush.msra.mxu2 %v2918_v43  ;;  %v2915_v18 = vld [vmem:[#allocation11 + $0x2c0] sm:$0xff] }
 0x20c   : > { %3041 = vmatpush.msra.mxu2 %v2917_v19  ;;  %v1508_v19 = vadd.s32 248, %v6042_v58 }
 0x20d   : > { %2972 = vmatmul.f32.gmra.mxu1 %v7226_v27 }
 0x20e   : > { %2443 = vmatmul.f32.gmra.mxu3 %v2177_v17  ;;  %v9002_v17 = vmov 0  ;;  %v7248_v61 = vpop.f32.mrf.mxu0  ;;  %3042 = vmatpush.msra.mxu2 %v2916_v22  ;;  %v2912_v22 = vld [vmem:[#allocation11 + $0x2a8] sm:$0xff] }
 0x20f   : > { %2547 = vmatmul.f32.gmra.mxu2 %v7230_v20  ;;  %v9003_v17 = vsel %vm7238_vm6, 4294967295, %v9002_v17  ;;  %v9005_v20 = vmov 0  ;;  %9008 = vst [vmem:[#allocation79_spill] sm:$0xff] %v7248_v61  ;;  %v1505_v61 = vadd.s32 224, %v6042_v58 }
 0x210   : > { %9004 = vst [vmem:[#allocation77_spill] sm:$0xff] %v9003_v17  ;;  %v9006_v20 = vsel %vm7244_vm4, 4294967295, %v9005_v20  ;;  %3043 = vmatpush.msra.mxu2 %v2915_v18  ;;  %v2179_v17 = vld [vmem:[#allocation2 + $0xf9] sm:$0xff]  ;;  %v7268_v18 = vld [vmem:[#allocation2 + $0xef] sm:$0xff] }
 0x211   : > { %2788 = vmatmul.f32.gmra.mxu0 %v7002_v28  ;;  %9007 = vst [vmem:[#allocation78_spill] sm:$0xff] %v9006_v20  ;;  %v2178_v28 = vld [vmem:[#allocation2 + $0xf1] sm:$0xff]  ;;  %v1709_v20 = vand.u32 15, %v1505_v61 }
 0x212   : > { %3044 = vmatpush.msra.mxu2 %v2914_v40  ;;  %9011 = vst [vmem:[#allocation82_spill] sm:$0xff] %v7268_v18  ;;  %v3292_v40 = vld [vmem:[#allocation11 + $0x378] sm:$0xff]  ;;  %v2907_v61 = vld [vmem:[#allocation11 + $0x280] sm:$0xff] }
 0x213   : > { %3309 = vmatpush.msra.mxu3 %v3292_v40  ;;  %v1957_v40 = vld [vmem:[#allocation2 + $0x7] sm:$0xff] }
 0x214   : > { %3045 = vmatpush.msra.mxu2 %v2913_v30 }
 0x215   : > { %2975 = vmatmul.f32.gmra.mxu1 %v7242_v48 }
 0x216   : > { %4775 = vmatmul.msk.f32.gmra.mxu3 %vm7238_vm6, %v2178_v28  ;;  %v7264_v28 = vld [vmem:[#allocation2 + $0x80] sm:$0xff]  ;;  %v7270_v44 = vpop.f32.mrf.mxu0  ;;  %3046 = vmatpush.msra.mxu2 %v2912_v22  ;;  %v2908_v22 = vld [vmem:[#allocation11 + $0x288] sm:$0xff] }
 0x217   : > { %4790 = vmatmul.msk.f32.gmra.mxu2 %vm7244_vm4, %v7253_v15  ;;  %9012 = vst [vmem:[#allocation83_spill] sm:$0xff] %v7270_v44  ;;  %v1730_v15 = vand.u32 15, %v1508_v19  ;;  %v7280_v19 = vld [vmem:[#allocation2 + $0x88] sm:$0xff]  ;;  %vm7282_vm4 = vcmp.ne.s32.totalorder %v1709_v20, 0  ;;  %v9017_v44 = vmov 0 }
 0x218   : > { %v9018_v44 = vsel %vm7282_vm4, 4294967295, %v9017_v44  ;;  %v3646_v20 = vld [vmem:[#allocation11 + $0x478] sm:$0xff] }
 0x219   : > { %2791 = vmatmul.f32.gmra.mxu0 %v7016_v41  ;;  %v2911_v41 = vld [vmem:[#allocation11 + $0x2a0] sm:$0xff]  ;;  %vm7276_vm6 = vcmp.ne.s32.totalorder %v1730_v15, 15  ;;  %9019 = vst [vmem:[#allocation86_spill] sm:$0xff] %v9018_v44  ;;  %3647 = vmatpush.msra.mxu1 %v3646_v20 }
 0x21a   : > { %v7259_v49 = vpop.f32.mrf.mxu1  ;;  %v7261_v43 = vpop.f32.mrf.mxu2  ;;  %3047 = vmatpush.msra.mxu2 %v2911_v41  ;;  %v7292_v15 = vld [vmem:[#allocation2 + $0xf7] sm:$0xff] }
 0x21b   : > { %9010 = vst [vmem:[#allocation81_spill] sm:$0xff] %v7261_v43  ;;  %v2910_v43 = vld [vmem:[#allocation11 + $0x298] sm:$0xff] }
 0x21c   : > { %3048 = vmatpush.msra.mxu2 %v2910_v43  ;;  %9021 = vst [vmem:[#allocation88_spill] sm:$0xff] %v7292_v15 }
 0x21d   : > { %2978 = vmatmul.f32.gmra.mxu1 %v7264_v28 }
 0x21e   : > { %2449 = vmatmul.f32.gmra.mxu3 %v2179_v17  ;;  %v9014_v17 = vmov 0  ;;  %3049 = vmatpush.msra.mxu2 %v2909_v31  ;;  %v7297_v43 = vpop.f32.mrf.mxu0 }
 0x21f   : > { %2553 = vmatmul.f32.gmra.mxu2 %v7268_v18  ;;  %v9015_v17 = vsel %vm7276_vm6, 4294967295, %v9014_v17  ;;  %9022 = vst [vmem:[#allocation89_spill] sm:$0xff] %v7297_v43  ;;  %v7309_v43 = vld [vmem:[#allocation2 + $0xff] sm:$0xff] }
 0x220   : > { %9016 = vst [vmem:[#allocation85_spill] sm:$0xff] %v9015_v17  ;;  %3050 = vmatpush.msra.mxu2 %v2908_v22  ;;  %v1507_v22 = vadd.s32 240, %v6042_v58  ;;  %v1958_v58 = vld [vmem:[#allocation2 + $0xf] sm:$0xff] }
 0x221   : > { %3438 = vmatmul.f32.vlgmr.msra.gmra.mxu0 %v7045_v2  ;;  %v7287_v2 = vld [vmem:[#allocation2 + $0x101] sm:$0xff]  ;;  %9024 = vst [vmem:[#allocation91_spill] sm:$0xff] %v7309_v43 }
 0x222   : > { %v2402_v7 = vpop.f32.mrf.mxu1  ;;  %v7274_v30 = vpop.f32.mrf.mxu2  ;;  %9020 = vst [vmem:[#allocation87_spill] sm:$0xff] %v7287_v2  ;;  %3051 = vmatpush.msra.mxu2 %v2907_v61  ;;  %v1723_v61 = vand.u32 15, %v1507_v22  ;;  %v2277_v22 = vld [vmem:[#allocation2 + $0x107] sm:$0xff] }
 0x223   : > { %9013 = vst [vmem:[#allocation84_spill] sm:$0xff] %v7274_v30  ;;  %v7474_v30 = vld [vmem:[#allocation2 + $0x69] sm:$0xff] }
 0x225   : > { %2981 = vmatmul.f32.gmra.mxu1 %v7280_v19 }
 0x226   : > { %4776 = vmatmul.msk.f32.gmra.mxu3 %vm7276_vm6, %v7287_v2  ;;  %v7303_v2 = vld [vmem:[#allocation2 + $0x90] sm:$0xff]  ;;  %vm7320_vm6 = vcmp.ne.s32.totalorder %v1723_v61, 0 }
 0x227   : > { %4791 = vmatmul.msk.f32.gmra.mxu2 %vm7282_vm4, %v7292_v15  ;;  %v7315_v15 = vpop.f32.mrf.mxu0 }
 0x228   : > { %9025 = vst [vmem:[#allocation92_spill] sm:$0xff] %v7315_v15 }
 0x229   : > { %3441 = vmatmul.f32.gmra.mxu0 %v7070_v38  ;;  %v3291_v38 = vld [vmem:[#allocation11 + $0x370] sm:$0xff] }
 0x22a   : > { %v2405_v41 = vpop.f32.mrf.mxu1  ;;  %v2509_v31 = vpop.f32.mrf.mxu2  ;;  %3310 = vmatpush.msra.mxu3 %v3291_v38 }
 0x22b   : > { %v7301_v17 = vadd.f32 %v2509_v31, %v7233_v45 }
 0x22d   : > { %9023 = vst [vmem:[#allocation90_spill] sm:$0xff] %v7301_v17  ;;  %2984 = vmatmul.f32.gmra.mxu1 %v7303_v2  ;;  %v5347_v17 = vld [vmem:[#allocation2 + $0x6f] sm:$0xff] }
 0x22e   : > { %4793 = vmatmul.msk.f32.vlgmr.msrb.gmra.mxu3 %vm6065_vm9, %v1957_v40  ;;  %v9027_v40 = vmov 0 }
 0x22f   : > { %2559 = vmatmul.f32.gmra.mxu2 %v7309_v43  ;;  %v9028_v40 = vsel %vm7320_vm6, 4294967295, %v9027_v40  ;;  %v7332_v61 = vpop.f32.mrf.mxu0 }
 0x230   : > { %9029 = vst [vmem:[#allocation94_spill] sm:$0xff] %v9028_v40  ;;  %v3640_v40 = vld [vmem:[#allocation11 + $0x448] sm:$0xff] }
 0x231   : > { %v2408_v20 = vpop.f32.mrf.mxu3  ;;  %3444 = vmatmul.f32.gmra.mxu0 %v7086_v46  ;;  %v3645_v46 = vld [vmem:[#allocation11 + $0x470] sm:$0xff]  ;;  %9031 = vst [vmem:[#allocation96_spill] sm:$0xff] %v7332_v61 }
 0x232   : > { %v7313_v45 = vpop.f32.mrf.mxu1  ;;  %v2512_v31 = vpop.f32.mrf.mxu2  ;;  %3648 = vmatpush.msra.mxu1 %v3645_v46 }
 0x233   : > { %v7318_v18 = vadd.f32 %v2512_v31, %v7259_v49 }
 0x235   : > { %9026 = vst [vmem:[#allocation93_spill] sm:$0xff] %v7318_v18  ;;  %2987 = vmatmul.f32.gmra.mxu1 %v6890_v29  ;;  %v5335_v29 = vld [vmem:[#allocation2 + $0x17] sm:$0xff]  ;;  %v7462_v18 = vld [vmem:[#allocation2 + $0x61] sm:$0xff] }
 0x236   : > { %2588 = vmatmul.f32.gmra.mxu3 %v1958_v58  ;;  %v2278_v58 = vld [vmem:[#allocation2 + $0x10f] sm:$0xff] }
 0x237   : > { %4792 = vmatmul.msk.f32.gmra.mxu2 %vm7320_vm6, %v2277_v22  ;;  %v3290_v22 = vld [vmem:[#allocation11 + $0x368] sm:$0xff]  ;;  %v7343_v61 = vpop.f32.mrf.mxu0 }
 0x238   : > { %3311 = vmatpush.msra.mxu3 %v3290_v22  ;;  %9033 = vst [vmem:[#allocation98_spill] sm:$0xff] %v7343_v61  ;;  %v5338_v61 = vld [vmem:[#allocation2 + $0x2f] sm:$0xff] }
 0x239   : > { %v2411_v38 = vpop.f32.mrf.mxu3  ;;  %3447 = vmatmul.f32.gmra.mxu0 %v7110_v1 }
 0x23a   : > { %v7328_v15 = vpop.f32.mrf.mxu1  ;;  %v2515_v49 = vpop.f32.mrf.mxu2 }
 0x23b   : > { %v7330_v31 = vadd.f32 %v2515_v49, %v2402_v7  ;;  %v5336_v49 = vld [vmem:[#allocation2 + $0x1f] sm:$0xff] }
 0x23d   : > { %9030 = vst [vmem:[#allocation95_spill] sm:$0xff] %v7330_v31  ;;  %2990 = vmatmul.f32.gmra.mxu1 %v6977_v47 }
 0x23e   : > { %4794 = vmatmul.msk.f32.gmra.mxu3 %vm6115_vm2, %v5335_v29  ;;  %v3644_v29 = vld [vmem:[#allocation11 + $0x468] sm:$0xff] }
 0x23f   : > { %2565 = vmatmul.f32.gmra.mxu2 %v2278_v58  ;;  %3649 = vmatpush.msra.mxu1 %v3644_v29 }
 0x241   : > { %v2414_v26 = vpop.f32.mrf.mxu3  ;;  %3450 = vmatmul.f32.gmra.mxu0 %v7130_v54 }
 0x242   : > { %v7338_v1 = vpop.f32.mrf.mxu1  ;;  %v2518_v46 = vpop.f32.mrf.mxu2 }
 0x243   : > { %v7340_v7 = vadd.f32 %v2518_v46, %v2405_v41  ;;  %v5337_v41 = vld [vmem:[#allocation2 + $0x27] sm:$0xff] }
 0x244   : > { %v2828_v46 = vld [vmem:[#allocation2 + $0x21] sm:$0xff] }
 0x245   : > { %9032 = vst [vmem:[#allocation97_spill] sm:$0xff] %v7340_v7  ;;  %2993 = vmatmul.f32.gmra.mxu1 %v7030_v3 }
 0x246   : > { %2594 = vmatmul.f32.gmra.mxu3 %v5336_v49  ;;  %v7355_v49 = vpop.f32.mrf.mxu0 }
 0x247   : > { %3052 = vmatmul.f32.vlgmr.msra.gmra.mxu2 %v2827_v9  ;;  %v3289_v9 = vld [vmem:[#allocation11 + $0x360] sm:$0xff]  ;;  %9035 = vst [vmem:[#allocation100_spill] sm:$0xff] %v7355_v49 }
 0x248   : > { %3312 = vmatpush.msra.mxu3 %v3289_v9 }
 0x249   : > { %v2417_v58 = vpop.f32.mrf.mxu3  ;;  %3453 = vmatmul.f32.gmra.mxu0 %v7150_v35 }
 0x24a   : > { %v7346_v54 = vpop.f32.mrf.mxu1  ;;  %v2521_v22 = vpop.f32.mrf.mxu2 }
 0x24b   : > { %v7348_v43 = vadd.f32 %v2521_v22, %v2408_v20 }
 0x24d   : > { %9034 = vst [vmem:[#allocation99_spill] sm:$0xff] %v7348_v43  ;;  %2996 = vmatmul.f32.gmra.mxu1 %v7062_v14 }
 0x24e   : > { %4795 = vmatmul.msk.f32.gmra.mxu3 %vm6160_vm13, %v5337_v41  ;;  %v7363_v41 = vld [vmem:[#allocation2 + $0x29] sm:$0xff]  ;;  %vm9049_vm13 = vnez %v8828_v8 }
 0x24f   : > { %4809 = vmatmul.msk.f32.gmra.mxu2 %vm6061_vm8, %v2828_v46  ;;  %v3643_v46 = vld [vmem:[#allocation11 + $0x460] sm:$0xff] }
 0x250   : > { %3650 = vmatpush.msra.mxu1 %v3643_v46 }
 0x251   : > { %v2420_v35 = vpop.f32.mrf.mxu3  ;;  %3456 = vmatmul.f32.gmra.mxu0 %v7168_v42  ;;  %v7367_v42 = vpop.f32.mrf.mxu0 }
 0x252   : > { %v2524_v29 = vpop.f32.mrf.mxu2  ;;  %v7358_v20 = vpop.f32.mrf.mxu1  ;;  %9037 = vst [vmem:[#allocation102_spill] sm:$0xff] %v7367_v42 }
 0x253   : > { %v7360_v22 = vadd.f32 %v2524_v29, %v2411_v38  ;;  %v5339_v29 = vld [vmem:[#allocation2 + $0x37] sm:$0xff] }
 0x255   : > { %9036 = vst [vmem:[#allocation101_spill] sm:$0xff] %v7360_v22  ;;  %2999 = vmatmul.f32.gmra.mxu1 %v7079_v12  ;;  %v3642_v22 = vld [vmem:[#allocation11 + $0x458] sm:$0xff] }
 0x256   : > { %2600 = vmatmul.f32.gmra.mxu3 %v5338_v61  ;;  %v7376_v61 = vld [vmem:[#allocation2 + $0x31] sm:$0xff]  ;;  %3651 = vmatpush.msra.mxu1 %v3642_v22 }
 0x257   : > { %3058 = vmatmul.f32.gmra.mxu2 %v7363_v41 }
 0x259   : > { %v2423_v52 = vpop.f32.mrf.mxu3  ;;  %3459 = vmatmul.f32.gmra.mxu0 %v7186_v5  ;;  %v3288_v5 = vld [vmem:[#allocation11 + $0x358] sm:$0xff]  ;;  %v7384_v42 = vpop.f32.mrf.mxu0 }
 0x25a   : > { %v2527_v9 = vpop.f32.mrf.mxu2  ;;  %v7371_v38 = vpop.f32.mrf.mxu1  ;;  %3313 = vmatpush.msra.mxu3 %v3288_v5  ;;  %9040 = vst [vmem:[#allocation105_spill] sm:$0xff] %v7384_v42  ;;  %v7395_v5 = vld [vmem:[#allocation2 + $0xd0] sm:$0xff]  ;;  %v7402_v42 = vld [vmem:[#allocation2 + $0x41] sm:$0xff] }
 0x25b   : > { %v7369_v49 = vadd.f32 %v2527_v9, %v2414_v26 }
 0x25d   : > { %9038 = vst [vmem:[#allocation103_spill] sm:$0xff] %v7369_v49  ;;  %3002 = vmatmul.f32.gmra.mxu1 %v7104_v11 }
 0x25e   : > { %4796 = vmatmul.msk.f32.gmra.mxu3 %vm6297_vm10, %v5339_v29  ;;  %v7387_v29 = vld [vmem:[#allocation2 + $0x39] sm:$0xff]  ;;  %vm9043_vm10 = vnez %v8811_v51  ;;  %v3280_v51 = vld [vmem:[#allocation11 + $0x318] sm:$0xff] }
 0x25f   : > { %4810 = vmatmul.msk.f32.gmra.mxu2 %vm6108_vm0, %v7376_v61 }
 0x261   : > { %v2426_v46 = vpop.f32.mrf.mxu3  ;;  %3462 = vmatmul.f32.gmra.mxu0 %v7204_v0 }
 0x262   : > { %v2530_v26 = vpop.f32.mrf.mxu2  ;;  %v7389_v49 = vpop.f32.mrf.mxu1 }
 0x263   : > { %v7382_v9 = vadd.f32 %v2530_v26, %v2417_v58  ;;  %v5341_v26 = vld [vmem:[#allocation2 + $0x47] sm:$0xff] }
 0x265   : > { %9039 = vst [vmem:[#allocation104_spill] sm:$0xff] %v7382_v9  ;;  %3005 = vmatmul.f32.gmra.mxu1 %v7121_v53  ;;  %v3641_v9 = vld [vmem:[#allocation11 + $0x450] sm:$0xff] }
 0x266   : > { %2606 = vmatmul.f32.gmra.mxu3 %v5340_v60  ;;  %v7400_v60 = vpop.f32.mrf.mxu0  ;;  %3652 = vmatpush.msra.mxu1 %v3641_v9 }
 0x267   : > { %3064 = vmatmul.f32.gmra.mxu2 %v7387_v29  ;;  %9042 = vst [vmem:[#allocation107_spill] sm:$0xff] %v7400_v60  ;;  %v7415_v60 = vld [vmem:[#allocation2 + $0x49] sm:$0xff] }
 0x268   : > { %3653 = vmatpush.msra.mxu1 %v3640_v40  ;;  %v3638_v40 = vld [vmem:[#allocation11 + $0x438] sm:$0xff] }
 0x269   : > { %v2429_v43 = vpop.f32.mrf.mxu3  ;;  %3465 = vmatmul.f32.gmra.mxu0 %v7226_v27  ;;  %v3287_v27 = vld [vmem:[#allocation11 + $0x350] sm:$0xff] }
 0x26a   : > { %v2533_v0 = vpop.f32.mrf.mxu2  ;;  %v7407_v22 = vpop.f32.mrf.mxu1  ;;  %3314 = vmatpush.msra.mxu3 %v3287_v27 }
 0x26b   : > { %v7393_v58 = vadd.f32 %v2533_v0, %v2420_v35 }
 0x26d   : > { %9041 = vst [vmem:[#allocation106_spill] sm:$0xff] %v7393_v58  ;;  %3008 = vmatmul.f32.gmra.mxu1 %v7395_v5 }
 0x26e   : > { %4797 = vmatmul.msk.f32.gmra.mxu3 %vm6514_vm14, %v5341_v26  ;;  %v5342_v26 = vld [vmem:[#allocation2 + $0x4f] sm:$0xff]  ;;  %v7418_v7 = vpop.f32.mrf.mxu0  ;;  %vm9048_vm14 = vnez %v8889_v37 }
 0x26f   : > { %4811 = vmatmul.msk.f32.gmra.mxu2 %vm9043_vm10, %v7402_v42  ;;  %9045 = vst [vmem:[#allocation109_spill] sm:$0xff] %v7418_v7 }
 0x271   : > { %v2432_v35 = vpop.f32.mrf.mxu3  ;;  %3468 = vmatmul.f32.gmra.mxu0 %v7242_v48 }
 0x272   : > { %v2536_v0 = vpop.f32.mrf.mxu2 }
 0x273   : > { %v7410_v58 = vadd.f32 %v2536_v0, %v2423_v52  ;;  %v7421_v52 = vpop.f32.mrf.mxu1  ;;  %v7425_v0 = vld [vmem:[#allocation2 + $0xe0] sm:$0xff] }
 0x274   : > { %9046 = vst [vmem:[#allocation110_spill] sm:$0xff] %v7421_v52  ;;  %v7440_v52 = vld [vmem:[#allocation2 + $0xe8] sm:$0xff] }
 0x275   : > { %9044 = vst [vmem:[#allocation108_spill] sm:$0xff] %v7410_v58  ;;  %3011 = vmatmul.f32.gmra.mxu1 %v7412_v24  ;;  %v7430_v58 = vld [vmem:[#allocation2 + $0x51] sm:$0xff] }
 0x276   : > { %2612 = vmatmul.f32.gmra.mxu3 %v5342_v26  ;;  %v5343_v26 = vld [vmem:[#allocation2 + $0x57] sm:$0xff] }
 0x277   : > { %3070 = vmatmul.f32.gmra.mxu2 %v7415_v60 }
 0x279   : > { %v2435_v31 = vpop.f32.mrf.mxu3  ;;  %3471 = vmatmul.f32.gmra.mxu0 %v7264_v28  ;;  %v3286_v28 = vld [vmem:[#allocation11 + $0x348] sm:$0xff] }
 0x27a   : > { %v2539_v48 = vpop.f32.mrf.mxu2  ;;  %3315 = vmatpush.msra.mxu3 %v3286_v28 }
 0x27b   : > { %v7423_v27 = vadd.f32 %v2539_v48, %v2426_v46  ;;  %v7436_v46 = vpop.f32.mrf.mxu0  ;;  %v7442_v37 = vpop.f32.mrf.mxu1 }
 0x27c   : > { %9050 = vst [vmem:[#allocation112_spill] sm:$0xff] %v7436_v46  ;;  %v3639_v46 = vld [vmem:[#allocation11 + $0x440] sm:$0xff] }
 0x27d   : > { %9047 = vst [vmem:[#allocation111_spill] sm:$0xff] %v7423_v27  ;;  %3014 = vmatmul.f32.gmra.mxu1 %v7425_v0  ;;  %v7445_v27 = vld [vmem:[#allocation2 + $0x59] sm:$0xff] }
 0x27e   : > { %4798 = vmatmul.msk.f32.gmra.mxu3 %vm9048_vm14, %v5343_v26  ;;  %9052 = vst [vmem:[#allocation114_spill] sm:$0xff] %v7442_v37  ;;  %v5344_v26 = vld [vmem:[#allocation2 + $0x5f] sm:$0xff]  ;;  %3654 = vmatpush.msra.mxu1 %v3639_v46  ;;  %vm9056_vm14 = vnez %v8847_v16 }
 0x27f   : > { %4812 = vmatmul.msk.f32.gmra.mxu2 %vm9049_vm13, %v7430_v58  ;;  %v7469_v46 = vld [vmem:[#allocation2 + $0xf8] sm:$0xff] }
 0x280   : > { %3655 = vmatpush.msra.mxu1 %v3638_v40  ;;  %v3278_v16 = vld [vmem:[#allocation11 + $0x308] sm:$0xff] }
 0x281   : > { %v2438_v9 = vpop.f32.mrf.mxu3  ;;  %3474 = vmatmul.f32.gmra.mxu0 %v7280_v19 }
 0x282   : > { %v2542_v48 = vpop.f32.mrf.mxu2 }
 0x283   : > { %v7438_v7 = vadd.f32 %v2542_v48, %v2429_v43  ;;  %v7453_v48 = vld [vmem:[#allocation2 + $0xf0] sm:$0xff]  ;;  %v7455_v37 = vpop.f32.mrf.mxu0 }
 0x284   : > { %9054 = vst [vmem:[#allocation116_spill] sm:$0xff] %v7455_v37  ;;  %v3637_v37 = vld [vmem:[#allocation11 + $0x430] sm:$0xff] }
 0x285   : > { %9051 = vst [vmem:[#allocation113_spill] sm:$0xff] %v7438_v7  ;;  %3017 = vmatmul.f32.gmra.mxu1 %v7440_v52  ;;  %v7460_v7 = vpop.f32.mrf.mxu1 }
 0x286   : > { %2618 = vmatmul.f32.gmra.mxu3 %v5344_v26  ;;  %v5345_v26 = vld [vmem:[#allocation2 + $0x67] sm:$0xff]  ;;  %9055 = vst [vmem:[#allocation117_spill] sm:$0xff] %v7460_v7  ;;  %3656 = vmatpush.msra.mxu1 %v3637_v37  ;;  %v3635_v7 = vld [vmem:[#allocation11 + $0x420] sm:$0xff] }
 0x287   : > { %3076 = vmatmul.f32.gmra.mxu2 %v7445_v27  ;;  %v3633_v37 = vld [vmem:[#allocation11 + $0x410] sm:$0xff] }
 0x289   : > { %v7448_v19 = vpop.f32.mrf.mxu3  ;;  %3477 = vmatmul.f32.gmra.mxu0 %v7303_v2  ;;  %v3285_v2 = vld [vmem:[#allocation11 + $0x340] sm:$0xff] }
 0x28a   : > { %v2545_v43 = vpop.f32.mrf.mxu2  ;;  %3316 = vmatpush.msra.mxu3 %v3285_v2  ;;  %v3634_v2 = vld [vmem:[#allocation11 + $0x418] sm:$0xff] }
 0x28b   : > { %v7451_v28 = vadd.f32 %v2545_v43, %v2432_v35  ;;  %v5346_v43 = vld [vmem:[#allocation2 + $0x98] sm:$0xff]  ;;  %v7472_v44 = vpop.f32.mrf.mxu0 }
 0x28c   : > { %9058 = vst [vmem:[#allocation119_spill] sm:$0xff] %v7472_v44  ;;  %v3631_v44 = vld [vmem:[#allocation11 + $0x400] sm:$0xff] }
 0x28d   : > { %9053 = vst [vmem:[#allocation115_spill] sm:$0xff] %v7451_v28  ;;  %3020 = vmatmul.f32.gmra.mxu1 %v7453_v48 }
 0x28e   : > { %4799 = vmatmul.msk.f32.gmra.mxu3 %vm6819_vm15, %v5345_v26  ;;  %v3636_v26 = vld [vmem:[#allocation11 + $0x428] sm:$0xff]  ;;  %vm9060_vm15 = vnez %v8873_v63  ;;  %v9126_v63 = vld [vmem:[#allocation90_spill] sm:$0xff] }
 0x28f   : > { %4813 = vmatmul.msk.f32.gmra.mxu2 %vm9056_vm14, %v7462_v18  ;;  %3657 = vmatpush.msra.mxu1 %v3636_v26  ;;  %v3632_v26 = vld [vmem:[#allocation11 + $0x408] sm:$0xff] }
 0x291   : > { %v2444_v35 = vpop.f32.mrf.mxu3  ;;  %3480 = vmatmul.f32.gmra.mxu0 %v5346_v43  ;;  %3658 = vmatpush.msra.mxu1 %v3635_v7  ;;  %v7487_v7 = vld [vmem:[#allocation2 + $0x71] sm:$0xff] }
 0x292   : > { %v2548_v28 = vpop.f32.mrf.mxu2 }
 0x293   : > { %v7467_v56 = vadd.f32 %v2548_v28, %v2435_v31  ;;  %v7477_v31 = vpop.f32.mrf.mxu1  ;;  %3659 = vmatpush.msra.mxu1 %v3634_v2 }
 0x294   : > { %9059 = vst [vmem:[#allocation120_spill] sm:$0xff] %v7477_v31  ;;  %v5349_v31 = vld [vmem:[#allocation2 + $0x7f] sm:$0xff] }
 0x295   : > { %9057 = vst [vmem:[#allocation118_spill] sm:$0xff] %v7467_v56  ;;  %3023 = vmatmul.f32.gmra.mxu1 %v7469_v46  ;;  %v5348_v56 = vld [vmem:[#allocation2 + $0x77] sm:$0xff] }
 0x296   : > { %2624 = vmatmul.f32.gmra.mxu3 %v5347_v17  ;;  %v7482_v17 = vld [vmem:[#allocation2 + $0x100] sm:$0xff]  ;;  %3660 = vmatpush.msra.mxu1 %v3633_v37 }
 0x297   : > { %3082 = vmatmul.f32.gmra.mxu2 %v7474_v30 }
 0x298   : > { %3661 = vmatpush.msra.mxu1 %v3632_v26  ;;  %v7500_v26 = vld [vmem:[#allocation2 + $0x108] sm:$0xff] }
 0x299   : > { %v2447_v28 = vpop.f32.mrf.mxu3  ;;  %3483 = vmatmul.f32.gmra.mxu0 %v6977_v47  ;;  %v3284_v47 = vld [vmem:[#allocation11 + $0x338] sm:$0xff] }
 0x29a   : > { %v2551_v40 = vpop.f32.mrf.mxu2  ;;  %3662 = vmatpush.msra.mxu1 %v3631_v44  ;;  %3317 = vmatpush.msra.mxu3 %v3284_v47  ;;  %v7503_v44 = vld [vmem:[#allocation2 + $0x79] sm:$0xff] }
 0x29b   : > { %v7480_v43 = vadd.f32 %v2551_v40, %v2438_v9  ;;  %v7492_v9 = vpop.f32.mrf.mxu0  ;;  %v7495_v37 = vpop.f32.mrf.mxu1 }
 0x29c   : > { %9061 = vst [vmem:[#allocation121_spill] sm:$0xff] %v7492_v9 }
 0x29d   : > { %3026 = vmatmul.f32.gmra.mxu1 %v7482_v17  ;;  %9062 = vst [vmem:[#allocation122_spill] sm:$0xff] %v7495_v37 }
 0x29e   : > { %4800 = vmatmul.msk.f32.gmra.mxu3 %vm6868_vm5, %v5348_v56  ;;  %vm9067_vm5 = vnez %v8899_v32  ;;  %v9137_v32 = vld [vmem:[#allocation91_spill] sm:$0xff] }
 0x29f   : > { %4814 = vmatmul.msk.f32.gmra.mxu2 %vm9060_vm15, %v7487_v7 }
 0x2a1   : > { %v2450_v2 = vpop.f32.mrf.mxu3  ;;  %3486 = vmatmul.f32.gmra.mxu0 %v7030_v3  ;;  %v7507_v3 = vld [vmem:[#allocation2 + $0x110] sm:$0xff] }
 0x2a2   : > { %v2554_v40 = vpop.f32.mrf.mxu2 }
 0x2a3   : > { %v7498_v56 = vadd.f32 %v2554_v40, %v7448_v19  ;;  %v7509_v47 = vpop.f32.mrf.mxu0  ;;  %v7513_v40 = vpop.f32.mrf.mxu1 }
 0x2a4   : > { %9064 = vst [vmem:[#allocation124_spill] sm:$0xff] %v7509_v47 }
 0x2a5   : > { %9063 = vst [vmem:[#allocation123_spill] sm:$0xff] %v7498_v56  ;;  %3029 = vmatmul.f32.gmra.mxu1 %v7500_v26 }
 0x2a6   : > { %2630 = vmatmul.f32.gmra.mxu3 %v5349_v31  ;;  %9066 = vst [vmem:[#allocation126_spill] sm:$0xff] %v7513_v40  ;;  %v7518_v31 = vld [vmem:[#allocation2 + $0x81] sm:$0xff]  ;;  %v5351_v40 = vld [vmem:[#allocation2 + $0x8f] sm:$0xff] }
 0x2a7   : > { %3088 = vmatmul.f32.gmra.mxu2 %v7503_v44 }
 0x2a9   : > { %v2453_v9 = vpop.f32.mrf.mxu3  ;;  %3489 = vmatmul.f32.gmra.mxu0 %v7062_v14  ;;  %v3283_v14 = vld [vmem:[#allocation11 + $0x330] sm:$0xff] }
 0x2aa   : > { %v2557_v37 = vpop.f32.mrf.mxu2  ;;  %3318 = vmatpush.msra.mxu3 %v3283_v14 }
 0x2ab   : > { %v7511_v19 = vadd.f32 %v2557_v37, %v2444_v35  ;;  %v7526_v47 = vpop.f32.mrf.mxu0 }
 0x2ac   : > { %9068 = vst [vmem:[#allocation127_spill] sm:$0xff] %v7526_v47 }
 0x2ad   : > { %9065 = vst [vmem:[#allocation125_spill] sm:$0xff] %v7511_v19  ;;  %3032 = vmatmul.f32.gmra.mxu1 %v7507_v3 }
 0x2ae   : > { %4801 = vmatmul.msk.f32.gmra.mxu3 %vm7048_vm7, %v5350_v6  ;;  %v7529_v6 = vpop.f32.mrf.mxu1  ;;  %vm9070_vm7 = vnez %v8906_v34  ;;  %v7789_v34 = vld [vmem:[#allocation2 + $0x109] sm:$0xff] }
 0x2af   : > { %4815 = vmatmul.msk.f32.gmra.mxu2 %vm9067_vm5, %v7518_v31 }
 0x2b1   : > { %v2586_v56 = vpop.f32.mrf.mxu3  ;;  %3492 = vmatmul.f32.gmra.mxu0 %v7079_v12 }
 0x2b2   : > { %v2560_v35 = vpop.f32.mrf.mxu2 }
 0x2b3   : > { %v7524_v37 = vadd.f32 %v2560_v35, %v2447_v28  ;;  %v7545_v28 = vld [vmem:[#allocation2 + $0x91] sm:$0xff]  ;;  %v7559_v35 = vld [vmem:[#allocation2 + $0x99] sm:$0xff] }
 0x2b5   : > { %3663 = vmatmul.f32.vlgmr.msra.gmra.mxu1 %v7363_v41  ;;  %v7543_v41 = vpop.f32.mrf.mxu0 }
 0x2b6   : > { %2636 = vmatmul.f32.gmra.mxu3 %v5351_v40  ;;  %9069 = vst [vmem:[#allocation128_spill] sm:$0xff] %v7543_v41  ;;  %v7550_v40 = vpop.f32.mrf.mxu1 }
 0x2b7   : > { %3094 = vmatmul.f32.gmra.mxu2 %v7531_v23  ;;  %9071 = vst [vmem:[#allocation129_spill] sm:$0xff] %v7550_v40  ;;  %v9144_v40 = vld [vmem:[#allocation99_spill] sm:$0xff] }
 0x2b9   : > { %v2589_v19 = vpop.f32.mrf.mxu3  ;;  %3495 = vmatmul.f32.gmra.mxu0 %v7104_v11  ;;  %v3282_v11 = vld [vmem:[#allocation11 + $0x328] sm:$0xff] }
 0x2ba   : > { %v2563_v12 = vpop.f32.mrf.mxu2  ;;  %3319 = vmatpush.msra.mxu3 %v3282_v11 }
 0x2bb   : > { %v7535_v14 = vadd.f32 %v2563_v12, %v2450_v2 }
 0x2bd   : > { %4841 = vmatmul.msk.f32.gmra.mxu1 %vm6061_vm8, %v7376_v61  ;;  %v7562_v41 = vpop.f32.mrf.mxu0  ;;  %vm9074_vm8 = vnez %v8917_v39  ;;  %v3184_v39 = vld [vmem:[#allocation2 + $0x3f] sm:$0xff] }
 0x2be   : > { %4802 = vmatmul.msk.f32.gmra.mxu3 %vm7090_vm11, %v7057_v50  ;;  %v2474_v50 = vadd.f32 %v6959_v62, %v6801_v36  ;;  %9072 = vst [vmem:[#allocation130_spill] sm:$0xff] %v7562_v41  ;;  %v2477_v36 = vadd.f32 %v7034_v21, %v6844_v13  ;;  %v9075_v21 = vld [vmem:[#allocation30_spill] sm:$0xff]  ;;  %v9104_v41 = vld [vmem:[#allocation67_spill] sm:$0xff] }
 0x2bf   : > { %4816 = vmatmul.msk.f32.gmra.mxu2 %vm9070_vm7, %v7545_v28 }
 0x2c0   : > { %v2587_v12 = vadd.f32 %v2586_v56, %v2474_v50 }
 0x2c1   : > { %v2592_v2 = vpop.f32.mrf.mxu3  ;;  %3498 = vmatmul.f32.gmra.mxu0 %v7121_v53  ;;  %v7565_v53 = vpop.f32.mrf.mxu1 }
 0x2c2   : > { %v2566_v25 = vpop.f32.mrf.mxu2  ;;  %9073 = vst [vmem:[#allocation131_spill] sm:$0xff] %v7565_v53 }
 0x2c3   : > { %v7553_v61 = vadd.f32 %v2566_v25, %v2453_v9  ;;  %v9078_v25 = vld [vmem:[#allocation43_spill] sm:$0xff] }
 0x2c5   : > { %3669 = vmatmul.f32.gmra.mxu1 %v7387_v29  ;;  %v2700_v29 = vadd.f32 %v6685_v59, %v2587_v12  ;;  %v3281_v59 = vld [vmem:[#allocation11 + $0x320] sm:$0xff]  ;;  %v7585_v4 = vpop.f32.mrf.mxu0 }
 0x2c6   : > { %2642 = vmatmul.f32.gmra.mxu3 %v7074_v33  ;;  %v7579_v33 = vld [vmem:[#allocation2 + $0xa1] sm:$0xff] }
 0x2c7   : > { %3100 = vmatmul.f32.gmra.mxu2 %v7559_v35  ;;  %3320 = vmatpush.msra.mxu3 %v3281_v59 }
 0x2c9   : > { %v2595_v47 = vpop.f32.mrf.mxu3  ;;  %3501 = vmatmul.f32.gmra.mxu0 %v7395_v5  ;;  %v2590_v5 = vadd.f32 %v2589_v19, %v2477_v36  ;;  %v9077_v19 = vld [vmem:[#allocation34_spill] sm:$0xff]  ;;  %v9080_v36 = vld [vmem:[#allocation32_spill] sm:$0xff]  ;;  %3321 = vmatpush.msra.mxu3 %v3280_v51 }
 0x2ca   : > { %v3053_v9 = vpop.f32.mrf.mxu2  ;;  %v2480_v50 = vadd.f32 %v9078_v25, %v9077_v19  ;;  %v7617_v25 = vld [vmem:[#allocation2 + $0xb1] sm:$0xff] }
 0x2cb   : > { %v3054_v11 = vadd.f32 %v3053_v9, %v7313_v45  ;;  %v9079_v9 = vld [vmem:[#allocation50_spill] sm:$0xff] }
 0x2cd   : > { %4842 = vmatmul.msk.f32.gmra.mxu1 %vm6108_vm0, %v7402_v42  ;;  %v7574_v62 = vadd.f32 %v3054_v11, %v2700_v29  ;;  %v2703_v42 = vadd.f32 %v9075_v21, %v2590_v5  ;;  %v2593_v29 = vadd.f32 %v2592_v2, %v2480_v50  ;;  %v7603_v59 = vpop.f32.mrf.mxu0  ;;  %v9082_v21 = vld [vmem:[#allocation47_spill] sm:$0xff]  ;;  %v3187_v50 = vld [vmem:[#allocation2 + $0x57] sm:$0xff] }
 0x2ce   : > { %4803 = vmatmul.msk.f32.gmra.mxu3 %vm7132_vm3, %v7099_v57  ;;  %v7589_v57 = vpop.f32.mrf.mxu1 }
 0x2cf   : > { %4817 = vmatmul.msk.f32.gmra.mxu2 %vm9074_vm8, %v7579_v33  ;;  %9076 = vst [vmem:[#allocation30_spill] sm:$0xff] %v7589_v57  ;;  %v2706_v5 = vadd.f32 %v9080_v36, %v2593_v29  ;;  %v9087_v29 = vld [vmem:[#allocation35_spill] sm:$0xff] }
 0x2d1   : > { %v2598_v45 = vpop.f32.mrf.mxu3  ;;  %3504 = vmatmul.f32.gmra.mxu0 %v7412_v24  ;;  %v7597_v24 = vld [vmem:[#allocation2 + $0xa9] sm:$0xff] }
 0x2d2   : > { %v3056_v13 = vpop.f32.mrf.mxu2 }
 0x2d3   : > { %v3057_v56 = vadd.f32 %v3056_v13, %v7328_v15  ;;  %v9081_v13 = vld [vmem:[#allocation36_spill] sm:$0xff] }
 0x2d5   : > { %3675 = vmatmul.f32.gmra.mxu1 %v7415_v60  ;;  %v7594_v12 = vadd.f32 %v3057_v56, %v2703_v42  ;;  %v2483_v42 = vadd.f32 %v9082_v21, %v9081_v13  ;;  %v9083_v56 = vld [vmem:[#allocation54_spill] sm:$0xff] }
 0x2d6   : > { %2648 = vmatmul.f32.gmra.mxu3 %v9079_v9  ;;  %v9090_v21 = vld [vmem:[#allocation58_spill] sm:$0xff] }
 0x2d7   : > { %3106 = vmatmul.f32.gmra.mxu2 %v7597_v24 }
 0x2d9   : > { %v2601_v11 = vpop.f32.mrf.mxu3  ;;  %3507 = vmatmul.f32.gmra.mxu0 %v7425_v0  ;;  %v7615_v0 = vpop.f32.mrf.mxu1 }
 0x2da   : > { %v3059_v15 = vpop.f32.mrf.mxu2  ;;  %9085 = vst [vmem:[#allocation34_spill] sm:$0xff] %v7615_v0  ;;  %v9134_v0 = vld [vmem:[#allocation95_spill] sm:$0xff] }
 0x2db   : > { %v3060_v60 = vadd.f32 %v3059_v15, %v7338_v1  ;;  %v2596_v1 = vadd.f32 %v2595_v47, %v2483_v42  ;;  %v7631_v42 = vpop.f32.mrf.mxu0 }
 0x2dd   : > { %4843 = vmatmul.msk.f32.gmra.mxu1 %vm9043_vm10, %v7430_v58  ;;  %v7610_v2 = vadd.f32 %v3060_v60, %v2706_v5  ;;  %v2709_v15 = vadd.f32 %v9087_v29, %v2596_v1  ;;  %v9088_v5 = vld [vmem:[#allocation38_spill] sm:$0xff]  ;;  %v9089_v60 = vld [vmem:[#allocation51_spill] sm:$0xff] }
 0x2de   : > { %4804 = vmatmul.msk.f32.gmra.mxu3 %vm7170_vm12, %v9083_v56  ;;  %v2486_v13 = vadd.f32 %v9089_v60, %v9088_v5  ;;  %v7633_v56 = vld [vmem:[#allocation2 + $0xb9] sm:$0xff]  ;;  %v9095_v60 = vld [vmem:[#allocation63_spill] sm:$0xff] }
 0x2df   : > { %4818 = vmatmul.msk.f32.gmra.mxu2 %vm7041_vm1, %v7617_v25 }
 0x2e1   : > { %v2604_v58 = vpop.f32.mrf.mxu3  ;;  %3510 = vmatmul.f32.gmra.mxu0 %v7440_v52  ;;  %v2599_v52 = vadd.f32 %v2598_v45, %v2486_v13  ;;  %v7636_v51 = vpop.f32.mrf.mxu1  ;;  %v9096_v13 = vld [vmem:[#allocation70_spill] sm:$0xff] }
 0x2e2   : > { %v3062_v9 = vpop.f32.mrf.mxu2  ;;  %9091 = vst [vmem:[#allocation43_spill] sm:$0xff] %v7636_v51  ;;  %vm9097_vm0 = vnez %v9096_v13  ;;  %v7671_v51 = vld [vmem:[#allocation2 + $0xc9] sm:$0xff] }
 0x2e3   : > { %v3063_v36 = vadd.f32 %v3062_v9, %v7346_v54 }
 0x2e5   : > { %3681 = vmatmul.f32.gmra.mxu1 %v7445_v27  ;;  %v7628_v47 = vadd.f32 %v3063_v36, %v2709_v15  ;;  %v9092_v27 = vld [vmem:[#allocation37_spill] sm:$0xff]  ;;  %v9093_v15 = vld [vmem:[#allocation42_spill] sm:$0xff]  ;;  %v9094_v36 = vld [vmem:[#allocation56_spill] sm:$0xff] }
 0x2e6   : > { %2654 = vmatmul.f32.gmra.mxu3 %v9090_v21  ;;  %v2712_v9 = vadd.f32 %v9092_v27, %v2599_v52  ;;  %v2489_v5 = vadd.f32 %v9094_v36, %v9093_v15  ;;  %v7651_v21 = vld [vmem:[#allocation2 + $0xc1] sm:$0xff]  ;;  %v9098_v52 = vld [vmem:[#allocation45_spill] sm:$0xff]  ;;  %v9103_v36 = vld [vmem:[#allocation60_spill] sm:$0xff] }
 0x2e7   : > { %3112 = vmatmul.f32.gmra.mxu2 %v7633_v56  ;;  %vm9099_vm10 = vnez %v9098_v52 }
 0x2e9   : > { %v2607_v1 = vpop.f32.mrf.mxu3  ;;  %3513 = vmatmul.f32.gmra.mxu0 %v7453_v48  ;;  %v2602_v48 = vadd.f32 %v2601_v11, %v2489_v5  ;;  %v9102_v11 = vld [vmem:[#allocation46_spill] sm:$0xff] }
 0x2ea   : > { %v3065_v54 = vpop.f32.mrf.mxu2  ;;  %v2492_v5 = vadd.f32 %v9103_v36, %v9102_v11  ;;  %v9109_v36 = vld [vmem:[#allocation72_spill] sm:$0xff] }
 0x2eb   : > { %v3066_v29 = vadd.f32 %v3065_v54, %v7358_v20  ;;  %v3279_v20 = vld [vmem:[#allocation11 + $0x310] sm:$0xff]  ;;  %v7656_v54 = vpop.f32.mrf.mxu0 }
 0x2ec   : > { %3322 = vmatpush.msra.mxu3 %v3279_v20 }
 0x2ed   : > { %4844 = vmatmul.msk.f32.gmra.mxu1 %vm9049_vm13, %v7462_v18  ;;  %v7646_v45 = vadd.f32 %v3066_v29, %v2712_v9  ;;  %v7661_v18 = vpop.f32.mrf.mxu1  ;;  %v9101_v9 = vld [vmem:[#allocation41_spill] sm:$0xff] }
 0x2ee   : > { %4805 = vmatmul.msk.f32.gmra.mxu3 %vm9097_vm0, %v9095_v60  ;;  %9100 = vst [vmem:[#allocation50_spill] sm:$0xff] %v7661_v18  ;;  %v2715_v29 = vadd.f32 %v9101_v9, %v2602_v48 }
 0x2ef   : > { %4819 = vmatmul.msk.f32.gmra.mxu2 %vm9099_vm10, %v7651_v21  ;;  %3323 = vmatpush.msra.mxu3 %v3278_v16 }
 0x2f1   : > { %v7658_v8 = vpop.f32.mrf.mxu3  ;;  %3516 = vmatmul.f32.gmra.mxu0 %v7469_v46  ;;  %v2605_v46 = vadd.f32 %v2604_v58, %v2492_v5  ;;  %v9108_v58 = vld [vmem:[#allocation66_spill] sm:$0xff]  ;;  %v7693_v5 = vld [vmem:[#allocation2 + $0xd1] sm:$0xff] }
 0x2f2   : > { %v3068_v27 = vpop.f32.mrf.mxu2 }
 0x2f3   : > { %v3069_v15 = vadd.f32 %v3068_v27, %v7371_v38  ;;  %v7677_v48 = vpop.f32.mrf.mxu0 }
 0x2f5   : > { %3687 = vmatmul.f32.gmra.mxu1 %v7474_v30  ;;  %v7668_v60 = vadd.f32 %v3069_v15, %v2715_v29  ;;  %v9105_v30 = vld [vmem:[#allocation44_spill] sm:$0xff]  ;;  %v7681_v29 = vpop.f32.mrf.mxu1 }
 0x2f6   : > { %2660 = vmatmul.f32.gmra.mxu3 %v9104_v41  ;;  %v2718_v27 = vadd.f32 %v9105_v30, %v2605_v46  ;;  %9106 = vst [vmem:[#allocation32_spill] sm:$0xff] %v7681_v29  ;;  %v9107_v41 = vld [vmem:[#allocation49_spill] sm:$0xff] }
 0x2f7   : > { %3118 = vmatmul.f32.gmra.mxu2 %v7671_v51  ;;  %v2495_v15 = vadd.f32 %v9108_v58, %v9107_v41  ;;  %v9112_v46 = vld [vmem:[#allocation65_spill] sm:$0xff]  ;;  %v9116_v41 = vld [vmem:[#allocation48_spill] sm:$0xff] }
 0x2f8   : > { %v9113_v30 = vld [vmem:[#allocation81_spill] sm:$0xff] }
 0x2f9   : > { %v7674_v20 = vpop.f32.mrf.mxu3  ;;  %3519 = vmatmul.f32.gmra.mxu0 %v7482_v17  ;;  %v9110_v17 = vld [vmem:[#allocation78_spill] sm:$0xff]  ;;  %v9114_v29 = vld [vmem:[#allocation53_spill] sm:$0xff] }
 0x2fa   : > { %v3071_v38 = vpop.f32.mrf.mxu2  ;;  %vm9111_vm13 = vnez %v9110_v17  ;;  %vm9115_vm0 = vnez %v9114_v29  ;;  %v3191_v29 = vld [vmem:[#allocation2 + $0x77] sm:$0xff] }
 0x2fb   : > { %v3072_v9 = vadd.f32 %v3071_v38, %v7389_v49  ;;  %v2504_v49 = vadd.f32 %v9113_v30, %v9112_v46  ;;  %v2608_v38 = vadd.f32 %v2607_v1, %v2495_v15  ;;  %v7705_v18 = vpop.f32.mrf.mxu0  ;;  %v9117_v15 = vld [vmem:[#allocation75_spill] sm:$0xff]  ;;  %v7713_v30 = vld [vmem:[#allocation2 + $0xd9] sm:$0xff] }
 0x2fd   : > { %4845 = vmatmul.msk.f32.gmra.mxu1 %vm9056_vm14, %v7487_v7  ;;  %v7688_v11 = vadd.f32 %v3072_v9, %v2718_v27  ;;  %v2721_v58 = vadd.f32 %v9116_v41, %v2608_v38  ;;  %v7711_v46 = vpop.f32.mrf.mxu1  ;;  %v7729_v41 = vld [vmem:[#allocation2 + $0xe1] sm:$0xff] }
 0x2fe   : > { %4806 = vmatmul.msk.f32.gmra.mxu3 %vm9111_vm13, %v9109_v36  ;;  %9118 = vst [vmem:[#allocation36_spill] sm:$0xff] %v7711_v46 }
 0x2ff   : > { %4820 = vmatmul.msk.f32.gmra.mxu2 %vm9115_vm0, %v7693_v5 }
 0x301   : > { %v2616_v7 = vpop.f32.mrf.mxu3  ;;  %3522 = vmatmul.f32.gmra.mxu0 %v7500_v26  ;;  %v9119_v26 = vld [vmem:[#allocation71_spill] sm:$0xff] }
 0x302   : > { %v7701_v27 = vadd.f32 %v2616_v7, %v2504_v49  ;;  %v3074_v9 = vpop.f32.mrf.mxu2  ;;  %v9120_v49 = vld [vmem:[#allocation84_spill] sm:$0xff] }
 0x303   : > { %v3075_v36 = vadd.f32 %v3074_v9, %v7407_v22  ;;  %v2507_v16 = vadd.f32 %v9120_v49, %v9119_v26  ;;  %v7727_v9 = vpop.f32.mrf.mxu0  ;;  %v5352_v26 = vld [vmem:[#allocation2 + $0x8] sm:$0xff]  ;;  %v9127_v49 = vld [vmem:[#allocation82_spill] sm:$0xff] }
 0x305   : > { %3693 = vmatmul.f32.gmra.mxu1 %v7503_v44  ;;  %v7708_v1 = vadd.f32 %v3075_v36, %v2721_v58  ;;  %v9121_v44 = vld [vmem:[#allocation80_spill] sm:$0xff]  ;;  %v9123_v58 = vld [vmem:[#allocation61_spill] sm:$0xff] }
 0x306   : > { %2666 = vmatmul.f32.gmra.mxu3 %v9117_v15  ;;  %vm9124_vm14 = vnez %v9123_v58  ;;  %v3277_v36 = vld [vmem:[#allocation11 + $0x300] sm:$0xff] }
 0x307   : > { %3124 = vmatmul.f32.gmra.mxu2 %v7713_v30  ;;  %3324 = vmatpush.msra.mxu3 %v3277_v36 }
 0x309   : > { %v2619_v38 = vpop.f32.mrf.mxu3  ;;  %3525 = vmatmul.f32.gmra.mxu0 %v7507_v3  ;;  %v7734_v3 = vpop.f32.mrf.mxu1 }
 0x30a   : > { %v7719_v22 = vadd.f32 %v2619_v38, %v2507_v16  ;;  %9125 = vst [vmem:[#allocation47_spill] sm:$0xff] %v7734_v3  ;;  %v7741_v16 = vld [vmem:[#allocation2 + $0xe9] sm:$0xff]  ;;  %v9128_v3 = vld [vmem:[#allocation93_spill] sm:$0xff] }
 0x30b   : > { %v7744_v38 = vpop.f32.mrf.mxu0 }
 0x30d   : > { %4846 = vmatmul.msk.f32.gmra.mxu1 %vm9060_vm15, %v7518_v31 }
 0x30e   : > { %4807 = vmatmul.msk.f32.gmra.mxu3 %vm7282_vm4, %v9121_v44 }
 0x30f   : > { %4821 = vmatmul.msk.f32.gmra.mxu2 %vm9124_vm14, %v7729_v41 }
 0x311   : > { %v2622_v15 = vpop.f32.mrf.mxu3  ;;  %3528 = vmatmul.f32.gmra.mxu0 %v5352_v26  ;;  %v7749_v36 = vpop.f32.mrf.mxu1 }
 0x312   : > { %v7737_v31 = vadd.f32 %v2622_v15, %v9126_v63  ;;  %9129 = vst [vmem:[#allocation54_spill] sm:$0xff] %v7749_v36  ;;  %v7757_v63 = vld [vmem:[#allocation2 + $0xf1] sm:$0xff] }
 0x313   : > { %v9138_v36 = vld [vmem:[#allocation97_spill] sm:$0xff] }
 0x315   : > { %3699 = vmatmul.f32.gmra.mxu1 %v7531_v23  ;;  %v9130_v23 = vld [vmem:[#allocation88_spill] sm:$0xff] }
 0x316   : > { %2672 = vmatmul.f32.gmra.mxu3 %v9127_v49  ;;  %v9132_v49 = vld [vmem:[#allocation69_spill] sm:$0xff] }
 0x317   : > { %3130 = vmatmul.f32.gmra.mxu2 %v7741_v16  ;;  %vm9133_vm15 = vnez %v9132_v49 }
 0x319   : > { %v2625_v44 = vpop.f32.mrf.mxu3  ;;  %3531 = vmatmul.f32.gmra.mxu0 %v5352_v26 }
 0x31a   : > { %v7747_v46 = vadd.f32 %v2625_v44, %v9128_v3  ;;  %v7765_v44 = vpop.f32.mrf.mxu1 }
 0x31b   : > { %9136 = vst [vmem:[#allocation39_spill] sm:$0xff] %v7765_v44 }
 0x31d   : > { %4847 = vmatmul.msk.f32.gmra.mxu1 %vm9067_vm5, %v7545_v28  ;;  %v7769_v28 = vld [vmem:[#allocation2 + $0xf9] sm:$0xff] }
 0x31e   : > { %4808 = vmatmul.msk.f32.gmra.mxu3 %vm7320_vm6, %v9130_v23 }
 0x31f   : > { %4822 = vmatmul.msk.f32.gmra.mxu2 %vm9133_vm15, %v7757_v63 }
 0x321   : > { %v2628_v26 = vpop.f32.mrf.mxu3 }
 0x322   : > { %v7763_v3 = vadd.f32 %v2628_v26, %v9134_v0  ;;  %v3181_v0 = vld [vmem:[#allocation2 + $0x27] sm:$0xff]  ;;  %v7780_v44 = vpop.f32.mrf.mxu1 }
 0x323   : > { %9140 = vst [vmem:[#allocation35_spill] sm:$0xff] %v7780_v44 }
 0x324   : > { %9135 = vst [vmem:[#allocation62_spill] sm:$0xff] %v7763_v3 }
 0x325   : > { %3705 = vmatmul.f32.gmra.mxu1 %v7559_v35  ;;  %v9141_v35 = vld [vmem:[#allocation87_spill] sm:$0xff] }
 0x326   : > { %2678 = vmatmul.f32.gmra.mxu3 %v9137_v32  ;;  %v9142_v32 = vld [vmem:[#allocation77_spill] sm:$0xff] }
 0x327   : > { %3136 = vmatmul.f32.gmra.mxu2 %v7769_v28  ;;  %vm9143_vm5 = vnez %v9142_v32 }
 0x329   : > { %v2631_v23 = vpop.f32.mrf.mxu3 }
 0x32a   : > { %v7773_v57 = vadd.f32 %v2631_v23, %v9138_v36  ;;  %v3182_v36 = vld [vmem:[#allocation2 + $0x2f] sm:$0xff] }
 0x32d   : > { %4848 = vmatmul.msk.f32.gmra.mxu1 %vm9070_vm7, %v7579_v33  ;;  %v7792_v33 = vpop.f32.mrf.mxu1 }
 0x32e   : > { %4825 = vmatmul.msk.f32.vlgmr.msra.gmra.mxu3 %vm6065_vm9, %v3181_v0  ;;  %9146 = vst [vmem:[#allocation51_spill] sm:$0xff] %v7792_v33  ;;  %v9147_v0 = vld [vmem:[#allocation101_spill] sm:$0xff]  ;;  %v9152_v33 = vld [vmem:[#allocation103_spill] sm:$0xff] }
 0x32f   : > { %4823 = vmatmul.msk.f32.gmra.mxu2 %vm9143_vm5, %v9141_v35  ;;  %v9150_v35 = vld [vmem:[#allocation85_spill] sm:$0xff] }
 0x330   : > { %vm9151_vm9 = vnez %v9150_v35 }
 0x331   : > { %v2634_v53 = vpop.f32.mrf.mxu3 }
 0x332   : > { %v7786_v3 = vadd.f32 %v2634_v53, %v9144_v40  ;;  %v3183_v40 = vld [vmem:[#allocation2 + $0x37] sm:$0xff] }
 0x334   : > { %9145 = vst [vmem:[#allocation38_spill] sm:$0xff] %v7786_v3  ;;  %v9156_v3 = vld [vmem:[#allocation26_spill] sm:$0xff] }
 0x335   : > { %3711 = vmatmul.f32.gmra.mxu1 %v7597_v24  ;;  %v7802_v24 = vld [vmem:[#allocation2 + $0x111] sm:$0xff] }
 0x336   : > { %3328 = vmatmul.f32.gmra.mxu3 %v3182_v36 }
 0x337   : > { %3142 = vmatmul.f32.gmra.mxu2 %v7789_v34 }
 0x339   : > { %v2637_v23 = vpop.f32.mrf.mxu3 }
 0x33a   : > { %v7795_v26 = vadd.f32 %v2637_v23, %v9147_v0  ;;  %v7810_v23 = vpop.f32.mrf.mxu1  ;;  %v9154_v0 = vld [vmem:[#allocation104_spill] sm:$0xff] }
 0x33b   : > { %9153 = vst [vmem:[#allocation37_spill] sm:$0xff] %v7810_v23 }
 0x33c   : > { %9148 = vst [vmem:[#allocation58_spill] sm:$0xff] %v7795_v26  ;;  %v3185_v26 = vld [vmem:[#allocation2 + $0x47] sm:$0xff] }
 0x33d   : > { %4849 = vmatmul.msk.f32.gmra.mxu1 %vm9074_vm8, %v7617_v25 }
 0x33e   : > { %4826 = vmatmul.msk.f32.gmra.mxu3 %vm6115_vm2, %v3183_v40  ;;  %vm9157_vm2 = vnez %v9156_v3 }
 0x33f   : > { %4824 = vmatmul.msk.f32.gmra.mxu2 %vm9151_vm9, %v7802_v24 }
 0x341   : > { %v2640_v36 = vpop.f32.mrf.mxu3 }
 0x342   : > { %v7808_v44 = vadd.f32 %v2640_v36, %v9152_v33  ;;  %v7816_v40 = vpop.f32.mrf.mxu1  ;;  %v9158_v36 = vld [vmem:[#allocation106_spill] sm:$0xff] }
 0x343   : > { %9155 = vst [vmem:[#allocation42_spill] sm:$0xff] %v7816_v40 }
 0x345   : > { %3717 = vmatmul.f32.gmra.mxu1 %v7633_v56  ;;  %v3186_v56 = vld [vmem:[#allocation2 + $0x4f] sm:$0xff] }
 0x346   : > { %3334 = vmatmul.f32.gmra.mxu3 %v3184_v39 }
 0x349   : > { %v2643_v25 = vpop.f32.mrf.mxu3 }
 0x34a   : > { %v7814_v53 = vadd.f32 %v2643_v25, %v9154_v0  ;;  %v7827_v39 = vpop.f32.mrf.mxu1  ;;  %v9160_v0 = vld [vmem:[#allocation108_spill] sm:$0xff] }
 0x34b   : > { %9159 = vst [vmem:[#allocation56_spill] sm:$0xff] %v7827_v39 }
 0x34d   : > { %4850 = vmatmul.msk.f32.gmra.mxu1 %vm7041_vm1, %v7651_v21  ;;  %v9161_v21 = vld [vmem:[#allocation27_spill] sm:$0xff] }
 0x34e   : > { %4827 = vmatmul.msk.f32.gmra.mxu3 %vm9157_vm2, %v3185_v26  ;;  %vm9162_vm1 = vnez %v9161_v21 }
 0x351   : > { %v2646_v33 = vpop.f32.mrf.mxu3 }
 0x352   : > { %v7824_v23 = vadd.f32 %v2646_v33, %v9158_v36  ;;  %v7837_v3 = vpop.f32.mrf.mxu1  ;;  %v3188_v36 = vld [vmem:[#allocation2 + $0x5f] sm:$0xff] }
 0x353   : > { %9163 = vst [vmem:[#allocation63_spill] sm:$0xff] %v7837_v3 }
 0x355   : > { %3723 = vmatmul.f32.gmra.mxu1 %v7671_v51  ;;  %v9164_v51 = vld [vmem:[#allocation111_spill] sm:$0xff] }
 0x356   : > { %3340 = vmatmul.f32.gmra.mxu3 %v3186_v56 }
 0x359   : > { %v2649_v25 = vpop.f32.mrf.mxu3 }
 0x35a   : > { %v7830_v40 = vadd.f32 %v2649_v25, %v9160_v0  ;;  %v9165_v25 = vld [vmem:[#allocation113_spill] sm:$0xff]  ;;  %v3664_v52 = vpop.f32.mrf.mxu1 }
 0x35d   : > { %4851 = vmatmul.msk.f32.gmra.mxu1 %vm9099_vm10, %v7693_v5  ;;  %v3189_v5 = vld [vmem:[#allocation2 + $0x67] sm:$0xff] }
 0x35e   : > { %4828 = vmatmul.msk.f32.gmra.mxu3 %vm9162_vm1, %v3187_v50  ;;  %v9166_v50 = vld [vmem:[#allocation28_spill] sm:$0xff] }
 0x35f   : > { %vm9167_vm7 = vnez %v9166_v50 }
 0x361   : > { %v2652_v26 = vpop.f32.mrf.mxu3 }
 0x362   : > { %v7840_v33 = vadd.f32 %v2652_v26, %v9164_v51  ;;  %v9168_v26 = vld [vmem:[#allocation115_spill] sm:$0xff] }
 0x365   : > { %3729 = vmatmul.f32.gmra.mxu1 %v7713_v30  ;;  %v3667_v30 = vpop.f32.mrf.mxu1 }
 0x366   : > { %3346 = vmatmul.f32.gmra.mxu3 %v3188_v36  ;;  %v3190_v36 = vld [vmem:[#allocation2 + $0x6f] sm:$0xff] }
 0x369   : > { %v2655_v56 = vpop.f32.mrf.mxu3 }
 0x36a   : > { %v7844_v0 = vadd.f32 %v2655_v56, %v9165_v25  ;;  %v9169_v25 = vld [vmem:[#allocation118_spill] sm:$0xff] }
 0x36d   : > { %4852 = vmatmul.msk.f32.gmra.mxu1 %vm9115_vm0, %v7729_v41  ;;  %v9171_v41 = vld [vmem:[#allocation29_spill] sm:$0xff] }
 0x36e   : > { %4829 = vmatmul.msk.f32.gmra.mxu3 %vm9167_vm7, %v3189_v5  ;;  %vm9172_vm8 = vnez %v9171_v41  ;;  %v7863_v5 = vpop.f32.mrf.mxu1  ;;  %v9178_v41 = vld [vmem:[#allocation125_spill] sm:$0xff] }
 0x371   : > { %v2658_v21 = vpop.f32.mrf.mxu3 }
 0x372   : > { %v7852_v51 = vadd.f32 %v2658_v21, %v9168_v26 }
 0x375   : > { %3735 = vmatmul.f32.gmra.mxu1 %v7741_v16  ;;  %v3192_v16 = vld [vmem:[#allocation2 + $0x7f] sm:$0xff] }
 0x376   : > { %3352 = vmatmul.f32.gmra.mxu3 %v3190_v36  ;;  %v7869_v26 = vpop.f32.mrf.mxu1 }
 0x379   : > { %v2661_v56 = vpop.f32.mrf.mxu3 }
 0x37a   : > { %v7856_v3 = vadd.f32 %v2661_v56, %v9169_v25  ;;  %v9174_v56 = vld [vmem:[#allocation123_spill] sm:$0xff] }
 0x37b   : > { %v3193_v25 = vld [vmem:[#allocation2 + $0x87] sm:$0xff] }
 0x37c   : > { %9170 = vst [vmem:[#allocation70_spill] sm:$0xff] %v7856_v3  ;;  %v5353_v3 = vld [vmem:[%s5961_s19] sm:$0xff] }
 0x37d   : > { %4853 = vmatmul.msk.f32.gmra.mxu1 %vm9124_vm14, %v7757_v63  ;;  %v3594_v63 = vld [vmem:[#allocation2 + $0x101] sm:$0xff] }
 0x37e   : > { %4830 = vmatmul.msk.f32.gmra.mxu3 %vm9172_vm8, %v3191_v29  ;;  %v9176_v29 = vld [vmem:[#allocation31_spill] sm:$0xff] }
 0x37f   : > { %vm9177_vm0 = vnez %v9176_v29 }
 0x381   : > { %v2664_v50 = vpop.f32.mrf.mxu3 }
 0x382   : > { %v7866_v21 = vadd.f32 %v2664_v50, %v7480_v43 }
 0x384   : > { %9173 = vst [vmem:[#allocation45_spill] sm:$0xff] %v7866_v21 }
 0x385   : > { %3741 = vmatmul.f32.gmra.mxu1 %v7769_v28  ;;  %v7881_v28 = vpop.f32.mrf.mxu1 }
 0x386   : > { %3358 = vmatmul.f32.gmra.mxu3 %v3192_v16  ;;  %v3194_v16 = vld [vmem:[#allocation2 + $0x8f] sm:$0xff] }
 0x389   : > { %v2667_v36 = vpop.f32.mrf.mxu3 }
 0x38a   : > { %v7872_v58 = vadd.f32 %v2667_v36, %v9174_v56 }
 0x38c   : > { %9175 = vst [vmem:[#allocation41_spill] sm:$0xff] %v7872_v58 }
 0x38d   : > { %4854 = vmatmul.msk.f32.gmra.mxu1 %vm9133_vm15, %v3594_v63  ;;  %v7887_v49 = vpop.f32.mrf.mxu1  ;;  %v3195_v63 = vld [vmem:[#allocation2 + $0x97] sm:$0xff] }
 0x38e   : > { %4831 = vmatmul.msk.f32.gmra.mxu3 %vm9177_vm0, %v3193_v25  ;;  %v9181_v25 = vld [vmem:[#allocation33_spill] sm:$0xff] }
 0x38f   : > { %vm9182_vm10 = vnez %v9181_v25  ;;  %v3198_v25 = vld [vmem:[#allocation2 + $0xaf] sm:$0xff] }
 0x391   : > { %v2670_v43 = vpop.f32.mrf.mxu3 }
 0x392   : > { %v7879_v50 = vadd.f32 %v2670_v43, %v9178_v41 }
 0x394   : > { %9179 = vst [vmem:[#allocation46_spill] sm:$0xff] %v7879_v50 }
 0x395   : > { %3747 = vmatmul.f32.gmra.mxu1 %v7789_v34  ;;  %v3196_v34 = vld [vmem:[#allocation2 + $0x9f] sm:$0xff]  ;;  %v7903_v39 = vpop.f32.mrf.mxu1 }
 0x396   : > { %3364 = vmatmul.f32.gmra.mxu3 %v3194_v16  ;;  %v3197_v16 = vld [vmem:[#allocation2 + $0xa7] sm:$0xff] }
 0x399   : > { %v2673_v36 = vpop.f32.mrf.mxu3 }
 0x39a   : > { %v7885_v56 = vadd.f32 %v2673_v36, %v7524_v37  ;;  %v9185_v36 = vld [vmem:[#allocation40_spill] sm:$0xff] }
 0x39b   : > { %vm9186_vm14 = vnez %v9185_v36  ;;  %v3199_v36 = vld [vmem:[#allocation2 + $0xb7] sm:$0xff] }
 0x39c   : > { %9180 = vst [vmem:[#allocation60_spill] sm:$0xff] %v7885_v56 }
 0x39d   : > { %4855 = vmatmul.msk.f32.gmra.mxu1 %vm9143_vm5, %v7802_v24 }
 0x39e   : > { %4832 = vmatmul.msk.f32.gmra.mxu3 %vm9182_vm10, %v3195_v63 }
 0x3a1   : > { %v2676_v29 = vpop.f32.mrf.mxu3 }
 0x3a2   : > { %v7895_v43 = vadd.f32 %v2676_v29, %v7535_v14  ;;  %v7909_v14 = vld [vmem:[%s9187_s14] ss:$0 sm:$0xff] }
 0x3a4   : > { %9183 = vst [vmem:[#allocation67_spill] sm:$0xff] %v7895_v43 }
 0x3a6   : > { %3370 = vmatmul.f32.gmra.mxu3 %v3196_v34 }
 0x3a9   : > { %v2679_v41 = vpop.f32.mrf.mxu3 }
 0x3aa   : > { %v7898_v37 = vadd.f32 %v2679_v41, %v7553_v61 }
 0x3ac   : > { %9184 = vst [vmem:[#allocation44_spill] sm:$0xff] %v7898_v37 }
 0x3ae   : > { %4833 = vmatmul.msk.f32.gmra.mxu3 %vm9186_vm14, %v3197_v16 }
 0x3b1   : > { %v3326_v32 = vpop.f32.mrf.mxu3 }
 0x3b2   : > { %v3440_v24 = vadd.f32 %v7585_v4, %v3326_v32  ;;  %v7919_v32 = vpop.f32.mrf.mxu1 }
 0x3b4   : > { %v3535_v63 = vadd.f32 %v3440_v24, %v7574_v62  ;;  %v7917_v62 = vpop.f32.mrf.mxu2 }
 0x3b6   : > { %v3760_v29 = vadd.f32 %v3664_v52, %v3535_v63  ;;  %3376 = vmatmul.f32.gmra.mxu3 %v3198_v25 }
 0x3b8   : > { %v7912_v61 = vadd.f32 %v7909_v14, %v3760_v29 }
 0x3b9   : > { %v3329_v34 = vpop.f32.mrf.mxu3 }
 0x3ba   : > { %v4857_v41 = vmul.f32 -1.442695, %v7912_v61  ;;  %v3443_v4 = vadd.f32 %v7603_v59, %v3329_v34  ;;  %v7928_v34 = vpop.f32.mrf.mxu0 }
 0x3bc   : > { %5206 = vpow2.f32 %v4857_v41  ;;  %v3536_v16 = vadd.f32 %v3443_v4, %v7594_v12  ;;  %v7932_v4 = vpop.f32.mrf.mxu2 }
 0x3be   : > { %v3761_v24 = vadd.f32 %v3667_v30, %v3536_v16  ;;  %4834 = vmatmul.msk.f32.gmra.mxu3 %vm7090_vm11, %v3199_v36  ;;  %v3200_v30 = vld [vmem:[#allocation2 + $0xbf] sm:$0xff]  ;;  %v7934_v16 = vpop.f32.mrf.mxu1 }
 0x3c0   : > { %v7924_v52 = vadd.f32 %v7909_v14, %v3761_v24 }
 0x3c1   : > { %v3332_v63 = vpop.f32.mrf.mxu3 }
 0x3c2   : > { %v5207_v25 = vpop.eup %5206  ;;  %v4858_v29 = vmul.f32 -1.442695, %v7924_v52  ;;  %v3446_v59 = vadd.f32 %v7631_v42, %v3332_v63 }
 0x3c3   : > { %v3924_v12 = vadd.f32 1.0, %v5207_v25 }
 0x3c4   : > { %5208 = vpow2.f32 %v4858_v29  ;;  %v3537_v41 = vadd.f32 %v3446_v59, %v7610_v2 }
 0x3c5   : > { %5210 = vrcp.f32 %v3924_v12  ;;  %v3967_v43 = vand.u32 2147483648, %v3924_v12  ;;  %vm3961_vm15 = vweird.f32 %v3924_v12 }
 0x3c6   : > { %v3762_v55 = vadd.f32 %v7863_v5, %v3537_v41  ;;  %3382 = vmatmul.f32.gmra.mxu3 %v3200_v30  ;;  %v7942_v41 = vpop.f32.mrf.mxu0  ;;  %v3201_v30 = vld [vmem:[#allocation2 + $0xc7] sm:$0xff] }
 0x3c8   : > { %v7937_v36 = vadd.f32 %v7909_v14, %v3762_v55 }
 0x3c9   : > { %v3335_v24 = vpop.f32.mrf.mxu3 }
 0x3ca   : > { %v5209_v42 = vpop.eup %5208  ;;  %v4859_v63 = vmul.f32 -1.442695, %v7937_v36  ;;  %v3449_v25 = vadd.f32 %v7656_v54, %v3335_v24  ;;  %v3965_v54 = vand.u32 2147483647, %v3924_v12 }
 0x3cb   : > { %v5211_v29 = vpop.eup %5210  ;;  %v3925_v2 = vadd.f32 1.0, %v5209_v42  ;;  %v7950_v42 = vpop.f32.mrf.mxu2 }
 0x3cc   : > { %v3957_v59 = vmul.f32 %v5211_v29, %v3924_v12  ;;  %5212 = vpow2.f32 %v4859_v63  ;;  %v3538_v5 = vadd.f32 %v3449_v25, %v7628_v47  ;;  %vm3962_vm11 = vweird.f32 %v5211_v29  ;;  %v7952_v25 = vpop.f32.mrf.mxu1 }
 0x3cd   : > { %5214 = vrcp.f32 %v3925_v2  ;;  %vm3966_vm5 = vcmp.eq.f32.partialorder %v3965_v54, 8.507059e+37  ;;  %vm3976_vm1 = vweird.f32 %v3925_v2 }
 0x3ce   : > { %v3958_v37 = vsub.f32 1.0, %v3957_v59  ;;  %v3763_v55 = vadd.f32 %v7869_v26, %v3538_v5  ;;  %4835 = vmatmul.msk.f32.gmra.mxu3 %vm7132_vm3, %v3201_v30  ;;  %vm3963_vm3 = vmor %vm3961_vm15, %vm3962_vm11 }
 0x3d0   : > { %v3959_v56 = vmul.f32 %v5211_v29, %v3958_v37  ;;  %v7948_v24 = vadd.f32 %v7909_v14, %v3763_v55  ;;  %v3968_v37 = vor.u32 1.1754944e-38, %v3967_v43  ;;  %v3980_v43 = vand.u32 2147483647, %v3925_v2 }
 0x3d1   : > { %v3338_v47 = vpop.f32.mrf.mxu3 }
 0x3d2   : > { %v5213_v63 = vpop.eup %5212  ;;  %v3960_v50 = vadd.f32 %v5211_v29, %v3959_v56  ;;  %v4860_v26 = vmul.f32 -1.442695, %v7948_v24  ;;  %v3452_v10 = vadd.f32 %v7677_v48, %v3338_v47  ;;  %v3202_v56 = vld [vmem:[#allocation2 + $0xcf] sm:$0xff]  ;;  %v7961_v47 = vpop.f32.mrf.mxu0  ;;  %vm3981_vm8 = vcmp.eq.f32.partialorder %v3980_v43, 8.507059e+37  ;;  %v5354_v43 = vld [vmem:[%s5961_s19 + $0x8] sm:$0xff] }
 0x3d3   : > { %v5215_v59 = vpop.eup %5214  ;;  %v7956_v5 = vadd.f32 1.0, %v5213_v63  ;;  %v3982_v63 = vand.u32 2147483648, %v3925_v2 }
 0x3d4   : > { %v3964_v30 = vsel %vm3963_vm3, %v5211_v29, %v3960_v50  ;;  %v3972_v55 = vmul.f32 %v5215_v59, %v3925_v2  ;;  %5216 = vpow2.f32 %v4860_v26  ;;  %v3539_v48 = vadd.f32 %v3452_v10, %v7646_v45  ;;  %v7973_v10 = vpop.f32.mrf.mxu2 }
 0x3d5   : > { %v3969_v58 = vsel %vm3966_vm5, %v3968_v37, %v3964_v30  ;;  %5218 = vrcp.f32 %v7956_v5  ;;  %vm3977_vm2 = vweird.f32 %v5215_v59  ;;  %v7978_v30 = vpop.f32.mrf.mxu1  ;;  %vm3991_vm10 = vweird.f32 %v7956_v5 }
 0x3d6   : > { %v4436_v12 = vmul.f32 %v3969_v58, %v7912_v61  ;;  %v3973_v21 = vsub.f32 1.0, %v3972_v55  ;;  %3388 = vmatmul.f32.gmra.mxu3 %v3202_v56  ;;  %v3764_v54 = vadd.f32 %v7881_v28, %v3539_v48  ;;  %vm3978_vm7 = vmor %vm3976_vm1, %vm3977_vm2  ;;  %v3203_v48 = vld [vmem:[#allocation2 + $0xd7] sm:$0xff]  ;;  %vm9191_vm2 = vnez %v9096_v13 }
 0x3d8   : > { %v4468_v50 = vadd.f32 %v5353_v3, %v4436_v12  ;;  %v3974_v29 = vmul.f32 %v5215_v59, %v3973_v21  ;;  %v7971_v45 = vadd.f32 %v7909_v14, %v3764_v54  ;;  %v3983_v3 = vor.u32 1.1754944e-38, %v3982_v63 }
 0x3d9   : > { %v3341_v26 = vpop.f32.mrf.mxu3 }
 0x3da   : > { %v5217_v37 = vpop.eup %5216  ;;  %4500 = vst [vmem:[%s7967_s16] sm:$0xff] %v4468_v50  ;;  %v3975_v58 = vadd.f32 %v5215_v59, %v3974_v29  ;;  %v3455_v28 = vadd.f32 %v7705_v18, %v3341_v26  ;;  %v4861_v2 = vmul.f32 -1.442695, %v7971_v45  ;;  %v3997_v18 = vand.u32 2147483648, %v7956_v5 }
 0x3db   : > { %v5219_v61 = vpop.eup %5218  ;;  %v7975_v21 = vadd.f32 1.0, %v5217_v37  ;;  %v3995_v26 = vand.u32 2147483647, %v7956_v5  ;;  %v7990_v37 = vpop.f32.mrf.mxu0 }
 0x3dc   : > { %v3979_v55 = vsel %vm3978_vm7, %v5215_v59, %v3975_v58  ;;  %v3987_v56 = vmul.f32 %v5219_v61, %v7956_v5  ;;  %v3540_v59 = vadd.f32 %v3455_v28, %v7668_v60  ;;  %vm3992_vm0 = vweird.f32 %v5219_v61 }
 0x3dd   : > { %v3984_v12 = vsel %vm3981_vm8, %v3983_v3, %v3979_v55  ;;  %5220 = vrcp.f32 %v7975_v21  ;;  %v3998_v60 = vor.u32 1.1754944e-38, %v3997_v18  ;;  %vm3996_vm14 = vcmp.eq.f32.partialorder %v3995_v26, 8.507059e+37  ;;  %v8006_v18 = vpop.f32.mrf.mxu1 }
 0x3de   : > { %v4437_v63 = vmul.f32 %v3984_v12, %v7924_v52  ;;  %v3988_v50 = vsub.f32 1.0, %v3987_v56  ;;  %5222 = vpow2.f32 %v4861_v2  ;;  %4836 = vmatmul.msk.f32.gmra.mxu3 %vm7170_vm12, %v3203_v48  ;;  %v3765_v58 = vadd.f32 %v7887_v49, %v3540_v59  ;;  %vm3993_vm12 = vmor %vm3991_vm10, %vm3992_vm0  ;;  %v8001_v48 = vpop.f32.mrf.mxu2 }
 0x3df   : > { %vm4006_vm15 = vweird.f32 %v7975_v21 }
 0x3e0   : > { %v4469_v29 = vadd.f32 %v5354_v43, %v4437_v63  ;;  %v3989_v54 = vmul.f32 %v5219_v61, %v3988_v50  ;;  %v7997_v28 = vadd.f32 %v7909_v14, %v3765_v58  ;;  %v3204_v50 = vld [vmem:[#allocation2 + $0xdf] sm:$0xff] }
 0x3e1   : > { %v3344_v52 = vpop.f32.mrf.mxu3 }
 0x3e2   : > { %4501 = vst [vmem:[%s7967_s16 + $0x8] sm:$0xff] %v4469_v29  ;;  %v3990_v3 = vadd.f32 %v5219_v61, %v3989_v54  ;;  %v3458_v19 = vadd.f32 %v7727_v9, %v3344_v52  ;;  %v4862_v9 = vmul.f32 -1.442695, %v7997_v28  ;;  %v4012_v29 = vand.u32 2147483648, %v7975_v21  ;;  %v5355_v54 = vld [vmem:[%s5961_s19 + $0x10] sm:$0xff] }
 0x3e3   : > { %v5221_v55 = vpop.eup %5220 }
 0x3e4   : > { %v5223_v56 = vpop.eup %5222  ;;  %v3994_v2 = vsel %vm3993_vm12, %v5219_v61, %v3990_v3  ;;  %v4002_v12 = vmul.f32 %v5221_v55, %v7975_v21  ;;  %v3541_v49 = vadd.f32 %v3458_v19, %v7688_v11  ;;  %vm4007_vm11 = vweird.f32 %v5221_v55  ;;  %v9188_v3 = vld [vmem:[#allocation55_spill] sm:$0xff] }
 0x3e5   : > { %v3999_v63 = vsel %vm3996_vm14, %v3998_v60, %v3994_v2  ;;  %v8003_v5 = vadd.f32 1.0, %v5223_v56  ;;  %v4010_v11 = vand.u32 2147483647, %v7975_v21  ;;  %vm4008_vm3 = vmor %vm4006_vm15, %vm4007_vm11 }
 0x3e6   : > { %v4438_v59 = vmul.f32 %v3999_v63, %v7937_v36  ;;  %v4003_v61 = vsub.f32 1.0, %v4002_v12  ;;  %v3766_v43 = vadd.f32 %v7903_v39, %v3541_v49  ;;  %3394 = vmatmul.f32.gmra.mxu3 %v3204_v50  ;;  %v9189_v36 = vld [vmem:[#allocation73_spill] sm:$0xff]  ;;  %v8024_v49 = vpop.f32.mrf.mxu0  ;;  %v4013_v63 = vor.u32 1.1754944e-38, %v4012_v29 }
 0x3e7   : > { %5224 = vrcp.f32 %v8003_v5  ;;  %v2498_v19 = vadd.f32 %v9189_v36, %v9188_v3  ;;  %vm4011_vm5 = vcmp.eq.f32.partialorder %v4010_v11, 8.507059e+37  ;;  %v5356_v3 = vld [vmem:[%s5961_s19 + $0x18] sm:$0xff]  ;;  %v4027_v13 = vand.u32 2147483648, %v8003_v5 }
 0x3e8   : > { %v4470_v26 = vadd.f32 %v5355_v54, %v4438_v59  ;;  %v4004_v58 = vmul.f32 %v5221_v55, %v4003_v61  ;;  %5226 = vpow2.f32 %v4862_v9  ;;  %v8015_v52 = vadd.f32 %v7909_v14, %v3766_v43  ;;  %v9190_v61 = vld [vmem:[#allocation110_spill] sm:$0xff] }
 0x3e9   : > { %v3347_v60 = vpop.f32.mrf.mxu3  ;;  %v2611_v12 = vadd.f32 %v7658_v8, %v2498_v19  ;;  %v3078_v21 = vadd.f32 %v7917_v62, %v9190_v61  ;;  %v3205_v54 = vld [vmem:[#allocation2 + $0xe7] sm:$0xff]  ;;  %v8040_v62 = vpop.f32.mrf.mxu1  ;;  %vm4021_vm7 = vweird.f32 %v8003_v5 }
 0x3ea   : > { %4502 = vst [vmem:[%s7967_s16 + $0x10] sm:$0xff] %v4470_v26  ;;  %v4005_v39 = vadd.f32 %v5221_v55, %v4004_v58  ;;  %v4863_v56 = vmul.f32 -1.442695, %v8015_v52  ;;  %v3461_v2 = vadd.f32 %v7744_v38, %v3347_v60 }
 0x3ec   : > { %v4009_v9 = vsel %vm4008_vm3, %v5221_v55, %v4005_v39  ;;  %5228 = vpow2.f32 %v4863_v56  ;;  %v3542_v50 = vadd.f32 %v3461_v2, %v7708_v1  ;;  %v9192_v55 = vld [vmem:[#allocation52_spill] sm:$0xff]  ;;  %v8036_v1 = vpop.f32.mrf.mxu2 }
 0x3ed   : > { %v5225_v59 = vpop.eup %5224  ;;  %v4014_v43 = vsel %vm4011_vm5, %v4013_v63, %v4009_v9  ;;  %v2724_v11 = vadd.f32 %v9192_v55, %v2611_v12  ;;  %v9193_v9 = vld [vmem:[#allocation59_spill] sm:$0xff] }
 0x3ee   : > { %v5227_v38 = vpop.eup %5226  ;;  %v4439_v8 = vmul.f32 %v4014_v43, %v7948_v24  ;;  %v4017_v26 = vmul.f32 %v5225_v59, %v8003_v5  ;;  %v3767_v58 = vadd.f32 %v7919_v32, %v3542_v50  ;;  %4837 = vmatmul.msk.f32.gmra.mxu3 %vm9191_vm2, %v3205_v54  ;;  %v4025_v32 = vand.u32 2147483647, %v8003_v5  ;;  %v9194_v50 = vld [vmem:[#allocation76_spill] sm:$0xff] }
 0x3ef   : > { %v8038_v29 = vadd.f32 1.0, %v5227_v38  ;;  %v3157_v60 = vadd.f32 %v3078_v21, %v2724_v11  ;;  %vm4022_vm1 = vweird.f32 %v5225_v59  ;;  %v2501_v61 = vadd.f32 %v9194_v50, %v9193_v9 }
 0x3f0   : > { %v4471_v36 = vadd.f32 %v5356_v3, %v4439_v8  ;;  %v4018_v19 = vsub.f32 1.0, %v4017_v26  ;;  %v8044_v24 = vadd.f32 %v7909_v14, %v3767_v58  ;;  %v8058_v8 = vpop.f32.mrf.mxu0  ;;  %vm4023_vm8 = vmor %vm4021_vm7, %vm4022_vm1  ;;  %v4028_v26 = vor.u32 1.1754944e-38, %v4027_v13  ;;  %v3206_v58 = vld [vmem:[#allocation2 + $0xef] sm:$0xff]  ;;  %v9195_v3 = vld [vmem:[#allocation114_spill] sm:$0xff] }
 0x3f1   : > { %5230 = vrcp.f32 %v8038_v29  ;;  %v3350_v39 = vpop.f32.mrf.mxu3  ;;  %v2614_v38 = vadd.f32 %v7674_v20, %v2501_v61  ;;  %vm4026_vm0 = vcmp.eq.f32.partialorder %v4025_v32, 8.507059e+37  ;;  %v3081_v5 = vadd.f32 %v7932_v4, %v9195_v3  ;;  %v9196_v13 = vld [vmem:[#allocation57_spill] sm:$0xff] }
 0x3f2   : > { %v5229_v56 = vpop.eup %5228  ;;  %4503 = vst [vmem:[%s7967_s16 + $0x18] sm:$0xff] %v4471_v36  ;;  %v4019_v2 = vmul.f32 %v5225_v59, %v4018_v19  ;;  %v4864_v12 = vmul.f32 -1.442695, %v8044_v24  ;;  %v3464_v63 = vadd.f32 %v7928_v34, %v3350_v39  ;;  %v4040_v61 = vand.u32 2147483647, %v8038_v29 }
 0x3f3   : > { %v8054_v43 = vadd.f32 1.0, %v5229_v56  ;;  %v2727_v39 = vadd.f32 %v9196_v13, %v2614_v38  ;;  %v8072_v56 = vpop.f32.mrf.mxu1  ;;  %vm4036_vm12 = vweird.f32 %v8038_v29 }
 0x3f4   : > { %v4020_v21 = vadd.f32 %v5225_v59, %v4019_v2  ;;  %5232 = vpow2.f32 %v4864_v12  ;;  %v3543_v54 = vadd.f32 %v3464_v63, %v3157_v60  ;;  %v5357_v2 = vld [vmem:[%s5961_s19 + $0x20] sm:$0xff]  ;;  %vm4041_vm11 = vcmp.eq.f32.partialorder %v4040_v61, 8.507059e+37 }
 0x3f5   : > { %5234 = vrcp.f32 %v8054_v43  ;;  %v3158_v50 = vadd.f32 %v3081_v5, %v2727_v39 }
 0x3f6   : > { %v4024_v34 = vsel %vm4023_vm8, %v5225_v59, %v4020_v21  ;;  %v3768_v55 = vadd.f32 %v7934_v16, %v3543_v54  ;;  %3400 = vmatmul.f32.gmra.mxu3 %v3206_v58  ;;  %v8070_v59 = vpop.f32.mrf.mxu2  ;;  %v4042_v21 = vand.u32 2147483648, %v8038_v29  ;;  %v3207_v58 = vld [vmem:[#allocation2 + $0xf7] sm:$0xff] }
 0x3f7   : > { %v5231_v11 = vpop.eup %5230  ;;  %v4029_v36 = vsel %vm4026_vm0, %v4028_v26, %v4024_v34 }
 0x3f8   : > { %v4440_v20 = vmul.f32 %v4029_v36, %v7971_v45  ;;  %v4032_v19 = vmul.f32 %v5231_v11, %v8038_v29  ;;  %v8067_v60 = vadd.f32 %v7909_v14, %v3768_v55  ;;  %vm4037_vm10 = vweird.f32 %v5231_v11  ;;  %v8087_v3 = vpop.f32.mrf.mxu0  ;;  %v9197_v29 = vld [vmem:[#allocation117_spill] sm:$0xff] }
 0x3f9   : > { %v3353_v32 = vpop.f32.mrf.mxu3  ;;  %vm4038_vm14 = vmor %vm4036_vm12, %vm4037_vm10  ;;  %v4043_v5 = vor.u32 1.1754944e-38, %v4042_v21  ;;  %v4055_v36 = vand.u32 2147483647, %v8054_v43 }
 0x3fa   : > { %v5233_v16 = vpop.eup %5232  ;;  %v4472_v12 = vadd.f32 %v5357_v2, %v4440_v20  ;;  %v4033_v4 = vsub.f32 1.0, %v4032_v19  ;;  %v4865_v63 = vmul.f32 -1.442695, %v8067_v60  ;;  %v3467_v45 = vadd.f32 %v7942_v41, %v3353_v32 }
 0x3fb   : > { %v5235_v9 = vpop.eup %5234  ;;  %v8079_v54 = vadd.f32 1.0, %v5233_v16  ;;  %v4057_v20 = vand.u32 2147483648, %v8054_v43  ;;  %v3084_v32 = vadd.f32 %v7950_v42, %v9197_v29  ;;  %vm4056_vm5 = vcmp.eq.f32.partialorder %v4055_v36, 8.507059e+37 }
 0x3fc   : > { %4504 = vst [vmem:[%s7967_s16 + $0x20] sm:$0xff] %v4472_v12  ;;  %v4034_v38 = vmul.f32 %v5231_v11, %v4033_v4  ;;  %v4047_v26 = vmul.f32 %v5235_v9, %v8054_v43  ;;  %5236 = vpow2.f32 %v4865_v63  ;;  %v3544_v55 = vadd.f32 %v3467_v45, %v3158_v50  ;;  %v9198_v45 = vld [vmem:[#allocation64_spill] sm:$0xff] }
 0x3fd   : > { %5238 = vrcp.f32 %v8079_v54  ;;  %vm4052_vm15 = vweird.f32 %v5235_v9  ;;  %v2730_v50 = vadd.f32 %v9198_v45, %v7701_v27  ;;  %v4058_v42 = vor.u32 1.1754944e-38, %v4057_v20 }
 0x3fe   : > { %v4035_v34 = vadd.f32 %v5231_v11, %v4034_v38  ;;  %v4048_v41 = vsub.f32 1.0, %v4047_v26  ;;  %4838 = vmatmul.msk.f32.gmra.mxu3 %vm9111_vm13, %v3207_v58  ;;  %v3769_v39 = vadd.f32 %v7952_v25, %v3544_v55  ;;  %vm4051_vm13 = vweird.f32 %v8054_v43  ;;  %v8101_v25 = vpop.f32.mrf.mxu2  ;;  %v5358_v38 = vld [vmem:[%s5961_s19 + $0x28] sm:$0xff]  ;;  %v9199_v55 = vld [vmem:[#allocation120_spill] sm:$0xff] }
 0x3ff   : > { %vm4053_vm3 = vmor %vm4051_vm13, %vm4052_vm15  ;;  %vm4066_vm1 = vweird.f32 %v8079_v54 }
 0x400   : > { %v4039_v19 = vsel %vm4038_vm14, %v5231_v11, %v4035_v34  ;;  %v4049_v13 = vmul.f32 %v5235_v9, %v4048_v41  ;;  %v8097_v63 = vadd.f32 %v7909_v14, %v3769_v39  ;;  %v3159_v34 = vadd.f32 %v3084_v32, %v2730_v50  ;;  %v3208_v41 = vld [vmem:[#allocation2 + $0xff] sm:$0xff] }
 0x401   : > { %v4044_v17 = vsel %vm4041_vm11, %v4043_v5, %v4039_v19  ;;  %v3356_v16 = vpop.f32.mrf.mxu3  ;;  %v3087_v5 = vadd.f32 %v7973_v10, %v9199_v55  ;;  %v4072_v39 = vand.u32 2147483648, %v8079_v54  ;;  %v5359_v32 = vld [vmem:[%s5961_s19 + $0x30] sm:$0xff]  ;;  %v8121_v10 = vpop.f32.mrf.mxu0 }
 0x402   : > { %v5237_v2 = vpop.eup %5236  ;;  %v4441_v12 = vmul.f32 %v4044_v17, %v7997_v28  ;;  %v4050_v4 = vadd.f32 %v5235_v9, %v4049_v13  ;;  %v3470_v21 = vadd.f32 %v7961_v47, %v3356_v16  ;;  %v8106_v28 = vpop.f32.mrf.mxu1  ;;  %v4866_v19 = vmul.f32 -1.442695, %v8097_v63 }
 0x403   : > { %v5239_v11 = vpop.eup %5238  ;;  %v8103_v61 = vadd.f32 1.0, %v5237_v2  ;;  %v4070_v13 = vand.u32 2147483647, %v8079_v54  ;;  %v4073_v50 = vor.u32 1.1754944e-38, %v4072_v39 }
 0x404   : > { %v4473_v43 = vadd.f32 %v5358_v38, %v4441_v12  ;;  %v4054_v26 = vsel %vm4053_vm3, %v5235_v9, %v4050_v4  ;;  %v4062_v58 = vmul.f32 %v5239_v11, %v8079_v54  ;;  %v9200_v9 = vld [vmem:[#allocation68_spill] sm:$0xff]  ;;  %v3545_v29 = vadd.f32 %v3470_v21, %v3159_v34  ;;  %v3209_v34 = vld [vmem:[#allocation2 + $0x107] sm:$0xff] }
 0x405   : > { %v4059_v27 = vsel %vm4056_vm5, %v4058_v42, %v4054_v26  ;;  %5240 = vrcp.f32 %v8103_v61  ;;  %v2733_v36 = vadd.f32 %v9200_v9, %v7719_v22  ;;  %vm4067_vm2 = vweird.f32 %v5239_v11 }
 0x406   : > { %4505 = vst [vmem:[%s7967_s16 + $0x28] sm:$0xff] %v4473_v43  ;;  %v4442_v47 = vmul.f32 %v4059_v27, %v8015_v52  ;;  %v4063_v20 = vsub.f32 1.0, %v4062_v58  ;;  %3406 = vmatmul.f32.gmra.mxu3 %v3208_v41  ;;  %5242 = vpow2.f32 %v4866_v19  ;;  %v3770_v52 = vadd.f32 %v7978_v30, %v3545_v29  ;;  %vm4068_vm7 = vmor %vm4066_vm1, %vm4067_vm2  ;;  %v9201_v30 = vld [vmem:[#allocation122_spill] sm:$0xff]  ;;  %v8133_v58 = vpop.f32.mrf.mxu2 }
 0x407   : > { %v3160_v12 = vadd.f32 %v3087_v5, %v2733_v36  ;;  %vm4071_vm8 = vcmp.eq.f32.partialorder %v4070_v13, 8.507059e+37  ;;  %v3090_v26 = vadd.f32 %v8001_v48, %v9201_v30  ;;  %v9202_v41 = vld [vmem:[#allocation74_spill] sm:$0xff]  ;;  %v4085_v48 = vand.u32 2147483647, %v8103_v61  ;;  %v5360_v36 = vld [vmem:[%s5961_s19 + $0x38] sm:$0xff] }
 0x408   : > { %v4474_v17 = vadd.f32 %v5359_v32, %v4442_v47  ;;  %v4064_v16 = vmul.f32 %v5239_v11, %v4063_v20  ;;  %v8128_v42 = vadd.f32 %v7909_v14, %v3770_v52  ;;  %v2736_v55 = vadd.f32 %v9202_v41, %v7737_v31  ;;  %v9204_v30 = vld [vmem:[#allocation79_spill] sm:$0xff] }
 0x409   : > { %v3359_v2 = vpop.f32.mrf.mxu3  ;;  %v4087_v19 = vand.u32 2147483648, %v8103_v61  ;;  %vm4086_vm12 = vcmp.eq.f32.partialorder %v4085_v48, 8.507059e+37 }
 0x40a   : > { %4506 = vst [vmem:[%s7967_s16 + $0x30] sm:$0xff] %v4474_v17  ;;  %v4065_v4 = vadd.f32 %v5239_v11, %v4064_v16  ;;  %v3473_v22 = vadd.f32 %v7990_v37, %v3359_v2  ;;  %v4867_v37 = vmul.f32 -1.442695, %v8128_v42  ;;  %v8138_v5 = vpop.f32.mrf.mxu1  ;;  %v3161_v39 = vadd.f32 %v3090_v26, %v2736_v55  ;;  %v8157_v17 = vpop.f32.mrf.mxu0 }
 0x40b   : > { %v5241_v45 = vpop.eup %5240  ;;  %v4088_v16 = vor.u32 1.1754944e-38, %v4087_v19  ;;  %v2739_v26 = vadd.f32 %v9204_v30, %v7747_v46 }
 0x40c   : > { %v4069_v21 = vsel %vm4068_vm7, %v5239_v11, %v4065_v4  ;;  %v4077_v38 = vmul.f32 %v5241_v45, %v8103_v61  ;;  %v3546_v43 = vadd.f32 %v3473_v22, %v3160_v12  ;;  %v5243_v27 = vpop.eup %5242  ;;  %5244 = vpow2.f32 %v4867_v37  ;;  %v3210_v22 = vld [vmem:[#allocation2 + $0x10f] sm:$0xff] }
 0x40d   : > { %v4074_v54 = vsel %vm4071_vm8, %v4073_v50, %v4069_v21  ;;  %v8146_v9 = vadd.f32 1.0, %v5243_v27  ;;  %vm4082_vm0 = vweird.f32 %v5241_v45  ;;  %v9203_v50 = vld [vmem:[#allocation126_spill] sm:$0xff]  ;;  %v5361_v37 = vld [vmem:[%s5961_s19 + $0x40] sm:$0xff] }
 0x40e   : > { %v4443_v11 = vmul.f32 %v4074_v54, %v8044_v24  ;;  %v4078_v47 = vsub.f32 1.0, %v4077_v38  ;;  %v3771_v20 = vadd.f32 %v8006_v18, %v3546_v43  ;;  %4839 = vmatmul.msk.f32.gmra.mxu3 %vm7282_vm4, %v3209_v34  ;;  %vm4081_vm4 = vweird.f32 %v8103_v61 }
 0x40f   : > { %5246 = vrcp.f32 %v8146_v9  ;;  %vm4083_vm10 = vmor %vm4081_vm4, %vm4082_vm0  ;;  %v3093_v21 = vadd.f32 %v8036_v1, %v9203_v50  ;;  %v4102_v46 = vand.u32 2147483648, %v8146_v9  ;;  %vm4096_vm11 = vweird.f32 %v8146_v9 }
 0x410   : > { %v4475_v31 = vadd.f32 %v5360_v36, %v4443_v11  ;;  %v4079_v13 = vmul.f32 %v5241_v45, %v4078_v47  ;;  %v8150_v24 = vadd.f32 %v7909_v14, %v3771_v20  ;;  %v4100_v36 = vand.u32 2147483647, %v8146_v9 }
 0x411   : > { %v3362_v18 = vpop.f32.mrf.mxu3  ;;  %v3162_v55 = vadd.f32 %v3093_v21, %v2739_v26 }
 0x412   : > { %4507 = vst [vmem:[%s7967_s16 + $0x38] sm:$0xff] %v4475_v31  ;;  %v4080_v7 = vadd.f32 %v5241_v45, %v4079_v13  ;;  %v4868_v29 = vmul.f32 -1.442695, %v8150_v24  ;;  %v3476_v32 = vadd.f32 %v8024_v49, %v3362_v18  ;;  %v5245_v12 = vpop.eup %5244  ;;  %v8169_v54 = vpop.f32.mrf.mxu1  ;;  %vm4101_vm13 = vcmp.eq.f32.partialorder %v4100_v36, 8.507059e+37 }
 0x413   : > { %v8162_v38 = vadd.f32 1.0, %v5245_v12  ;;  %v8184_v13 = vpop.f32.mrf.mxu0  ;;  %v9205_v12 = vld [vmem:[#allocation62_spill] sm:$0xff] }
 0x414   : > { %v4084_v52 = vsel %vm4083_vm10, %v5241_v45, %v4080_v7  ;;  %5248 = vpow2.f32 %v4868_v29  ;;  %v3547_v2 = vadd.f32 %v3476_v32, %v3161_v39  ;;  %v8165_v45 = vpop.f32.mrf.mxu2  ;;  %v3211_v39 = vld [vmem:[#allocation2 + $0x117] sm:$0xff]  ;;  %v3096_v29 = vadd.f32 %v8070_v59, %v7529_v6  ;;  %v3598_v59 = vld [vmem:[#allocation2 + $0x121] sm:$0xff] }
 0x415   : > { %v4089_v4 = vsel %vm4086_vm12, %v4088_v16, %v4084_v52  ;;  %v5247_v43 = vpop.eup %5246  ;;  %5250 = vrcp.f32 %v8162_v38  ;;  %v4103_v32 = vor.u32 1.1754944e-38, %v4102_v46  ;;  %v4115_v50 = vand.u32 2147483647, %v8162_v38  ;;  %v9208_v46 = vld [vmem:[#allocation89_spill] sm:$0xff] }
 0x416   : > { %v4444_v61 = vmul.f32 %v4089_v4, %v8067_v60  ;;  %v3772_v49 = vadd.f32 %v8040_v62, %v3547_v2  ;;  %3412 = vmatmul.f32.gmra.mxu3 %v3210_v22  ;;  %v4092_v1 = vmul.f32 %v5247_v43, %v8146_v9  ;;  %v3597_v62 = vld [vmem:[#allocation2 + $0x119] sm:$0xff]  ;;  %vm4097_vm14 = vweird.f32 %v5247_v43  ;;  %v9206_v9 = vld [vmem:[#allocation83_spill] sm:$0xff] }
 0x417   : > { %3753 = vmatmul.f32.gmra.mxu1 %v3597_v62  ;;  %vm4098_vm15 = vmor %vm4096_vm11, %vm4097_vm14  ;;  %v2742_v4 = vadd.f32 %v9206_v9, %v9205_v12  ;;  %v9207_v62 = vld [vmem:[#allocation129_spill] sm:$0xff]  ;;  %vm4111_vm3 = vweird.f32 %v8162_v38  ;;  %vm4116_vm5 = vcmp.eq.f32.partialorder %v4115_v50, 8.507059e+37 }
 0x418   : > { %v4476_v34 = vadd.f32 %v5361_v37, %v4444_v61  ;;  %v8175_v60 = vadd.f32 %v7909_v14, %v3772_v49  ;;  %v4093_v11 = vsub.f32 1.0, %v4092_v1  ;;  %v4117_v49 = vand.u32 2147483648, %v8162_v38  ;;  %v3212_v1 = vld [vmem:[#allocation2 + $0x11f] sm:$0xff] }
 0x419   : > { %v3365_v27 = vpop.f32.mrf.mxu3  ;;  %v3163_v37 = vadd.f32 %v3096_v29, %v2742_v4 }
 0x41a   : > { %v5249_v41 = vpop.eup %5248  ;;  %4508 = vst [vmem:[%s7967_s16 + $0x40] sm:$0xff] %v4476_v34  ;;  %v3479_v47 = vadd.f32 %v8058_v8, %v3365_v27  ;;  %v4869_v48 = vmul.f32 -1.442695, %v8175_v60  ;;  %v4094_v19 = vmul.f32 %v5247_v43, %v4093_v11  ;;  %v8202_v21 = vpop.f32.mrf.mxu1 }
 0x41b   : > { %v8180_v20 = vadd.f32 1.0, %v5249_v41  ;;  %v5251_v18 = vpop.eup %5250  ;;  %v3099_v41 = vadd.f32 %v8101_v25, %v9207_v62  ;;  %v8220_v25 = vpop.f32.mrf.mxu0  ;;  %v5364_v62 = vld [vmem:[%s5961_s19 + $0x58] sm:$0xff] }
 0x41c   : > { %v3548_v31 = vadd.f32 %v3479_v47, %v3162_v55  ;;  %v4095_v7 = vadd.f32 %v5247_v43, %v4094_v19  ;;  %v4107_v16 = vmul.f32 %v5251_v18, %v8162_v38  ;;  %v8199_v22 = vpop.f32.mrf.mxu2  ;;  %v4118_v19 = vor.u32 1.1754944e-38, %v4117_v49 }
 0x41d   : > { %5252 = vrcp.f32 %v8180_v20  ;;  %v4132_v38 = vand.u32 2147483648, %v8180_v20  ;;  %vm4126_vm1 = vweird.f32 %v8180_v20 }
 0x41e   : > { %5254 = vpow2.f32 %v4869_v48  ;;  %v3773_v8 = vadd.f32 %v8072_v56, %v3548_v31  ;;  %4840 = vmatmul.msk.f32.gmra.mxu3 %vm7320_vm6, %v3211_v39  ;;  %v4099_v52 = vsel %vm4098_vm15, %v5247_v43, %v4095_v7  ;;  %v4108_v15 = vsub.f32 1.0, %v4107_v16 }
 0x41f   : > { %v4104_v56 = vsel %vm4101_vm13, %v4103_v32, %v4099_v52  ;;  %4856 = vmatmul.msk.f32.gmra.mxu1 %vm9151_vm9, %v3598_v59  ;;  %vm4112_vm6 = vweird.f32 %v5251_v18  ;;  %v2745_v48 = vadd.f32 %v9208_v46, %v7773_v57  ;;  %v4130_v39 = vand.u32 2147483647, %v8180_v20 }
 0x420   : > { %v8195_v2 = vadd.f32 %v7909_v14, %v3773_v8  ;;  %v4445_v61 = vmul.f32 %v4104_v56, %v8097_v63  ;;  %v4109_v34 = vmul.f32 %v5251_v18, %v4108_v15  ;;  %v5362_v63 = vld [vmem:[%s5961_s19 + $0x48] sm:$0xff]  ;;  %vm4113_vm9 = vmor %vm4111_vm3, %vm4112_vm6  ;;  %v5363_v56 = vld [vmem:[%s5961_s19 + $0x50] sm:$0xff] }
 0x421   : > { %v3368_v6 = vpop.f32.mrf.mxu3  ;;  %v3164_v29 = vadd.f32 %v3099_v41, %v2745_v48  ;;  %vm4131_vm8 = vcmp.eq.f32.partialorder %v4130_v39, 8.507059e+37 }
 0x422   : > { %v4870_v43 = vmul.f32 -1.442695, %v8195_v2  ;;  %v3482_v30 = vadd.f32 %v8087_v3, %v3368_v6  ;;  %v4477_v55 = vadd.f32 %v5362_v63, %v4445_v61  ;;  %v4110_v47 = vadd.f32 %v5251_v18, %v4109_v34  ;;  %v9210_v34 = vld [vmem:[#allocation38_spill] sm:$0xff] }
 0x423   : > { %v5253_v26 = vpop.eup %5252 }
 0x424   : > { %v5255_v27 = vpop.eup %5254  ;;  %v4122_v11 = vmul.f32 %v5253_v26, %v8180_v20  ;;  %5256 = vpow2.f32 %v4870_v43  ;;  %v3549_v3 = vadd.f32 %v3482_v30, %v3163_v37  ;;  %4509 = vst [vmem:[%s7967_s16 + $0x48] sm:$0xff] %v4477_v55  ;;  %v4114_v31 = vsel %vm4113_vm9, %v5251_v18, %v4110_v47  ;;  %v8232_v4 = vpop.f32.mrf.mxu2 }
 0x425   : > { %v8215_v35 = vadd.f32 1.0, %v5255_v27  ;;  %v4119_v7 = vsel %vm4116_vm5, %v4118_v19, %v4114_v31  ;;  %vm4127_vm2 = vweird.f32 %v5253_v26  ;;  %v8250_v55 = vpop.f32.mrf.mxu0 }
 0x426   : > { %v4123_v36 = vsub.f32 1.0, %v4122_v11  ;;  %3418 = vmatmul.f32.gmra.mxu3 %v3212_v1  ;;  %v3774_v57 = vadd.f32 %v8106_v28, %v3549_v3  ;;  %v4446_v32 = vmul.f32 %v4119_v7, %v8128_v42  ;;  %vm4128_vm7 = vmor %vm4126_vm1, %vm4127_vm2  ;;  %v4133_v28 = vor.u32 1.1754944e-38, %v4132_v38  ;;  %v8237_v42 = vpop.f32.mrf.mxu1  ;;  %v9211_v1 = vld [vmem:[#allocation92_spill] sm:$0xff]  ;;  %v9212_v7 = vld [vmem:[#allocation30_spill] sm:$0xff] }
 0x427   : > { %5258 = vrcp.f32 %v8215_v35  ;;  %v2748_v27 = vadd.f32 %v9211_v1, %v9210_v34  ;;  %v4145_v11 = vand.u32 2147483647, %v8215_v35  ;;  %v4147_v47 = vand.u32 2147483648, %v8215_v35 }
 0x428   : > { %v4124_v8 = vmul.f32 %v5253_v26, %v4123_v36  ;;  %v8229_v18 = vadd.f32 %v7909_v14, %v3774_v57  ;;  %v4478_v15 = vadd.f32 %v5363_v56, %v4446_v32  ;;  %vm4141_vm4 = vweird.f32 %v8215_v35 }
 0x429   : > { %v3371_v16 = vpop.f32.mrf.mxu3  ;;  %vm4146_vm12 = vcmp.eq.f32.partialorder %v4145_v11, 8.507059e+37 }
 0x42a   : > { %v5257_v52 = vpop.eup %5256  ;;  %v4125_v12 = vadd.f32 %v5253_v26, %v4124_v8  ;;  %v3485_v9 = vadd.f32 %v8121_v10, %v3371_v16  ;;  %v4871_v20 = vmul.f32 -1.442695, %v8229_v18  ;;  %4510 = vst [vmem:[%s7967_s16 + $0x50] sm:$0xff] %v4478_v15  ;;  %v9209_v10 = vld [vmem:[#allocation131_spill] sm:$0xff]  ;;  %v3105_v8 = vadd.f32 %v8165_v45, %v9212_v7 }
 0x42b   : > { %v8235_v50 = vadd.f32 1.0, %v5257_v52  ;;  %v3102_v43 = vadd.f32 %v8133_v58, %v9209_v10 }
 0x42c   : > { %v4129_v6 = vsel %vm4128_vm7, %v5253_v26, %v4125_v12  ;;  %v3550_v59 = vadd.f32 %v3485_v9, %v3164_v29  ;;  %v8264_v57 = vpop.f32.mrf.mxu2  ;;  %v4148_v29 = vor.u32 1.1754944e-38, %v4147_v47  ;;  %v9213_v12 = vld [vmem:[#allocation58_spill] sm:$0xff]  ;;  %v9214_v9 = vld [vmem:[#allocation96_spill] sm:$0xff] }
 0x42d   : > { %v5259_v61 = vpop.eup %5258  ;;  %v4134_v49 = vsel %vm4131_vm8, %v4133_v28, %v4129_v6  ;;  %5260 = vrcp.f32 %v8235_v50  ;;  %v3165_v3 = vadd.f32 %v3102_v43, %v2748_v27  ;;  %v2751_v56 = vadd.f32 %v9214_v9, %v9213_v12 }
 0x42e   : > { %v4447_v30 = vmul.f32 %v4134_v49, %v8150_v24  ;;  %v4137_v37 = vmul.f32 %v5259_v61, %v8215_v35  ;;  %5262 = vpow2.f32 %v4871_v20  ;;  %v3775_v26 = vadd.f32 %v8138_v5, %v3550_v59  ;;  %v5365_v49 = vld [vmem:[%s5961_s19 + $0x60] sm:$0xff] }
 0x42f   : > { %vm4142_vm0 = vweird.f32 %v5259_v61  ;;  %v4160_v45 = vand.u32 2147483647, %v8235_v50  ;;  %v4162_v28 = vand.u32 2147483648, %v8235_v50  ;;  %v3166_v59 = vadd.f32 %v3105_v8, %v2751_v56 }
 0x430   : > { %v4479_v41 = vadd.f32 %v5364_v62, %v4447_v30  ;;  %v4138_v63 = vsub.f32 1.0, %v4137_v37  ;;  %v8255_v58 = vadd.f32 %v7909_v14, %v3775_v26  ;;  %vm4143_vm10 = vmor %vm4141_vm4, %vm4142_vm0  ;;  %vm4156_vm11 = vweird.f32 %v8235_v50  ;;  %v8283_v26 = vpop.f32.mrf.mxu0 }
 0x431   : > { %v3374_v24 = vpop.f32.mrf.mxu3  ;;  %vm4161_vm13 = vcmp.eq.f32.partialorder %v4160_v45, 8.507059e+37 }
 0x432   : > { %4511 = vst [vmem:[%s7967_s16 + $0x58] sm:$0xff] %v4479_v41  ;;  %v4139_v46 = vmul.f32 %v5259_v61, %v4138_v63  ;;  %v3488_v5 = vadd.f32 %v8157_v17, %v3374_v24  ;;  %v4872_v19 = vmul.f32 -1.442695, %v8255_v58  ;;  %v8266_v17 = vpop.f32.mrf.mxu1 }
 0x433   : > { %v5261_v48 = vpop.eup %5260 }
 0x434   : > { %v4140_v36 = vadd.f32 %v5259_v61, %v4139_v46  ;;  %v4152_v31 = vmul.f32 %v5261_v48, %v8235_v50  ;;  %v3551_v39 = vadd.f32 %v3488_v5, %v3165_v3  ;;  %v5263_v38 = vpop.eup %5262  ;;  %5264 = vpow2.f32 %v4872_v19  ;;  %v9215_v50 = vld [vmem:[#allocation34_spill] sm:$0xff]  ;;  %v8293_v11 = vpop.f32.mrf.mxu2 }
 0x435   : > { %v8268_v52 = vadd.f32 1.0, %v5263_v38  ;;  %vm4157_vm14 = vweird.f32 %v5261_v48  ;;  %v9216_v3 = vld [vmem:[#allocation98_spill] sm:$0xff] }
 0x436   : > { %v4144_v32 = vsel %vm4143_vm10, %v5259_v61, %v4140_v36  ;;  %v4153_v16 = vsub.f32 1.0, %v4152_v31  ;;  %v3776_v35 = vadd.f32 %v8169_v54, %v3551_v39  ;;  %vm4158_vm15 = vmor %vm4156_vm11, %vm4157_vm14  ;;  %v2754_v46 = vadd.f32 %v9216_v3, %v7808_v44  ;;  %v9219_v3 = vld [vmem:[#allocation50_spill] sm:$0xff] }
 0x437   : > { %v4149_v15 = vsel %vm4146_vm12, %v4148_v29, %v4144_v32  ;;  %5266 = vrcp.f32 %v8268_v52  ;;  %v4175_v8 = vand.u32 2147483647, %v8268_v52  ;;  %vm4171_vm3 = vweird.f32 %v8268_v52 }
 0x438   : > { %v4448_v6 = vmul.f32 %v4149_v15, %v8175_v60  ;;  %v4154_v20 = vmul.f32 %v5261_v48, %v4153_v16  ;;  %v8278_v61 = vadd.f32 %v7909_v14, %v3776_v35  ;;  %v4163_v60 = vor.u32 1.1754944e-38, %v4162_v28  ;;  %v8317_v12 = vpop.f32.mrf.mxu0 }
 0x439   : > { %v3377_v54 = vpop.f32.mrf.mxu3  ;;  %vm4176_vm5 = vcmp.eq.f32.partialorder %v4175_v8, 8.507059e+37 }
 0x43a   : > { %v4480_v10 = vadd.f32 %v5365_v49, %v4448_v6  ;;  %v4155_v43 = vadd.f32 %v5261_v48, %v4154_v20  ;;  %v3491_v30 = vadd.f32 %v8184_v13, %v3377_v54  ;;  %v5265_v37 = vpop.eup %5264  ;;  %v4873_v34 = vmul.f32 -1.442695, %v8278_v61  ;;  %v8299_v5 = vpop.f32.mrf.mxu1 }
 0x43b   : > { %v8287_v14 = vadd.f32 1.0, %v5265_v37  ;;  %v3108_v13 = vadd.f32 %v8199_v22, %v9215_v50 }
 0x43c   : > { %4512 = vst [vmem:[%s7967_s16 + $0x60] sm:$0xff] %v4480_v10  ;;  %v4159_v1 = vsel %vm4158_vm15, %v5261_v48, %v4155_v43  ;;  %v3552_v27 = vadd.f32 %v3491_v30, %v3166_v59  ;;  %5268 = vpow2.f32 %v4873_v34  ;;  %v5366_v48 = vld [vmem:[%s5961_s19 + $0x68] sm:$0xff]  ;;  %v9218_v59 = vld [vmem:[#allocation100_spill] sm:$0xff]  ;;  %v8329_v43 = vpop.f32.mrf.mxu2 }
 0x43d   : > { %v4164_v62 = vsel %vm4161_vm13, %v4163_v60, %v4159_v1  ;;  %v5267_v41 = vpop.eup %5266  ;;  %5270 = vrcp.f32 %v8287_v14  ;;  %v3167_v39 = vadd.f32 %v3108_v13, %v2754_v46  ;;  %v2757_v54 = vadd.f32 %v9218_v59, %v7814_v53  ;;  %v9221_v59 = vld [vmem:[#allocation32_spill] sm:$0xff] }
 0x43e   : > { %v4449_v63 = vmul.f32 %v4164_v62, %v8195_v2  ;;  %v4167_v47 = vmul.f32 %v5267_v41, %v8268_v52  ;;  %v3777_v24 = vadd.f32 %v8202_v21, %v3552_v27  ;;  %v8305_v2 = vld [vmem:[%s9187_s14] ss:$0 sm:$0xff]  ;;  %v4177_v21 = vand.u32 2147483648, %v8268_v52 }
 0x43f   : > { %vm4172_vm6 = vweird.f32 %v5267_v41  ;;  %v4190_v49 = vand.u32 2147483647, %v8287_v14  ;;  %v4192_v10 = vand.u32 2147483648, %v8287_v14  ;;  %v5368_v27 = vld [vmem:[%s5961_s19 + $0x70] sm:$0xff]  ;;  %vm4186_vm1 = vweird.f32 %v8287_v14 }
 0x440   : > { %v4481_v19 = vadd.f32 %v5366_v48, %v4449_v63  ;;  %v4168_v36 = vsub.f32 1.0, %v4167_v47  ;;  %v8308_v22 = vadd.f32 %v8305_v2, %v3777_v24  ;;  %vm4173_vm9 = vmor %vm4171_vm3, %vm4172_vm6  ;;  %v4178_v45 = vor.u32 1.1754944e-38, %v4177_v21 }
 0x441   : > { %v3380_v31 = vpop.f32.mrf.mxu3  ;;  %v4193_v13 = vor.u32 1.1754944e-38, %v4192_v10  ;;  %vm4191_vm8 = vcmp.eq.f32.partialorder %v4190_v49, 8.507059e+37  ;;  %v3114_v46 = vadd.f32 %v8264_v57, %v9219_v3 }
 0x442   : > { %4513 = vst [vmem:[%s7967_s16 + $0x68] sm:$0xff] %v4481_v19  ;;  %v3494_v44 = vadd.f32 %v8220_v25, %v3380_v31  ;;  %v5269_v38 = vpop.eup %5268  ;;  %v4169_v7 = vmul.f32 %v5267_v41, %v4168_v36  ;;  %v4874_v29 = vmul.f32 -1.442695, %v8308_v22  ;;  %v9217_v25 = vld [vmem:[#allocation43_spill] sm:$0xff]  ;;  %v8335_v34 = vpop.f32.mrf.mxu1 }
 0x443   : > { %v5271_v32 = vpop.eup %5270  ;;  %v8315_v16 = vadd.f32 1.0, %v5269_v38  ;;  %v3111_v15 = vadd.f32 %v8232_v4, %v9217_v25 }
 0x444   : > { %v3553_v35 = vadd.f32 %v3494_v44, %v3167_v39  ;;  %v4170_v9 = vadd.f32 %v5267_v41, %v4169_v7  ;;  %v4182_v56 = vmul.f32 %v5271_v32, %v8287_v14  ;;  %5272 = vpow2.f32 %v4874_v29  ;;  %v8348_v14 = vpop.f32.mrf.mxu0  ;;  %v9220_v39 = vld [vmem:[#allocation102_spill] sm:$0xff]  ;;  %v5369_v7 = vld [vmem:[%s5961_s19 + $0x78] sm:$0xff] }
 0x445   : > { %5274 = vrcp.f32 %v8315_v16  ;;  %vm4187_vm2 = vweird.f32 %v5271_v32  ;;  %v2760_v21 = vadd.f32 %v9220_v39, %v7824_v23  ;;  %v4205_v44 = vand.u32 2147483647, %v8315_v16 }
 0x446   : > { %v4174_v28 = vsel %vm4173_vm9, %v5267_v41, %v4170_v9  ;;  %v4183_v6 = vsub.f32 1.0, %v4182_v56  ;;  %v3778_v20 = vadd.f32 %v8237_v42, %v3553_v35  ;;  %v3168_v42 = vadd.f32 %v3111_v15, %v2757_v54  ;;  %vm4188_vm7 = vmor %vm4186_vm1, %vm4187_vm2 }
 0x447   : > { %v4179_v52 = vsel %vm4176_vm5, %v4178_v45, %v4174_v28  ;;  %v4207_v38 = vand.u32 2147483648, %v8315_v16  ;;  %vm4201_vm4 = vweird.f32 %v8315_v16  ;;  %vm4206_vm12 = vcmp.eq.f32.partialorder %v4205_v44, 8.507059e+37  ;;  %v9224_v44 = vld [vmem:[#allocation107_spill] sm:$0xff] }
 0x448   : > { %v4450_v4 = vmul.f32 %v4179_v52, %v8229_v18  ;;  %v4184_v30 = vmul.f32 %v5271_v32, %v4183_v6  ;;  %v8333_v37 = vadd.f32 %v8305_v2, %v3778_v20  ;;  %v3117_v54 = vadd.f32 %v8293_v11, %v9221_v59  ;;  %v9225_v59 = vld [vmem:[#allocation47_spill] sm:$0xff] }
 0x449   : > { %v3383_v60 = vpop.f32.mrf.mxu3  ;;  %v4208_v45 = vor.u32 1.1754944e-38, %v4207_v38  ;;  %v2766_v38 = vadd.f32 %v9224_v44, %v7840_v33 }
 0x44a   : > { %v3497_v53 = vadd.f32 %v8250_v55, %v3383_v60  ;;  %v5273_v1 = vpop.eup %5272  ;;  %v4482_v62 = vadd.f32 %v5368_v27, %v4450_v4  ;;  %v4185_v41 = vadd.f32 %v5271_v32, %v4184_v30  ;;  %v4875_v18 = vmul.f32 -1.442695, %v8333_v37  ;;  %v8366_v15 = vpop.f32.mrf.mxu1  ;;  %v9222_v4 = vld [vmem:[#allocation105_spill] sm:$0xff] }
 0x44b   : > { %v5275_v50 = vpop.eup %5274  ;;  %v8341_v63 = vadd.f32 1.0, %v5273_v1  ;;  %v2763_v30 = vadd.f32 %v9222_v4, %v7830_v40  ;;  %v5370_v1 = vld [vmem:[%s5961_s19 + $0x80] sm:$0xff]  ;;  %v9226_v4 = vld [vmem:[#allocation109_spill] sm:$0xff] }
 0x44c   : > { %v3554_v47 = vadd.f32 %v3497_v53, %v3168_v42  ;;  %4514 = vst [vmem:[%s7967_s16 + $0x70] sm:$0xff] %v4482_v62  ;;  %v4189_v24 = vsel %vm4188_vm7, %v5271_v32, %v4185_v41  ;;  %v4197_v55 = vmul.f32 %v5275_v50, %v8315_v16  ;;  %5276 = vpow2.f32 %v4875_v18  ;;  %v8380_v53 = vpop.f32.mrf.mxu0 }
 0x44d   : > { %v4194_v48 = vsel %vm4191_vm8, %v4193_v13, %v4189_v24  ;;  %5278 = vrcp.f32 %v8341_v63  ;;  %vm4202_vm0 = vweird.f32 %v5275_v50  ;;  %v4220_v60 = vand.u32 2147483647, %v8341_v63 }
 0x44e   : > { %v4451_v19 = vmul.f32 %v4194_v48, %v8255_v58  ;;  %v4198_v36 = vsub.f32 1.0, %v4197_v55  ;;  %v3779_v31 = vadd.f32 %v8266_v17, %v3554_v47  ;;  %v3169_v58 = vadd.f32 %v3114_v46, %v2760_v21  ;;  %v8361_v17 = vpop.f32.mrf.mxu2  ;;  %vm4203_vm10 = vmor %vm4201_vm4, %vm4202_vm0  ;;  %v9223_v48 = vld [vmem:[#allocation36_spill] sm:$0xff] }
 0x44f   : > { %v4222_v42 = vand.u32 2147483648, %v8341_v63  ;;  %v3170_v41 = vadd.f32 %v3117_v54, %v2763_v30  ;;  %vm4216_vm11 = vweird.f32 %v8341_v63  ;;  %vm4221_vm13 = vcmp.eq.f32.partialorder %v4220_v60, 8.507059e+37 }
 0x450   : > { %v4483_v57 = vadd.f32 %v5369_v7, %v4451_v19  ;;  %v4199_v8 = vmul.f32 %v5275_v50, %v4198_v36  ;;  %v8358_v29 = vadd.f32 %v8305_v2, %v3779_v31  ;;  %v3120_v19 = vadd.f32 %v8329_v43, %v9223_v48 }
 0x451   : > { %v3386_v32 = vpop.f32.mrf.mxu3  ;;  %v4223_v47 = vor.u32 1.1754944e-38, %v4222_v42  ;;  %v3123_v54 = vadd.f32 %v8361_v17, %v9225_v59  ;;  %v2769_v30 = vadd.f32 %v9226_v4, %v7844_v0 }
 0x452   : > { %v3500_v35 = vadd.f32 %v8283_v26, %v3386_v32  ;;  %v5277_v9 = vpop.eup %5276  ;;  %4515 = vst [vmem:[%s7967_s16 + $0x78] sm:$0xff] %v4483_v57  ;;  %v4200_v23 = vadd.f32 %v5275_v50, %v4199_v8  ;;  %v4876_v56 = vmul.f32 -1.442695, %v8358_v29  ;;  %v5371_v8 = vld [vmem:[%s5961_s19 + $0x88] sm:$0xff] }
 0x453   : > { %v5279_v25 = vpop.eup %5278  ;;  %v8368_v28 = vadd.f32 1.0, %v5277_v9 }
 0x454   : > { %v3555_v6 = vadd.f32 %v3500_v35, %v3169_v58  ;;  %v4204_v20 = vsel %vm4203_vm10, %v5275_v50, %v4200_v23  ;;  %v4212_v26 = vmul.f32 %v5279_v25, %v8341_v63  ;;  %5280 = vpow2.f32 %v4876_v56  ;;  %v8397_v63 = vpop.f32.mrf.mxu1 }
 0x455   : > { %v4209_v16 = vsel %vm4206_vm12, %v4208_v45, %v4204_v20  ;;  %5282 = vrcp.f32 %v8368_v28  ;;  %vm4217_vm14 = vweird.f32 %v5279_v25  ;;  %v4235_v7 = vand.u32 2147483647, %v8368_v28 }
 0x456   : > { %v4452_v52 = vmul.f32 %v4209_v16, %v8278_v61  ;;  %v4213_v49 = vsub.f32 1.0, %v4212_v26  ;;  %v3780_v10 = vadd.f32 %v8299_v5, %v3555_v6  ;;  %vm4218_vm15 = vmor %vm4216_vm11, %vm4217_vm14  ;;  %v8392_v3 = vpop.f32.mrf.mxu2  ;;  %v4237_v57 = vand.u32 2147483648, %v8368_v28 }
 0x457   : > { %vm4231_vm3 = vweird.f32 %v8368_v28  ;;  %vm4236_vm5 = vcmp.eq.f32.partialorder %v4235_v7, 8.507059e+37 }
 0x458   : > { %v4484_v11 = vadd.f32 %v5370_v1, %v4452_v52  ;;  %v4214_v27 = vmul.f32 %v5279_v25, %v4213_v49  ;;  %v8384_v62 = vadd.f32 %v8305_v2, %v3780_v10  ;;  %v4238_v45 = vor.u32 1.1754944e-38, %v4237_v57  ;;  %v5372_v1 = vld [vmem:[%s5961_s19 + $0x90] sm:$0xff]  ;;  %v5373_v57 = vld [vmem:[%s5961_s19 + $0x98] sm:$0xff] }
 0x459   : > { %v3389_v61 = vpop.f32.mrf.mxu3 }
 0x45a   : > { %v3503_v5 = vadd.f32 %v8317_v12, %v3389_v61  ;;  %v5281_v18 = vpop.eup %5280  ;;  %4516 = vst [vmem:[%s7967_s16 + $0x80] sm:$0xff] %v4484_v11  ;;  %v4215_v40 = vadd.f32 %v5279_v25, %v4214_v27  ;;  %v4877_v50 = vmul.f32 -1.442695, %v8384_v62 }
 0x45b   : > { %v5283_v13 = vpop.eup %5282  ;;  %v8390_v24 = vadd.f32 1.0, %v5281_v18 }
 0x45c   : > { %v3556_v55 = vadd.f32 %v3503_v5, %v3170_v41  ;;  %v4219_v46 = vsel %vm4218_vm15, %v5279_v25, %v4215_v40  ;;  %v4227_v12 = vmul.f32 %v5283_v13, %v8368_v28  ;;  %5284 = vpow2.f32 %v4877_v50  ;;  %v8428_v60 = vpop.f32.mrf.mxu1 }
 0x45d   : > { %v4224_v36 = vsel %vm4221_vm13, %v4223_v47, %v4219_v46  ;;  %5286 = vrcp.f32 %v8390_v24  ;;  %vm4232_vm6 = vweird.f32 %v5283_v13  ;;  %v4250_v42 = vand.u32 2147483647, %v8390_v24 }
 0x45e   : > { %v4453_v31 = vmul.f32 %v4224_v36, %v8308_v22  ;;  %v4228_v39 = vsub.f32 1.0, %v4227_v12  ;;  %v3781_v21 = vadd.f32 %v8335_v34, %v3556_v55  ;;  %v3171_v22 = vadd.f32 %v3120_v19, %v2766_v38  ;;  %v8411_v34 = vpop.f32.mrf.mxu0  ;;  %vm4233_vm9 = vmor %vm4231_vm3, %vm4232_vm6  ;;  %v8422_v28 = vpop.f32.mrf.mxu2 }
 0x45f   : > { %v4252_v17 = vand.u32 2147483648, %v8390_v24  ;;  %v3172_v41 = vadd.f32 %v3123_v54, %v2769_v30  ;;  %vm4246_vm1 = vweird.f32 %v8390_v24  ;;  %vm4251_vm8 = vcmp.eq.f32.partialorder %v4250_v42, 8.507059e+37  ;;  %v5374_v42 = vld [vmem:[%s5961_s19 + $0xa0] sm:$0xff] }
 0x460   : > { %v4485_v43 = vadd.f32 %v5371_v8, %v4453_v31  ;;  %v4229_v32 = vmul.f32 %v5283_v13, %v4228_v39  ;;  %v8408_v58 = vadd.f32 %v8305_v2, %v3781_v21  ;;  %v9228_v39 = vld [vmem:[#allocation112_spill] sm:$0xff] }
 0x461   : > { %v3392_v35 = vpop.f32.mrf.mxu3  ;;  %v4253_v50 = vor.u32 1.1754944e-38, %v4252_v17  ;;  %v2772_v21 = vadd.f32 %v9228_v39, %v7852_v51 }
 0x462   : > { %v3506_v9 = vadd.f32 %v8348_v14, %v3392_v35  ;;  %v5285_v23 = vpop.eup %5284  ;;  %4517 = vst [vmem:[%s7967_s16 + $0x88] sm:$0xff] %v4485_v43  ;;  %v4230_v33 = vadd.f32 %v5283_v13, %v4229_v32  ;;  %v4878_v56 = vmul.f32 -1.442695, %v8408_v58 }
 0x463   : > { %v5287_v25 = vpop.eup %5286  ;;  %v8416_v6 = vadd.f32 1.0, %v5285_v23 }
 0x464   : > { %v3557_v20 = vadd.f32 %v3506_v9, %v3171_v22  ;;  %v4234_v26 = vsel %vm4233_vm9, %v5283_v13, %v4230_v33  ;;  %v4242_v14 = vmul.f32 %v5287_v25, %v8390_v24  ;;  %5288 = vpow2.f32 %v4878_v56  ;;  %v3739_v35 = vpop.f32.mrf.mxu1 }
 0x465   : > { %v4239_v16 = vsel %vm4236_vm5, %v4238_v45, %v4234_v26  ;;  %5290 = vrcp.f32 %v8416_v6  ;;  %vm4247_vm2 = vweird.f32 %v5287_v25  ;;  %v4265_v44 = vand.u32 2147483647, %v8416_v6 }
 0x466   : > { %v4454_v52 = vmul.f32 %v4239_v16, %v8333_v37  ;;  %v4243_v49 = vsub.f32 1.0, %v4242_v14  ;;  %v3782_v10 = vadd.f32 %v8366_v15, %v3557_v20  ;;  %vm4248_vm7 = vmor %vm4246_vm1, %vm4247_vm2  ;;  %v3514_v55 = vpop.f32.mrf.mxu0  ;;  %v4267_v38 = vand.u32 2147483648, %v8416_v6  ;;  %v3131_v7 = vpop.f32.mrf.mxu2 }
 0x467   : > { %vm4261_vm4 = vweird.f32 %v8416_v6  ;;  %vm4266_vm12 = vcmp.eq.f32.partialorder %v4265_v44, 8.507059e+37 }
 0x468   : > { %v4486_v11 = vadd.f32 %v5372_v1, %v4454_v52  ;;  %v4244_v27 = vmul.f32 %v5287_v25, %v4243_v49  ;;  %v8434_v61 = vadd.f32 %v8305_v2, %v3782_v10  ;;  %v4268_v33 = vor.u32 1.1754944e-38, %v4267_v38  ;;  %v9230_v52 = vld [vmem:[#allocation70_spill] sm:$0xff]  ;;  %v9231_v49 = vld [vmem:[#allocation116_spill] sm:$0xff]  ;;  %v5375_v38 = vld [vmem:[%s5961_s19 + $0xa8] sm:$0xff] }
 0x469   : > { %v3395_v37 = vpop.f32.mrf.mxu3  ;;  %v2775_v10 = vadd.f32 %v9231_v49, %v9230_v52 }
 0x46a   : > { %v3509_v15 = vadd.f32 %v8380_v53, %v3395_v37  ;;  %v5289_v5 = vpop.eup %5288  ;;  %4518 = vst [vmem:[%s7967_s16 + $0x90] sm:$0xff] %v4486_v11  ;;  %v4245_v0 = vadd.f32 %v5287_v25, %v4244_v27  ;;  %v4879_v18 = vmul.f32 -1.442695, %v8434_v61  ;;  %v9227_v53 = vld [vmem:[#allocation54_spill] sm:$0xff] }
 0x46b   : > { %v5291_v40 = vpop.eup %5290  ;;  %v8440_v13 = vadd.f32 1.0, %v5289_v5  ;;  %v3126_v48 = vadd.f32 %v8392_v3, %v9227_v53 }
 0x46c   : > { %v3558_v47 = vadd.f32 %v3509_v15, %v3172_v41  ;;  %v4249_v46 = vsel %vm4248_vm7, %v5287_v25, %v4245_v0  ;;  %v4257_v12 = vmul.f32 %v5291_v40, %v8416_v6  ;;  %5292 = vpow2.f32 %v4879_v18  ;;  %v3742_v0 = vpop.f32.mrf.mxu1 }
 0x46d   : > { %v4254_v19 = vsel %vm4251_vm8, %v4253_v50, %v4249_v46  ;;  %5294 = vrcp.f32 %v8440_v13  ;;  %vm4262_vm0 = vweird.f32 %v5291_v40  ;;  %v3173_v32 = vadd.f32 %v3126_v48, %v2772_v21  ;;  %v9232_v46 = vld [vmem:[#allocation35_spill] sm:$0xff] }
 0x46e   : > { %v4455_v24 = vmul.f32 %v4254_v19, %v8358_v29  ;;  %v4258_v36 = vsub.f32 1.0, %v4257_v12  ;;  %v3783_v31 = vadd.f32 %v8397_v63, %v3558_v47  ;;  %vm4263_vm10 = vmor %vm4261_vm4, %vm4262_vm0  ;;  %v3517_v6 = vpop.f32.mrf.mxu0  ;;  %v4280_v4 = vand.u32 2147483647, %v8440_v13  ;;  %v3134_v41 = vpop.f32.mrf.mxu2 }
 0x46f   : > { %v4282_v30 = vand.u32 2147483648, %v8440_v13  ;;  %vm4276_vm11 = vweird.f32 %v8440_v13  ;;  %v3132_v12 = vadd.f32 %v3131_v7, %v9232_v46 }
 0x470   : > { %v4487_v8 = vadd.f32 %v5373_v57, %v4455_v24  ;;  %v4259_v3 = vmul.f32 %v5291_v40, %v4258_v36  ;;  %v8454_v43 = vadd.f32 %v8305_v2, %v3783_v31  ;;  %vm4281_vm13 = vcmp.eq.f32.partialorder %v4280_v4, 8.507059e+37  ;;  %v9233_v24 = vld [vmem:[#allocation45_spill] sm:$0xff]  ;;  %v9234_v36 = vld [vmem:[#allocation119_spill] sm:$0xff]  ;;  %v5376_v4 = vld [vmem:[%s5961_s19 + $0xb0] sm:$0xff] }
 0x471   : > { %v3398_v29 = vpop.f32.mrf.mxu3  ;;  %v4283_v18 = vor.u32 1.1754944e-38, %v4282_v30  ;;  %v2778_v31 = vadd.f32 %v9234_v36, %v9233_v24 }
 0x472   : > { %v3512_v63 = vadd.f32 %v8411_v34, %v3398_v29  ;;  %v5293_v22 = vpop.eup %5292  ;;  %4519 = vst [vmem:[%s7967_s16 + $0x98] sm:$0xff] %v4487_v8  ;;  %v4260_v51 = vadd.f32 %v5291_v40, %v4259_v3  ;;  %v4880_v9 = vmul.f32 -1.442695, %v8454_v43  ;;  %v9229_v34 = vld [vmem:[#allocation39_spill] sm:$0xff] }
 0x473   : > { %v5295_v23 = vpop.eup %5294  ;;  %v8460_v56 = vadd.f32 1.0, %v5293_v22  ;;  %v3129_v26 = vadd.f32 %v8422_v28, %v9229_v34 }
 0x474   : > { %v3559_v25 = vadd.f32 %v3512_v63, %v3173_v32  ;;  %v4264_v45 = vsel %vm4263_vm10, %v5291_v40, %v4260_v51  ;;  %v4272_v20 = vmul.f32 %v5295_v23, %v8440_v13  ;;  %5296 = vpow2.f32 %v4880_v9 }
 0x475   : > { %v4269_v14 = vsel %vm4266_vm12, %v4268_v33, %v4264_v45  ;;  %5298 = vrcp.f32 %v8460_v56  ;;  %vm4277_vm14 = vweird.f32 %v5295_v23  ;;  %v4295_v39 = vand.u32 2147483647, %v8460_v56 }
 0x476   : > { %v4456_v59 = vmul.f32 %v4269_v14, %v8384_v62  ;;  %v4273_v54 = vsub.f32 1.0, %v4272_v20  ;;  %v3784_v16 = vadd.f32 %v8428_v60, %v3559_v25  ;;  %v3174_v62 = vadd.f32 %v3129_v26, %v2775_v10  ;;  %vm4278_vm15 = vmor %vm4276_vm11, %vm4277_vm14  ;;  %v3520_v44 = vpop.f32.mrf.mxu0  ;;  %v3137_v33 = vpop.f32.mrf.mxu2  ;;  %v9235_v20 = vld [vmem:[#allocation51_spill] sm:$0xff] }
 0x477   : > { %v4297_v21 = vand.u32 2147483648, %v8460_v56  ;;  %vm4291_vm3 = vweird.f32 %v8460_v56  ;;  %vm4296_vm5 = vcmp.eq.f32.partialorder %v4295_v39, 8.507059e+37  ;;  %v3135_v34 = vadd.f32 %v3134_v41, %v9235_v20  ;;  %v3745_v26 = vpop.f32.mrf.mxu1 }
 0x478   : > { %v4488_v17 = vadd.f32 %v5374_v42, %v4456_v59  ;;  %v4274_v28 = vmul.f32 %v5295_v23, %v4273_v54  ;;  %v8474_v1 = vadd.f32 %v8305_v2, %v3784_v16  ;;  %v9236_v54 = vld [vmem:[#allocation41_spill] sm:$0xff] }
 0x479   : > { %v3401_v11 = vpop.f32.mrf.mxu3  ;;  %v4298_v51 = vor.u32 1.1754944e-38, %v4297_v21  ;;  %v9237_v16 = vld [vmem:[#allocation121_spill] sm:$0xff]  ;;  %v5377_v21 = vld [vmem:[%s5961_s19 + $0xb8] sm:$0xff] }
 0x47a   : > { %v3515_v27 = vadd.f32 %v3514_v55, %v3401_v11  ;;  %v5297_v37 = vpop.eup %5296  ;;  %4520 = vst [vmem:[%s7967_s16 + $0xa0] sm:$0xff] %v4488_v17  ;;  %v4275_v60 = vadd.f32 %v5295_v23, %v4274_v28  ;;  %v4881_v15 = vmul.f32 -1.442695, %v8474_v1  ;;  %v2781_v52 = vadd.f32 %v9237_v16, %v9236_v54 }
 0x47b   : > { %v5299_v5 = vpop.eup %5298  ;;  %v8479_v40 = vadd.f32 1.0, %v5297_v37 }
 0x47c   : > { %v3560_v50 = vadd.f32 %v3515_v27, %v3174_v62  ;;  %v4279_v47 = vsel %vm4278_vm15, %v5295_v23, %v4275_v60  ;;  %v4287_v55 = vmul.f32 %v5299_v5, %v8460_v56  ;;  %5300 = vpow2.f32 %v4881_v15 }
 0x47d   : > { %v4284_v53 = vsel %vm4281_vm13, %v4283_v18, %v4279_v47  ;;  %5302 = vrcp.f32 %v8479_v40  ;;  %vm4292_vm6 = vweird.f32 %v5299_v5  ;;  %v4310_v49 = vand.u32 2147483647, %v8479_v40  ;;  %v9238_v47 = vld [vmem:[#allocation37_spill] sm:$0xff] }
 0x47e   : > { %v4457_v13 = vmul.f32 %v4284_v53, %v8408_v58  ;;  %v4288_v48 = vsub.f32 1.0, %v4287_v55  ;;  %v3785_v19 = vadd.f32 %v3739_v35, %v3560_v50  ;;  %v3175_v58 = vadd.f32 %v3132_v12, %v2778_v31  ;;  %vm4293_vm9 = vmor %vm4291_vm3, %vm4292_vm6  ;;  %v3523_v27 = vpop.f32.mrf.mxu0 }
 0x47f   : > { %v4312_v10 = vand.u32 2147483648, %v8479_v40  ;;  %v3176_v11 = vadd.f32 %v3135_v34, %v2781_v52  ;;  %vm4306_vm1 = vweird.f32 %v8479_v40  ;;  %vm4311_vm8 = vcmp.eq.f32.partialorder %v4310_v49, 8.507059e+37  ;;  %v3748_v36 = vpop.f32.mrf.mxu1  ;;  %v5378_v49 = vld [vmem:[%s5961_s19 + $0xc0] sm:$0xff] }
 0x480   : > { %v4489_v57 = vadd.f32 %v5375_v38, %v4457_v13  ;;  %v4289_v8 = vmul.f32 %v5299_v5, %v4288_v48  ;;  %v8491_v7 = vadd.f32 %v8305_v2, %v3785_v19  ;;  %v3138_v55 = vadd.f32 %v3137_v33, %v9238_v47  ;;  %v9239_v48 = vld [vmem:[#allocation46_spill] sm:$0xff]  ;;  %v9240_v19 = vld [vmem:[#allocation124_spill] sm:$0xff] }
 0x481   : > { %v3404_v3 = vpop.f32.mrf.mxu3  ;;  %v4313_v15 = vor.u32 1.1754944e-38, %v4312_v10  ;;  %v2784_v24 = vadd.f32 %v9240_v19, %v9239_v48  ;;  %v9244_v47 = vld [vmem:[#allocation56_spill] sm:$0xff] }
 0x482   : > { %v3518_v29 = vadd.f32 %v3517_v6, %v3404_v3  ;;  %v5301_v32 = vpop.eup %5300  ;;  %4521 = vst [vmem:[%s7967_s16 + $0xa8] sm:$0xff] %v4489_v57  ;;  %v4290_v35 = vadd.f32 %v5299_v5, %v4289_v8  ;;  %v4882_v63 = vmul.f32 -1.442695, %v8491_v7 }
 0x483   : > { %v5303_v22 = vpop.eup %5302  ;;  %v8496_v9 = vadd.f32 1.0, %v5301_v32 }
 0x484   : > { %v3561_v23 = vadd.f32 %v3518_v29, %v3175_v58  ;;  %v4294_v25 = vsel %vm4293_vm9, %v5299_v5, %v4290_v35  ;;  %v4302_v45 = vmul.f32 %v5303_v22, %v8479_v40  ;;  %5304 = vpow2.f32 %v4882_v63  ;;  %v3140_v40 = vpop.f32.mrf.mxu2 }
 0x485   : > { %v4299_v14 = vsel %vm4296_vm5, %v4298_v51, %v4294_v25  ;;  %5306 = vrcp.f32 %v8496_v9  ;;  %vm4307_vm2 = vweird.f32 %v5303_v22  ;;  %v4325_v31 = vand.u32 2147483647, %v8496_v9 }
 0x486   : > { %v4458_v56 = vmul.f32 %v4299_v14, %v8434_v61  ;;  %v4303_v6 = vsub.f32 1.0, %v4302_v45  ;;  %v3786_v59 = vadd.f32 %v3742_v0, %v3561_v23  ;;  %vm4308_vm7 = vmor %vm4306_vm1, %vm4307_vm2  ;;  %v4327_v39 = vand.u32 2147483648, %v8496_v9  ;;  %v3526_v23 = vpop.f32.mrf.mxu0  ;;  %v9241_v45 = vld [vmem:[#allocation42_spill] sm:$0xff] }
 0x487   : > { %vm4321_vm4 = vweird.f32 %v8496_v9  ;;  %vm4326_vm12 = vcmp.eq.f32.partialorder %v4325_v31, 8.507059e+37  ;;  %v3141_v20 = vadd.f32 %v3140_v40, %v9241_v45 }
 0x488   : > { %v4490_v30 = vadd.f32 %v5376_v4, %v4458_v56  ;;  %v4304_v42 = vmul.f32 %v5303_v22, %v4303_v6  ;;  %v8508_v17 = vadd.f32 %v8305_v2, %v3786_v59  ;;  %v4328_v63 = vor.u32 1.1754944e-38, %v4327_v39  ;;  %v9242_v56 = vld [vmem:[#allocation60_spill] sm:$0xff]  ;;  %v9243_v6 = vld [vmem:[#allocation127_spill] sm:$0xff] }
 0x489   : > { %v3407_v28 = vpop.f32.mrf.mxu3  ;;  %v2787_v59 = vadd.f32 %v9243_v6, %v9242_v56  ;;  %v9249_v56 = vld [vmem:[#allocation130_spill] sm:$0xff] }
 0x48a   : > { %v3521_v61 = vadd.f32 %v3520_v44, %v3407_v28  ;;  %v5305_v62 = vpop.eup %5304  ;;  %4522 = vst [vmem:[%s7967_s16 + $0xb0] sm:$0xff] %v4490_v30  ;;  %v4305_v37 = vadd.f32 %v5303_v22, %v4304_v42  ;;  %v4883_v41 = vmul.f32 -1.442695, %v8508_v17  ;;  %v3751_v28 = vpop.f32.mrf.mxu1 }
 0x48b   : > { %v5307_v60 = vpop.eup %5306  ;;  %v8513_v5 = vadd.f32 1.0, %v5305_v62 }
 0x48c   : > { %v3562_v0 = vadd.f32 %v3521_v61, %v3176_v11  ;;  %v4309_v18 = vsel %vm4308_vm7, %v5303_v22, %v4305_v37  ;;  %v4317_v50 = vmul.f32 %v5307_v60, %v8496_v9  ;;  %5308 = vpow2.f32 %v4883_v41  ;;  %v3143_v52 = vpop.f32.mrf.mxu2 }
 0x48d   : > { %v4314_v46 = vsel %vm4311_vm8, %v4313_v15, %v4309_v18  ;;  %5310 = vrcp.f32 %v8513_v5  ;;  %vm4322_vm0 = vweird.f32 %v5307_v60  ;;  %v4340_v54 = vand.u32 2147483647, %v8513_v5 }
 0x48e   : > { %v4459_v12 = vmul.f32 %v4314_v46, %v8454_v43  ;;  %v4318_v53 = vsub.f32 1.0, %v4317_v50  ;;  %v3787_v13 = vadd.f32 %v3745_v26, %v3562_v0  ;;  %v3177_v43 = vadd.f32 %v3138_v55, %v2784_v24  ;;  %vm4323_vm10 = vmor %vm4321_vm4, %vm4322_vm0  ;;  %v3529_v50 = vpop.f32.mrf.mxu0 }
 0x48f   : > { %v4342_v16 = vand.u32 2147483648, %v8513_v5  ;;  %vm4336_vm11 = vweird.f32 %v8513_v5  ;;  %vm4341_vm13 = vcmp.eq.f32.partialorder %v4340_v54, 8.507059e+37  ;;  %v3144_v55 = vadd.f32 %v3143_v52, %v9244_v47 }
 0x490   : > { %v4491_v44 = vadd.f32 %v5377_v21, %v4459_v12  ;;  %v4319_v38 = vmul.f32 %v5307_v60, %v4318_v53  ;;  %v8525_v57 = vadd.f32 %v8305_v2, %v3787_v13  ;;  %v9245_v53 = vld [vmem:[#allocation67_spill] sm:$0xff]  ;;  %v9246_v13 = vld [vmem:[#allocation128_spill] sm:$0xff] }
 0x491   : > { %v3410_v8 = vpop.f32.mrf.mxu3  ;;  %v4343_v41 = vor.u32 1.1754944e-38, %v4342_v16  ;;  %v2790_v48 = vadd.f32 %v9246_v13, %v9245_v53  ;;  %v5380_v16 = vld [vmem:[%s5961_s19 + $0xd0] sm:$0xff] }
 0x492   : > { %v3524_v3 = vadd.f32 %v3523_v27, %v3410_v8  ;;  %v5309_v58 = vpop.eup %5308  ;;  %4523 = vst [vmem:[%s7967_s16 + $0xb8] sm:$0xff] %v4491_v44  ;;  %v4320_v29 = vadd.f32 %v5307_v60, %v4319_v38  ;;  %v4884_v32 = vmul.f32 -1.442695, %v8525_v57 }
 0x493   : > { %v5311_v35 = vpop.eup %5310  ;;  %v8530_v22 = vadd.f32 1.0, %v5309_v58  ;;  %v3179_v38 = vadd.f32 %v3144_v55, %v2790_v48 }
 0x494   : > { %v3563_v51 = vadd.f32 %v3524_v3, %v3177_v43  ;;  %v4324_v33 = vsel %vm4323_vm10, %v5307_v60, %v4320_v29  ;;  %v4332_v25 = vmul.f32 %v5311_v35, %v8513_v5  ;;  %5312 = vpow2.f32 %v4884_v32  ;;  %v3754_v8 = vpop.f32.mrf.mxu1  ;;  %v3146_v3 = vpop.f32.mrf.mxu2 }
 0x495   : > { %v4329_v34 = vsel %vm4326_vm12, %v4328_v63, %v4324_v33  ;;  %5314 = vrcp.f32 %v8530_v22  ;;  %vm4337_vm14 = vweird.f32 %v5311_v35  ;;  %v4355_v19 = vand.u32 2147483647, %v8530_v22 }
 0x496   : > { %v4460_v9 = vmul.f32 %v4329_v34, %v8474_v1  ;;  %v4333_v26 = vsub.f32 1.0, %v4332_v25  ;;  %v3788_v14 = vadd.f32 %v3748_v36, %v3563_v51  ;;  %v3178_v1 = vadd.f32 %v3141_v20, %v2787_v59  ;;  %vm4338_vm15 = vmor %vm4336_vm11, %vm4337_vm14  ;;  %v5379_v36 = vld [vmem:[%s5961_s19 + $0xc8] sm:$0xff]  ;;  %v9247_v25 = vld [vmem:[#allocation63_spill] sm:$0xff] }
 0x497   : > { %v4357_v24 = vand.u32 2147483648, %v8530_v22  ;;  %vm4351_vm3 = vweird.f32 %v8530_v22  ;;  %vm4356_vm5 = vcmp.eq.f32.partialorder %v4355_v19, 8.507059e+37  ;;  %v3147_v45 = vadd.f32 %v3146_v3, %v9247_v25 }
 0x498   : > { %v4492_v10 = vadd.f32 %v5378_v49, %v4460_v9  ;;  %v4334_v4 = vmul.f32 %v5311_v35, %v4333_v26  ;;  %v8542_v30 = vadd.f32 %v8305_v2, %v3788_v14  ;;  %v3532_v26 = vpop.f32.mrf.mxu0  ;;  %v9248_v14 = vld [vmem:[#allocation44_spill] sm:$0xff] }
 0x499   : > { %v3413_v42 = vpop.f32.mrf.mxu3  ;;  %v2793_v6 = vadd.f32 %v9249_v56, %v9248_v14 }
 0x49a   : > { %v3527_v11 = vadd.f32 %v3526_v23, %v3413_v42  ;;  %v5313_v61 = vpop.eup %5312  ;;  %4524 = vst [vmem:[%s7967_s16 + $0xc0] sm:$0xff] %v4492_v10  ;;  %v4335_v62 = vadd.f32 %v5311_v35, %v4334_v4  ;;  %v4885_v27 = vmul.f32 -1.442695, %v8542_v30 }
 0x49b   : > { %v5315_v37 = vpop.eup %5314  ;;  %v8547_v60 = vadd.f32 1.0, %v5313_v61 }
 0x49c   : > { %v3564_v15 = vadd.f32 %v3527_v11, %v3178_v1  ;;  %v4339_v0 = vsel %vm4338_vm15, %v5311_v35, %v4335_v62  ;;  %v4347_v18 = vmul.f32 %v5315_v37, %v8530_v22  ;;  %5316 = vpow2.f32 %v4885_v27 }
 0x49d   : > { %v4344_v46 = vsel %vm4341_vm13, %v4343_v41, %v4339_v0  ;;  %5318 = vrcp.f32 %v8547_v60  ;;  %vm4352_vm6 = vweird.f32 %v5315_v37  ;;  %v4358_v35 = vor.u32 1.1754944e-38, %v4357_v24  ;;  %v3757_v41 = vpop.f32.mrf.mxu1 }
 0x49e   : > { %v4461_v5 = vmul.f32 %v4344_v46, %v8491_v7  ;;  %v4348_v40 = vsub.f32 1.0, %v4347_v18  ;;  %v3789_v12 = vadd.f32 %v3751_v28, %v3564_v15  ;;  %vm4353_vm9 = vmor %vm4351_vm3, %vm4352_vm6  ;;  %v4370_v59 = vand.u32 2147483647, %v8547_v60 }
 0x49f   : > { %v4372_v54 = vand.u32 2147483648, %v8547_v60  ;;  %vm4366_vm1 = vweird.f32 %v8547_v60 }
 0x4a0   : > { %v4493_v31 = vadd.f32 %v5379_v36, %v4461_v5  ;;  %v4349_v39 = vmul.f32 %v5315_v37, %v4348_v40  ;;  %v8559_v21 = vadd.f32 %v8305_v2, %v3789_v12  ;;  %vm4371_vm8 = vcmp.eq.f32.partialorder %v4370_v59, 8.507059e+37  ;;  %v5381_v5 = vld [vmem:[%s5961_s19 + $0xd8] sm:$0xff] }
 0x4a1   : > { %v3416_v44 = vpop.f32.mrf.mxu3  ;;  %v4373_v62 = vor.u32 1.1754944e-38, %v4372_v54 }
 0x4a2   : > { %v3530_v7 = vadd.f32 %v3529_v50, %v3416_v44  ;;  %v5317_v43 = vpop.eup %5316  ;;  %4525 = vst [vmem:[%s7967_s16 + $0xc8] sm:$0xff] %v4493_v31  ;;  %v4350_v58 = vadd.f32 %v5315_v37, %v4349_v39  ;;  %v4886_v29 = vmul.f32 -1.442695, %v8559_v21 }
 0x4a3   : > { %v5319_v32 = vpop.eup %5318  ;;  %v3952_v63 = vadd.f32 1.0, %v5317_v43 }
 0x4a4   : > { %v3565_v51 = vadd.f32 %v3530_v7, %v3179_v38  ;;  %v4354_v23 = vsel %vm4353_vm9, %v5315_v37, %v4350_v58  ;;  %v4362_v33 = vmul.f32 %v5319_v32, %v8547_v60  ;;  %5320 = vpow2.f32 %v4886_v29 }
 0x4a5   : > { %v4359_v20 = vsel %vm4356_vm5, %v4358_v35, %v4354_v23  ;;  %5322 = vrcp.f32 %v3952_v63  ;;  %vm4367_vm2 = vweird.f32 %v5319_v32  ;;  %v4385_v55 = vand.u32 2147483647, %v3952_v63 }
 0x4a6   : > { %v4462_v34 = vmul.f32 %v4359_v20, %v8508_v17  ;;  %v4363_v22 = vsub.f32 1.0, %v4362_v33  ;;  %v3790_v9 = vadd.f32 %v3754_v8, %v3565_v51  ;;  %v3180_v17 = vadd.f32 %v3147_v45, %v2793_v6  ;;  %vm4368_vm7 = vmor %vm4366_vm1, %vm4367_vm2  ;;  %v5382_v8 = vld [vmem:[%s5961_s19 + $0xe0] sm:$0xff] }
 0x4a7   : > { %v4387_v46 = vand.u32 2147483648, %v3952_v63  ;;  %vm4381_vm4 = vweird.f32 %v3952_v63  ;;  %vm4386_vm12 = vcmp.eq.f32.partialorder %v4385_v55, 8.507059e+37 }
 0x4a8   : > { %v4494_v52 = vadd.f32 %v5380_v16, %v4462_v34  ;;  %v4364_v49 = vmul.f32 %v5319_v32, %v4363_v22  ;;  %v8573_v10 = vadd.f32 %v8305_v2, %v3790_v9  ;;  %v5383_v34 = vld [vmem:[%s5961_s19 + $0xe8] sm:$0xff] }
 0x4a9   : > { %v3419_v4 = vpop.f32.mrf.mxu3 }
 0x4aa   : > { %v3533_v42 = vadd.f32 %v3532_v26, %v3419_v4  ;;  %v5321_v1 = vpop.eup %5320  ;;  %4526 = vst [vmem:[%s7967_s16 + $0xd0] sm:$0xff] %v4494_v52  ;;  %v4365_v28 = vadd.f32 %v5319_v32, %v4364_v49  ;;  %v4887_v11 = vmul.f32 -1.442695, %v8573_v10  ;;  %v5384_v4 = vld [vmem:[%s5961_s19 + $0xf0] sm:$0xff] }
 0x4ab   : > { %v5323_v61 = vpop.eup %5322  ;;  %v3953_v27 = vadd.f32 1.0, %v5321_v1 }
 0x4ac   : > { %v3566_v37 = vadd.f32 %v3533_v42, %v3180_v17  ;;  %v4369_v15 = vsel %vm4368_vm7, %v5319_v32, %v4365_v28  ;;  %v4377_v0 = vmul.f32 %v5323_v61, %v3952_v63  ;;  %5324 = vpow2.f32 %v4887_v11 }
 0x4ad   : > { %v4374_v18 = vsel %vm4371_vm8, %v4373_v62, %v4369_v15  ;;  %5326 = vrcp.f32 %v3953_v27  ;;  %vm4382_vm0 = vweird.f32 %v5323_v61  ;;  %v4402_v7 = vand.u32 2147483648, %v3953_v27 }
 0x4ae   : > { %v4463_v50 = vmul.f32 %v4374_v18, %v8525_v57  ;;  %v4378_v47 = vsub.f32 1.0, %v4377_v0  ;;  %v3791_v60 = vadd.f32 %v3757_v41, %v3566_v37  ;;  %vm4383_vm10 = vmor %vm4381_vm4, %vm4382_vm0  ;;  %v4388_v57 = vor.u32 1.1754944e-38, %v4387_v46 }
 0x4af   : > { %v4400_v58 = vand.u32 2147483647, %v3953_v27  ;;  %vm4396_vm11 = vweird.f32 %v3953_v27  ;;  %v4403_v63 = vor.u32 1.1754944e-38, %v4402_v7 }
 0x4b0   : > { %v4495_v40 = vadd.f32 %v5381_v5, %v4463_v50  ;;  %v4379_v12 = vmul.f32 %v5323_v61, %v4378_v47  ;;  %v8581_v53 = vadd.f32 %v8305_v2, %v3791_v60 }
 0x4b1   : > { %vm4401_vm13 = vcmp.eq.f32.partialorder %v4400_v58, 8.507059e+37 }
 0x4b2   : > { %v5325_v13 = vpop.eup %5324  ;;  %4527 = vst [vmem:[%s7967_s16 + $0xd8] sm:$0xff] %v4495_v40  ;;  %v4380_v48 = vadd.f32 %v5323_v61, %v4379_v12  ;;  %v4888_v19 = vmul.f32 -1.442695, %v8581_v53 }
 0x4b3   : > { %v5327_v24 = vpop.eup %5326  ;;  %v3954_v36 = vadd.f32 1.0, %v5325_v13 }
 0x4b4   : > { %v4384_v31 = vsel %vm4383_vm10, %v5323_v61, %v4380_v48  ;;  %v4392_v39 = vmul.f32 %v5327_v24, %v3953_v27  ;;  %5328 = vpow2.f32 %v4888_v19  ;;  %vm4397_vm14 = vweird.f32 %v5327_v24  ;;  %v5385_v27 = vld [vmem:[%s5961_s19 + $0xf8] sm:$0xff] }
 0x4b5   : > { %v4389_v44 = vsel %vm4386_vm12, %v4388_v57, %v4384_v31  ;;  %5330 = vrcp.f32 %v3954_v36  ;;  %vm4398_vm15 = vmor %vm4396_vm11, %vm4397_vm14  ;;  %v4417_v20 = vand.u32 2147483648, %v3954_v36  ;;  %v4415_v26 = vand.u32 2147483647, %v3954_v36 }
 0x4b6   : > { %v4464_v2 = vmul.f32 %v4389_v44, %v8542_v30  ;;  %v4393_v38 = vsub.f32 1.0, %v4392_v39  ;;  %vm4411_vm3 = vweird.f32 %v3954_v36 }
 0x4b7   : > { %v4418_v6 = vor.u32 1.1754944e-38, %v4417_v20  ;;  %vm4416_vm5 = vcmp.eq.f32.partialorder %v4415_v26, 8.507059e+37 }
 0x4b8   : > { %v4496_v43 = vadd.f32 %v5382_v8, %v4464_v2  ;;  %v4394_v3 = vmul.f32 %v5327_v24, %v4393_v38 }
 0x4ba   : > { %v5329_v29 = vpop.eup %5328  ;;  %4528 = vst [vmem:[%s7967_s16 + $0xe0] sm:$0xff] %v4496_v43  ;;  %v4395_v32 = vadd.f32 %v5327_v24, %v4394_v3 }
 0x4bb   : > { %v5331_v35 = vpop.eup %5330  ;;  %v3955_v51 = vadd.f32 1.0, %v5329_v29 }
 0x4bc   : > { %v4399_v23 = vsel %vm4398_vm15, %v5327_v24, %v4395_v32  ;;  %v4407_v30 = vmul.f32 %v5331_v35, %v3954_v36  ;;  %vm4412_vm6 = vweird.f32 %v5331_v35 }
 0x4bd   : > { %v4404_v33 = vsel %vm4401_vm13, %v4403_v63, %v4399_v23  ;;  %5332 = vrcp.f32 %v3955_v51  ;;  %vm4413_vm9 = vmor %vm4411_vm3, %vm4412_vm6  ;;  %v4432_v49 = vand.u32 2147483648, %v3955_v51  ;;  %v4430_v1 = vand.u32 2147483647, %v3955_v51 }
 0x4be   : > { %v4465_v25 = vmul.f32 %v4404_v33, %v8559_v21  ;;  %v4408_v45 = vsub.f32 1.0, %v4407_v30  ;;  %vm4426_vm1 = vweird.f32 %v3955_v51 }
 0x4bf   : > { %vm4431_vm8 = vcmp.eq.f32.partialorder %v4430_v1, 8.507059e+37 }
 0x4c0   : > { %v4497_v22 = vadd.f32 %v5383_v34, %v4465_v25  ;;  %v4409_v9 = vmul.f32 %v5331_v35, %v4408_v45 }
 0x4c2   : > { %4529 = vst [vmem:[%s7967_s16 + $0xe8] sm:$0xff] %v4497_v22  ;;  %v4410_v14 = vadd.f32 %v5331_v35, %v4409_v9 }
 0x4c3   : > { %v5333_v56 = vpop.eup %5332 }
 0x4c4   : > { %v4414_v59 = vsel %vm4413_vm9, %v5331_v35, %v4410_v14  ;;  %v4422_v54 = vmul.f32 %v5333_v56, %v3955_v51  ;;  %vm4427_vm2 = vweird.f32 %v5333_v56 }
 0x4c5   : > { %v4419_v21 = vsel %vm4416_vm5, %v4418_v6, %v4414_v59  ;;  %vm4428_vm7 = vmor %vm4426_vm1, %vm4427_vm2 }
 0x4c6   : > { %v4466_v16 = vmul.f32 %v4419_v21, %v8573_v10  ;;  %v4423_v52 = vsub.f32 1.0, %v4422_v54  ;;  %v4433_v10 = vor.u32 1.1754944e-38, %v4432_v49 }
 0x4c8   : > { %v4498_v17 = vadd.f32 %v5384_v4, %v4466_v16  ;;  %v4424_v42 = vmul.f32 %v5333_v56, %v4423_v52 }
 0x4ca   : > { %4530 = vst [vmem:[%s7967_s16 + $0xf0] sm:$0xff] %v4498_v17  ;;  %v4425_v28 = vadd.f32 %v5333_v56, %v4424_v42 }
 0x4cc   : > { %v4429_v11 = vsel %vm4428_vm7, %v5333_v56, %v4425_v28 }
 0x4cd   : > { %v4434_v61 = vsel %vm4431_vm8, %v4433_v10, %v4429_v11 }
 0x4ce   : > { %v4467_v62 = vmul.f32 %v4434_v61, %v8581_v53 }
 0x4d0   : > { %v4499_v37 = vadd.f32 %v5385_v27, %v4467_v62 }
 0x4d2   : > { %4531 = vst [vmem:[%s7967_s16 + $0xf8] sm:$0xff] %v4499_v37 }
 0x4d3   : > { %5563 = shalt.err (!%p5560_p0)
}
 0x4d4   : > { %s5685_s22 = smov 128   ;;  %s5686_s19 = smov 8  }
 0x4d5   : > { %4944 = dma.vmem_to_hbm [thread:$0]  (%p9252_p4), %s4547_s13, 4096, %s4549_s20, %s4533_s11, %s5685_s22, %s5685_s22, %s5686_s19  }
 0x4d6 PF: > { %s4563_s16 = sand.u32 1, %s5658_s30   ;;  %p9253_p9 = scmp.ne.s32.totalorder %s8787_s10, 0 }
 0x4d7   : > { %p9254_p13 = scmp.ge.s32.totalorder %s5678_s12, 2  ;;  %s4564_s0 = scalar_lea.sflag [#allocation5], %s4563_s16 }
 0x4d9   : > { %p4964_p6 = pnand %p9254_p13, %p9253_p9 }
 0x4db   : > { %p4965_p8 = pneg %p4964_p6 }
 0x4dd   : > { %5629 = dma.done.wait (%p4965_p8), %s4564_s0, 4096  }
 0x4de   : > { %5631 = vsyncadd (%p4965_p8), %s4564_s0, 4294963200  ;;  %s27_s12 = sadd.s32 1, %s5678_s12   ;;  %s9255_s7 = sld [smem:[#allocation18_spill]] }
 0x4df   : > { %p24_p1 = scmp.ge.s32.totalorder %s27_s12, 4   ;;  %s9256_s17 = smov %s5853_s28 }
 0x4e0   : > { %s9257_s18 = smov %s5881_s27  ;;  %s9258_s10 = sld [smem:[#allocation20_spill]] }
 0x4e1   : > { %s9259_s11 = sld [smem:[#allocation22_spill]]  ;;  %s9260_s24 = smov %s5638_s25 }
 0x4e2   : > { %s9261_s25 = smov %s5642_s26  ;;  %s9262_s26 = smov %s5941_s5 }
 0x4e3   : > { %s9264_s28 = smov %s5654_s29  ;;  %s9265_s29 = smov %s9256_s17 }
 0x4e4   : > { %s9263_s27 = smov %s9255_s7  ;;  %s9266_s30 = smov %s5662_s8 }
 0x4e5   : > { %s9267_s8 = smov %s5666_s9  ;;  %s9268_s9 = smov %s9257_s18 }
 0x4e6   :  { %26 = sbr.rel (!%p24_p1) target bundleno = 21 (0x15), region = 141 }
 0x4eb   :  { %4570 = vsyncpa [#allocation4], 1 }
 0x4ec   :  { %4572 = vsyncpa [#allocation4 + $0x1], 1 }
 0x4ed   :  { %4573 = vsyncpa [#allocation7], 1 }
 0x4ee   :  { %4575 = vsyncpa [#allocation7 + $0x1], 1 }
 0x4ef   :  { %4576 = vsyncpa [#allocation10], 1 }
 0x4f0   :  { %4577 = vsyncpa [#allocation5], 1 }
 0x4f1   :  { %4579 = vsyncpa [#allocation5 + $0x1], 1 }

</bundles_post_ra>
